<compile_context>
chip_gen: v5e
topology: v5e:2x2
jax: 0.10.0
libtpu: 0.0.40
codegen_flags: <defaults>
</compile_context>

<pallas_src>
import jax
import jax.numpy as jnp
from jax import lax
from jax.experimental import pallas as pl
from jax.experimental.pallas import tpu as pltpu

D_HEAD = 128      # head projection width (Conv2d(1024, 128, 1))
N_CODES = 32      # Encoding codewords K
BN_EPS = 1e-5     # nn.BatchNorm2d default eps
NORM_EPS = 1e-12  # F.normalize default eps


# ---------------------------------------------------------------------------
# Fused kernel: per (batch, spatial-tile):
#   y  = relu(W' @ x + b')                       (D, tile_n)   [1x1 conv + BN]
#   SL = s*||y||^2 + s*||c||^2 - 2*s*(c @ y)     (K, tile_n)
#   A  = softmax_K(SL)
#   E += A @ y^T ,  m += sum_n A                 (VMEM accumulators)
# last tile:  E -= m*c ;  logits = (vec(E) @ Wfc)/max(||E||,eps) + bfc
# ---------------------------------------------------------------------------
def _deepten_kernel(x_ref, w_ref, b_ref, cs_ref, c_ref, s_ref, sc2_ref,
                    wf_ref, bfc_ref, o_ref, e_acc, asum_acc, ef_ref):
    j = pl.program_id(1)
    nt = pl.num_programs(1)

    @pl.when(j == 0)
    def _():
        e_acc[...] = jnp.zeros_like(e_acc)
        asum_acc[...] = jnp.zeros_like(asum_acc)

    # ---- 1x1 conv + folded BatchNorm + ReLU (canonical matmul, bf16 in / f32 acc)
    x = x_ref[0]                                                       # (C, tile_n) bf16
    y = jnp.dot(w_ref[...], x, preferred_element_type=jnp.float32)     # (D, tile_n)
    y = jnp.maximum(y + b_ref[...], 0.0)

    # ---- Scaled-L2 assignment softmax, lane-dense (K, tile_n) layout.
    x2 = jnp.sum(y * y, axis=0, keepdims=True)                         # (1, tile_n)
    xc = jnp.dot(cs_ref[...], y, preferred_element_type=jnp.float32)   # (K, tile_n) = 2*s_k*<c_k,y_n>
    sl = s_ref[...] * x2 + sc2_ref[...] - xc                           # (K, tile_n)
    m = jnp.max(sl, axis=0, keepdims=True)
    p = jnp.exp(sl - m)
    denom = jnp.sum(p, axis=0, keepdims=True)
    a = p * pl.reciprocal(denom, approx=True)                          # (K, tile_n)

    # ---- Residual aggregation, accumulated across spatial tiles.
    e_acc[...] += lax.dot_general(a, y, (((1,), (1,)), ((), ())),
                                  preferred_element_type=jnp.float32)  # (K, D)
    asum_acc[...] += jnp.sum(a, axis=1, keepdims=True)                 # (K, 1)

    # ---- Last spatial tile: finish encoding, L2-normalize, Linear.
    @pl.when(j == nt - 1)
    def _():
        e = e_acc[...] - asum_acc[...] * c_ref[...]                    # (K, D)
        ss = jnp.sum(jnp.sum(e * e, axis=1, keepdims=True),
                     axis=0, keepdims=True)                            # (1, 1)
        inv = lax.rsqrt(jnp.maximum(ss, NORM_EPS * NORM_EPS))          # 1/max(||E||,eps)
        # Flatten (K, D) -> (1, K*D) via a 16 KiB scratch (lane-aligned stores),
        # then a single classifier matmul (no serialized M=1 chain).
        e_acc[...] = e
        for k in range(N_CODES):
            ef_ref[0:1, k * D_HEAD:(k + 1) * D_HEAD] = e_acc[k:k + 1, :]
        raw = jnp.dot(ef_ref[...], wf_ref[...],
                      preferred_element_type=jnp.float32)              # (1, P)
        o_ref[0] = raw * inv + bfc_ref[...]


def _pick_tile(n):
    for t in (512, 256, 128):
        if n % t == 0:
            return t
    return n  # small / odd spatial sizes: one full-N block (still legal)


# ---------------------------------------------------------------------------
# Wrapper: DeepTen.head forward on a backbone feature map (NCHW, 1024 chans).
# ---------------------------------------------------------------------------
def deepten_head(x_feat, params):
    b, c, h, w = x_feat.shape
    n = h * w
    d = D_HEAD
    k = N_CODES
    nclass = params["w_fc"].shape[1]

    tile_n = _pick_tile(n)
    num_tiles = n // tile_n

    # Native layout: NCHW -> (B, C, N) is a free reshape; bf16 feed for the
    # HBM-bound projection (f32 accumulation in-kernel).
    x_bcn = x_feat.reshape(b, c, n).astype(jnp.bfloat16)

    # Fold eval-mode BatchNorm and the conv bias into the 1x1-conv weights,
    # pre-transposed to (D, Cin) so the in-kernel matmul is canonical.
    inv_bn = params["bn_gamma"] * lax.rsqrt(params["bn_var"] + BN_EPS)    # (1, D)
    w_t = (params["w_conv"] * inv_bn).T.astype(jnp.bfloat16)              # (D, Cin)
    b_col = (params["bn_beta"]
             + (params["b_conv"] - params["bn_mean"]) * inv_bn).reshape(d, 1)

    # Fold the Encoding smoothing factors into the codeword operands.
    scale_col = params["scale"].reshape(k, 1)                             # (K, 1)
    cw = params["codewords"]                                              # (K, D)
    c_s = 2.0 * scale_col * cw                                            # (K, D)
    sc2 = scale_col * jnp.sum(cw * cw, axis=1, keepdims=True)             # (K, 1)

    # Pad classifier columns to a lane-dense multiple of 128; slice outside.
    p_pad = ((nclass + 127) // 128) * 128
    w_fc_pad = jnp.pad(params["w_fc"], ((0, 0), (0, p_pad - nclass)))     # (K*D, P)
    b_fc_pad = jnp.pad(params["b_fc"], ((0, 0), (0, p_pad - nclass)))     # (1, P)

    cost = pl.CostEstimate(
        flops=int(2 * b * n * c * d + 4 * b * n * k * d + 2 * b * k * d * p_pad),
        transcendentals=int(b * n * k),
        bytes_accessed=int(2 * b * c * n + 2 * d * c
                           + 4 * (2 * k * d + 2 * k + d + k * d * p_pad
                                  + p_pad + b * p_pad)),
    )

    out = pl.pallas_call(
        _deepten_kernel,
        out_shape=jax.ShapeDtypeStruct((b, 1, p_pad), jnp.float32),
        grid_spec=pltpu.PrefetchScalarGridSpec(
            num_scalar_prefetch=0,
            grid=(b, num_tiles),
            in_specs=[
                pl.BlockSpec((1, c, tile_n), lambda i, j: (i, 0, j)),   # x
                pl.BlockSpec((d, c), lambda i, j: (0, 0)),              # W' (bf16)
                pl.BlockSpec((d, 1), lambda i, j: (0, 0)),              # b'
                pl.BlockSpec((k, d), lambda i, j: (0, 0)),              # 2*s*c
                pl.BlockSpec((k, d), lambda i, j: (0, 0)),              # c
                pl.BlockSpec((k, 1), lambda i, j: (0, 0)),              # s
                pl.BlockSpec((k, 1), lambda i, j: (0, 0)),              # s*||c||^2
                pl.BlockSpec((k * d, p_pad), lambda i, j: (0, 0)),      # W_fc (padded)
                pl.BlockSpec((1, p_pad), lambda i, j: (0, 0)),          # b_fc (padded)
            ],
            out_specs=pl.BlockSpec((1, 1, p_pad), lambda i, j: (i, 0, 0)),
            scratch_shapes=[
                pltpu.VMEM((k, d), jnp.float32),      # E accumulator
                pltpu.VMEM((k, 1), jnp.float32),      # assignment-mass accumulator
                pltpu.VMEM((1, k * d), jnp.float32),  # flattened E for the classifier
            ],
        ),
        compiler_params=pltpu.CompilerParams(
            dimension_semantics=("parallel", "arbitrary"),
            vmem_limit_bytes=32 * 1024 * 1024),
        cost_estimate=cost,
    )(x_bcn, w_t, b_col, c_s, cw, scale_col, sc2, w_fc_pad, b_fc_pad)

    return out.reshape(b, p_pad)[:, :nclass]


def init_params(key, nclass, cin=1024):
    ks = jax.random.split(key, 10)
    feat = D_HEAD * N_CODES
    std1 = 1.0 / ((N_CODES * D_HEAD) ** 0.5)      # Encoding codeword init std
    bound_fc = 1.0 / (feat ** 0.5)                # nn.Linear default init bound
    return {
        # Conv2d(1024, 128, 1): weight stored transposed as (Cin, Cout)
        "w_conv": jax.random.normal(ks[0], (cin, D_HEAD), jnp.float32)
                  * (1.0 / (cin ** 0.5)),
        "b_conv": 0.01 * jax.random.normal(ks[1], (1, D_HEAD), jnp.float32),
        # BatchNorm2d(128) eval-mode parameters / running stats
        "bn_gamma": 1.0 + 0.1 * jax.random.normal(ks[2], (1, D_HEAD), jnp.float32),
        "bn_beta": 0.1 * jax.random.normal(ks[3], (1, D_HEAD), jnp.float32),
        "bn_mean": 0.1 * jax.random.normal(ks[4], (1, D_HEAD), jnp.float32),
        "bn_var": jnp.abs(jax.random.normal(ks[5], (1, D_HEAD), jnp.float32)) + 0.5,
        # Encoding(D=128, K=32)
        "codewords": jax.random.uniform(ks[6], (N_CODES, D_HEAD), jnp.float32,
                                        -std1, std1),
        "scale": jax.random.uniform(ks[7], (1, N_CODES), jnp.float32, -1.0, 0.0),
        # Linear(128*32, nclass): weight stored transposed as (feat, nclass)
        "w_fc": jax.random.uniform(ks[8], (feat, nclass), jnp.float32,
                                   -bound_fc, bound_fc),
        "b_fc": jax.random.uniform(ks[9], (1, nclass), jnp.float32,
                                   -bound_fc, bound_fc),
    }


if __name__ == "__main__":
    NCLASS = 10
    key = jax.random.PRNGKey(0)
    kx, kp = jax.random.split(key)

    # x = pretrained.forward_features(image): NCHW feature map, 1024 channels.
    # H=W=32 -> N=1024 -> two 512-wide spatial tiles (exercises the fused
    # accumulator path) while staying small.
    B, C, H, W = 2, 1024, 32, 32
    x = jax.random.normal(kx, (B, C, H, W), jnp.float32)
    params = init_params(kp, NCLASS, cin=C)

    out = jax.jit(deepten_head)(x, params)
    out = jax.block_until_ready(out)
    assert out.shape == (B, NCLASS) and out.dtype == jnp.float32
    print("KERNEL_OK")
</pallas_src>

<mosaic_0001>
module attributes {stable_mosaic.version = 11 : i64} {
  func.func @_deepten_kernel(%arg0: i32, %arg1: i32, %arg2: memref<1x1024x512xbf16, #tpu.memory_space<vmem>>, %arg3: memref<128x1024xbf16, #tpu.memory_space<vmem>>, %arg4: memref<128x1xf32, #tpu.memory_space<vmem>>, %arg5: memref<32x128xf32, #tpu.memory_space<vmem>>, %arg6: memref<32x128xf32, #tpu.memory_space<vmem>>, %arg7: memref<32x1xf32, #tpu.memory_space<vmem>>, %arg8: memref<32x1xf32, #tpu.memory_space<vmem>>, %arg9: memref<4096x128xf32, #tpu.memory_space<vmem>>, %arg10: memref<1x128xf32, #tpu.memory_space<vmem>>, %arg11: memref<1x1x128xf32, #tpu.memory_space<vmem>>, %arg12: memref<32x128xf32, #tpu.memory_space<vmem>>, %arg13: memref<32x1xf32, #tpu.memory_space<vmem>>, %arg14: memref<1x4096xf32, #tpu.memory_space<vmem>>) attributes {dimension_semantics = [#tpu.dimension_semantics<parallel>, #tpu.dimension_semantics<arbitrary>], iteration_bounds = array<i64: 2, 2>, scalar_prefetch = 0 : i64, scratch_operands = 3 : i64, tpu.core_type = #tpu.core_type<tc>, window_params = [{transform_indices = @transform_0, window_bounds = array<i64: 1, 1024, 512>}, {pipeline_mode = #tpu.pipeline_mode<synchronous>, transform_indices = @transform_1, window_bounds = array<i64: 128, 1024>}, {pipeline_mode = #tpu.pipeline_mode<synchronous>, transform_indices = @transform_2, window_bounds = array<i64: 128, 1>}, {pipeline_mode = #tpu.pipeline_mode<synchronous>, transform_indices = @transform_3, window_bounds = array<i64: 32, 128>}, {pipeline_mode = #tpu.pipeline_mode<synchronous>, transform_indices = @transform_4, window_bounds = array<i64: 32, 128>}, {pipeline_mode = #tpu.pipeline_mode<synchronous>, transform_indices = @transform_5, window_bounds = array<i64: 32, 1>}, {pipeline_mode = #tpu.pipeline_mode<synchronous>, transform_indices = @transform_6, window_bounds = array<i64: 32, 1>}, {pipeline_mode = #tpu.pipeline_mode<synchronous>, transform_indices = @transform_7, window_bounds = array<i64: 4096, 128>}, {pipeline_mode = #tpu.pipeline_mode<synchronous>, transform_indices = @transform_8, window_bounds = array<i64: 1, 128>}, {transform_indices = @transform_9, window_bounds = array<i64: 1, 1, 128>}]} {
    %c0_i32 = arith.constant 0 : i32
    %0 = arith.cmpi eq, %arg1, %c0_i32 : i32
    %1 = arith.extui %0 : i1 to i32
    %c0_i32_0 = arith.constant 0 : i32
    %2 = arith.cmpi ne, %1, %c0_i32_0 : i32
    scf.if %2 {
      %cst_29 = arith.constant 0.000000e+00 : f32
      %47 = vector.broadcast %cst_29 : f32 to vector<32x128xf32>
      %c0_30 = arith.constant 0 : index
      %c0_31 = arith.constant 0 : index
      %48 = vector.load %arg12[%c0_30, %c0_31] : memref<32x128xf32, #tpu.memory_space<vmem>>, vector<32x128xf32>
      tpu.vector_store %arg12[%c0_30, %c0_31], %47 {strides = array<i32>} : memref<32x128xf32, #tpu.memory_space<vmem>>, vector<32x128xf32>,
      %cst_32 = arith.constant 0.000000e+00 : f32
      %49 = vector.broadcast %cst_32 : f32 to vector<32x1xf32>
      %c0_33 = arith.constant 0 : index
      %c0_34 = arith.constant 0 : index
      %50 = vector.load %arg13[%c0_33, %c0_34] : memref<32x1xf32, #tpu.memory_space<vmem>>, vector<32x1xf32>
      tpu.vector_store %arg13[%c0_33, %c0_34], %49 {strides = array<i32>} : memref<32x1xf32, #tpu.memory_space<vmem>>, vector<32x1xf32>,
    } else {
    }
    %c0 = arith.constant 0 : index
    %c0_1 = arith.constant 0 : index
    %c0_2 = arith.constant 0 : index
    %3 = vector.load %arg2[%c0, %c0_1, %c0_2] : memref<1x1024x512xbf16, #tpu.memory_space<vmem>>, vector<1x1024x512xbf16>
    %4 = vector.shape_cast %3 : vector<1x1024x512xbf16> to vector<1024x512xbf16>
    %c0_3 = arith.constant 0 : index
    %c0_4 = arith.constant 0 : index
    %5 = vector.load %arg3[%c0_3, %c0_4] : memref<128x1024xbf16, #tpu.memory_space<vmem>>, vector<128x1024xbf16>
    %cst = arith.constant dense<0.000000e+00> : vector<128x512xf32>
    %6 = tpu.matmul %5, %4, %cst {dimension_numbers = #tpu.dot_dimension_numbers<[1], [0], [0], [1], [0, 0, 1, 1], [], []>} : vector<128x1024xbf16>, vector<1024x512xbf16>, vector<128x512xf32> -> vector<128x512xf32>
    %c0_5 = arith.constant 0 : index
    %c0_6 = arith.constant 0 : index
    %7 = vector.load %arg4[%c0_5, %c0_6] : memref<128x1xf32, #tpu.memory_space<vmem>>, vector<128x1xf32>
    %8 = vector.broadcast %7 : vector<128x1xf32> to vector<128x512xf32>
    %9 = arith.addf %6, %8 : vector<128x512xf32>
    %cst_7 = arith.constant 0.000000e+00 : f32
    %10 = vector.broadcast %cst_7 : f32 to vector<128x512xf32>
    %11 = arith.maximumf %9, %10 : vector<128x512xf32>
    %12 = arith.mulf %11, %11 : vector<128x512xf32>
    %cst_8 = arith.constant dense<0.000000e+00> : vector<512xf32>
    %13 = vector.multi_reduction <add>, %12, %cst_8 [0] : vector<128x512xf32> to vector<512xf32>
    %14 = vector.shape_cast %13 : vector<512xf32> to vector<1x512xf32>
    %c0_9 = arith.constant 0 : index
    %c0_10 = arith.constant 0 : index
    %15 = vector.load %arg5[%c0_9, %c0_10] : memref<32x128xf32, #tpu.memory_space<vmem>>, vector<32x128xf32>
    %cst_11 = arith.constant dense<0.000000e+00> : vector<32x512xf32>
    %16 = tpu.matmul %15, %11, %cst_11 {dimension_numbers = #tpu.dot_dimension_numbers<[1], [0], [0], [1], [0, 0, 1, 1], [], []>} : vector<32x128xf32>, vector<128x512xf32>, vector<32x512xf32> -> vector<32x512xf32>
    %c0_12 = arith.constant 0 : index
    %c0_13 = arith.constant 0 : index
    %17 = vector.load %arg7[%c0_12, %c0_13] : memref<32x1xf32, #tpu.memory_space<vmem>>, vector<32x1xf32>
    %18 = vector.broadcast %17 : vector<32x1xf32> to vector<32x512xf32>
    %19 = vector.broadcast %14 : vector<1x512xf32> to vector<32x512xf32>
    %20 = arith.mulf %18, %19 : vector<32x512xf32>
    %c0_14 = arith.constant 0 : index
    %c0_15 = arith.constant 0 : index
    %21 = vector.load %arg8[%c0_14, %c0_15] : memref<32x1xf32, #tpu.memory_space<vmem>>, vector<32x1xf32>
    %22 = vector.broadcast %21 : vector<32x1xf32> to vector<32x512xf32>
    %23 = arith.addf %20, %22 : vector<32x512xf32>
    %24 = arith.subf %23, %16 : vector<32x512xf32>
    %cst_16 = arith.constant dense<0xFF800000> : vector<512xf32>
    %25 = vector.multi_reduction <maximumf>, %24, %cst_16 [0] : vector<32x512xf32> to vector<512xf32>
    %26 = vector.shape_cast %25 : vector<512xf32> to vector<1x512xf32>
    %27 = vector.broadcast %26 : vector<1x512xf32> to vector<32x512xf32>
    %28 = arith.subf %24, %27 : vector<32x512xf32>
    %29 = math.exp %28 : vector<32x512xf32>
    %cst_17 = arith.constant dense<0.000000e+00> : vector<512xf32>
    %30 = vector.multi_reduction <add>, %29, %cst_17 [0] : vector<32x512xf32> to vector<512xf32>
    %31 = vector.shape_cast %30 : vector<512xf32> to vector<1x512xf32>
    %32 = tpu.reciprocal %31 {approx = true} : vector<1x512xf32> -> vector<1x512xf32>
    %33 = vector.broadcast %32 : vector<1x512xf32> to vector<32x512xf32>
    %34 = arith.mulf %29, %33 : vector<32x512xf32>
    %c0_18 = arith.constant 0 : index
    %c0_19 = arith.constant 0 : index
    %35 = vector.load %arg12[%c0_18, %c0_19] : memref<32x128xf32, #tpu.memory_space<vmem>>, vector<32x128xf32>
    %cst_20 = arith.constant dense<0.000000e+00> : vector<32x128xf32>
    %36 = tpu.matmul %34, %11, %cst_20 {dimension_numbers = #tpu.dot_dimension_numbers<[1], [1], [0], [0], [0, 0, 1, 0], [], []>} : vector<32x512xf32>, vector<128x512xf32>, vector<32x128xf32> -> vector<32x128xf32>
    %37 = arith.addf %35, %36 : vector<32x128xf32>
    %c0_21 = arith.constant 0 : index
    %c0_22 = arith.constant 0 : index
    %38 = vector.load %arg12[%c0_21, %c0_22] : memref<32x128xf32, #tpu.memory_space<vmem>>, vector<32x128xf32>
    tpu.vector_store %arg12[%c0_21, %c0_22], %37 {strides = array<i32>} : memref<32x128xf32, #tpu.memory_space<vmem>>, vector<32x128xf32>,
    %c0_23 = arith.constant 0 : index
    %c0_24 = arith.constant 0 : index
    %39 = vector.load %arg13[%c0_23, %c0_24] : memref<32x1xf32, #tpu.memory_space<vmem>>, vector<32x1xf32>
    %cst_25 = arith.constant dense<0.000000e+00> : vector<32xf32>
    %40 = vector.multi_reduction <add>, %34, %cst_25 [1] : vector<32x512xf32> to vector<32xf32>
    %41 = vector.shape_cast %40 : vector<32xf32> to vector<32x1xf32>
    %42 = arith.addf %39, %41 : vector<32x1xf32>
    %c0_26 = arith.constant 0 : index
    %c0_27 = arith.constant 0 : index
    %43 = vector.load %arg13[%c0_26, %c0_27] : memref<32x1xf32, #tpu.memory_space<vmem>>, vector<32x1xf32>
    tpu.vector_store %arg13[%c0_26, %c0_27], %42 {strides = array<i32>} : memref<32x1xf32, #tpu.memory_space<vmem>>, vector<32x1xf32>,
    %c1_i32 = arith.constant 1 : i32
    %44 = arith.cmpi eq, %arg1, %c1_i32 : i32
    %45 = arith.extui %44 : i1 to i32
    %c0_i32_28 = arith.constant 0 : i32
    %46 = arith.cmpi ne, %45, %c0_i32_28 : i32
    scf.if %46 {
      %c0_29 = arith.constant 0 : index
      %c0_30 = arith.constant 0 : index
      %47 = vector.load %arg12[%c0_29, %c0_30] : memref<32x128xf32, #tpu.memory_space<vmem>>, vector<32x128xf32>
      %c0_31 = arith.constant 0 : index
      %c0_32 = arith.constant 0 : index
      %48 = vector.load %arg13[%c0_31, %c0_32] : memref<32x1xf32, #tpu.memory_space<vmem>>, vector<32x1xf32>
      %c0_33 = arith.constant 0 : index
      %c0_34 = arith.constant 0 : index
      %49 = vector.load %arg6[%c0_33, %c0_34] : memref<32x128xf32, #tpu.memory_space<vmem>>, vector<32x128xf32>
      %50 = vector.broadcast %48 : vector<32x1xf32> to vector<32x128xf32>
      %51 = arith.mulf %50, %49 : vector<32x128xf32>
      %52 = arith.subf %47, %51 : vector<32x128xf32>
      %53 = arith.mulf %52, %52 : vector<32x128xf32>
      %cst_35 = arith.constant dense<0.000000e+00> : vector<32xf32>
      %54 = vector.multi_reduction <add>, %53, %cst_35 [1] : vector<32x128xf32> to vector<32xf32>
      %55 = vector.shape_cast %54 : vector<32xf32> to vector<32x1xf32>
      %cst_36 = arith.constant dense<0.000000e+00> : vector<1xf32>
      %56 = vector.multi_reduction <add>, %55, %cst_36 [0] : vector<32x1xf32> to vector<1xf32>
      %57 = vector.shape_cast %56 : vector<1xf32> to vector<1x1xf32>
      %cst_37 = arith.constant 1.000000e-24 : f32
      %58 = vector.broadcast %cst_37 : f32 to vector<1x1xf32>
      %59 = arith.maximumf %57, %58 : vector<1x1xf32>
      %60 = math.rsqrt %59 : vector<1x1xf32>
      %c0_38 = arith.constant 0 : index
      %c0_39 = arith.constant 0 : index
      %61 = vector.load %arg12[%c0_38, %c0_39] : memref<32x128xf32, #tpu.memory_space<vmem>>, vector<32x128xf32>
      tpu.vector_store %arg12[%c0_38, %c0_39], %52 {strides = array<i32>} : memref<32x128xf32, #tpu.memory_space<vmem>>, vector<32x128xf32>,
      %c0_40 = arith.constant 0 : index
      %c0_41 = arith.constant 0 : index
      %62 = vector.load %arg12[%c0_40, %c0_41] : memref<32x128xf32, #tpu.memory_space<vmem>>, vector<1x128xf32>
      %c0_42 = arith.constant 0 : index
      %c0_43 = arith.constant 0 : index
      %63 = vector.load %arg14[%c0_42, %c0_43] : memref<1x4096xf32, #tpu.memory_space<vmem>>, vector<1x128xf32>
      tpu.vector_store %arg14[%c0_42, %c0_43], %62 {strides = array<i32>} : memref<1x4096xf32, #tpu.memory_space<vmem>>, vector<1x128xf32>,
      %c1 = arith.constant 1 : index
      %c0_44 = arith.constant 0 : index
      %64 = vector.load %arg12[%c1, %c0_44] : memref<32x128xf32, #tpu.memory_space<vmem>>, vector<1x128xf32>
      %c0_45 = arith.constant 0 : index
      %c128 = arith.constant 128 : index
      %65 = vector.load %arg14[%c0_45, %c128] : memref<1x4096xf32, #tpu.memory_space<vmem>>, vector<1x128xf32>
      tpu.vector_store %arg14[%c0_45, %c128], %64 {strides = array<i32>} : memref<1x4096xf32, #tpu.memory_space<vmem>>, vector<1x128xf32>,
      %c2 = arith.constant 2 : index
      %c0_46 = arith.constant 0 : index
      %66 = vector.load %arg12[%c2, %c0_46] : memref<32x128xf32, #tpu.memory_space<vmem>>, vector<1x128xf32>
      %c0_47 = arith.constant 0 : index
      %c256 = arith.constant 256 : index
      %67 = vector.load %arg14[%c0_47, %c256] : memref<1x4096xf32, #tpu.memory_space<vmem>>, vector<1x128xf32>
      tpu.vector_store %arg14[%c0_47, %c256], %66 {strides = array<i32>} : memref<1x4096xf32, #tpu.memory_space<vmem>>, vector<1x128xf32>,
      %c3 = arith.constant 3 : index
      %c0_48 = arith.constant 0 : index
      %68 = vector.load %arg12[%c3, %c0_48] : memref<32x128xf32, #tpu.memory_space<vmem>>, vector<1x128xf32>
      %c0_49 = arith.constant 0 : index
      %c384 = arith.constant 384 : index
      %69 = vector.load %arg14[%c0_49, %c384] : memref<1x4096xf32, #tpu.memory_space<vmem>>, vector<1x128xf32>
      tpu.vector_store %arg14[%c0_49, %c384], %68 {strides = array<i32>} : memref<1x4096xf32, #tpu.memory_space<vmem>>, vector<1x128xf32>,
      %c4 = arith.constant 4 : index
      %c0_50 = arith.constant 0 : index
      %70 = vector.load %arg12[%c4, %c0_50] : memref<32x128xf32, #tpu.memory_space<vmem>>, vector<1x128xf32>
      %c0_51 = arith.constant 0 : index
      %c512 = arith.constant 512 : index
      %71 = vector.load %arg14[%c0_51, %c512] : memref<1x4096xf32, #tpu.memory_space<vmem>>, vector<1x128xf32>
      tpu.vector_store %arg14[%c0_51, %c512], %70 {strides = array<i32>} : memref<1x4096xf32, #tpu.memory_space<vmem>>, vector<1x128xf32>,
      %c5 = arith.constant 5 : index
      %c0_52 = arith.constant 0 : index
      %72 = vector.load %arg12[%c5, %c0_52] : memref<32x128xf32, #tpu.memory_space<vmem>>, vector<1x128xf32>
      %c0_53 = arith.constant 0 : index
      %c640 = arith.constant 640 : index
      %73 = vector.load %arg14[%c0_53, %c640] : memref<1x4096xf32, #tpu.memory_space<vmem>>, vector<1x128xf32>
      tpu.vector_store %arg14[%c0_53, %c640], %72 {strides = array<i32>} : memref<1x4096xf32, #tpu.memory_space<vmem>>, vector<1x128xf32>,
      %c6 = arith.constant 6 : index
      %c0_54 = arith.constant 0 : index
      %74 = vector.load %arg12[%c6, %c0_54] : memref<32x128xf32, #tpu.memory_space<vmem>>, vector<1x128xf32>
      %c0_55 = arith.constant 0 : index
      %c768 = arith.constant 768 : index
      %75 = vector.load %arg14[%c0_55, %c768] : memref<1x4096xf32, #tpu.memory_space<vmem>>, vector<1x128xf32>
      tpu.vector_store %arg14[%c0_55, %c768], %74 {strides = array<i32>} : memref<1x4096xf32, #tpu.memory_space<vmem>>, vector<1x128xf32>,
      %c7 = arith.constant 7 : index
      %c0_56 = arith.constant 0 : index
      %76 = vector.load %arg12[%c7, %c0_56] : memref<32x128xf32, #tpu.memory_space<vmem>>, vector<1x128xf32>
      %c0_57 = arith.constant 0 : index
      %c896 = arith.constant 896 : index
      %77 = vector.load %arg14[%c0_57, %c896] : memref<1x4096xf32, #tpu.memory_space<vmem>>, vector<1x128xf32>
      tpu.vector_store %arg14[%c0_57, %c896], %76 {strides = array<i32>} : memref<1x4096xf32, #tpu.memory_space<vmem>>, vector<1x128xf32>,
      %c8 = arith.constant 8 : index
      %c0_58 = arith.constant 0 : index
      %78 = vector.load %arg12[%c8, %c0_58] : memref<32x128xf32, #tpu.memory_space<vmem>>, vector<1x128xf32>
      %c0_59 = arith.constant 0 : index
      %c1024 = arith.constant 1024 : index
      %79 = vector.load %arg14[%c0_59, %c1024] : memref<1x4096xf32, #tpu.memory_space<vmem>>, vector<1x128xf32>
      tpu.vector_store %arg14[%c0_59, %c1024], %78 {strides = array<i32>} : memref<1x4096xf32, #tpu.memory_space<vmem>>, vector<1x128xf32>,
      %c9 = arith.constant 9 : index
      %c0_60 = arith.constant 0 : index
      %80 = vector.load %arg12[%c9, %c0_60] : memref<32x128xf32, #tpu.memory_space<vmem>>, vector<1x128xf32>
      %c0_61 = arith.constant 0 : index
      %c1152 = arith.constant 1152 : index
      %81 = vector.load %arg14[%c0_61, %c1152] : memref<1x4096xf32, #tpu.memory_space<vmem>>, vector<1x128xf32>
      tpu.vector_store %arg14[%c0_61, %c1152], %80 {strides = array<i32>} : memref<1x4096xf32, #tpu.memory_space<vmem>>, vector<1x128xf32>,
      %c10 = arith.constant 10 : index
      %c0_62 = arith.constant 0 : index
      %82 = vector.load %arg12[%c10, %c0_62] : memref<32x128xf32, #tpu.memory_space<vmem>>, vector<1x128xf32>
      %c0_63 = arith.constant 0 : index
      %c1280 = arith.constant 1280 : index
      %83 = vector.load %arg14[%c0_63, %c1280] : memref<1x4096xf32, #tpu.memory_space<vmem>>, vector<1x128xf32>
      tpu.vector_store %arg14[%c0_63, %c1280], %82 {strides = array<i32>} : memref<1x4096xf32, #tpu.memory_space<vmem>>, vector<1x128xf32>,
      %c11 = arith.constant 11 : index
      %c0_64 = arith.constant 0 : index
      %84 = vector.load %arg12[%c11, %c0_64] : memref<32x128xf32, #tpu.memory_space<vmem>>, vector<1x128xf32>
      %c0_65 = arith.constant 0 : index
      %c1408 = arith.constant 1408 : index
      %85 = vector.load %arg14[%c0_65, %c1408] : memref<1x4096xf32, #tpu.memory_space<vmem>>, vector<1x128xf32>
      tpu.vector_store %arg14[%c0_65, %c1408], %84 {strides = array<i32>} : memref<1x4096xf32, #tpu.memory_space<vmem>>, vector<1x128xf32>,
      %c12 = arith.constant 12 : index
      %c0_66 = arith.constant 0 : index
      %86 = vector.load %arg12[%c12, %c0_66] : memref<32x128xf32, #tpu.memory_space<vmem>>, vector<1x128xf32>
      %c0_67 = arith.constant 0 : index
      %c1536 = arith.constant 1536 : index
      %87 = vector.load %arg14[%c0_67, %c1536] : memref<1x4096xf32, #tpu.memory_space<vmem>>, vector<1x128xf32>
      tpu.vector_store %arg14[%c0_67, %c1536], %86 {strides = array<i32>} : memref<1x4096xf32, #tpu.memory_space<vmem>>, vector<1x128xf32>,
      %c13 = arith.constant 13 : index
      %c0_68 = arith.constant 0 : index
      %88 = vector.load %arg12[%c13, %c0_68] : memref<32x128xf32, #tpu.memory_space<vmem>>, vector<1x128xf32>
      %c0_69 = arith.constant 0 : index
      %c1664 = arith.constant 1664 : index
      %89 = vector.load %arg14[%c0_69, %c1664] : memref<1x4096xf32, #tpu.memory_space<vmem>>, vector<1x128xf32>
      tpu.vector_store %arg14[%c0_69, %c1664], %88 {strides = array<i32>} : memref<1x4096xf32, #tpu.memory_space<vmem>>, vector<1x128xf32>,
      %c14 = arith.constant 14 : index
      %c0_70 = arith.constant 0 : index
      %90 = vector.load %arg12[%c14, %c0_70] : memref<32x128xf32, #tpu.memory_space<vmem>>, vector<1x128xf32>
      %c0_71 = arith.constant 0 : index
      %c1792 = arith.constant 1792 : index
      %91 = vector.load %arg14[%c0_71, %c1792] : memref<1x4096xf32, #tpu.memory_space<vmem>>, vector<1x128xf32>
      tpu.vector_store %arg14[%c0_71, %c1792], %90 {strides = array<i32>} : memref<1x4096xf32, #tpu.memory_space<vmem>>, vector<1x128xf32>,
      %c15 = arith.constant 15 : index
      %c0_72 = arith.constant 0 : index
      %92 = vector.load %arg12[%c15, %c0_72] : memref<32x128xf32, #tpu.memory_space<vmem>>, vector<1x128xf32>
      %c0_73 = arith.constant 0 : index
      %c1920 = arith.constant 1920 : index
      %93 = vector.load %arg14[%c0_73, %c1920] : memref<1x4096xf32, #tpu.memory_space<vmem>>, vector<1x128xf32>
      tpu.vector_store %arg14[%c0_73, %c1920], %92 {strides = array<i32>} : memref<1x4096xf32, #tpu.memory_space<vmem>>, vector<1x128xf32>,
      %c16 = arith.constant 16 : index
      %c0_74 = arith.constant 0 : index
      %94 = vector.load %arg12[%c16, %c0_74] : memref<32x128xf32, #tpu.memory_space<vmem>>, vector<1x128xf32>
      %c0_75 = arith.constant 0 : index
      %c2048 = arith.constant 2048 : index
      %95 = vector.load %arg14[%c0_75, %c2048] : memref<1x4096xf32, #tpu.memory_space<vmem>>, vector<1x128xf32>
      tpu.vector_store %arg14[%c0_75, %c2048], %94 {strides = array<i32>} : memref<1x4096xf32, #tpu.memory_space<vmem>>, vector<1x128xf32>,
      %c17 = arith.constant 17 : index
      %c0_76 = arith.constant 0 : index
      %96 = vector.load %arg12[%c17, %c0_76] : memref<32x128xf32, #tpu.memory_space<vmem>>, vector<1x128xf32>
      %c0_77 = arith.constant 0 : index
      %c2176 = arith.constant 2176 : index
      %97 = vector.load %arg14[%c0_77, %c2176] : memref<1x4096xf32, #tpu.memory_space<vmem>>, vector<1x128xf32>
      tpu.vector_store %arg14[%c0_77, %c2176], %96 {strides = array<i32>} : memref<1x4096xf32, #tpu.memory_space<vmem>>, vector<1x128xf32>,
      %c18 = arith.constant 18 : index
      %c0_78 = arith.constant 0 : index
      %98 = vector.load %arg12[%c18, %c0_78] : memref<32x128xf32, #tpu.memory_space<vmem>>, vector<1x128xf32>
      %c0_79 = arith.constant 0 : index
      %c2304 = arith.constant 2304 : index
      %99 = vector.load %arg14[%c0_79, %c2304] : memref<1x4096xf32, #tpu.memory_space<vmem>>, vector<1x128xf32>
      tpu.vector_store %arg14[%c0_79, %c2304], %98 {strides = array<i32>} : memref<1x4096xf32, #tpu.memory_space<vmem>>, vector<1x128xf32>,
      %c19 = arith.constant 19 : index
      %c0_80 = arith.constant 0 : index
      %100 = vector.load %arg12[%c19, %c0_80] : memref<32x128xf32, #tpu.memory_space<vmem>>, vector<1x128xf32>
      %c0_81 = arith.constant 0 : index
      %c2432 = arith.constant 2432 : index
      %101 = vector.load %arg14[%c0_81, %c2432] : memref<1x4096xf32, #tpu.memory_space<vmem>>, vector<1x128xf32>
      tpu.vector_store %arg14[%c0_81, %c2432], %100 {strides = array<i32>} : memref<1x4096xf32, #tpu.memory_space<vmem>>, vector<1x128xf32>,
      %c20 = arith.constant 20 : index
      %c0_82 = arith.constant 0 : index
      %102 = vector.load %arg12[%c20, %c0_82] : memref<32x128xf32, #tpu.memory_space<vmem>>, vector<1x128xf32>
      %c0_83 = arith.constant 0 : index
      %c2560 = arith.constant 2560 : index
      %103 = vector.load %arg14[%c0_83, %c2560] : memref<1x4096xf32, #tpu.memory_space<vmem>>, vector<1x128xf32>
      tpu.vector_store %arg14[%c0_83, %c2560], %102 {strides = array<i32>} : memref<1x4096xf32, #tpu.memory_space<vmem>>, vector<1x128xf32>,
      %c21 = arith.constant 21 : index
      %c0_84 = arith.constant 0 : index
      %104 = vector.load %arg12[%c21, %c0_84] : memref<32x128xf32, #tpu.memory_space<vmem>>, vector<1x128xf32>
      %c0_85 = arith.constant 0 : index
      %c2688 = arith.constant 2688 : index
      %105 = vector.load %arg14[%c0_85, %c2688] : memref<1x4096xf32, #tpu.memory_space<vmem>>, vector<1x128xf32>
      tpu.vector_store %arg14[%c0_85, %c2688], %104 {strides = array<i32>} : memref<1x4096xf32, #tpu.memory_space<vmem>>, vector<1x128xf32>,
      %c22 = arith.constant 22 : index
      %c0_86 = arith.constant 0 : index
      %106 = vector.load %arg12[%c22, %c0_86] : memref<32x128xf32, #tpu.memory_space<vmem>>, vector<1x128xf32>
      %c0_87 = arith.constant 0 : index
      %c2816 = arith.constant 2816 : index
      %107 = vector.load %arg14[%c0_87, %c2816] : memref<1x4096xf32, #tpu.memory_space<vmem>>, vector<1x128xf32>
      tpu.vector_store %arg14[%c0_87, %c2816], %106 {strides = array<i32>} : memref<1x4096xf32, #tpu.memory_space<vmem>>, vector<1x128xf32>,
      %c23 = arith.constant 23 : index
      %c0_88 = arith.constant 0 : index
      %108 = vector.load %arg12[%c23, %c0_88] : memref<32x128xf32, #tpu.memory_space<vmem>>, vector<1x128xf32>
      %c0_89 = arith.constant 0 : index
      %c2944 = arith.constant 2944 : index
      %109 = vector.load %arg14[%c0_89, %c2944] : memref<1x4096xf32, #tpu.memory_space<vmem>>, vector<1x128xf32>
      tpu.vector_store %arg14[%c0_89, %c2944], %108 {strides = array<i32>} : memref<1x4096xf32, #tpu.memory_space<vmem>>, vector<1x128xf32>,
      %c24 = arith.constant 24 : index
      %c0_90 = arith.constant 0 : index
      %110 = vector.load %arg12[%c24, %c0_90] : memref<32x128xf32, #tpu.memory_space<vmem>>, vector<1x128xf32>
      %c0_91 = arith.constant 0 : index
      %c3072 = arith.constant 3072 : index
      %111 = vector.load %arg14[%c0_91, %c3072] : memref<1x4096xf32, #tpu.memory_space<vmem>>, vector<1x128xf32>
      tpu.vector_store %arg14[%c0_91, %c3072], %110 {strides = array<i32>} : memref<1x4096xf32, #tpu.memory_space<vmem>>, vector<1x128xf32>,
      %c25 = arith.constant 25 : index
      %c0_92 = arith.constant 0 : index
      %112 = vector.load %arg12[%c25, %c0_92] : memref<32x128xf32, #tpu.memory_space<vmem>>, vector<1x128xf32>
      %c0_93 = arith.constant 0 : index
      %c3200 = arith.constant 3200 : index
      %113 = vector.load %arg14[%c0_93, %c3200] : memref<1x4096xf32, #tpu.memory_space<vmem>>, vector<1x128xf32>
      tpu.vector_store %arg14[%c0_93, %c3200], %112 {strides = array<i32>} : memref<1x4096xf32, #tpu.memory_space<vmem>>, vector<1x128xf32>,
      %c26 = arith.constant 26 : index
      %c0_94 = arith.constant 0 : index
      %114 = vector.load %arg12[%c26, %c0_94] : memref<32x128xf32, #tpu.memory_space<vmem>>, vector<1x128xf32>
      %c0_95 = arith.constant 0 : index
      %c3328 = arith.constant 3328 : index
      %115 = vector.load %arg14[%c0_95, %c3328] : memref<1x4096xf32, #tpu.memory_space<vmem>>, vector<1x128xf32>
      tpu.vector_store %arg14[%c0_95, %c3328], %114 {strides = array<i32>} : memref<1x4096xf32, #tpu.memory_space<vmem>>, vector<1x128xf32>,
      %c27 = arith.constant 27 : index
      %c0_96 = arith.constant 0 : index
      %116 = vector.load %arg12[%c27, %c0_96] : memref<32x128xf32, #tpu.memory_space<vmem>>, vector<1x128xf32>
      %c0_97 = arith.constant 0 : index
      %c3456 = arith.constant 3456 : index
      %117 = vector.load %arg14[%c0_97, %c3456] : memref<1x4096xf32, #tpu.memory_space<vmem>>, vector<1x128xf32>
      tpu.vector_store %arg14[%c0_97, %c3456], %116 {strides = array<i32>} : memref<1x4096xf32, #tpu.memory_space<vmem>>, vector<1x128xf32>,
      %c28 = arith.constant 28 : index
      %c0_98 = arith.constant 0 : index
      %118 = vector.load %arg12[%c28, %c0_98] : memref<32x128xf32, #tpu.memory_space<vmem>>, vector<1x128xf32>
      %c0_99 = arith.constant 0 : index
      %c3584 = arith.constant 3584 : index
      %119 = vector.load %arg14[%c0_99, %c3584] : memref<1x4096xf32, #tpu.memory_space<vmem>>, vector<1x128xf32>
      tpu.vector_store %arg14[%c0_99, %c3584], %118 {strides = array<i32>} : memref<1x4096xf32, #tpu.memory_space<vmem>>, vector<1x128xf32>,
      %c29 = arith.constant 29 : index
      %c0_100 = arith.constant 0 : index
      %120 = vector.load %arg12[%c29, %c0_100] : memref<32x128xf32, #tpu.memory_space<vmem>>, vector<1x128xf32>
      %c0_101 = arith.constant 0 : index
      %c3712 = arith.constant 3712 : index
      %121 = vector.load %arg14[%c0_101, %c3712] : memref<1x4096xf32, #tpu.memory_space<vmem>>, vector<1x128xf32>
      tpu.vector_store %arg14[%c0_101, %c3712], %120 {strides = array<i32>} : memref<1x4096xf32, #tpu.memory_space<vmem>>, vector<1x128xf32>,
      %c30 = arith.constant 30 : index
      %c0_102 = arith.constant 0 : index
      %122 = vector.load %arg12[%c30, %c0_102] : memref<32x128xf32, #tpu.memory_space<vmem>>, vector<1x128xf32>
      %c0_103 = arith.constant 0 : index
      %c3840 = arith.constant 3840 : index
      %123 = vector.load %arg14[%c0_103, %c3840] : memref<1x4096xf32, #tpu.memory_space<vmem>>, vector<1x128xf32>
      tpu.vector_store %arg14[%c0_103, %c3840], %122 {strides = array<i32>} : memref<1x4096xf32, #tpu.memory_space<vmem>>, vector<1x128xf32>,
      %c31 = arith.constant 31 : index
      %c0_104 = arith.constant 0 : index
      %124 = vector.load %arg12[%c31, %c0_104] : memref<32x128xf32, #tpu.memory_space<vmem>>, vector<1x128xf32>
      %c0_105 = arith.constant 0 : index
      %c3968 = arith.constant 3968 : index
      %125 = vector.load %arg14[%c0_105, %c3968] : memref<1x4096xf32, #tpu.memory_space<vmem>>, vector<1x128xf32>
      tpu.vector_store %arg14[%c0_105, %c3968], %124 {strides = array<i32>} : memref<1x4096xf32, #tpu.memory_space<vmem>>, vector<1x128xf32>,
      %c0_106 = arith.constant 0 : index
      %c0_107 = arith.constant 0 : index
      %126 = vector.load %arg14[%c0_106, %c0_107] : memref<1x4096xf32, #tpu.memory_space<vmem>>, vector<1x4096xf32>
      %c0_108 = arith.constant 0 : index
      %c0_109 = arith.constant 0 : index
      %127 = vector.load %arg9[%c0_108, %c0_109] : memref<4096x128xf32, #tpu.memory_space<vmem>>, vector<4096x128xf32>
      %cst_110 = arith.constant dense<0.000000e+00> : vector<1x128xf32>
      %128 = tpu.matmul %126, %127, %cst_110 {dimension_numbers = #tpu.dot_dimension_numbers<[1], [0], [0], [1], [0, 0, 1, 1], [], []>} : vector<1x4096xf32>, vector<4096x128xf32>, vector<1x128xf32> -> vector<1x128xf32>
      %129 = vector.broadcast %60 : vector<1x1xf32> to vector<1x128xf32>
      %130 = arith.mulf %128, %129 : vector<1x128xf32>
      %c0_111 = arith.constant 0 : index
      %c0_112 = arith.constant 0 : index
      %131 = vector.load %arg10[%c0_111, %c0_112] : memref<1x128xf32, #tpu.memory_space<vmem>>, vector<1x128xf32>
      %132 = arith.addf %130, %131 : vector<1x128xf32>
      %c0_113 = arith.constant 0 : index
      %c0_114 = arith.constant 0 : index
      %c0_115 = arith.constant 0 : index
      %133 = vector.load %arg11[%c0_113, %c0_114, %c0_115] : memref<1x1x128xf32, #tpu.memory_space<vmem>>, vector<1x1x128xf32>
      %134 = vector.shape_cast %133 : vector<1x1x128xf32> to vector<1x128xf32>
      %135 = vector.shape_cast %132 : vector<1x128xf32> to vector<1x1x128xf32>
      tpu.vector_store %arg11[%c0_113, %c0_114, %c0_115], %135 {strides = array<i32>} : memref<1x1x128xf32, #tpu.memory_space<vmem>>, vector<1x1x128xf32>,
    } else {
    }
    return
  }
  func.func @transform_0(%arg0: i32, %arg1: i32) -> (i32, i32, i32) {
    %c0_i32 = arith.constant 0 : i32
    %c0_i32_0 = arith.constant 0 : i32
    return %arg0, %c0_i32, %arg1 : i32, i32, i32
  }
  func.func @transform_1(%arg0: i32, %arg1: i32) -> (i32, i32) {
    %c0_i32 = arith.constant 0 : i32
    %c0_i32_0 = arith.constant 0 : i32
    %c0_i32_1 = arith.constant 0 : i32
    return %c0_i32, %c0_i32_0 : i32, i32
  }
  func.func @transform_2(%arg0: i32, %arg1: i32) -> (i32, i32) {
    %c0_i32 = arith.constant 0 : i32
    %c0_i32_0 = arith.constant 0 : i32
    %c0_i32_1 = arith.constant 0 : i32
    return %c0_i32, %c0_i32_0 : i32, i32
  }
  func.func @transform_3(%arg0: i32, %arg1: i32) -> (i32, i32) {
    %c0_i32 = arith.constant 0 : i32
    %c0_i32_0 = arith.constant 0 : i32
    %c0_i32_1 = arith.constant 0 : i32
    return %c0_i32, %c0_i32_0 : i32, i32
  }
  func.func @transform_4(%arg0: i32, %arg1: i32) -> (i32, i32) {
    %c0_i32 = arith.constant 0 : i32
    %c0_i32_0 = arith.constant 0 : i32
    %c0_i32_1 = arith.constant 0 : i32
    return %c0_i32, %c0_i32_0 : i32, i32
  }
  func.func @transform_5(%arg0: i32, %arg1: i32) -> (i32, i32) {
    %c0_i32 = arith.constant 0 : i32
    %c0_i32_0 = arith.constant 0 : i32
    %c0_i32_1 = arith.constant 0 : i32
    return %c0_i32, %c0_i32_0 : i32, i32
  }
  func.func @transform_6(%arg0: i32, %arg1: i32) -> (i32, i32) {
    %c0_i32 = arith.constant 0 : i32
    %c0_i32_0 = arith.constant 0 : i32
    %c0_i32_1 = arith.constant 0 : i32
    return %c0_i32, %c0_i32_0 : i32, i32
  }
  func.func @transform_7(%arg0: i32, %arg1: i32) -> (i32, i32) {
    %c0_i32 = arith.constant 0 : i32
    %c0_i32_0 = arith.constant 0 : i32
    %c0_i32_1 = arith.constant 0 : i32
    return %c0_i32, %c0_i32_0 : i32, i32
  }
  func.func @transform_8(%arg0: i32, %arg1: i32) -> (i32, i32) {
    %c0_i32 = arith.constant 0 : i32
    %c0_i32_0 = arith.constant 0 : i32
    %c0_i32_1 = arith.constant 0 : i32
    return %c0_i32, %c0_i32_0 : i32, i32
  }
  func.func @transform_9(%arg0: i32, %arg1: i32) -> (i32, i32, i32) {
    %c0_i32 = arith.constant 0 : i32
    %c0_i32_0 = arith.constant 0 : i32
    %c0_i32_1 = arith.constant 0 : i32
    return %arg0, %c0_i32, %c0_i32_0 : i32, i32, i32
  }
}

</mosaic_0001>

<bundles_post_ra>
// kernel: deepten_head.1
= control target key start
LH: loop header
LB: loop body
LE: loop exit
PB: predicated region body
PF: predicated region fallthrough
CT: control target
= control target key end

     0   :  { %s13369_s0 = inlined_call_operand.vmem [shape: bf16[2,1024,1024], index: 0, kind: input, shape index: {}]   ;;  %s13370_s1 = inlined_call_operand.vmem [shape: bf16[128,1024], index: 1, kind: input, shape index: {}]   ;;  %s13371_s2 = inlined_call_operand.vmem [shape: f32[128,1], index: 2, kind: input, shape index: {}]   ;;  %s13372_s3 = inlined_call_operand.vmem [shape: f32[32,128], index: 3, kind: input, shape index: {}]   ;;  %s13373_s4 = inlined_call_operand.vmem [shape: f32[32,128], index: 4, kind: input, shape index: {}]   ;;  %s13374_s5 = inlined_call_operand.vmem [shape: f32[32,1], index: 5, kind: input, shape index: {}]   ;;  %s13375_s6 = inlined_call_operand.vmem [shape: f32[32,1], index: 6, kind: input, shape index: {}]   ;;  %s13376_s7 = inlined_call_operand.vmem [shape: f32[4096,128], index: 7, kind: input, shape index: {}]   ;;  %s13377_s8 = inlined_call_operand.vmem [shape: f32[1,128], index: 8, kind: input, shape index: {}]   ;;  %s13378_s9 = inlined_call_operand.hbm [shape: f32[2,1,128], index: 9, kind: output, shape index: {}]  }
   0x1   :  { %13541 = sst [smem:[#allocation111_spill]] %s13369_s0 }
   0x2   :  { %13542 = sst [smem:[#allocation112_spill]] %s13378_s9 }
   0x3   :  { %14 = vsyncpa [#allocation7], 0 }
   0x4   :  { %16 = vsyncpa [#allocation7 + $0x1], 0  ;;  %s8583_s30 = smov 0   ;;  %s8585_s10 = smov 0  }
   0x5   :  { %s8587_s11 = smov 0   ;;  %s8589_s12 = smov 0  }
   0x6   :  { %s8591_s13 = smov 0   ;;  %s8593_s14 = smov 0  }
   0x7   :  { %s8595_s15 = smov 0   ;;  %s8597_s16 = smov 0  }
   0x8   :  { %s8599_s17 = smov 0   ;;  %s8601_s18 = smov 0  }
   0x9 LB: > { %13543 = sst [smem:[#allocation9_spill]] %s8492_s30  ;;  %s6667_s19 = sadd.s32 4294967295, %s8528_s18   ;;  %s8528_s18 = sphi %s8601_s18, %s22_s18   ;;  %s8524_s17 = sphi %s8599_s17, %s13936_s17   ;;  %s8520_s16 = sphi %s8597_s16, %s13935_s16   ;;  %s8516_s15 = sphi %s8595_s15, %s13934_s15   ;;  %s8512_s14 = sphi %s8593_s14, %s13933_s14   ;;  %s8508_s13 = sphi %s8591_s13, %s13941_s13   ;;  %s8504_s12 = sphi %s8589_s12, %s13940_s12   ;;  %s8500_s11 = sphi %s8587_s11, %s13939_s11   ;;  %s8496_s10 = sphi %s8585_s10, %s13938_s10   ;;  %s8492_s30 = sphi %s8583_s30, %s13937_s30  }
   0xa   : > { %13544 = sst [smem:[#allocation10_spill]] %s8520_s16  ;;  %s6668_s20 = sadd.s32 4294967294, %s8528_s18  }
   0xb   : > { %13545 = sst [smem:[#allocation11_spill]] %s8524_s17  ;;  %s31_s21 = sadd.s32 1, %s8520_s16 }
   0xc   : > { %s34_s22 = sadd.s32 1, %s8524_s17  ;;  %p32_p0 = scmp.ge.s32.totalorder %s31_s21, 2 }
   0xd   : > { %s43_s23 = sadd.s32 1, %s8508_s13  ;;  %p50_p1 = scmp.ne.s32.totalorder %s8508_s13, %s8504_s12 }
   0xe   : > { %p51_p2 = scmp.eq.s32.totalorder %s8528_s18, 0  ;;  %s13943_s21 = smov (%p32_p0, %s31_s21), 0 }
   0xf   : > { %13546 = sst [smem:[#allocation12_spill]] %s13943_s21  ;;  %s13945_s22 = smov (!%p32_p0, %s34_s22), %s8524_s17 }
  0x10   : > { %s39_s24 = ssub.s32 %s8520_s16, %s13943_s21  ;;  %p8646_p3 = por %p51_p2, %p50_p1 }
  0x11   : > { %p36_p4 = scmp.ge.s32.totalorder %s13945_s22, 2  ;;  %s237_s26 = sadd.s32 1, %s8500_s11 }
  0x12   : > { %p247_p5 = scmp.ne.s32.totalorder %s8500_s11, %s8496_s10  ;;  %p248_p6 = scmp.eq.s32.totalorder %s6667_s19, 3 }
  0x13   : > { %s13947_s22 = smov (%p36_p4, %s13945_s22), 0  ;;  %p253_p8 = scmp.ne.s32.totalorder %s8496_s10, %s8492_s30 }
  0x14   : > { %13548 = sst [smem:[#allocation13_spill]] %s13947_s22  ;;  %p8655_p7 = por %p248_p6, %p247_p5 }
  0x15   : > { %s38_s28 = ssub.s32 %s8524_s17, %s13947_s22  ;;  %p254_p9 = scmp.eq.s32.totalorder %s6668_s20, 3 }
  0x16   : > { %s40_s29 = sor.u32 %s39_s24, %s38_s28  ;;  %p235_p10 = scmp.eq.s32.totalorder %s38_s28, 0 }
  0x17   : > { %p41_p11 = scmp.eq.s32.totalorder %s40_s29, 0  ;;  %p8663_p12 = por %p254_p9, %p253_p8 }
  0x18   : > { %s8668_s9 = scalar_select %p235_p10, %s8500_s11, %s237_s26  }
  0x19   : > { %s13550_s21 = scalar_select %p8663_p12, 1, 0 }
  0x1a   : > { %s8671_s19 = scalar_select %p41_p11, %s8508_s13, %s43_s23  }
  0x1b   : > { %13551 = sst [smem:[#allocation14_spill]] %s13550_s21  ;;  %p6670_p13 = scmp.ge.s32.totalorder %s8528_s18, 4 }
  0x1d   : > { %294 = sbr.rel (%p6670_p13) target bundleno = 300 (0x12c), region = 48 }
  0x22   : > { %297 = sbr.rel (!%p8646_p3) target bundleno = 300 (0x12c), region = 52  ;;  %s299_s20 = sand.u32 (%p8646_p3), 1, %s8508_s13  }
  0x23   : > { %s6672_s24 = sshll.u32 (%p8646_p3), %s8520_s16, 2  ;;  %s6671_s28 = sshll.u32 (%p8646_p3), %s299_s20, 11 }
  0x24   : > { %s6673_s29 = sshll.u32 (%p8646_p3), %s8524_s17, 10  ;;  %s13552_s0 = sld [smem:[#allocation111_spill]] (%p8646_p3) }
  0x25   : > { %s304_s22 = sadd.s32 (%p8646_p3), %s6673_s29, %s6672_s24  ;;  %s8687_s25 = scalar_lea.vmem (%p8646_p3), [#allocation5], %s6671_s28 }
  0x26   : > { %s6674_s30 = sshll.u32 (%p8646_p3), %s304_s22, 2 }
  0x2a   : > { %s8682_s23 = scalar_lea.vmem %s13552_s0, %s6674_s30 }
  0x2b   : > { %v319_v0 = vld [vmem:[%s8682_s23] sm:$0xff]  ;;  %v321_v1 = vld [vmem:[%s8682_s23 + $0x8] sm:$0xff] }
  0x2c   : > { %v323_v2 = vld [vmem:[%s8682_s23 + $0x20] sm:$0xff]  ;;  %320 = vst [vmem:[%s8687_s25] sm:$0xff] %v319_v0  ;;  %v325_v3 = vld [vmem:[%s8682_s23 + $0x28] sm:$0xff] }
  0x2d   : > { %322 = vst [vmem:[%s8687_s25 + $0x8] sm:$0xff] %v321_v1  ;;  %v327_v4 = vld [vmem:[%s8682_s23 + $0x40] sm:$0xff]  ;;  %v329_v5 = vld [vmem:[%s8682_s23 + $0x48] sm:$0xff] }
  0x2e   : > { %324 = vst [vmem:[%s8687_s25 + $0x10] sm:$0xff] %v323_v2  ;;  %v331_v6 = vld [vmem:[%s8682_s23 + $0x60] sm:$0xff]  ;;  %v333_v7 = vld [vmem:[%s8682_s23 + $0x68] sm:$0xff] }
  0x2f   : > { %326 = vst [vmem:[%s8687_s25 + $0x18] sm:$0xff] %v325_v3  ;;  %v335_v8 = vld [vmem:[%s8682_s23 + $0x80] sm:$0xff]  ;;  %v337_v9 = vld [vmem:[%s8682_s23 + $0x88] sm:$0xff] }
  0x30   : > { %328 = vst [vmem:[%s8687_s25 + $0x20] sm:$0xff] %v327_v4  ;;  %v339_v10 = vld [vmem:[%s8682_s23 + $0xa0] sm:$0xff]  ;;  %v341_v11 = vld [vmem:[%s8682_s23 + $0xa8] sm:$0xff] }
  0x31   : > { %330 = vst [vmem:[%s8687_s25 + $0x28] sm:$0xff] %v329_v5  ;;  %v343_v12 = vld [vmem:[%s8682_s23 + $0xc0] sm:$0xff]  ;;  %v345_v13 = vld [vmem:[%s8682_s23 + $0xc8] sm:$0xff] }
  0x32   : > { %332 = vst [vmem:[%s8687_s25 + $0x30] sm:$0xff] %v331_v6  ;;  %v347_v14 = vld [vmem:[%s8682_s23 + $0xe0] sm:$0xff]  ;;  %v349_v15 = vld [vmem:[%s8682_s23 + $0xe8] sm:$0xff] }
  0x33   : > { %334 = vst [vmem:[%s8687_s25 + $0x38] sm:$0xff] %v333_v7  ;;  %v351_v16 = vld [vmem:[%s8682_s23 + $0x100] sm:$0xff]  ;;  %v353_v17 = vld [vmem:[%s8682_s23 + $0x108] sm:$0xff] }
  0x34   : > { %336 = vst [vmem:[%s8687_s25 + $0x40] sm:$0xff] %v335_v8  ;;  %v355_v18 = vld [vmem:[%s8682_s23 + $0x120] sm:$0xff]  ;;  %v357_v19 = vld [vmem:[%s8682_s23 + $0x128] sm:$0xff] }
  0x35   : > { %338 = vst [vmem:[%s8687_s25 + $0x48] sm:$0xff] %v337_v9  ;;  %v359_v20 = vld [vmem:[%s8682_s23 + $0x140] sm:$0xff]  ;;  %v361_v21 = vld [vmem:[%s8682_s23 + $0x148] sm:$0xff] }
  0x36   : > { %340 = vst [vmem:[%s8687_s25 + $0x50] sm:$0xff] %v339_v10  ;;  %v363_v22 = vld [vmem:[%s8682_s23 + $0x160] sm:$0xff]  ;;  %v365_v23 = vld [vmem:[%s8682_s23 + $0x168] sm:$0xff] }
  0x37   : > { %342 = vst [vmem:[%s8687_s25 + $0x58] sm:$0xff] %v341_v11  ;;  %v367_v24 = vld [vmem:[%s8682_s23 + $0x180] sm:$0xff]  ;;  %v369_v25 = vld [vmem:[%s8682_s23 + $0x188] sm:$0xff] }
  0x38   : > { %344 = vst [vmem:[%s8687_s25 + $0x60] sm:$0xff] %v343_v12  ;;  %v371_v26 = vld [vmem:[%s8682_s23 + $0x1a0] sm:$0xff]  ;;  %v373_v27 = vld [vmem:[%s8682_s23 + $0x1a8] sm:$0xff] }
  0x39   : > { %346 = vst [vmem:[%s8687_s25 + $0x68] sm:$0xff] %v345_v13  ;;  %v375_v28 = vld [vmem:[%s8682_s23 + $0x1c0] sm:$0xff]  ;;  %v377_v29 = vld [vmem:[%s8682_s23 + $0x1c8] sm:$0xff] }
  0x3a   : > { %348 = vst [vmem:[%s8687_s25 + $0x70] sm:$0xff] %v347_v14  ;;  %v379_v30 = vld [vmem:[%s8682_s23 + $0x1e0] sm:$0xff]  ;;  %v381_v31 = vld [vmem:[%s8682_s23 + $0x1e8] sm:$0xff] }
  0x3b   : > { %350 = vst [vmem:[%s8687_s25 + $0x78] sm:$0xff] %v349_v15  ;;  %v383_v32 = vld [vmem:[%s8682_s23 + $0x200] sm:$0xff]  ;;  %v385_v33 = vld [vmem:[%s8682_s23 + $0x208] sm:$0xff] }
  0x3c   : > { %352 = vst [vmem:[%s8687_s25 + $0x80] sm:$0xff] %v351_v16  ;;  %v387_v34 = vld [vmem:[%s8682_s23 + $0x220] sm:$0xff]  ;;  %v389_v35 = vld [vmem:[%s8682_s23 + $0x228] sm:$0xff] }
  0x3d   : > { %354 = vst [vmem:[%s8687_s25 + $0x88] sm:$0xff] %v353_v17  ;;  %v391_v36 = vld [vmem:[%s8682_s23 + $0x240] sm:$0xff]  ;;  %v393_v37 = vld [vmem:[%s8682_s23 + $0x248] sm:$0xff] }
  0x3e   : > { %356 = vst [vmem:[%s8687_s25 + $0x90] sm:$0xff] %v355_v18  ;;  %v395_v38 = vld [vmem:[%s8682_s23 + $0x260] sm:$0xff]  ;;  %v397_v39 = vld [vmem:[%s8682_s23 + $0x268] sm:$0xff] }
  0x3f   : > { %358 = vst [vmem:[%s8687_s25 + $0x98] sm:$0xff] %v357_v19  ;;  %v399_v40 = vld [vmem:[%s8682_s23 + $0x280] sm:$0xff]  ;;  %v401_v41 = vld [vmem:[%s8682_s23 + $0x288] sm:$0xff] }
  0x40   : > { %360 = vst [vmem:[%s8687_s25 + $0xa0] sm:$0xff] %v359_v20  ;;  %v403_v42 = vld [vmem:[%s8682_s23 + $0x2a0] sm:$0xff]  ;;  %v405_v43 = vld [vmem:[%s8682_s23 + $0x2a8] sm:$0xff] }
  0x41   : > { %362 = vst [vmem:[%s8687_s25 + $0xa8] sm:$0xff] %v361_v21  ;;  %v407_v44 = vld [vmem:[%s8682_s23 + $0x2c0] sm:$0xff]  ;;  %v409_v45 = vld [vmem:[%s8682_s23 + $0x2c8] sm:$0xff] }
  0x42   : > { %364 = vst [vmem:[%s8687_s25 + $0xb0] sm:$0xff] %v363_v22  ;;  %v411_v46 = vld [vmem:[%s8682_s23 + $0x2e0] sm:$0xff]  ;;  %v413_v47 = vld [vmem:[%s8682_s23 + $0x2e8] sm:$0xff] }
  0x43   : > { %366 = vst [vmem:[%s8687_s25 + $0xb8] sm:$0xff] %v365_v23  ;;  %v415_v48 = vld [vmem:[%s8682_s23 + $0x300] sm:$0xff]  ;;  %v417_v49 = vld [vmem:[%s8682_s23 + $0x308] sm:$0xff] }
  0x44   : > { %368 = vst [vmem:[%s8687_s25 + $0xc0] sm:$0xff] %v367_v24  ;;  %v419_v50 = vld [vmem:[%s8682_s23 + $0x320] sm:$0xff]  ;;  %v421_v51 = vld [vmem:[%s8682_s23 + $0x328] sm:$0xff] }
  0x45   : > { %370 = vst [vmem:[%s8687_s25 + $0xc8] sm:$0xff] %v369_v25  ;;  %v423_v52 = vld [vmem:[%s8682_s23 + $0x340] sm:$0xff]  ;;  %v425_v53 = vld [vmem:[%s8682_s23 + $0x348] sm:$0xff] }
  0x46   : > { %372 = vst [vmem:[%s8687_s25 + $0xd0] sm:$0xff] %v371_v26  ;;  %v427_v54 = vld [vmem:[%s8682_s23 + $0x360] sm:$0xff]  ;;  %v429_v55 = vld [vmem:[%s8682_s23 + $0x368] sm:$0xff] }
  0x47   : > { %374 = vst [vmem:[%s8687_s25 + $0xd8] sm:$0xff] %v373_v27  ;;  %v431_v56 = vld [vmem:[%s8682_s23 + $0x380] sm:$0xff]  ;;  %v433_v57 = vld [vmem:[%s8682_s23 + $0x388] sm:$0xff] }
  0x48   : > { %376 = vst [vmem:[%s8687_s25 + $0xe0] sm:$0xff] %v375_v28  ;;  %v435_v58 = vld [vmem:[%s8682_s23 + $0x3a0] sm:$0xff]  ;;  %v437_v59 = vld [vmem:[%s8682_s23 + $0x3a8] sm:$0xff] }
  0x49   : > { %378 = vst [vmem:[%s8687_s25 + $0xe8] sm:$0xff] %v377_v29  ;;  %v439_v60 = vld [vmem:[%s8682_s23 + $0x3c0] sm:$0xff]  ;;  %v441_v61 = vld [vmem:[%s8682_s23 + $0x3c8] sm:$0xff] }
  0x4a   : > { %380 = vst [vmem:[%s8687_s25 + $0xf0] sm:$0xff] %v379_v30  ;;  %v443_v62 = vld [vmem:[%s8682_s23 + $0x3e0] sm:$0xff]  ;;  %v445_v63 = vld [vmem:[%s8682_s23 + $0x3e8] sm:$0xff] }
  0x4b   : > { %382 = vst [vmem:[%s8687_s25 + $0xf8] sm:$0xff] %v381_v31  ;;  %v447_v0 = vld [vmem:[%s8682_s23 + $0x400] sm:$0xff]  ;;  %v449_v1 = vld [vmem:[%s8682_s23 + $0x408] sm:$0xff] }
  0x4c   : > { %384 = vst [vmem:[%s8687_s25 + $0x100] sm:$0xff] %v383_v32  ;;  %v451_v2 = vld [vmem:[%s8682_s23 + $0x420] sm:$0xff]  ;;  %v453_v3 = vld [vmem:[%s8682_s23 + $0x428] sm:$0xff] }
  0x4d   : > { %386 = vst [vmem:[%s8687_s25 + $0x108] sm:$0xff] %v385_v33  ;;  %v455_v4 = vld [vmem:[%s8682_s23 + $0x440] sm:$0xff]  ;;  %v457_v5 = vld [vmem:[%s8682_s23 + $0x448] sm:$0xff] }
  0x4e   : > { %388 = vst [vmem:[%s8687_s25 + $0x110] sm:$0xff] %v387_v34  ;;  %v459_v6 = vld [vmem:[%s8682_s23 + $0x460] sm:$0xff]  ;;  %v461_v7 = vld [vmem:[%s8682_s23 + $0x468] sm:$0xff] }
  0x4f   : > { %390 = vst [vmem:[%s8687_s25 + $0x118] sm:$0xff] %v389_v35  ;;  %v463_v8 = vld [vmem:[%s8682_s23 + $0x480] sm:$0xff]  ;;  %v465_v9 = vld [vmem:[%s8682_s23 + $0x488] sm:$0xff] }
  0x50   : > { %392 = vst [vmem:[%s8687_s25 + $0x120] sm:$0xff] %v391_v36  ;;  %v467_v10 = vld [vmem:[%s8682_s23 + $0x4a0] sm:$0xff]  ;;  %v469_v11 = vld [vmem:[%s8682_s23 + $0x4a8] sm:$0xff] }
  0x51   : > { %394 = vst [vmem:[%s8687_s25 + $0x128] sm:$0xff] %v393_v37  ;;  %v471_v12 = vld [vmem:[%s8682_s23 + $0x4c0] sm:$0xff]  ;;  %v473_v13 = vld [vmem:[%s8682_s23 + $0x4c8] sm:$0xff] }
  0x52   : > { %396 = vst [vmem:[%s8687_s25 + $0x130] sm:$0xff] %v395_v38  ;;  %v475_v14 = vld [vmem:[%s8682_s23 + $0x4e0] sm:$0xff]  ;;  %v477_v15 = vld [vmem:[%s8682_s23 + $0x4e8] sm:$0xff] }
  0x53   : > { %398 = vst [vmem:[%s8687_s25 + $0x138] sm:$0xff] %v397_v39  ;;  %v479_v16 = vld [vmem:[%s8682_s23 + $0x500] sm:$0xff]  ;;  %v481_v17 = vld [vmem:[%s8682_s23 + $0x508] sm:$0xff] }
  0x54   : > { %400 = vst [vmem:[%s8687_s25 + $0x140] sm:$0xff] %v399_v40  ;;  %v483_v18 = vld [vmem:[%s8682_s23 + $0x520] sm:$0xff]  ;;  %v485_v19 = vld [vmem:[%s8682_s23 + $0x528] sm:$0xff] }
  0x55   : > { %402 = vst [vmem:[%s8687_s25 + $0x148] sm:$0xff] %v401_v41  ;;  %v487_v20 = vld [vmem:[%s8682_s23 + $0x540] sm:$0xff]  ;;  %v489_v21 = vld [vmem:[%s8682_s23 + $0x548] sm:$0xff] }
  0x56   : > { %404 = vst [vmem:[%s8687_s25 + $0x150] sm:$0xff] %v403_v42  ;;  %v491_v22 = vld [vmem:[%s8682_s23 + $0x560] sm:$0xff]  ;;  %v493_v23 = vld [vmem:[%s8682_s23 + $0x568] sm:$0xff] }
  0x57   : > { %406 = vst [vmem:[%s8687_s25 + $0x158] sm:$0xff] %v405_v43  ;;  %v495_v24 = vld [vmem:[%s8682_s23 + $0x580] sm:$0xff]  ;;  %v497_v25 = vld [vmem:[%s8682_s23 + $0x588] sm:$0xff] }
  0x58   : > { %408 = vst [vmem:[%s8687_s25 + $0x160] sm:$0xff] %v407_v44  ;;  %v499_v26 = vld [vmem:[%s8682_s23 + $0x5a0] sm:$0xff]  ;;  %v501_v27 = vld [vmem:[%s8682_s23 + $0x5a8] sm:$0xff] }
  0x59   : > { %410 = vst [vmem:[%s8687_s25 + $0x168] sm:$0xff] %v409_v45  ;;  %v503_v28 = vld [vmem:[%s8682_s23 + $0x5c0] sm:$0xff]  ;;  %v505_v29 = vld [vmem:[%s8682_s23 + $0x5c8] sm:$0xff] }
  0x5a   : > { %412 = vst [vmem:[%s8687_s25 + $0x170] sm:$0xff] %v411_v46  ;;  %v507_v30 = vld [vmem:[%s8682_s23 + $0x5e0] sm:$0xff]  ;;  %v509_v31 = vld [vmem:[%s8682_s23 + $0x5e8] sm:$0xff] }
  0x5b   : > { %414 = vst [vmem:[%s8687_s25 + $0x178] sm:$0xff] %v413_v47  ;;  %v511_v32 = vld [vmem:[%s8682_s23 + $0x600] sm:$0xff]  ;;  %v513_v33 = vld [vmem:[%s8682_s23 + $0x608] sm:$0xff] }
  0x5c   : > { %416 = vst [vmem:[%s8687_s25 + $0x180] sm:$0xff] %v415_v48  ;;  %v515_v34 = vld [vmem:[%s8682_s23 + $0x620] sm:$0xff]  ;;  %v517_v35 = vld [vmem:[%s8682_s23 + $0x628] sm:$0xff] }
  0x5d   : > { %418 = vst [vmem:[%s8687_s25 + $0x188] sm:$0xff] %v417_v49  ;;  %v519_v36 = vld [vmem:[%s8682_s23 + $0x640] sm:$0xff]  ;;  %v521_v37 = vld [vmem:[%s8682_s23 + $0x648] sm:$0xff] }
  0x5e   : > { %420 = vst [vmem:[%s8687_s25 + $0x190] sm:$0xff] %v419_v50  ;;  %v523_v38 = vld [vmem:[%s8682_s23 + $0x660] sm:$0xff]  ;;  %v525_v39 = vld [vmem:[%s8682_s23 + $0x668] sm:$0xff] }
  0x5f   : > { %422 = vst [vmem:[%s8687_s25 + $0x198] sm:$0xff] %v421_v51  ;;  %v527_v40 = vld [vmem:[%s8682_s23 + $0x680] sm:$0xff]  ;;  %v529_v41 = vld [vmem:[%s8682_s23 + $0x688] sm:$0xff] }
  0x60   : > { %424 = vst [vmem:[%s8687_s25 + $0x1a0] sm:$0xff] %v423_v52  ;;  %v531_v42 = vld [vmem:[%s8682_s23 + $0x6a0] sm:$0xff]  ;;  %v533_v43 = vld [vmem:[%s8682_s23 + $0x6a8] sm:$0xff] }
  0x61   : > { %426 = vst [vmem:[%s8687_s25 + $0x1a8] sm:$0xff] %v425_v53  ;;  %v535_v44 = vld [vmem:[%s8682_s23 + $0x6c0] sm:$0xff]  ;;  %v537_v45 = vld [vmem:[%s8682_s23 + $0x6c8] sm:$0xff] }
  0x62   : > { %428 = vst [vmem:[%s8687_s25 + $0x1b0] sm:$0xff] %v427_v54  ;;  %v539_v46 = vld [vmem:[%s8682_s23 + $0x6e0] sm:$0xff]  ;;  %v541_v47 = vld [vmem:[%s8682_s23 + $0x6e8] sm:$0xff] }
  0x63   : > { %430 = vst [vmem:[%s8687_s25 + $0x1b8] sm:$0xff] %v429_v55  ;;  %v543_v48 = vld [vmem:[%s8682_s23 + $0x700] sm:$0xff]  ;;  %v545_v49 = vld [vmem:[%s8682_s23 + $0x708] sm:$0xff] }
  0x64   : > { %432 = vst [vmem:[%s8687_s25 + $0x1c0] sm:$0xff] %v431_v56  ;;  %v547_v50 = vld [vmem:[%s8682_s23 + $0x720] sm:$0xff]  ;;  %v549_v51 = vld [vmem:[%s8682_s23 + $0x728] sm:$0xff] }
  0x65   : > { %434 = vst [vmem:[%s8687_s25 + $0x1c8] sm:$0xff] %v433_v57  ;;  %v551_v52 = vld [vmem:[%s8682_s23 + $0x740] sm:$0xff]  ;;  %v553_v53 = vld [vmem:[%s8682_s23 + $0x748] sm:$0xff] }
  0x66   : > { %436 = vst [vmem:[%s8687_s25 + $0x1d0] sm:$0xff] %v435_v58  ;;  %v555_v54 = vld [vmem:[%s8682_s23 + $0x760] sm:$0xff]  ;;  %v557_v55 = vld [vmem:[%s8682_s23 + $0x768] sm:$0xff] }
  0x67   : > { %438 = vst [vmem:[%s8687_s25 + $0x1d8] sm:$0xff] %v437_v59  ;;  %v559_v56 = vld [vmem:[%s8682_s23 + $0x780] sm:$0xff]  ;;  %v561_v57 = vld [vmem:[%s8682_s23 + $0x788] sm:$0xff] }
  0x68   : > { %440 = vst [vmem:[%s8687_s25 + $0x1e0] sm:$0xff] %v439_v60  ;;  %v563_v58 = vld [vmem:[%s8682_s23 + $0x7a0] sm:$0xff]  ;;  %v565_v59 = vld [vmem:[%s8682_s23 + $0x7a8] sm:$0xff] }
  0x69   : > { %442 = vst [vmem:[%s8687_s25 + $0x1e8] sm:$0xff] %v441_v61  ;;  %v567_v60 = vld [vmem:[%s8682_s23 + $0x7c0] sm:$0xff]  ;;  %v569_v61 = vld [vmem:[%s8682_s23 + $0x7c8] sm:$0xff] }
  0x6a   : > { %444 = vst [vmem:[%s8687_s25 + $0x1f0] sm:$0xff] %v443_v62  ;;  %v571_v62 = vld [vmem:[%s8682_s23 + $0x7e0] sm:$0xff] }
  0x6b   : > { %446 = vst [vmem:[%s8687_s25 + $0x1f8] sm:$0xff] %v445_v63  ;;  %v573_v63 = vld [vmem:[%s8682_s23 + $0x7e8] sm:$0xff] }
  0x6c   : > { %448 = vst [vmem:[%s8687_s25 + $0x200] sm:$0xff] %v447_v0  ;;  %v575_v0 = vld [vmem:[%s8682_s23 + $0x800] sm:$0xff] }
  0x6d   : > { %450 = vst [vmem:[%s8687_s25 + $0x208] sm:$0xff] %v449_v1  ;;  %v577_v1 = vld [vmem:[%s8682_s23 + $0x808] sm:$0xff] }
  0x6e   : > { %452 = vst [vmem:[%s8687_s25 + $0x210] sm:$0xff] %v451_v2  ;;  %v579_v2 = vld [vmem:[%s8682_s23 + $0x820] sm:$0xff] }
  0x6f   : > { %454 = vst [vmem:[%s8687_s25 + $0x218] sm:$0xff] %v453_v3  ;;  %v581_v3 = vld [vmem:[%s8682_s23 + $0x828] sm:$0xff] }
  0x70   : > { %456 = vst [vmem:[%s8687_s25 + $0x220] sm:$0xff] %v455_v4  ;;  %v583_v4 = vld [vmem:[%s8682_s23 + $0x840] sm:$0xff] }
  0x71   : > { %458 = vst [vmem:[%s8687_s25 + $0x228] sm:$0xff] %v457_v5  ;;  %v585_v5 = vld [vmem:[%s8682_s23 + $0x848] sm:$0xff] }
  0x72   : > { %460 = vst [vmem:[%s8687_s25 + $0x230] sm:$0xff] %v459_v6  ;;  %v587_v6 = vld [vmem:[%s8682_s23 + $0x860] sm:$0xff] }
  0x73   : > { %462 = vst [vmem:[%s8687_s25 + $0x238] sm:$0xff] %v461_v7  ;;  %v589_v7 = vld [vmem:[%s8682_s23 + $0x868] sm:$0xff] }
  0x74   : > { %464 = vst [vmem:[%s8687_s25 + $0x240] sm:$0xff] %v463_v8  ;;  %v591_v8 = vld [vmem:[%s8682_s23 + $0x880] sm:$0xff] }
  0x75   : > { %466 = vst [vmem:[%s8687_s25 + $0x248] sm:$0xff] %v465_v9  ;;  %v593_v9 = vld [vmem:[%s8682_s23 + $0x888] sm:$0xff] }
  0x76   : > { %468 = vst [vmem:[%s8687_s25 + $0x250] sm:$0xff] %v467_v10  ;;  %v595_v10 = vld [vmem:[%s8682_s23 + $0x8a0] sm:$0xff] }
  0x77   : > { %470 = vst [vmem:[%s8687_s25 + $0x258] sm:$0xff] %v469_v11  ;;  %v597_v11 = vld [vmem:[%s8682_s23 + $0x8a8] sm:$0xff] }
  0x78   : > { %472 = vst [vmem:[%s8687_s25 + $0x260] sm:$0xff] %v471_v12  ;;  %v599_v12 = vld [vmem:[%s8682_s23 + $0x8c0] sm:$0xff] }
  0x79   : > { %474 = vst [vmem:[%s8687_s25 + $0x268] sm:$0xff] %v473_v13  ;;  %v601_v13 = vld [vmem:[%s8682_s23 + $0x8c8] sm:$0xff] }
  0x7a   : > { %476 = vst [vmem:[%s8687_s25 + $0x270] sm:$0xff] %v475_v14  ;;  %v603_v14 = vld [vmem:[%s8682_s23 + $0x8e0] sm:$0xff] }
  0x7b   : > { %478 = vst [vmem:[%s8687_s25 + $0x278] sm:$0xff] %v477_v15  ;;  %v605_v15 = vld [vmem:[%s8682_s23 + $0x8e8] sm:$0xff] }
  0x7c   : > { %480 = vst [vmem:[%s8687_s25 + $0x280] sm:$0xff] %v479_v16  ;;  %v607_v16 = vld [vmem:[%s8682_s23 + $0x900] sm:$0xff] }
  0x7d   : > { %482 = vst [vmem:[%s8687_s25 + $0x288] sm:$0xff] %v481_v17  ;;  %v609_v17 = vld [vmem:[%s8682_s23 + $0x908] sm:$0xff] }
  0x7e   : > { %484 = vst [vmem:[%s8687_s25 + $0x290] sm:$0xff] %v483_v18  ;;  %v611_v18 = vld [vmem:[%s8682_s23 + $0x920] sm:$0xff] }
  0x7f   : > { %486 = vst [vmem:[%s8687_s25 + $0x298] sm:$0xff] %v485_v19  ;;  %v613_v19 = vld [vmem:[%s8682_s23 + $0x928] sm:$0xff] }
  0x80   : > { %488 = vst [vmem:[%s8687_s25 + $0x2a0] sm:$0xff] %v487_v20  ;;  %v615_v20 = vld [vmem:[%s8682_s23 + $0x940] sm:$0xff] }
  0x81   : > { %490 = vst [vmem:[%s8687_s25 + $0x2a8] sm:$0xff] %v489_v21  ;;  %v617_v21 = vld [vmem:[%s8682_s23 + $0x948] sm:$0xff] }
  0x82   : > { %492 = vst [vmem:[%s8687_s25 + $0x2b0] sm:$0xff] %v491_v22  ;;  %v619_v22 = vld [vmem:[%s8682_s23 + $0x960] sm:$0xff] }
  0x83   : > { %494 = vst [vmem:[%s8687_s25 + $0x2b8] sm:$0xff] %v493_v23  ;;  %v621_v23 = vld [vmem:[%s8682_s23 + $0x968] sm:$0xff] }
  0x84   : > { %496 = vst [vmem:[%s8687_s25 + $0x2c0] sm:$0xff] %v495_v24  ;;  %v623_v24 = vld [vmem:[%s8682_s23 + $0x980] sm:$0xff] }
  0x85   : > { %498 = vst [vmem:[%s8687_s25 + $0x2c8] sm:$0xff] %v497_v25  ;;  %v625_v25 = vld [vmem:[%s8682_s23 + $0x988] sm:$0xff] }
  0x86   : > { %500 = vst [vmem:[%s8687_s25 + $0x2d0] sm:$0xff] %v499_v26  ;;  %v627_v26 = vld [vmem:[%s8682_s23 + $0x9a0] sm:$0xff] }
  0x87   : > { %502 = vst [vmem:[%s8687_s25 + $0x2d8] sm:$0xff] %v501_v27  ;;  %v629_v27 = vld [vmem:[%s8682_s23 + $0x9a8] sm:$0xff] }
  0x88   : > { %504 = vst [vmem:[%s8687_s25 + $0x2e0] sm:$0xff] %v503_v28  ;;  %v631_v28 = vld [vmem:[%s8682_s23 + $0x9c0] sm:$0xff] }
  0x89   : > { %506 = vst [vmem:[%s8687_s25 + $0x2e8] sm:$0xff] %v505_v29  ;;  %v633_v29 = vld [vmem:[%s8682_s23 + $0x9c8] sm:$0xff] }
  0x8a   : > { %508 = vst [vmem:[%s8687_s25 + $0x2f0] sm:$0xff] %v507_v30  ;;  %v635_v30 = vld [vmem:[%s8682_s23 + $0x9e0] sm:$0xff] }
  0x8b   : > { %510 = vst [vmem:[%s8687_s25 + $0x2f8] sm:$0xff] %v509_v31  ;;  %v637_v31 = vld [vmem:[%s8682_s23 + $0x9e8] sm:$0xff] }
  0x8c   : > { %512 = vst [vmem:[%s8687_s25 + $0x300] sm:$0xff] %v511_v32  ;;  %v639_v32 = vld [vmem:[%s8682_s23 + $0xa00] sm:$0xff] }
  0x8d   : > { %514 = vst [vmem:[%s8687_s25 + $0x308] sm:$0xff] %v513_v33  ;;  %v641_v33 = vld [vmem:[%s8682_s23 + $0xa08] sm:$0xff] }
  0x8e   : > { %516 = vst [vmem:[%s8687_s25 + $0x310] sm:$0xff] %v515_v34  ;;  %v643_v34 = vld [vmem:[%s8682_s23 + $0xa20] sm:$0xff] }
  0x8f   : > { %518 = vst [vmem:[%s8687_s25 + $0x318] sm:$0xff] %v517_v35  ;;  %v645_v35 = vld [vmem:[%s8682_s23 + $0xa28] sm:$0xff] }
  0x90   : > { %520 = vst [vmem:[%s8687_s25 + $0x320] sm:$0xff] %v519_v36  ;;  %v647_v36 = vld [vmem:[%s8682_s23 + $0xa40] sm:$0xff] }
  0x91   : > { %522 = vst [vmem:[%s8687_s25 + $0x328] sm:$0xff] %v521_v37  ;;  %v649_v37 = vld [vmem:[%s8682_s23 + $0xa48] sm:$0xff] }
  0x92   : > { %524 = vst [vmem:[%s8687_s25 + $0x330] sm:$0xff] %v523_v38  ;;  %v651_v38 = vld [vmem:[%s8682_s23 + $0xa60] sm:$0xff] }
  0x93   : > { %526 = vst [vmem:[%s8687_s25 + $0x338] sm:$0xff] %v525_v39  ;;  %v653_v39 = vld [vmem:[%s8682_s23 + $0xa68] sm:$0xff] }
  0x94   : > { %528 = vst [vmem:[%s8687_s25 + $0x340] sm:$0xff] %v527_v40  ;;  %v655_v40 = vld [vmem:[%s8682_s23 + $0xa80] sm:$0xff] }
  0x95   : > { %530 = vst [vmem:[%s8687_s25 + $0x348] sm:$0xff] %v529_v41  ;;  %v657_v41 = vld [vmem:[%s8682_s23 + $0xa88] sm:$0xff] }
  0x96   : > { %532 = vst [vmem:[%s8687_s25 + $0x350] sm:$0xff] %v531_v42  ;;  %v659_v42 = vld [vmem:[%s8682_s23 + $0xaa0] sm:$0xff] }
  0x97   : > { %534 = vst [vmem:[%s8687_s25 + $0x358] sm:$0xff] %v533_v43  ;;  %v661_v43 = vld [vmem:[%s8682_s23 + $0xaa8] sm:$0xff] }
  0x98   : > { %536 = vst [vmem:[%s8687_s25 + $0x360] sm:$0xff] %v535_v44  ;;  %v663_v44 = vld [vmem:[%s8682_s23 + $0xac0] sm:$0xff] }
  0x99   : > { %538 = vst [vmem:[%s8687_s25 + $0x368] sm:$0xff] %v537_v45  ;;  %v665_v45 = vld [vmem:[%s8682_s23 + $0xac8] sm:$0xff] }
  0x9a   : > { %540 = vst [vmem:[%s8687_s25 + $0x370] sm:$0xff] %v539_v46  ;;  %v667_v46 = vld [vmem:[%s8682_s23 + $0xae0] sm:$0xff] }
  0x9b   : > { %542 = vst [vmem:[%s8687_s25 + $0x378] sm:$0xff] %v541_v47  ;;  %v669_v47 = vld [vmem:[%s8682_s23 + $0xae8] sm:$0xff] }
  0x9c   : > { %544 = vst [vmem:[%s8687_s25 + $0x380] sm:$0xff] %v543_v48  ;;  %v671_v48 = vld [vmem:[%s8682_s23 + $0xb00] sm:$0xff] }
  0x9d   : > { %546 = vst [vmem:[%s8687_s25 + $0x388] sm:$0xff] %v545_v49  ;;  %v673_v49 = vld [vmem:[%s8682_s23 + $0xb08] sm:$0xff] }
  0x9e   : > { %548 = vst [vmem:[%s8687_s25 + $0x390] sm:$0xff] %v547_v50  ;;  %v675_v50 = vld [vmem:[%s8682_s23 + $0xb20] sm:$0xff] }
  0x9f   : > { %550 = vst [vmem:[%s8687_s25 + $0x398] sm:$0xff] %v549_v51  ;;  %v677_v51 = vld [vmem:[%s8682_s23 + $0xb28] sm:$0xff] }
  0xa0   : > { %552 = vst [vmem:[%s8687_s25 + $0x3a0] sm:$0xff] %v551_v52  ;;  %v679_v52 = vld [vmem:[%s8682_s23 + $0xb40] sm:$0xff] }
  0xa1   : > { %554 = vst [vmem:[%s8687_s25 + $0x3a8] sm:$0xff] %v553_v53  ;;  %v681_v53 = vld [vmem:[%s8682_s23 + $0xb48] sm:$0xff] }
  0xa2   : > { %556 = vst [vmem:[%s8687_s25 + $0x3b0] sm:$0xff] %v555_v54  ;;  %v683_v54 = vld [vmem:[%s8682_s23 + $0xb60] sm:$0xff] }
  0xa3   : > { %558 = vst [vmem:[%s8687_s25 + $0x3b8] sm:$0xff] %v557_v55  ;;  %v685_v55 = vld [vmem:[%s8682_s23 + $0xb68] sm:$0xff] }
  0xa4   : > { %560 = vst [vmem:[%s8687_s25 + $0x3c0] sm:$0xff] %v559_v56  ;;  %v687_v56 = vld [vmem:[%s8682_s23 + $0xb80] sm:$0xff] }
  0xa5   : > { %562 = vst [vmem:[%s8687_s25 + $0x3c8] sm:$0xff] %v561_v57  ;;  %v689_v57 = vld [vmem:[%s8682_s23 + $0xb88] sm:$0xff] }
  0xa6   : > { %564 = vst [vmem:[%s8687_s25 + $0x3d0] sm:$0xff] %v563_v58  ;;  %v691_v58 = vld [vmem:[%s8682_s23 + $0xba0] sm:$0xff] }
  0xa7   : > { %566 = vst [vmem:[%s8687_s25 + $0x3d8] sm:$0xff] %v565_v59  ;;  %v693_v59 = vld [vmem:[%s8682_s23 + $0xba8] sm:$0xff] }
  0xa8   : > { %568 = vst [vmem:[%s8687_s25 + $0x3e0] sm:$0xff] %v567_v60  ;;  %v695_v60 = vld [vmem:[%s8682_s23 + $0xbc0] sm:$0xff] }
  0xa9   : > { %570 = vst [vmem:[%s8687_s25 + $0x3e8] sm:$0xff] %v569_v61  ;;  %v697_v61 = vld [vmem:[%s8682_s23 + $0xbc8] sm:$0xff] }
  0xaa   : > { %572 = vst [vmem:[%s8687_s25 + $0x3f0] sm:$0xff] %v571_v62  ;;  %v699_v62 = vld [vmem:[%s8682_s23 + $0xbe0] sm:$0xff] }
  0xab   : > { %574 = vst [vmem:[%s8687_s25 + $0x3f8] sm:$0xff] %v573_v63  ;;  %v701_v63 = vld [vmem:[%s8682_s23 + $0xbe8] sm:$0xff] }
  0xac   : > { %576 = vst [vmem:[%s8687_s25 + $0x400] sm:$0xff] %v575_v0  ;;  %v703_v0 = vld [vmem:[%s8682_s23 + $0xc00] sm:$0xff] }
  0xad   : > { %578 = vst [vmem:[%s8687_s25 + $0x408] sm:$0xff] %v577_v1  ;;  %v705_v1 = vld [vmem:[%s8682_s23 + $0xc08] sm:$0xff] }
  0xae   : > { %580 = vst [vmem:[%s8687_s25 + $0x410] sm:$0xff] %v579_v2  ;;  %v707_v2 = vld [vmem:[%s8682_s23 + $0xc20] sm:$0xff] }
  0xaf   : > { %582 = vst [vmem:[%s8687_s25 + $0x418] sm:$0xff] %v581_v3  ;;  %v709_v3 = vld [vmem:[%s8682_s23 + $0xc28] sm:$0xff] }
  0xb0   : > { %584 = vst [vmem:[%s8687_s25 + $0x420] sm:$0xff] %v583_v4  ;;  %v711_v4 = vld [vmem:[%s8682_s23 + $0xc40] sm:$0xff] }
  0xb1   : > { %586 = vst [vmem:[%s8687_s25 + $0x428] sm:$0xff] %v585_v5  ;;  %v713_v5 = vld [vmem:[%s8682_s23 + $0xc48] sm:$0xff] }
  0xb2   : > { %588 = vst [vmem:[%s8687_s25 + $0x430] sm:$0xff] %v587_v6  ;;  %v715_v6 = vld [vmem:[%s8682_s23 + $0xc60] sm:$0xff] }
  0xb3   : > { %590 = vst [vmem:[%s8687_s25 + $0x438] sm:$0xff] %v589_v7  ;;  %v717_v7 = vld [vmem:[%s8682_s23 + $0xc68] sm:$0xff] }
  0xb4   : > { %592 = vst [vmem:[%s8687_s25 + $0x440] sm:$0xff] %v591_v8  ;;  %v719_v8 = vld [vmem:[%s8682_s23 + $0xc80] sm:$0xff] }
  0xb5   : > { %594 = vst [vmem:[%s8687_s25 + $0x448] sm:$0xff] %v593_v9  ;;  %v721_v9 = vld [vmem:[%s8682_s23 + $0xc88] sm:$0xff] }
  0xb6   : > { %596 = vst [vmem:[%s8687_s25 + $0x450] sm:$0xff] %v595_v10  ;;  %v723_v10 = vld [vmem:[%s8682_s23 + $0xca0] sm:$0xff] }
  0xb7   : > { %598 = vst [vmem:[%s8687_s25 + $0x458] sm:$0xff] %v597_v11  ;;  %v725_v11 = vld [vmem:[%s8682_s23 + $0xca8] sm:$0xff] }
  0xb8   : > { %600 = vst [vmem:[%s8687_s25 + $0x460] sm:$0xff] %v599_v12  ;;  %v727_v12 = vld [vmem:[%s8682_s23 + $0xcc0] sm:$0xff] }
  0xb9   : > { %602 = vst [vmem:[%s8687_s25 + $0x468] sm:$0xff] %v601_v13  ;;  %v729_v13 = vld [vmem:[%s8682_s23 + $0xcc8] sm:$0xff] }
  0xba   : > { %604 = vst [vmem:[%s8687_s25 + $0x470] sm:$0xff] %v603_v14  ;;  %v731_v14 = vld [vmem:[%s8682_s23 + $0xce0] sm:$0xff] }
  0xbb   : > { %606 = vst [vmem:[%s8687_s25 + $0x478] sm:$0xff] %v605_v15  ;;  %v733_v15 = vld [vmem:[%s8682_s23 + $0xce8] sm:$0xff] }
  0xbc   : > { %608 = vst [vmem:[%s8687_s25 + $0x480] sm:$0xff] %v607_v16  ;;  %v735_v16 = vld [vmem:[%s8682_s23 + $0xd00] sm:$0xff] }
  0xbd   : > { %610 = vst [vmem:[%s8687_s25 + $0x488] sm:$0xff] %v609_v17  ;;  %v737_v17 = vld [vmem:[%s8682_s23 + $0xd08] sm:$0xff] }
  0xbe   : > { %612 = vst [vmem:[%s8687_s25 + $0x490] sm:$0xff] %v611_v18  ;;  %v739_v18 = vld [vmem:[%s8682_s23 + $0xd20] sm:$0xff] }
  0xbf   : > { %614 = vst [vmem:[%s8687_s25 + $0x498] sm:$0xff] %v613_v19  ;;  %v741_v19 = vld [vmem:[%s8682_s23 + $0xd28] sm:$0xff] }
  0xc0   : > { %616 = vst [vmem:[%s8687_s25 + $0x4a0] sm:$0xff] %v615_v20  ;;  %v743_v20 = vld [vmem:[%s8682_s23 + $0xd40] sm:$0xff] }
  0xc1   : > { %618 = vst [vmem:[%s8687_s25 + $0x4a8] sm:$0xff] %v617_v21  ;;  %v745_v21 = vld [vmem:[%s8682_s23 + $0xd48] sm:$0xff] }
  0xc2   : > { %620 = vst [vmem:[%s8687_s25 + $0x4b0] sm:$0xff] %v619_v22  ;;  %v747_v22 = vld [vmem:[%s8682_s23 + $0xd60] sm:$0xff] }
  0xc3   : > { %622 = vst [vmem:[%s8687_s25 + $0x4b8] sm:$0xff] %v621_v23  ;;  %v749_v23 = vld [vmem:[%s8682_s23 + $0xd68] sm:$0xff] }
  0xc4   : > { %624 = vst [vmem:[%s8687_s25 + $0x4c0] sm:$0xff] %v623_v24  ;;  %v751_v24 = vld [vmem:[%s8682_s23 + $0xd80] sm:$0xff] }
  0xc5   : > { %626 = vst [vmem:[%s8687_s25 + $0x4c8] sm:$0xff] %v625_v25  ;;  %v753_v25 = vld [vmem:[%s8682_s23 + $0xd88] sm:$0xff] }
  0xc6   : > { %628 = vst [vmem:[%s8687_s25 + $0x4d0] sm:$0xff] %v627_v26  ;;  %v755_v26 = vld [vmem:[%s8682_s23 + $0xda0] sm:$0xff] }
  0xc7   : > { %630 = vst [vmem:[%s8687_s25 + $0x4d8] sm:$0xff] %v629_v27  ;;  %v757_v27 = vld [vmem:[%s8682_s23 + $0xda8] sm:$0xff] }
  0xc8   : > { %632 = vst [vmem:[%s8687_s25 + $0x4e0] sm:$0xff] %v631_v28  ;;  %v759_v28 = vld [vmem:[%s8682_s23 + $0xdc0] sm:$0xff] }
  0xc9   : > { %634 = vst [vmem:[%s8687_s25 + $0x4e8] sm:$0xff] %v633_v29  ;;  %v761_v29 = vld [vmem:[%s8682_s23 + $0xdc8] sm:$0xff] }
  0xca   : > { %636 = vst [vmem:[%s8687_s25 + $0x4f0] sm:$0xff] %v635_v30  ;;  %v763_v30 = vld [vmem:[%s8682_s23 + $0xde0] sm:$0xff] }
  0xcb   : > { %638 = vst [vmem:[%s8687_s25 + $0x4f8] sm:$0xff] %v637_v31  ;;  %v765_v31 = vld [vmem:[%s8682_s23 + $0xde8] sm:$0xff] }
  0xcc   : > { %640 = vst [vmem:[%s8687_s25 + $0x500] sm:$0xff] %v639_v32  ;;  %v767_v32 = vld [vmem:[%s8682_s23 + $0xe00] sm:$0xff] }
  0xcd   : > { %642 = vst [vmem:[%s8687_s25 + $0x508] sm:$0xff] %v641_v33  ;;  %v769_v33 = vld [vmem:[%s8682_s23 + $0xe08] sm:$0xff] }
  0xce   : > { %644 = vst [vmem:[%s8687_s25 + $0x510] sm:$0xff] %v643_v34  ;;  %v771_v34 = vld [vmem:[%s8682_s23 + $0xe20] sm:$0xff] }
  0xcf   : > { %646 = vst [vmem:[%s8687_s25 + $0x518] sm:$0xff] %v645_v35  ;;  %v773_v35 = vld [vmem:[%s8682_s23 + $0xe28] sm:$0xff] }
  0xd0   : > { %648 = vst [vmem:[%s8687_s25 + $0x520] sm:$0xff] %v647_v36  ;;  %v775_v36 = vld [vmem:[%s8682_s23 + $0xe40] sm:$0xff] }
  0xd1   : > { %650 = vst [vmem:[%s8687_s25 + $0x528] sm:$0xff] %v649_v37  ;;  %v777_v37 = vld [vmem:[%s8682_s23 + $0xe48] sm:$0xff] }
  0xd2   : > { %652 = vst [vmem:[%s8687_s25 + $0x530] sm:$0xff] %v651_v38  ;;  %v779_v38 = vld [vmem:[%s8682_s23 + $0xe60] sm:$0xff] }
  0xd3   : > { %654 = vst [vmem:[%s8687_s25 + $0x538] sm:$0xff] %v653_v39  ;;  %v781_v39 = vld [vmem:[%s8682_s23 + $0xe68] sm:$0xff] }
  0xd4   : > { %656 = vst [vmem:[%s8687_s25 + $0x540] sm:$0xff] %v655_v40  ;;  %v783_v40 = vld [vmem:[%s8682_s23 + $0xe80] sm:$0xff] }
  0xd5   : > { %658 = vst [vmem:[%s8687_s25 + $0x548] sm:$0xff] %v657_v41  ;;  %v785_v41 = vld [vmem:[%s8682_s23 + $0xe88] sm:$0xff] }
  0xd6   : > { %660 = vst [vmem:[%s8687_s25 + $0x550] sm:$0xff] %v659_v42  ;;  %v787_v42 = vld [vmem:[%s8682_s23 + $0xea0] sm:$0xff] }
  0xd7   : > { %662 = vst [vmem:[%s8687_s25 + $0x558] sm:$0xff] %v661_v43  ;;  %v789_v43 = vld [vmem:[%s8682_s23 + $0xea8] sm:$0xff] }
  0xd8   : > { %664 = vst [vmem:[%s8687_s25 + $0x560] sm:$0xff] %v663_v44  ;;  %v791_v44 = vld [vmem:[%s8682_s23 + $0xec0] sm:$0xff] }
  0xd9   : > { %666 = vst [vmem:[%s8687_s25 + $0x568] sm:$0xff] %v665_v45  ;;  %v793_v45 = vld [vmem:[%s8682_s23 + $0xec8] sm:$0xff] }
  0xda   : > { %668 = vst [vmem:[%s8687_s25 + $0x570] sm:$0xff] %v667_v46  ;;  %v795_v46 = vld [vmem:[%s8682_s23 + $0xee0] sm:$0xff] }
  0xdb   : > { %670 = vst [vmem:[%s8687_s25 + $0x578] sm:$0xff] %v669_v47  ;;  %v797_v47 = vld [vmem:[%s8682_s23 + $0xee8] sm:$0xff] }
  0xdc   : > { %672 = vst [vmem:[%s8687_s25 + $0x580] sm:$0xff] %v671_v48  ;;  %v799_v48 = vld [vmem:[%s8682_s23 + $0xf00] sm:$0xff] }
  0xdd   : > { %674 = vst [vmem:[%s8687_s25 + $0x588] sm:$0xff] %v673_v49  ;;  %v801_v49 = vld [vmem:[%s8682_s23 + $0xf08] sm:$0xff] }
  0xde   : > { %676 = vst [vmem:[%s8687_s25 + $0x590] sm:$0xff] %v675_v50  ;;  %v803_v50 = vld [vmem:[%s8682_s23 + $0xf20] sm:$0xff] }
  0xdf   : > { %678 = vst [vmem:[%s8687_s25 + $0x598] sm:$0xff] %v677_v51  ;;  %v805_v51 = vld [vmem:[%s8682_s23 + $0xf28] sm:$0xff] }
  0xe0   : > { %680 = vst [vmem:[%s8687_s25 + $0x5a0] sm:$0xff] %v679_v52  ;;  %v807_v52 = vld [vmem:[%s8682_s23 + $0xf40] sm:$0xff] }
  0xe1   : > { %682 = vst [vmem:[%s8687_s25 + $0x5a8] sm:$0xff] %v681_v53  ;;  %v809_v53 = vld [vmem:[%s8682_s23 + $0xf48] sm:$0xff] }
  0xe2   : > { %684 = vst [vmem:[%s8687_s25 + $0x5b0] sm:$0xff] %v683_v54  ;;  %v811_v54 = vld [vmem:[%s8682_s23 + $0xf60] sm:$0xff] }
  0xe3   : > { %686 = vst [vmem:[%s8687_s25 + $0x5b8] sm:$0xff] %v685_v55  ;;  %v813_v55 = vld [vmem:[%s8682_s23 + $0xf68] sm:$0xff] }
  0xe4   : > { %688 = vst [vmem:[%s8687_s25 + $0x5c0] sm:$0xff] %v687_v56  ;;  %v815_v56 = vld [vmem:[%s8682_s23 + $0xf80] sm:$0xff] }
  0xe5   : > { %690 = vst [vmem:[%s8687_s25 + $0x5c8] sm:$0xff] %v689_v57  ;;  %v817_v57 = vld [vmem:[%s8682_s23 + $0xf88] sm:$0xff] }
  0xe6   : > { %692 = vst [vmem:[%s8687_s25 + $0x5d0] sm:$0xff] %v691_v58  ;;  %v819_v58 = vld [vmem:[%s8682_s23 + $0xfa0] sm:$0xff] }
  0xe7   : > { %694 = vst [vmem:[%s8687_s25 + $0x5d8] sm:$0xff] %v693_v59  ;;  %v821_v59 = vld [vmem:[%s8682_s23 + $0xfa8] sm:$0xff] }
  0xe8   : > { %696 = vst [vmem:[%s8687_s25 + $0x5e0] sm:$0xff] %v695_v60  ;;  %v823_v60 = vld [vmem:[%s8682_s23 + $0xfc0] sm:$0xff] }
  0xe9   : > { %698 = vst [vmem:[%s8687_s25 + $0x5e8] sm:$0xff] %v697_v61  ;;  %v825_v61 = vld [vmem:[%s8682_s23 + $0xfc8] sm:$0xff] }
  0xea   : > { %700 = vst [vmem:[%s8687_s25 + $0x5f0] sm:$0xff] %v699_v62  ;;  %v827_v62 = vld [vmem:[%s8682_s23 + $0xfe0] sm:$0xff] }
  0xeb   : > { %702 = vst [vmem:[%s8687_s25 + $0x5f8] sm:$0xff] %v701_v63  ;;  %v829_v63 = vld [vmem:[%s8682_s23 + $0xfe8] sm:$0xff] }
  0xec   : > { %704 = vst [vmem:[%s8687_s25 + $0x600] sm:$0xff] %v703_v0 }
  0xed   : > { %706 = vst [vmem:[%s8687_s25 + $0x608] sm:$0xff] %v705_v1 }
  0xee   : > { %708 = vst [vmem:[%s8687_s25 + $0x610] sm:$0xff] %v707_v2 }
  0xef   : > { %710 = vst [vmem:[%s8687_s25 + $0x618] sm:$0xff] %v709_v3 }
  0xf0   : > { %712 = vst [vmem:[%s8687_s25 + $0x620] sm:$0xff] %v711_v4 }
  0xf1   : > { %714 = vst [vmem:[%s8687_s25 + $0x628] sm:$0xff] %v713_v5 }
  0xf2   : > { %716 = vst [vmem:[%s8687_s25 + $0x630] sm:$0xff] %v715_v6 }
  0xf3   : > { %718 = vst [vmem:[%s8687_s25 + $0x638] sm:$0xff] %v717_v7 }
  0xf4   : > { %720 = vst [vmem:[%s8687_s25 + $0x640] sm:$0xff] %v719_v8 }
  0xf5   : > { %722 = vst [vmem:[%s8687_s25 + $0x648] sm:$0xff] %v721_v9 }
  0xf6   : > { %724 = vst [vmem:[%s8687_s25 + $0x650] sm:$0xff] %v723_v10 }
  0xf7   : > { %726 = vst [vmem:[%s8687_s25 + $0x658] sm:$0xff] %v725_v11 }
  0xf8   : > { %728 = vst [vmem:[%s8687_s25 + $0x660] sm:$0xff] %v727_v12 }
  0xf9   : > { %730 = vst [vmem:[%s8687_s25 + $0x668] sm:$0xff] %v729_v13 }
  0xfa   : > { %732 = vst [vmem:[%s8687_s25 + $0x670] sm:$0xff] %v731_v14 }
  0xfb   : > { %734 = vst [vmem:[%s8687_s25 + $0x678] sm:$0xff] %v733_v15 }
  0xfc   : > { %736 = vst [vmem:[%s8687_s25 + $0x680] sm:$0xff] %v735_v16 }
  0xfd   : > { %738 = vst [vmem:[%s8687_s25 + $0x688] sm:$0xff] %v737_v17 }
  0xfe   : > { %740 = vst [vmem:[%s8687_s25 + $0x690] sm:$0xff] %v739_v18 }
  0xff   : > { %742 = vst [vmem:[%s8687_s25 + $0x698] sm:$0xff] %v741_v19 }
 0x100   : > { %744 = vst [vmem:[%s8687_s25 + $0x6a0] sm:$0xff] %v743_v20 }
 0x101   : > { %746 = vst [vmem:[%s8687_s25 + $0x6a8] sm:$0xff] %v745_v21 }
 0x102   : > { %748 = vst [vmem:[%s8687_s25 + $0x6b0] sm:$0xff] %v747_v22 }
 0x103   : > { %750 = vst [vmem:[%s8687_s25 + $0x6b8] sm:$0xff] %v749_v23 }
 0x104   : > { %752 = vst [vmem:[%s8687_s25 + $0x6c0] sm:$0xff] %v751_v24 }
 0x105   : > { %754 = vst [vmem:[%s8687_s25 + $0x6c8] sm:$0xff] %v753_v25 }
 0x106   : > { %756 = vst [vmem:[%s8687_s25 + $0x6d0] sm:$0xff] %v755_v26 }
 0x107   : > { %758 = vst [vmem:[%s8687_s25 + $0x6d8] sm:$0xff] %v757_v27 }
 0x108   : > { %760 = vst [vmem:[%s8687_s25 + $0x6e0] sm:$0xff] %v759_v28 }
 0x109   : > { %762 = vst [vmem:[%s8687_s25 + $0x6e8] sm:$0xff] %v761_v29 }
 0x10a   : > { %764 = vst [vmem:[%s8687_s25 + $0x6f0] sm:$0xff] %v763_v30 }
 0x10b   : > { %766 = vst [vmem:[%s8687_s25 + $0x6f8] sm:$0xff] %v765_v31 }
 0x10c   : > { %768 = vst [vmem:[%s8687_s25 + $0x700] sm:$0xff] %v767_v32 }
 0x10d   : > { %770 = vst [vmem:[%s8687_s25 + $0x708] sm:$0xff] %v769_v33 }
 0x10e   : > { %772 = vst [vmem:[%s8687_s25 + $0x710] sm:$0xff] %v771_v34 }
 0x10f   : > { %774 = vst [vmem:[%s8687_s25 + $0x718] sm:$0xff] %v773_v35 }
 0x110   : > { %776 = vst [vmem:[%s8687_s25 + $0x720] sm:$0xff] %v775_v36 }
 0x111   : > { %778 = vst [vmem:[%s8687_s25 + $0x728] sm:$0xff] %v777_v37 }
 0x112   : > { %780 = vst [vmem:[%s8687_s25 + $0x730] sm:$0xff] %v779_v38 }
 0x113   : > { %782 = vst [vmem:[%s8687_s25 + $0x738] sm:$0xff] %v781_v39 }
 0x114   : > { %784 = vst [vmem:[%s8687_s25 + $0x740] sm:$0xff] %v783_v40 }
 0x115   : > { %786 = vst [vmem:[%s8687_s25 + $0x748] sm:$0xff] %v785_v41 }
 0x116   : > { %788 = vst [vmem:[%s8687_s25 + $0x750] sm:$0xff] %v787_v42 }
 0x117   : > { %790 = vst [vmem:[%s8687_s25 + $0x758] sm:$0xff] %v789_v43 }
 0x118   : > { %792 = vst [vmem:[%s8687_s25 + $0x760] sm:$0xff] %v791_v44 }
 0x119   : > { %794 = vst [vmem:[%s8687_s25 + $0x768] sm:$0xff] %v793_v45 }
 0x11a   : > { %796 = vst [vmem:[%s8687_s25 + $0x770] sm:$0xff] %v795_v46 }
 0x11b   : > { %798 = vst [vmem:[%s8687_s25 + $0x778] sm:$0xff] %v797_v47 }
 0x11c   : > { %800 = vst [vmem:[%s8687_s25 + $0x780] sm:$0xff] %v799_v48 }
 0x11d   : > { %802 = vst [vmem:[%s8687_s25 + $0x788] sm:$0xff] %v801_v49 }
 0x11e   : > { %804 = vst [vmem:[%s8687_s25 + $0x790] sm:$0xff] %v803_v50 }
 0x11f   : > { %806 = vst [vmem:[%s8687_s25 + $0x798] sm:$0xff] %v805_v51 }
 0x120   : > { %808 = vst [vmem:[%s8687_s25 + $0x7a0] sm:$0xff] %v807_v52 }
 0x121   : > { %810 = vst [vmem:[%s8687_s25 + $0x7a8] sm:$0xff] %v809_v53 }
 0x122   : > { %812 = vst [vmem:[%s8687_s25 + $0x7b0] sm:$0xff] %v811_v54 }
 0x123   : > { %814 = vst [vmem:[%s8687_s25 + $0x7b8] sm:$0xff] %v813_v55 }
 0x124   : > { %816 = vst [vmem:[%s8687_s25 + $0x7c0] sm:$0xff] %v815_v56 }
 0x125   : > { %818 = vst [vmem:[%s8687_s25 + $0x7c8] sm:$0xff] %v817_v57 }
 0x126   : > { %820 = vst [vmem:[%s8687_s25 + $0x7d0] sm:$0xff] %v819_v58 }
 0x127   : > { %822 = vst [vmem:[%s8687_s25 + $0x7d8] sm:$0xff] %v821_v59 }
 0x128   : > { %824 = vst [vmem:[%s8687_s25 + $0x7e0] sm:$0xff] %v823_v60 }
 0x129   : > { %826 = vst [vmem:[%s8687_s25 + $0x7e8] sm:$0xff] %v825_v61 }
 0x12a   : > { %828 = vst [vmem:[%s8687_s25 + $0x7f0] sm:$0xff] %v827_v62 }
 0x12b   : > { %830 = vst [vmem:[%s8687_s25 + $0x7f8] sm:$0xff] %v829_v63 }
 0x12c PF: > { %p6675_p0 = scmp.ge.s32.totalorder %s8528_s18, 1  ;;  %p835_p1 = scmp.lt.s32.totalorder %s8528_s18, 5 }
 0x12e   : > { %p836_p2 = pnand %p6675_p0, %p835_p1 }
 0x130   : > { %839 = sbr.rel (%p836_p2) target bundleno = 2450 (0x992), region = 75 }
 0x135   : > { %s842_s30 = sand.u32 1, %s8504_s12   ;;  %s13384_s21 = sand.u32 1, %s8496_s10  }
 0x136   : > { %s6676_s22 = sshll.u32 %s842_s30, 11  ;;  %s9206_s24 = scalar_lea.vmem [#allocation6], %s13384_s21 }
 0x137   : > { %s9202_s20 = scalar_lea.vmem [#allocation5], %s6676_s22  ;;  %p6677_p3 = scmp.ne.s32.totalorder %s8512_s14, 0 }
 0x139   : > { %880 = sbr.rel (%p6677_p3) target bundleno = 327 (0x147), region = 83 }
 0x13e   : > { %v8530_v0 = vmov 0.0   ;;  %vm885_vm0 = vcmask 7168  }
 0x13f   : > { %881 = vst [vmem:[#allocation2] sm:$0xff] %v8530_v0 }
 0x140   : > { %882 = vst [vmem:[#allocation2 + $0x8] sm:$0xff] %v8530_v0 }
 0x141   : > { %883 = vst [vmem:[#allocation2 + $0x10] sm:$0xff] %v8530_v0 }
 0x142   : > { %884 = vst [vmem:[#allocation2 + $0x18] sm:$0xff] %v8530_v0 }
 0x143   : > { %886 = vst.msk [vmem:[#allocation3] sm:$0xff] %vm885_vm0, %v8530_v0 }
 0x144   : > { %887 = vst.msk [vmem:[#allocation3 + $0x8] sm:$0xff] %vm885_vm0, %v8530_v0 }
 0x145   : > { %888 = vst.msk [vmem:[#allocation3 + $0x10] sm:$0xff] %vm885_vm0, %v8530_v0 }
 0x146   : > { %889 = vst.msk [vmem:[#allocation3 + $0x18] sm:$0xff] %vm885_vm0, %v8530_v0 }
 0x147 PF: > { %v7048_v1 = vld [vmem:[%s9202_s20 + $0xe0] sm:$0xf]  ;;  %v7991_v2 = vld [vmem:[%s9202_s20 + $0xec] sm:$0xf0]  ;;  %v1225_v12 = vld [vmem:[%s13371_s2 + $0x78] sm:$0xff]  ;;  %v8531_v14 = vmov 0  }
 0x148   : > { %v7176_v3 = vld [vmem:[%s9202_s20 + $0x1e0] sm:$0xf]  ;;  %v7049_v4 = vor.u32 %v7991_v2, %v7048_v1  ;;  %v8023_v5 = vld [vmem:[%s9202_s20 + $0x1ec] sm:$0xf0]  ;;  %8371 = vset.pattern.permute.xlu0 %v8531_v14  ;;  %8372 = vset.pattern.permute.xlu1 %v8531_v14  ;;  %vm5198_vm1 = vcmask 7168   ;;  %p7958_p4 = scmp.ne.s32.totalorder %s8512_s14, 1 }
 0x149   : > { %v7304_v6 = vld [vmem:[%s9202_s20 + $0x2e0] sm:$0xf]  ;;  %v8055_v7 = vld [vmem:[%s9202_s20 + $0x2ec] sm:$0xf0]  ;;  %v7177_v8 = vor.u32 %v8023_v5, %v7176_v3  ;;  %1303 = vperm.xlu0 %8371, %v1225_v12   ;;  %8373 = vset.pattern.permute.xlu2 %v8531_v14 }
 0x14a   : > { %v7305_v9 = vor.u32 %v8055_v7, %v7304_v6  ;;  %v7432_v10 = vld [vmem:[%s9202_s20 + $0x3e0] sm:$0xf]  ;;  %v8087_v11 = vld [vmem:[%s9202_s20 + $0x3ec] sm:$0xf0]  ;;  %2906 = vmatpush.bf16.msra.mxu0 %v7049_v4  ;;  %v1219_v6 = vld [vmem:[%s13371_s2 + $0x48] sm:$0xff] }
 0x14b   : > { %v7433_v13 = vor.u32 %v8087_v11, %v7432_v10  ;;  %v7032_v15 = vld [vmem:[%s9202_s20 + $0xc0] sm:$0xf]  ;;  %v7987_v16 = vld [vmem:[%s9202_s20 + $0xcc] sm:$0xf0]  ;;  %2955 = vmatpush.bf16.msra.mxu1 %v7177_v8  ;;  %v1223_v10 = vld [vmem:[%s13371_s2 + $0x68] sm:$0xff] }
 0x14c   : > { %v7160_v17 = vld [vmem:[%s9202_s20 + $0x1c0] sm:$0xf]  ;;  %3004 = vmatpush.bf16.msra.mxu2 %v7305_v9  ;;  %v7033_v18 = vor.u32 %v7987_v16, %v7032_v15  ;;  %v8019_v19 = vld [vmem:[%s9202_s20 + $0x1cc] sm:$0xf0]  ;;  %1293 = vperm.xlu1 %8372, %v1223_v10  }
 0x14d   : > { %v7288_v20 = vld [vmem:[%s9202_s20 + $0x2c0] sm:$0xf]  ;;  %v8051_v21 = vld [vmem:[%s9202_s20 + $0x2cc] sm:$0xf0]  ;;  %3053 = vmatpush.bf16.msra.mxu3 %v7433_v13  ;;  %v7161_v22 = vor.u32 %v8019_v19, %v7160_v17 }
 0x14e   : > { %v7289_v23 = vor.u32 %v8051_v21, %v7288_v20  ;;  %v7416_v24 = vld [vmem:[%s9202_s20 + $0x3c0] sm:$0xf]  ;;  %v8083_v25 = vld [vmem:[%s9202_s20 + $0x3cc] sm:$0xf0]  ;;  %2907 = vmatpush.bf16.msra.mxu0 %v7033_v18 }
 0x14f   : > { %v7016_v26 = vld [vmem:[%s9202_s20 + $0xa0] sm:$0xf]  ;;  %v7417_v27 = vor.u32 %v8083_v25, %v7416_v24  ;;  %v7983_v28 = vld [vmem:[%s9202_s20 + $0xac] sm:$0xf0]  ;;  %2956 = vmatpush.bf16.msra.mxu1 %v7161_v22 }
 0x150   : > { %v7144_v29 = vld [vmem:[%s9202_s20 + $0x1a0] sm:$0xf]  ;;  %v8015_v30 = vld [vmem:[%s9202_s20 + $0x1ac] sm:$0xf0]  ;;  %v7017_v31 = vor.u32 %v7983_v28, %v7016_v26  ;;  %3005 = vmatpush.bf16.msra.mxu2 %v7289_v23 }
 0x151   : > { %v7272_v32 = vld [vmem:[%s9202_s20 + $0x2a0] sm:$0xf]  ;;  %v8047_v33 = vld [vmem:[%s9202_s20 + $0x2ac] sm:$0xf0]  ;;  %v7145_v35 = vor.u32 %v8015_v30, %v7144_v29  ;;  %3054 = vmatpush.bf16.msra.mxu3 %v7417_v27 }
 0x152   : > { %v7400_v34 = vld [vmem:[%s9202_s20 + $0x3a0] sm:$0xf]  ;;  %v7273_v36 = vor.u32 %v8047_v33, %v7272_v32  ;;  %v8079_v37 = vld [vmem:[%s9202_s20 + $0x3ac] sm:$0xf0]  ;;  %2908 = vmatpush.bf16.msra.mxu0 %v7017_v31 }
 0x153   : > { %v1224_v38 = vld [vmem:[%s13371_s2 + $0x70] sm:$0xff]  ;;  %v7000_v39 = vld [vmem:[%s9202_s20 + $0x80] sm:$0xf]  ;;  %v7401_v40 = vor.u32 %v8079_v37, %v7400_v34  ;;  %2957 = vmatpush.bf16.msra.mxu1 %v7145_v35 }
 0x154   : > { %v7979_v41 = vld [vmem:[%s9202_s20 + $0x8c] sm:$0xf0]  ;;  %v7128_v42 = vld [vmem:[%s9202_s20 + $0x180] sm:$0xf]  ;;  %3006 = vmatpush.bf16.msra.mxu2 %v7273_v36  ;;  %1298 = vperm.xlu0 %8371, %v1224_v38   ;;  %v1221_v36 = vld [vmem:[%s13371_s2 + $0x58] sm:$0xff] }
 0x155   : > { %v8011_v43 = vld [vmem:[%s9202_s20 + $0x18c] sm:$0xf0]  ;;  %v7256_v44 = vld [vmem:[%s9202_s20 + $0x280] sm:$0xf]  ;;  %v7001_v47 = vor.u32 %v7979_v41, %v7000_v39  ;;  %3055 = vmatpush.bf16.msra.mxu3 %v7401_v40  ;;  %v8217_v39 = vld [vmem:[%s13370_s1 + $0x4] sm:$0xf]  ;;  %1283 = vperm.xlu2 %8373, %v1221_v36  }
 0x156   : > { %v8043_v45 = vld [vmem:[%s9202_s20 + $0x28c] sm:$0xf0]  ;;  %v7384_v46 = vld [vmem:[%s9202_s20 + $0x380] sm:$0xf]  ;;  %v7129_v49 = vor.u32 %v8011_v43, %v7128_v42  ;;  %v6682_v43 = vld [vmem:[%s13370_s1 + $0x20] sm:$0xf0] }
 0x157   : > { %v8075_v48 = vld [vmem:[%s9202_s20 + $0x38c] sm:$0xf0]  ;;  %v7257_v50 = vor.u32 %v8043_v45, %v7256_v44  ;;  %v6984_v51 = vld [vmem:[%s9202_s20 + $0x60] sm:$0xf]  ;;  %2909 = vmatpush.bf16.msra.mxu0 %v7001_v47  ;;  %v6688_v44 = vld [vmem:[%s13370_s1 + $0x8] sm:$0xf] }
 0x158   : > { %v7975_v52 = vld [vmem:[%s9202_s20 + $0x6c] sm:$0xf0]  ;;  %v7112_v53 = vld [vmem:[%s9202_s20 + $0x160] sm:$0xf]  ;;  %v7385_v54 = vor.u32 %v8075_v48, %v7384_v46  ;;  %2958 = vmatpush.bf16.msra.mxu1 %v7129_v49  ;;  %v8222_v45 = vld [vmem:[%s13370_s1 + $0x24] sm:$0xf0] }
 0x159   : > { %v8007_v55 = vld [vmem:[%s9202_s20 + $0x16c] sm:$0xf0]  ;;  %v7240_v56 = vld [vmem:[%s9202_s20 + $0x260] sm:$0xf]  ;;  %v6985_v60 = vor.u32 %v7975_v52, %v6984_v51  ;;  %3007 = vmatpush.bf16.msra.mxu2 %v7257_v50  ;;  %v8218_v47 = vld [vmem:[%s13370_s1 + $0xc] sm:$0xf]  ;;  %v9320_v50 = vor.u32 %v8217_v39, %v6682_v43  ;;  %v9322_v51 = vor.u32 %v8222_v45, %v6688_v44 }
 0x15a   : > { %v8039_v57 = vld [vmem:[%s9202_s20 + $0x26c] sm:$0xf0]  ;;  %v7368_v58 = vld [vmem:[%s9202_s20 + $0x360] sm:$0xf]  ;;  %v7113_v61 = vor.u32 %v8007_v55, %v7112_v53  ;;  %3056 = vmatpush.bf16.msra.mxu3 %v7385_v54  ;;  %v6690_v48 = vld [vmem:[%s13370_s1 + $0x28] sm:$0xf0] }
 0x15b   : > { %v8071_v59 = vld [vmem:[%s9202_s20 + $0x36c] sm:$0xf0]  ;;  %v7241_v62 = vor.u32 %v8039_v57, %v7240_v56  ;;  %v6968_v63 = vld [vmem:[%s9202_s20 + $0x40] sm:$0xf]  ;;  %2910 = vmatpush.bf16.msra.mxu0 %v6985_v60  ;;  %v9324_v52 = vor.u32 %v8218_v47, %v6690_v48  ;;  %v1213_v54 = vld [vmem:[%s13371_s2 + $0x18] sm:$0xff] }
 0x15c   : > { %v7971_v0 = vld [vmem:[%s9202_s20 + $0x4c] sm:$0xf0]  ;;  %v7096_v1 = vld [vmem:[%s9202_s20 + $0x140] sm:$0xf]  ;;  %v7369_v2 = vor.u32 %v8071_v59, %v7368_v58  ;;  %2959 = vmatpush.bf16.msra.mxu1 %v7113_v61  ;;  %1273 = vperm.xlu0 %8371, %v1219_v6   ;;  %v1217_v56 = vld [vmem:[%s13371_s2 + $0x38] sm:$0xff] }
 0x15d   : > { %v8003_v3 = vld [vmem:[%s9202_s20 + $0x14c] sm:$0xf0]  ;;  %v7224_v4 = vld [vmem:[%s9202_s20 + $0x240] sm:$0xf]  ;;  %v6969_v9 = vor.u32 %v7971_v0, %v6968_v63  ;;  %3008 = vmatpush.bf16.msra.mxu2 %v7241_v62  ;;  %v8225_v60 = vld [vmem:[%s13370_s1 + $0x44] sm:$0xf] }
 0x15e   : > { %v8035_v5 = vld [vmem:[%s9202_s20 + $0x24c] sm:$0xf0]  ;;  %v7352_v7 = vld [vmem:[%s9202_s20 + $0x340] sm:$0xf]  ;;  %v7097_v11 = vor.u32 %v8003_v3, %v7096_v1  ;;  %3057 = vmatpush.bf16.msra.mxu3 %v7369_v2  ;;  %v1215_v61 = vld [vmem:[%s13371_s2 + $0x28] sm:$0xff] }
 0x15f   : > { %v8067_v8 = vld [vmem:[%s9202_s20 + $0x34c] sm:$0xf0]  ;;  %v7225_v12 = vor.u32 %v8035_v5, %v7224_v4  ;;  %v6952_v13 = vld [vmem:[%s9202_s20 + $0x20] sm:$0xf]  ;;  %2911 = vmatpush.bf16.msra.mxu0 %v6969_v9  ;;  %v6714_v62 = vld [vmem:[%s13370_s1 + $0x60] sm:$0xf0] }
 0x160   : > { %v7967_v14 = vld [vmem:[%s9202_s20 + $0x2c] sm:$0xf0]  ;;  %v7080_v15 = vld [vmem:[%s9202_s20 + $0x120] sm:$0xf]  ;;  %v7353_v16 = vor.u32 %v8067_v8, %v7352_v7  ;;  %2960 = vmatpush.bf16.msra.mxu1 %v7097_v11  ;;  %v6720_v63 = vld [vmem:[%s13370_s1 + $0x48] sm:$0xf]  ;;  %v9374_v4 = vor.u32 %v8225_v60, %v6714_v62 }
 0x161   : > { %v7999_v17 = vld [vmem:[%s9202_s20 + $0x12c] sm:$0xf0]  ;;  %v7208_v18 = vld [vmem:[%s9202_s20 + $0x220] sm:$0xf]  ;;  %v6953_v22 = vor.u32 %v7967_v14, %v6952_v13  ;;  %3009 = vmatpush.bf16.msra.mxu2 %v7225_v12  ;;  %v8230_v0 = vld [vmem:[%s13370_s1 + $0x64] sm:$0xf0] }
 0x162   : > { %v8031_v19 = vld [vmem:[%s9202_s20 + $0x22c] sm:$0xf0]  ;;  %v7336_v20 = vld [vmem:[%s9202_s20 + $0x320] sm:$0xf]  ;;  %v7081_v24 = vor.u32 %v7999_v17, %v7080_v15  ;;  %3058 = vmatpush.bf16.msra.mxu3 %v7353_v16  ;;  %v8226_v1 = vld [vmem:[%s13370_s1 + $0x4c] sm:$0xf]  ;;  %v9376_v5 = vor.u32 %v8230_v0, %v6720_v63 }
 0x163   : > { %v8063_v21 = vld [vmem:[%s9202_s20 + $0x32c] sm:$0xf0]  ;;  %v6936_v23 = vld [vmem:[%s9202_s20] sm:$0xf]  ;;  %v7209_v25 = vor.u32 %v8031_v19, %v7208_v18  ;;  %2912 = vmatpush.bf16.msra.mxu0 %v6953_v22  ;;  %v6722_v2 = vld [vmem:[%s13370_s1 + $0x68] sm:$0xf0] }
 0x164   : > { %v1216_v26 = vld [vmem:[%s13371_s2 + $0x30] sm:$0xff]  ;;  %v7064_v28 = vld [vmem:[%s9202_s20 + $0x100] sm:$0xf]  ;;  %v7337_v30 = vor.u32 %v8063_v21, %v7336_v20  ;;  %2961 = vmatpush.bf16.msra.mxu1 %v7081_v24  ;;  %v9378_v6 = vor.u32 %v8226_v1, %v6722_v2  ;;  %v1211_v9 = vld [vmem:[%s13371_s2 + $0x8] sm:$0xff] }
 0x165   : > { %v7963_v27 = vld [vmem:[%s9202_s20 + $0xc] sm:$0xf0]  ;;  %v7192_v31 = vld [vmem:[%s9202_s20 + $0x200] sm:$0xf]  ;;  %3010 = vmatpush.bf16.msra.mxu2 %v7209_v25  ;;  %1258 = vperm.xlu0 %8371, %v1216_v26   ;;  %v8233_v12 = vld [vmem:[%s13370_s1 + $0x84] sm:$0xf] }
 0x166   : > { %v7995_v29 = vld [vmem:[%s9202_s20 + $0x10c] sm:$0xf0]  ;;  %v7320_v33 = vld [vmem:[%s9202_s20 + $0x300] sm:$0xf]  ;;  %v6937_v37 = vor.u32 %v7963_v27, %v6936_v23  ;;  %3059 = vmatpush.bf16.msra.mxu3 %v7337_v30  ;;  %v6746_v13 = vld [vmem:[%s13370_s1 + $0xa0] sm:$0xf0] }
 0x167   : > { %v8027_v32 = vld [vmem:[%s9202_s20 + $0x20c] sm:$0xf0]  ;;  %v6680_v35 = vld [vmem:[%s13370_s1] sm:$0xf]  ;;  %v7065_v41 = vor.u32 %v7995_v29, %v7064_v28  ;;  %v6752_v14 = vld [vmem:[%s13370_s1 + $0x88] sm:$0xf]  ;;  %v9419_v19 = vor.u32 %v8233_v12, %v6746_v13 }
 0x168   : > { %v8059_v34 = vld [vmem:[%s9202_s20 + $0x30c] sm:$0xf0]  ;;  %v8221_v38 = vld [vmem:[%s13370_s1 + $0x1c] sm:$0xf0]  ;;  %v7193_v42 = vor.u32 %v8027_v32, %v7192_v31  ;;  %2913 = vmatpush.bf16.msra.mxu0 %v6937_v37  ;;  %v8238_v15 = vld [vmem:[%s13370_s1 + $0xa4] sm:$0xf0] }
 0x169   : > { %v1222_v40 = vld [vmem:[%s13371_s2 + $0x60] sm:$0xff]  ;;  %v7321_v46 = vor.u32 %v8059_v34, %v7320_v33  ;;  %v9318_v49 = vor.u32 %v8221_v38, %v6680_v35  ;;  %2962 = vmatpush.bf16.msra.mxu1 %v7065_v41  ;;  %v1220_v53 = vld [vmem:[%s13371_s2 + $0x50] sm:$0xff]  ;;  %v8234_v16 = vld [vmem:[%s13370_s1 + $0x8c] sm:$0xf]  ;;  %13554 = vst [vmem:[#allocation16_spill] sm:$0xff] %v9419_v19  ;;  %v9421_v20 = vor.u32 %v8238_v15, %v6752_v14 }
 0x16a   : > { %1288 = vperm.xlu1 %8372, %v1222_v40   ;;  %3011 = vmatpush.bf16.msra.mxu2 %v7193_v42  ;;  %v1218_v55 = vld [vmem:[%s13371_s2 + $0x40] sm:$0xff]  ;;  %v1212_v8 = vld [vmem:[%s13371_s2 + $0x10] sm:$0xff]  ;;  %v6754_v17 = vld [vmem:[%s13370_s1 + $0xa8] sm:$0xf0] }
 0x16b   : > { %3060 = vmatpush.bf16.msra.mxu3 %v7321_v46  ;;  %2914 = vmatmul.bf16.vlgmr.msra.gmra.mxu0 %v9318_v49  ;;  %v1210_v57 = vld [vmem:[%s13371_s2] sm:$0xff]  ;;  %13555 = vst [vmem:[#allocation17_spill] sm:$0xff] %v9421_v20  ;;  %v9423_v21 = vor.u32 %v8234_v16, %v6754_v17  ;;  %v6784_v26 = vld [vmem:[%s13370_s1 + $0xc8] sm:$0xf]  ;;  %v8242_v28 = vld [vmem:[%s13370_s1 + $0xcc] sm:$0xf] }
 0x16c   : > { %2963 = vmatmul.bf16.vlgmr.msra.gmra.mxu1 %v9320_v50  ;;  %1278 = vperm.xlu2 %8373, %v1220_v53   ;;  %v6712_v58 = vld [vmem:[%s13370_s1 + $0x40] sm:$0xf]  ;;  %v8241_v24 = vld [vmem:[%s13370_s1 + $0xc4] sm:$0xf]  ;;  %v8246_v27 = vld [vmem:[%s13370_s1 + $0xe4] sm:$0xf0] }
 0x16d   : > { %3012 = vmatmul.bf16.vlgmr.msra.gmra.mxu2 %v9322_v51  ;;  %1243 = vperm.xlu0 %8371, %v1213_v54   ;;  %v8229_v59 = vld [vmem:[%s13370_s1 + $0x5c] sm:$0xf0]  ;;  %13556 = vst [vmem:[#allocation18_spill] sm:$0xff] %v9423_v21  ;;  %v6778_v25 = vld [vmem:[%s13370_s1 + $0xe0] sm:$0xf0]  ;;  %v9457_v32 = vor.u32 %v8246_v27, %v6784_v26 }
 0x16e   : > { %3061 = vmatmul.bf16.vlgmr.msra.gmra.mxu3 %v9324_v52  ;;  %v9372_v3 = vor.u32 %v8229_v59, %v6712_v58  ;;  %v1214_v7 = vld [vmem:[%s13371_s2 + $0x20] sm:$0xff]  ;;  %v6786_v29 = vld [vmem:[%s13370_s1 + $0xe8] sm:$0xf0]  ;;  %v9455_v31 = vor.u32 %v8241_v24, %v6778_v25  ;;  %v6816_v38 = vld [vmem:[%s13370_s1 + $0x108] sm:$0xf] }
 0x16f   : > { %v6744_v10 = vld [vmem:[%s13370_s1 + $0x80] sm:$0xf]  ;;  %13559 = vst [vmem:[#allocation21_spill] sm:$0xff] %v9457_v32  ;;  %v9459_v33 = vor.u32 %v8242_v28, %v6786_v29  ;;  %v8249_v36 = vld [vmem:[%s13370_s1 + $0x104] sm:$0xf] }
 0x170   : > { %v8237_v11 = vld [vmem:[%s13370_s1 + $0x9c] sm:$0xf0]  ;;  %13558 = vst [vmem:[#allocation20_spill] sm:$0xff] %v9455_v31  ;;  %v6810_v37 = vld [vmem:[%s13370_s1 + $0x120] sm:$0xf0] }
 0x171   : > { %v9417_v18 = vor.u32 %v8237_v11, %v6744_v10  ;;  %v6776_v22 = vld [vmem:[%s13370_s1 + $0xc0] sm:$0xf]  ;;  %13560 = vst [vmem:[#allocation22_spill] sm:$0xff] %v9459_v33  ;;  %v8254_v39 = vld [vmem:[%s13370_s1 + $0x124] sm:$0xf0]  ;;  %v9491_v43 = vor.u32 %v8249_v36, %v6810_v37 }
 0x172   : > { %1268 = vperm.xlu1 %8372, %v1218_v55   ;;  %v8245_v23 = vld [vmem:[%s13370_s1 + $0xdc] sm:$0xf0]  ;;  %v8250_v40 = vld [vmem:[%s13370_s1 + $0x10c] sm:$0xf]  ;;  %v9493_v44 = vor.u32 %v8254_v39, %v6816_v38  ;;  %v8119_v47 = vld [vmem:[%s9202_s20 + $0x4ec] sm:$0xf0] }
 0x173   : > { %13553 = vst [vmem:[#allocation15_spill] sm:$0xff] %v9417_v18  ;;  %v9453_v30 = vor.u32 %v8245_v23, %v6776_v22  ;;  %v6808_v34 = vld [vmem:[%s13370_s1 + $0x100] sm:$0xf]  ;;  %v6818_v41 = vld [vmem:[%s13370_s1 + $0x128] sm:$0xf0] }
 0x174   : > { %1263 = vperm.xlu2 %8373, %v1217_v56   ;;  %v8253_v35 = vld [vmem:[%s13370_s1 + $0x11c] sm:$0xf0]  ;;  %13562 = vst [vmem:[#allocation24_spill] sm:$0xff] %v9491_v43  ;;  %v9495_v45 = vor.u32 %v8250_v40, %v6818_v41  ;;  %v8151_v54 = vld [vmem:[%s9202_s20 + $0x5ec] sm:$0xf0] }
 0x175   : > { %1228 = vperm.xlu0 %8371, %v1210_v57   ;;  %13557 = vst [vmem:[#allocation19_spill] sm:$0xff] %v9453_v30  ;;  %v9489_v42 = vor.u32 %v8253_v35, %v6808_v34  ;;  %v7560_v46 = vld [vmem:[%s9202_s20 + $0x4e0] sm:$0xf]  ;;  %v8183_v56 = vld [vmem:[%s9202_s20 + $0x6ec] sm:$0xf0] }
 0x176   : > { %13563 = vst [vmem:[#allocation25_spill] sm:$0xff] %v9493_v44  ;;  %v7688_v48 = vld [vmem:[%s9202_s20 + $0x5e0] sm:$0xf]  ;;  %v7561_v53 = vor.u32 %v8119_v47, %v7560_v46  ;;  %v8215_v60 = vld [vmem:[%s9202_s20 + $0x7ec] sm:$0xf0] }
 0x177   : > { %13561 = vst [vmem:[#allocation23_spill] sm:$0xff] %v9489_v42  ;;  %v7816_v55 = vld [vmem:[%s9202_s20 + $0x6e0] sm:$0xf]  ;;  %v7689_v57 = vor.u32 %v8151_v54, %v7688_v48  ;;  %v8115_v63 = vld [vmem:[%s9202_s20 + $0x4cc] sm:$0xf0] }
 0x178   : > { %13564 = vst [vmem:[#allocation26_spill] sm:$0xff] %v9495_v45  ;;  %v7817_v58 = vor.u32 %v8183_v56, %v7816_v55  ;;  %v7944_v59 = vld [vmem:[%s9202_s20 + $0x7e0] sm:$0xf]  ;;  %3102 = vmatpush.bf16.msrb.mxu0 %v7561_v53  ;;  %v8147_v1 = vld [vmem:[%s9202_s20 + $0x5cc] sm:$0xf0] }
 0x179   : > { %v7945_v62 = vor.u32 %v8215_v60, %v7944_v59  ;;  %v7672_v0 = vld [vmem:[%s9202_s20 + $0x5c0] sm:$0xf]  ;;  %3151 = vmatpush.bf16.msrb.mxu1 %v7689_v57  ;;  %v8211_v12 = vld [vmem:[%s9202_s20 + $0x7cc] sm:$0xf0]  ;;  %v8257_v29 = vld [vmem:[%s13370_s1 + $0x144] sm:$0xf] }
 0x17a   : > { %1253 = vperm.xlu1 %8372, %v1215_v61   ;;  %v7544_v61 = vld [vmem:[%s9202_s20 + $0x4c0] sm:$0xf]  ;;  %3200 = vmatpush.bf16.msrb.mxu2 %v7817_v58  ;;  %v8111_v14 = vld [vmem:[%s9202_s20 + $0x4ac] sm:$0xf0]  ;;  %v6842_v34 = vld [vmem:[%s13370_s1 + $0x160] sm:$0xf0] }
 0x17b   : > { %2919 = vmatmul.bf16.gmra.mxu0 %v9372_v3  ;;  %v7545_v2 = vor.u32 %v8115_v63, %v7544_v61  ;;  %v7928_v10 = vld [vmem:[%s9202_s20 + $0x7c0] sm:$0xf]  ;;  %3249 = vmatpush.bf16.msrb.mxu3 %v7945_v62  ;;  %v8143_v23 = vld [vmem:[%s9202_s20 + $0x5ac] sm:$0xf0]  ;;  %v6848_v35 = vld [vmem:[%s13370_s1 + $0x148] sm:$0xf]  ;;  %v9557_v57 = vor.u32 %v8257_v29, %v6842_v34 }
 0x17c   : > { %2968 = vmatmul.bf16.gmra.mxu1 %v9374_v4  ;;  %1248 = vperm.xlu2 %8373, %v1214_v7   ;;  %v7673_v7 = vor.u32 %v8147_v1, %v7672_v0  ;;  %v7528_v13 = vld [vmem:[%s9202_s20 + $0x4a0] sm:$0xf]  ;;  %v7929_v17 = vor.u32 %v8211_v12, %v7928_v10  ;;  %v8175_v26 = vld [vmem:[%s9202_s20 + $0x6ac] sm:$0xf0]  ;;  %v8262_v38 = vld [vmem:[%s13370_s1 + $0x164] sm:$0xf0] }
 0x17d   : > { %3017 = vmatmul.bf16.gmra.mxu2 %v9376_v5  ;;  %v6840_v15 = vld [vmem:[%s13370_s1 + $0x140] sm:$0xf]  ;;  %3103 = vmatpush.bf16.msrb.mxu0 %v7545_v2  ;;  %v7529_v25 = vor.u32 %v8111_v14, %v7528_v13  ;;  %v8207_v28 = vld [vmem:[%s9202_s20 + $0x7ac] sm:$0xf0]  ;;  %v8258_v39 = vld [vmem:[%s13370_s1 + $0x14c] sm:$0xf]  ;;  %v9559_v58 = vor.u32 %v8262_v38, %v6848_v35 }
 0x17e   : > { %3066 = vmatmul.bf16.gmra.mxu3 %v9378_v6  ;;  %v8261_v16 = vld [vmem:[%s13370_s1 + $0x15c] sm:$0xf0]  ;;  %3152 = vmatpush.bf16.msrb.mxu1 %v7673_v7  ;;  %v6850_v40 = vld [vmem:[%s13370_s1 + $0x168] sm:$0xf0]  ;;  %v8107_v47 = vld [vmem:[%s9202_s20 + $0x48c] sm:$0xf0] }
 0x17f   : > { %v7656_v22 = vld [vmem:[%s9202_s20 + $0x5a0] sm:$0xf]  ;;  %3250 = vmatpush.bf16.msrb.mxu3 %v7929_v17  ;;  %v9552_v53 = vor.u32 %v8261_v16, %v6840_v15  ;;  %v8139_v54 = vld [vmem:[%s9202_s20 + $0x58c] sm:$0xf0]  ;;  %13566 = vst [vmem:[#allocation28_spill] sm:$0xff] %v9557_v57  ;;  %v9563_v61 = vor.u32 %v8258_v39, %v6850_v40 }
 0x180   : > { %v7784_v24 = vld [vmem:[%s9202_s20 + $0x6a0] sm:$0xf]  ;;  %v7657_v36 = vor.u32 %v8143_v23, %v7656_v22  ;;  %v8171_v56 = vld [vmem:[%s9202_s20 + $0x68c] sm:$0xf0]  ;;  %13567 = vst [vmem:[#allocation29_spill] sm:$0xff] %v9559_v58 }
 0x181   : > { %v7912_v27 = vld [vmem:[%s9202_s20 + $0x7a0] sm:$0xf]  ;;  %v7785_v37 = vor.u32 %v8175_v26, %v7784_v24  ;;  %13565 = vst [vmem:[#allocation27_spill] sm:$0xff] %v9552_v53  ;;  %3104 = vmatpush.bf16.msrb.mxu0 %v7529_v25  ;;  %v8203_v60 = vld [vmem:[%s9202_s20 + $0x78c] sm:$0xf0] }
 0x182   : > { %1238 = vperm.xlu1 %8372, %v1212_v8   ;;  %v7800_v8 = vld [vmem:[%s9202_s20 + $0x6c0] sm:$0xf]  ;;  %v7913_v41 = vor.u32 %v8207_v28, %v7912_v27  ;;  %3153 = vmatpush.bf16.msrb.mxu1 %v7657_v36  ;;  %13568 = vst [vmem:[#allocation30_spill] sm:$0xff] %v9563_v61  ;;  %v8103_v7 = vld [vmem:[%s9202_s20 + $0x46c] sm:$0xf0] }
 0x183   : > { %v7512_v46 = vld [vmem:[%s9202_s20 + $0x480] sm:$0xf]  ;;  %v8135_v10 = vld [vmem:[%s9202_s20 + $0x56c] sm:$0xf0] }
 0x184   : > { %1233 = vperm.xlu2 %8373, %v1211_v9   ;;  %v8179_v9 = vld [vmem:[%s9202_s20 + $0x6cc] sm:$0xf0]  ;;  %v7640_v48 = vld [vmem:[%s9202_s20 + $0x580] sm:$0xf]  ;;  %3251 = vmatpush.bf16.msrb.mxu3 %v7913_v41  ;;  %v7513_v62 = vor.u32 %v8107_v47, %v7512_v46 }
 0x185   : > { %v7801_v11 = vor.u32 %v8179_v9, %v7800_v8  ;;  %v7768_v55 = vld [vmem:[%s9202_s20 + $0x680] sm:$0xf]  ;;  %v7641_v63 = vor.u32 %v8139_v54, %v7640_v48  ;;  %v8167_v12 = vld [vmem:[%s9202_s20 + $0x66c] sm:$0xf0] }
 0x186   : > { %v7896_v59 = vld [vmem:[%s9202_s20 + $0x780] sm:$0xf]  ;;  %v7769_v0 = vor.u32 %v8171_v56, %v7768_v55  ;;  %3105 = vmatpush.bf16.msrb.mxu0 %v7513_v62  ;;  %v8199_v16 = vld [vmem:[%s9202_s20 + $0x76c] sm:$0xf0]  ;;  %v8265_v56 = vld [vmem:[%s13370_s1 + $0x184] sm:$0xf] }
 0x187   : > { %3201 = vmatpush.bf16.msrb.mxu2 %v7801_v11  ;;  %v7897_v1 = vor.u32 %v8203_v60, %v7896_v59  ;;  %v7496_v2 = vld [vmem:[%s9202_s20 + $0x460] sm:$0xf]  ;;  %3154 = vmatpush.bf16.msrb.mxu1 %v7641_v63  ;;  %v8099_v23 = vld [vmem:[%s9202_s20 + $0x44c] sm:$0xf0]  ;;  %v6874_v62 = vld [vmem:[%s13370_s1 + $0x1a0] sm:$0xf0] }
 0x188   : > { %v7624_v8 = vld [vmem:[%s9202_s20 + $0x560] sm:$0xf]  ;;  %v7497_v9 = vor.u32 %v8103_v7, %v7496_v2  ;;  %v8131_v25 = vld [vmem:[%s9202_s20 + $0x54c] sm:$0xf0]  ;;  %v6880_v63 = vld [vmem:[%s13370_s1 + $0x188] sm:$0xf] }
 0x189   : > { %v7752_v11 = vld [vmem:[%s9202_s20 + $0x660] sm:$0xf]  ;;  %v7625_v13 = vor.u32 %v8135_v10, %v7624_v8  ;;  %3252 = vmatpush.bf16.msrb.mxu3 %v7897_v1  ;;  %v8163_v28 = vld [vmem:[%s9202_s20 + $0x64c] sm:$0xf0]  ;;  %v8266_v2 = vld [vmem:[%s13370_s1 + $0x18c] sm:$0xf] }
 0x18a   : > { %v7753_v14 = vor.u32 %v8167_v12, %v7752_v11  ;;  %v7880_v15 = vld [vmem:[%s9202_s20 + $0x760] sm:$0xf]  ;;  %3106 = vmatpush.bf16.msrb.mxu0 %v7497_v9  ;;  %v8195_v35 = vld [vmem:[%s9202_s20 + $0x74c] sm:$0xf0]  ;;  %v6882_v7 = vld [vmem:[%s13370_s1 + $0x1a8] sm:$0xf0] }
 0x18b   : > { %2924 = vmatmul.bf16.gmra.mxu0 %v9417_v18  ;;  %3202 = vmatpush.bf16.msrb.mxu2 %v7785_v37  ;;  %v7480_v17 = vld [vmem:[%s9202_s20 + $0x440] sm:$0xf]  ;;  %v7881_v22 = vor.u32 %v8199_v16, %v7880_v15  ;;  %v8095_v41 = vld [vmem:[%s9202_s20 + $0x42c] sm:$0xf0] }
 0x18c   : > { %2973 = vmatmul.bf16.gmra.mxu1 %v9419_v19  ;;  %v7608_v24 = vld [vmem:[%s9202_s20 + $0x540] sm:$0xf]  ;;  %v7481_v34 = vor.u32 %v8099_v23, %v7480_v17  ;;  %v8127_v48 = vld [vmem:[%s9202_s20 + $0x52c] sm:$0xf0]  ;;  %v9628_v17 = vor.u32 %v8265_v56, %v6874_v62  ;;  %v8274_v56 = vld [vmem:[%s13370_s1 + $0x1cc] sm:$0xf] }
 0x18d   : > { %3022 = vmatmul.bf16.gmra.mxu2 %v9421_v20  ;;  %v7736_v27 = vld [vmem:[%s9202_s20 + $0x640] sm:$0xf]  ;;  %3155 = vmatpush.bf16.msrb.mxu1 %v7625_v13  ;;  %v7609_v38 = vor.u32 %v8131_v25, %v7608_v24  ;;  %v8159_v55 = vld [vmem:[%s9202_s20 + $0x62c] sm:$0xf0] }
 0x18e   : > { %3071 = vmatmul.bf16.gmra.mxu3 %v9423_v21  ;;  %v7864_v29 = vld [vmem:[%s9202_s20 + $0x740] sm:$0xf]  ;;  %v7737_v39 = vor.u32 %v8163_v28, %v7736_v27  ;;  %v8191_v60 = vld [vmem:[%s9202_s20 + $0x72c] sm:$0xf0]  ;;  %3107 = vmatpush.bf16.msrb.mxu0 %v7481_v34  ;;  %13573 = vst [vmem:[#allocation35_spill] sm:$0xff] %v9628_v17  ;;  %v9635_v27 = vor.u32 %v8266_v2, %v6882_v7 }
 0x18f   : > { %3203 = vmatpush.bf16.msrb.mxu2 %v7769_v0  ;;  %v6872_v36 = vld [vmem:[%s13370_s1 + $0x180] sm:$0xf]  ;;  %3253 = vmatpush.bf16.msrb.mxu3 %v7881_v22  ;;  %v7865_v47 = vor.u32 %v8195_v35, %v7864_v29  ;;  %v8270_v0 = vld [vmem:[%s13370_s1 + $0x1a4] sm:$0xf0]  ;;  %v8123_v23 = vld [vmem:[%s9202_s20 + $0x50c] sm:$0xf0] }
 0x190   : > { %v8269_v37 = vld [vmem:[%s13370_s1 + $0x19c] sm:$0xf0]  ;;  %v9630_v22 = vor.u32 %v8270_v0, %v6880_v63  ;;  %v8155_v25 = vld [vmem:[%s9202_s20 + $0x60c] sm:$0xf0]  ;;  %13575 = vst [vmem:[#allocation37_spill] sm:$0xff] %v9635_v27 }
 0x191   : > { %v7464_v40 = vld [vmem:[%s9202_s20 + $0x420] sm:$0xf]  ;;  %3156 = vmatpush.bf16.msrb.mxu1 %v7609_v38  ;;  %v9621_v11 = vor.u32 %v8269_v37, %v6872_v36  ;;  %v8187_v34 = vld [vmem:[%s9202_s20 + $0x70c] sm:$0xf0] }
 0x192   : > { %v7592_v46 = vld [vmem:[%s9202_s20 + $0x520] sm:$0xf]  ;;  %v7465_v1 = vor.u32 %v8095_v41, %v7464_v40  ;;  %13574 = vst [vmem:[#allocation36_spill] sm:$0xff] %v9630_v22 }
 0x193   : > { %3204 = vmatpush.bf16.msrb.mxu2 %v7753_v14  ;;  %v7720_v54 = vld [vmem:[%s9202_s20 + $0x620] sm:$0xf]  ;;  %v7593_v9 = vor.u32 %v8127_v48, %v7592_v46  ;;  %13571 = vst [vmem:[#allocation33_spill] sm:$0xff] %v9621_v11  ;;  %3254 = vmatpush.bf16.msrb.mxu3 %v7865_v47  ;;  %v8091_v14 = vld [vmem:[%s9202_s20 + $0x40c] sm:$0xf0] }
 0x194   : > { %v7848_v59 = vld [vmem:[%s9202_s20 + $0x720] sm:$0xf]  ;;  %v7721_v10 = vor.u32 %v8159_v55, %v7720_v54  ;;  %3108 = vmatpush.bf16.msrb.mxu0 %v7465_v1  ;;  %v8273_v47 = vld [vmem:[%s13370_s1 + $0x1c4] sm:$0xf]  ;;  %v6912_v54 = vld [vmem:[%s13370_s1 + $0x1c8] sm:$0xf] }
 0x195   : > { %v7849_v12 = vor.u32 %v8191_v60, %v7848_v59  ;;  %v7448_v13 = vld [vmem:[%s9202_s20 + $0x400] sm:$0xf]  ;;  %3157 = vmatpush.bf16.msrb.mxu1 %v7593_v9  ;;  %v6906_v48 = vld [vmem:[%s13370_s1 + $0x1e0] sm:$0xf0]  ;;  %v8278_v55 = vld [vmem:[%s13370_s1 + $0x1e4] sm:$0xf0] }
 0x196   : > { %v7576_v15 = vld [vmem:[%s9202_s20 + $0x500] sm:$0xf]  ;;  %v7449_v28 = vor.u32 %v8091_v14, %v7448_v13  ;;  %v6914_v59 = vld [vmem:[%s13370_s1 + $0x1e8] sm:$0xf0]  ;;  %v9677_v63 = vor.u32 %v8273_v47, %v6906_v48  ;;  %v9679_v0 = vor.u32 %v8278_v55, %v6912_v54  ;;  %v6696_v13 = vld [vmem:[%s13370_s1 + $0x10] sm:$0xf] }
 0x197   : > { %3205 = vmatpush.bf16.msrb.mxu2 %v7737_v39  ;;  %v7704_v24 = vld [vmem:[%s9202_s20 + $0x600] sm:$0xf]  ;;  %v7577_v35 = vor.u32 %v8123_v23, %v7576_v15  ;;  %3255 = vmatpush.bf16.msrb.mxu3 %v7849_v12  ;;  %v9681_v1 = vor.u32 %v8274_v56, %v6914_v59  ;;  %v8223_v14 = vld [vmem:[%s13370_s1 + $0x2c] sm:$0xf0]  ;;  %v8219_v15 = vld [vmem:[%s13370_s1 + $0x14] sm:$0xf] }
 0x198   : > { %v7832_v29 = vld [vmem:[%s9202_s20 + $0x700] sm:$0xf]  ;;  %v7705_v36 = vor.u32 %v8155_v25, %v7704_v24  ;;  %3109 = vmatpush.bf16.msrb.mxu0 %v7449_v28  ;;  %13581 = vst [vmem:[#allocation43_spill] sm:$0xff] %v9677_v63  ;;  %v6698_v23 = vld [vmem:[%s13370_s1 + $0x30] sm:$0xf0] }
 0x199   : > { %v7833_v37 = vor.u32 %v8187_v34, %v7832_v29  ;;  %3158 = vmatpush.bf16.msrb.mxu1 %v7577_v35  ;;  %v6904_v41 = vld [vmem:[%s13370_s1 + $0x1c0] sm:$0xf]  ;;  %13582 = vst [vmem:[#allocation44_spill] sm:$0xff] %v9679_v0  ;;  %v6704_v24 = vld [vmem:[%s13370_s1 + $0x18] sm:$0xf]  ;;  %v9721_v34 = vor.u32 %v8223_v14, %v6696_v13 }
 0x19a   : > { %v8277_v46 = vld [vmem:[%s13370_s1 + $0x1dc] sm:$0xf0]  ;;  %13583 = vst [vmem:[#allocation45_spill] sm:$0xff] %v9681_v1  ;;  %v8224_v25 = vld [vmem:[%s13370_s1 + $0x34] sm:$0xf0] }
 0x19b   : > { %2929 = vmatmul.bf16.gmra.mxu0 %v9453_v30  ;;  %3206 = vmatpush.bf16.msrb.mxu2 %v7721_v10  ;;  %v9673_v60 = vor.u32 %v8277_v46, %v6904_v41  ;;  %v8220_v28 = vld [vmem:[%s13370_s1 + $0x1c] sm:$0xf]  ;;  %13589 = vst [vmem:[#allocation51_spill] sm:$0xff] %v9721_v34  ;;  %v9727_v41 = vor.u32 %v8224_v25, %v6704_v24 }
 0x19c   : > { %2978 = vmatmul.bf16.gmra.mxu1 %v9455_v31  ;;  %3256 = vmatpush.bf16.msrb.mxu3 %v7833_v37  ;;  %v6706_v29 = vld [vmem:[%s13370_s1 + $0x38] sm:$0xf0]  ;;  %v9725_v37 = vor.u32 %v8219_v15, %v6698_v23 }
 0x19d   : > { %3027 = vmatmul.bf16.gmra.mxu2 %v9457_v32  ;;  %13579 = vst [vmem:[#allocation41_spill] sm:$0xff] %v9673_v60  ;;  %v9729_v47 = vor.u32 %v8220_v28, %v6706_v29  ;;  %v6728_v29 = vld [vmem:[%s13370_s1 + $0x50] sm:$0xf] }
 0x19e   : > { %3076 = vmatmul.bf16.gmra.mxu3 %v9459_v33  ;;  %13591 = vst [vmem:[#allocation53_spill] sm:$0xff] %v9725_v37 }
 0x19f   : > { %3207 = vmatpush.bf16.msrb.mxu2 %v7705_v36  ;;  %13592 = vst [vmem:[#allocation54_spill] sm:$0xff] %v9727_v41 }
 0x1a0   : > { %13593 = vst [vmem:[#allocation55_spill] sm:$0xff] %v9729_v47 }
 0x1ab   : > { %2934 = vmatmul.bf16.gmra.mxu0 %v9489_v42 }
 0x1ac   : > { %2983 = vmatmul.bf16.gmra.mxu1 %v9491_v43 }
 0x1ad   : > { %3032 = vmatmul.bf16.gmra.mxu2 %v9493_v44 }
 0x1ae   : > { %3081 = vmatmul.bf16.gmra.mxu3 %v9495_v45 }
 0x1af   : > { %v9619_v8 = vpop.permute.xlu2 %1283 }
 0x1b0   : > { %13570 = vst [vmem:[#allocation32_spill] sm:$0xff] %v9619_v8 }
 0x1bb   : > { %2939 = vmatmul.bf16.gmra.mxu0 %v9552_v53  ;;  %v9581_v26 = vpop.permute.xlu0 %1303 }
 0x1bc   : > { %2988 = vmatmul.bf16.gmra.mxu1 %v9557_v57  ;;  %13569 = vst [vmem:[#allocation31_spill] sm:$0xff] %v9581_v26 }
 0x1bd   : > { %3037 = vmatmul.bf16.gmra.mxu2 %v9559_v58  ;;  %v8041_v58 = vld [vmem:[%s9202_s20 + $0x284] sm:$0xf] }
 0x1be   : > { %3086 = vmatmul.bf16.gmra.mxu3 %v9563_v61  ;;  %v9647_v40 = vpop.permute.xlu1 %1293 }
 0x1bf   : > { %13578 = vst [vmem:[#allocation40_spill] sm:$0xff] %v9647_v40 }
 0x1c6   : > { %v9626_v16 = vpop.permute.xlu0 %1298  ;;  %v9645_v39 = vpop.permute.xlu2 %1278 }
 0x1c7   : > { %13572 = vst [vmem:[#allocation34_spill] sm:$0xff] %v9626_v16 }
 0x1c8   : > { %13577 = vst [vmem:[#allocation39_spill] sm:$0xff] %v9645_v39 }
 0x1cb   : > { %2944 = vmatmul.bf16.gmra.mxu0 %v9621_v11 }
 0x1cc   : > { %2993 = vmatmul.bf16.gmra.mxu1 %v9628_v17 }
 0x1cd   : > { %3042 = vmatmul.bf16.gmra.mxu2 %v9630_v22 }
 0x1ce   : > { %3091 = vmatmul.bf16.gmra.mxu3 %v9635_v27  ;;  %v9643_v38 = vpop.permute.xlu0 %1273  ;;  %v9685_v7 = vpop.permute.xlu2 %1263 }
 0x1cf   : > { %13576 = vst [vmem:[#allocation38_spill] sm:$0xff] %v9643_v38 }
 0x1d0   : > { %13585 = vst [vmem:[#allocation47_spill] sm:$0xff] %v9685_v7 }
 0x1d6   : > { %v9695_v12 = vpop.permute.xlu2 %1248 }
 0x1d7   : > { %v9675_v62 = vpop.permute.xlu0 %1258  ;;  %13588 = vst [vmem:[#allocation50_spill] sm:$0xff] %v9695_v12 }
 0x1d8   : > { %13580 = vst [vmem:[#allocation42_spill] sm:$0xff] %v9675_v62 }
 0x1db   : > { %2949 = vmatmul.bf16.gmra.mxu0 %v9673_v60 }
 0x1dc   : > { %v9683_v2 = vpop.permute.xlu1 %1288  ;;  %2998 = vmatmul.bf16.gmra.mxu1 %v9677_v63 }
 0x1dd   : > { %13584 = vst [vmem:[#allocation46_spill] sm:$0xff] %v9683_v2  ;;  %3047 = vmatmul.bf16.gmra.mxu2 %v9679_v0 }
 0x1de   : > { %3096 = vmatmul.bf16.gmra.mxu3 %v9681_v1  ;;  %v9738_v56 = vpop.permute.xlu2 %1233 }
 0x1df   : > { %v9691_v9 = vpop.permute.xlu0 %1243  ;;  %13595 = vst [vmem:[#allocation57_spill] sm:$0xff] %v9738_v56 }
 0x1e0   : > { %13586 = vst [vmem:[#allocation48_spill] sm:$0xff] %v9691_v9 }
 0x1e4   : > { %v9693_v10 = vpop.permute.xlu1 %1268 }
 0x1e5   : > { %13587 = vst [vmem:[#allocation49_spill] sm:$0xff] %v9693_v10 }
 0x1e7   : > { %v9723_v36 = vpop.permute.xlu0 %1228 }
 0x1e8   : > { %v2915_v35 = vpop.f32.mrf.mxu0  ;;  %13590 = vst [vmem:[#allocation52_spill] sm:$0xff] %v9723_v36 }
 0x1e9   : > { %v2964_v46 = vpop.f32.mrf.mxu1  ;;  %v2916_v48 = vadd.f32 %v2915_v35, %v9723_v36  ;;  %v8231_v35 = vld [vmem:[%s13370_s1 + $0x6c] sm:$0xf0] }
 0x1eb   : > { %3110 = vmatmul.bf16.vlgmr.msrb.gmra.mxu0 %v9721_v34  ;;  %v2965_v54 = vadd.f32 %v2964_v46, %v2916_v48  ;;  %v8227_v46 = vld [vmem:[%s13370_s1 + $0x54] sm:$0xf] }
 0x1ec   : > { %3159 = vmatmul.bf16.vlgmr.msrb.gmra.mxu1 %v9725_v37  ;;  %v9735_v55 = vpop.permute.xlu1 %1253  ;;  %v6730_v48 = vld [vmem:[%s13370_s1 + $0x70] sm:$0xf0] }
 0x1ed   : > { %3208 = vmatmul.bf16.vlgmr.msrb.gmra.mxu2 %v9727_v41  ;;  %13594 = vst [vmem:[#allocation56_spill] sm:$0xff] %v9735_v55  ;;  %v9771_v37 = vor.u32 %v8227_v46, %v6730_v48 }
 0x1ee   : > { %3257 = vmatmul.bf16.vlgmr.msrb.gmra.mxu3 %v9729_v47 }
 0x1ef   : > { %13598 = vst [vmem:[#allocation60_spill] sm:$0xff] %v9771_v37 }
 0x1f0   : > { %v3013_v59 = vpop.f32.mrf.mxu2  ;;  %v2917_v15 = vpop.f32.mrf.mxu0 }
 0x1f1   : > { %v3014_v13 = vadd.f32 %v3013_v59, %v2965_v54  ;;  %v3062_v14 = vpop.f32.mrf.mxu3  ;;  %v2918_v23 = vadd.f32 %v2917_v15, %v9738_v56  ;;  %v2966_v24 = vpop.f32.mrf.mxu1  ;;  %v6736_v54 = vld [vmem:[%s13370_s1 + $0x58] sm:$0xf]  ;;  %v6738_v15 = vld [vmem:[%s13370_s1 + $0x78] sm:$0xf0] }
 0x1f2   : > { %v8232_v59 = vld [vmem:[%s13370_s1 + $0x74] sm:$0xf0] }
 0x1f3   : > { %v9741_v25 = vadd.f32 %v3062_v14, %v3014_v13  ;;  %v2967_v28 = vadd.f32 %v2966_v24, %v2918_v23  ;;  %v8228_v14 = vld [vmem:[%s13370_s1 + $0x5c] sm:$0xf]  ;;  %v9769_v24 = vor.u32 %v8231_v35, %v6728_v29  ;;  %v9773_v34 = vor.u32 %v8232_v59, %v6736_v54 }
 0x1f4   : > { %v9761_v13 = vpop.permute.xlu1 %1238  ;;  %v9775_v1 = vor.u32 %v8228_v14, %v6738_v15  ;;  %v8240_v14 = vld [vmem:[%s13370_s1 + $0xb4] sm:$0xf0]  ;;  %v8236_v15 = vld [vmem:[%s13370_s1 + $0x9c] sm:$0xf] }
 0x1f5   : > { %13596 = vst [vmem:[#allocation58_spill] sm:$0xff] %v9761_v13 }
 0x1f6   : > { %13597 = vst [vmem:[#allocation59_spill] sm:$0xff] %v9769_v24 }
 0x1f7   : > { %13599 = vst [vmem:[#allocation61_spill] sm:$0xff] %v9773_v34 }
 0x1f8   : > { %v3015_v23 = vpop.f32.mrf.mxu2  ;;  %v2920_v41 = vpop.f32.mrf.mxu0  ;;  %13600 = vst [vmem:[#allocation62_spill] sm:$0xff] %v9775_v1 }
 0x1f9   : > { %v3016_v56 = vadd.f32 %v3015_v23, %v2967_v28  ;;  %v3064_v47 = vpop.f32.mrf.mxu3  ;;  %v2969_v36 = vpop.f32.mrf.mxu1  ;;  %v2921_v0 = vadd.f32 %v2920_v41, %v9761_v13  ;;  %v6770_v23 = vld [vmem:[%s13370_s1 + $0xb8] sm:$0xf0] }
 0x1fb   : > { %v9778_v63 = vadd.f32 %v3064_v47, %v3016_v56  ;;  %3115 = vmatmul.bf16.gmra.mxu0 %v9769_v24  ;;  %v2970_v60 = vadd.f32 %v2969_v36, %v2921_v0  ;;  %v6760_v0 = vld [vmem:[%s13370_s1 + $0x90] sm:$0xf]  ;;  %v6762_v47 = vld [vmem:[%s13370_s1 + $0xb0] sm:$0xf0]  ;;  %v6768_v56 = vld [vmem:[%s13370_s1 + $0x98] sm:$0xf] }
 0x1fc   : > { %3164 = vmatmul.bf16.gmra.mxu1 %v9771_v37  ;;  %v8239_v36 = vld [vmem:[%s13370_s1 + $0xac] sm:$0xf0]  ;;  %v9818_v37 = vor.u32 %v8236_v15, %v6770_v23  ;;  %v6794_v23 = vld [vmem:[%s13370_s1 + $0xf0] sm:$0xf0] }
 0x1fd   : > { %3213 = vmatmul.bf16.gmra.mxu2 %v9773_v34 }
 0x1fe   : > { %3262 = vmatmul.bf16.gmra.mxu3 %v9775_v1  ;;  %13604 = vst [vmem:[#allocation66_spill] sm:$0xff] %v9818_v37 }
 0x200   : > { %v3018_v28 = vpop.f32.mrf.mxu2  ;;  %v2922_v46 = vpop.f32.mrf.mxu0 }
 0x201   : > { %v3019_v29 = vadd.f32 %v3018_v28, %v2970_v60  ;;  %v3067_v35 = vpop.f32.mrf.mxu3  ;;  %v2923_v48 = vadd.f32 %v2922_v46, %v9691_v9  ;;  %v2971_v54 = vpop.f32.mrf.mxu1  ;;  %v8235_v60 = vld [vmem:[%s13370_s1 + $0x94] sm:$0xf]  ;;  %v9815_v9 = vor.u32 %v8240_v14, %v6768_v56 }
 0x203   : > { %v9785_v59 = vadd.f32 %v3067_v35, %v3019_v29  ;;  %v2972_v41 = vadd.f32 %v2971_v54, %v2923_v48  ;;  %v9811_v29 = vor.u32 %v8239_v36, %v6760_v0  ;;  %v9813_v54 = vor.u32 %v8235_v60, %v6762_v47  ;;  %13603 = vst [vmem:[#allocation65_spill] sm:$0xff] %v9815_v9 }
 0x205   : > { %13601 = vst [vmem:[#allocation63_spill] sm:$0xff] %v9811_v29 }
 0x206   : > { %13602 = vst [vmem:[#allocation64_spill] sm:$0xff] %v9813_v54 }
 0x208   : > { %v3020_v28 = vpop.f32.mrf.mxu2  ;;  %v2925_v48 = vpop.f32.mrf.mxu0 }
 0x209   : > { %v3021_v35 = vadd.f32 %v3020_v28, %v2972_v41  ;;  %v3069_v46 = vpop.f32.mrf.mxu3  ;;  %v2926_v1 = vadd.f32 %v2925_v48, %v9695_v12  ;;  %v2974_v34 = vpop.f32.mrf.mxu1  ;;  %v6800_v28 = vld [vmem:[%s13370_s1 + $0xd8] sm:$0xf]  ;;  %v6802_v48 = vld [vmem:[%s13370_s1 + $0xf8] sm:$0xf0] }
 0x20b   : > { %v9820_v24 = vadd.f32 %v3069_v46, %v3021_v35  ;;  %v2975_v13 = vadd.f32 %v2974_v34, %v2926_v1  ;;  %3120 = vmatmul.bf16.gmra.mxu0 %v9811_v29  ;;  %v6792_v1 = vld [vmem:[%s13370_s1 + $0xd0] sm:$0xf]  ;;  %v8248_v35 = vld [vmem:[%s13370_s1 + $0xf4] sm:$0xf0]  ;;  %v8244_v46 = vld [vmem:[%s13370_s1 + $0xdc] sm:$0xf] }
 0x20c   : > { %3169 = vmatmul.bf16.gmra.mxu1 %v9813_v54  ;;  %v8247_v34 = vld [vmem:[%s13370_s1 + $0xec] sm:$0xf0]  ;;  %v9860_v54 = vor.u32 %v8244_v46, %v6802_v48  ;;  %v6826_v48 = vld [vmem:[%s13370_s1 + $0x130] sm:$0xf0] }
 0x20d   : > { %3218 = vmatmul.bf16.gmra.mxu2 %v9815_v9 }
 0x20e   : > { %3267 = vmatmul.bf16.gmra.mxu3 %v9818_v37  ;;  %13608 = vst [vmem:[#allocation70_spill] sm:$0xff] %v9860_v54 }
 0x210   : > { %v3023_v41 = vpop.f32.mrf.mxu2  ;;  %v2927_v60 = vpop.f32.mrf.mxu0 }
 0x211   : > { %v3024_v0 = vadd.f32 %v3023_v41, %v2975_v13  ;;  %v3072_v36 = vpop.f32.mrf.mxu3  ;;  %v2928_v47 = vadd.f32 %v2927_v60, %v9735_v55  ;;  %v2976_v56 = vpop.f32.mrf.mxu1  ;;  %v8243_v13 = vld [vmem:[%s13370_s1 + $0xd4] sm:$0xf]  ;;  %v9857_v55 = vor.u32 %v8248_v35, %v6800_v28 }
 0x213   : > { %v9827_v14 = vadd.f32 %v3072_v36, %v3024_v0  ;;  %v2977_v15 = vadd.f32 %v2976_v56, %v2928_v47  ;;  %v9853_v0 = vor.u32 %v8247_v34, %v6792_v1  ;;  %v9855_v56 = vor.u32 %v8243_v13, %v6794_v23  ;;  %13607 = vst [vmem:[#allocation69_spill] sm:$0xff] %v9857_v55 }
 0x215   : > { %13605 = vst [vmem:[#allocation67_spill] sm:$0xff] %v9853_v0 }
 0x216   : > { %13606 = vst [vmem:[#allocation68_spill] sm:$0xff] %v9855_v56 }
 0x218   : > { %v3025_v41 = vpop.f32.mrf.mxu2  ;;  %v2930_v47 = vpop.f32.mrf.mxu0 }
 0x219   : > { %v3026_v36 = vadd.f32 %v3025_v41, %v2977_v15  ;;  %v3074_v60 = vpop.f32.mrf.mxu3  ;;  %v2931_v37 = vadd.f32 %v2930_v47, %v9675_v62  ;;  %v2979_v9 = vpop.f32.mrf.mxu1  ;;  %v6832_v41 = vld [vmem:[%s13370_s1 + $0x118] sm:$0xf]  ;;  %v6834_v47 = vld [vmem:[%s13370_s1 + $0x138] sm:$0xf0] }
 0x21b   : > { %v9862_v29 = vadd.f32 %v3074_v60, %v3026_v36  ;;  %v2980_v12 = vadd.f32 %v2979_v9, %v2931_v37  ;;  %3125 = vmatmul.bf16.gmra.mxu0 %v9853_v0  ;;  %v6824_v9 = vld [vmem:[%s13370_s1 + $0x110] sm:$0xf]  ;;  %v8256_v36 = vld [vmem:[%s13370_s1 + $0x134] sm:$0xf0]  ;;  %v8252_v60 = vld [vmem:[%s13370_s1 + $0x11c] sm:$0xf] }
 0x21c   : > { %3174 = vmatmul.bf16.gmra.mxu1 %v9855_v56  ;;  %v8255_v37 = vld [vmem:[%s13370_s1 + $0x12c] sm:$0xf0]  ;;  %v9902_v56 = vor.u32 %v8252_v60, %v6834_v47  ;;  %v8053_v47 = vld [vmem:[%s9202_s20 + $0x2e4] sm:$0xf] }
 0x21d   : > { %3223 = vmatmul.bf16.gmra.mxu2 %v9857_v55 }
 0x21e   : > { %3272 = vmatmul.bf16.gmra.mxu3 %v9860_v54  ;;  %13612 = vst [vmem:[#allocation74_spill] sm:$0xff] %v9902_v56 }
 0x220   : > { %v3028_v15 = vpop.f32.mrf.mxu2  ;;  %v2932_v13 = vpop.f32.mrf.mxu0 }
 0x221   : > { %v3029_v1 = vadd.f32 %v3028_v15, %v2980_v12  ;;  %v3077_v34 = vpop.f32.mrf.mxu3  ;;  %v2933_v23 = vadd.f32 %v2932_v13, %v9685_v7  ;;  %v2981_v28 = vpop.f32.mrf.mxu1  ;;  %v8251_v12 = vld [vmem:[%s13370_s1 + $0x114] sm:$0xf]  ;;  %v9899_v7 = vor.u32 %v8256_v36, %v6832_v41 }
 0x222   : > { %v7178_v41 = vld [vmem:[%s9202_s20 + $0x1f0] sm:$0xf0] }
 0x223   : > { %v9869_v35 = vadd.f32 %v3077_v34, %v3029_v1  ;;  %v2982_v46 = vadd.f32 %v2981_v28, %v2933_v23  ;;  %v9895_v1 = vor.u32 %v8255_v37, %v6824_v9  ;;  %v9897_v28 = vor.u32 %v8251_v12, %v6826_v48  ;;  %13611 = vst [vmem:[#allocation73_spill] sm:$0xff] %v9899_v7  ;;  %v7050_v12 = vld [vmem:[%s9202_s20 + $0xf0] sm:$0xf0]  ;;  %v8021_v48 = vld [vmem:[%s9202_s20 + $0x1e4] sm:$0xf] }
 0x224   : > { %v7181_v60 = vor.u32 %v8021_v48, %v7178_v41  ;;  %v8017_v48 = vld [vmem:[%s9202_s20 + $0x1c4] sm:$0xf]  ;;  %v7162_v41 = vld [vmem:[%s9202_s20 + $0x1d0] sm:$0xf0] }
 0x225   : > { %13609 = vst [vmem:[#allocation71_spill] sm:$0xff] %v9895_v1 }
 0x226   : > { %13610 = vst [vmem:[#allocation72_spill] sm:$0xff] %v9897_v28  ;;  %3347 = vmatpush.bf16.msra.mxu1 %v7181_v60 }
 0x228   : > { %v3030_v15 = vpop.f32.mrf.mxu2  ;;  %v2935_v23 = vpop.f32.mrf.mxu0 }
 0x229   : > { %v3031_v34 = vadd.f32 %v3030_v15, %v2982_v46  ;;  %v3079_v13 = vpop.f32.mrf.mxu3  ;;  %v2936_v54 = vadd.f32 %v2935_v23, %v9693_v10  ;;  %v2984_v55 = vpop.f32.mrf.mxu1  ;;  %v7989_v46 = vld [vmem:[%s9202_s20 + $0xe4] sm:$0xf] }
 0x22a   : > { %v7053_v36 = vor.u32 %v7989_v46, %v7050_v12  ;;  %v7985_v23 = vld [vmem:[%s9202_s20 + $0xc4] sm:$0xf] }
 0x22b   : > { %v9904_v9 = vadd.f32 %v3079_v13, %v3031_v34  ;;  %v2985_v37 = vadd.f32 %v2984_v55, %v2936_v54  ;;  %3130 = vmatmul.bf16.gmra.mxu0 %v9895_v1  ;;  %v7306_v55 = vld [vmem:[%s9202_s20 + $0x2f0] sm:$0xf0]  ;;  %v8085_v54 = vld [vmem:[%s9202_s20 + $0x3e4] sm:$0xf] }
 0x22c   : > { %3179 = vmatmul.bf16.gmra.mxu1 %v9897_v28  ;;  %v7309_v34 = vor.u32 %v8053_v47, %v7306_v55  ;;  %v7434_v13 = vld [vmem:[%s9202_s20 + $0x3f0] sm:$0xf0]  ;;  %3298 = vmatpush.bf16.msra.mxu0 %v7053_v36  ;;  %v8049_v10 = vld [vmem:[%s9202_s20 + $0x2c4] sm:$0xf]  ;;  %v7165_v47 = vor.u32 %v8017_v48, %v7162_v41  ;;  %v8264_v41 = vld [vmem:[%s13370_s1 + $0x174] sm:$0xf0] }
 0x22d   : > { %3228 = vmatmul.bf16.gmra.mxu2 %v9899_v7  ;;  %v7034_v7 = vld [vmem:[%s9202_s20 + $0xd0] sm:$0xf0]  ;;  %v7437_v46 = vor.u32 %v8085_v54, %v7434_v13  ;;  %v7981_v13 = vld [vmem:[%s9202_s20 + $0xa4] sm:$0xf] }
 0x22e   : > { %3277 = vmatmul.bf16.gmra.mxu3 %v9902_v56  ;;  %v7037_v12 = vor.u32 %v7985_v23, %v7034_v7  ;;  %3396 = vmatpush.bf16.msra.mxu2 %v7309_v34  ;;  %v7290_v55 = vld [vmem:[%s9202_s20 + $0x2d0] sm:$0xf0]  ;;  %v6856_v7 = vld [vmem:[%s13370_s1 + $0x150] sm:$0xf]  ;;  %v6864_v34 = vld [vmem:[%s13370_s1 + $0x158] sm:$0xf] }
 0x22f   : > { %3445 = vmatpush.bf16.msra.mxu3 %v7437_v46  ;;  %v7293_v36 = vor.u32 %v8049_v10, %v7290_v55  ;;  %v7018_v23 = vld [vmem:[%s9202_s20 + $0xb0] sm:$0xf0]  ;;  %v8013_v46 = vld [vmem:[%s9202_s20 + $0x1a4] sm:$0xf]  ;;  %3348 = vmatpush.bf16.msra.mxu1 %v7165_v47  ;;  %v6866_v47 = vld [vmem:[%s13370_s1 + $0x178] sm:$0xf0]  ;;  %v9968_v61 = vor.u32 %v8264_v41, %v6864_v34 }
 0x230   : > { %v3033_v15 = vpop.f32.mrf.mxu2  ;;  %v2937_v1 = vpop.f32.mrf.mxu0  ;;  %3299 = vmatpush.bf16.msra.mxu0 %v7037_v12  ;;  %v7146_v10 = vld [vmem:[%s9202_s20 + $0x1b0] sm:$0xf0]  ;;  %v8260_v12 = vld [vmem:[%s13370_s1 + $0x15c] sm:$0xf] }
 0x231   : > { %v3034_v28 = vadd.f32 %v3033_v15, %v2985_v37  ;;  %v3082_v56 = vpop.f32.mrf.mxu3  ;;  %v2938_v0 = vadd.f32 %v2937_v1, %v9643_v38  ;;  %v2986_v62 = vpop.f32.mrf.mxu1  ;;  %v8081_v37 = vld [vmem:[%s9202_s20 + $0x3c4] sm:$0xf]  ;;  %v7418_v15 = vld [vmem:[%s9202_s20 + $0x3d0] sm:$0xf0]  ;;  %v8263_v1 = vld [vmem:[%s13370_s1 + $0x16c] sm:$0xf0]  ;;  %v7149_v55 = vor.u32 %v8013_v46, %v7146_v10 }
 0x232   : > { %v7421_v60 = vor.u32 %v8081_v37, %v7418_v15  ;;  %v7274_v48 = vld [vmem:[%s9202_s20 + $0x2b0] sm:$0xf0]  ;;  %3397 = vmatpush.bf16.msra.mxu2 %v7293_v36  ;;  %v8077_v15 = vld [vmem:[%s9202_s20 + $0x3a4] sm:$0xf]  ;;  %v9961_v22 = vor.u32 %v8263_v1, %v6856_v7  ;;  %13615 = vst [vmem:[#allocation77_spill] sm:$0xff] %v9968_v61 }
 0x233   : > { %v9927_v27 = vadd.f32 %v3082_v56, %v3034_v28  ;;  %v2987_v54 = vadd.f32 %v2986_v62, %v2938_v0  ;;  %v8259_v56 = vld [vmem:[%s13370_s1 + $0x154] sm:$0xf]  ;;  %v7021_v62 = vor.u32 %v7981_v13, %v7018_v23  ;;  %v8045_v0 = vld [vmem:[%s9202_s20 + $0x2a4] sm:$0xf]  ;;  %3349 = vmatpush.bf16.msra.mxu1 %v7149_v55 }
 0x234   : > { %v6858_v28 = vld [vmem:[%s13370_s1 + $0x170] sm:$0xf0]  ;;  %v7277_v37 = vor.u32 %v8045_v0, %v7274_v48  ;;  %3446 = vmatpush.bf16.msra.mxu3 %v7421_v60  ;;  %13613 = vst [vmem:[#allocation75_spill] sm:$0xff] %v9961_v22  ;;  %v7977_v36 = vld [vmem:[%s9202_s20 + $0x84] sm:$0xf] }
 0x235   : > { %v7402_v38 = vld [vmem:[%s9202_s20 + $0x3b0] sm:$0xf0]  ;;  %v8009_v10 = vld [vmem:[%s9202_s20 + $0x184] sm:$0xf]  ;;  %v9966_v11 = vor.u32 %v8259_v56, %v6858_v28  ;;  %3300 = vmatpush.bf16.msra.mxu0 %v7021_v62 }
 0x236   : > { %v7405_v13 = vor.u32 %v8077_v15, %v7402_v38  ;;  %v7002_v46 = vld [vmem:[%s9202_s20 + $0x90] sm:$0xf0]  ;;  %v9974_v15 = vor.u32 %v8260_v12, %v6866_v47  ;;  %3398 = vmatpush.bf16.msra.mxu2 %v7277_v37  ;;  %v7973_v55 = vld [vmem:[%s9202_s20 + $0x64] sm:$0xf] }
 0x237   : > { %13614 = vst [vmem:[#allocation76_spill] sm:$0xff] %v9966_v11  ;;  %v7130_v60 = vld [vmem:[%s9202_s20 + $0x190] sm:$0xf0] }
 0x238   : > { %v3035_v23 = vpop.f32.mrf.mxu2  ;;  %v2940_v17 = vpop.f32.mrf.mxu0  ;;  %v7258_v38 = vld [vmem:[%s9202_s20 + $0x290] sm:$0xf0]  ;;  %13616 = vst [vmem:[#allocation78_spill] sm:$0xff] %v9974_v15  ;;  %3447 = vmatpush.bf16.msra.mxu3 %v7405_v13  ;;  %v7133_v34 = vor.u32 %v8009_v10, %v7130_v60  ;;  %v8069_v10 = vld [vmem:[%s9202_s20 + $0x364] sm:$0xf] }
 0x239   : > { %v3036_v0 = vadd.f32 %v3035_v23, %v2987_v54  ;;  %v3084_v48 = vpop.f32.mrf.mxu3  ;;  %v2941_v7 = vadd.f32 %v2940_v17, %v9645_v39  ;;  %v2989_v1 = vpop.f32.mrf.mxu1  ;;  %v7005_v54 = vor.u32 %v7977_v36, %v7002_v46  ;;  %v8073_v23 = vld [vmem:[%s9202_s20 + $0x384] sm:$0xf]  ;;  %v7386_v56 = vld [vmem:[%s9202_s20 + $0x390] sm:$0xf0]  ;;  %v7261_v62 = vor.u32 %v8041_v58, %v7258_v38 }
 0x23a   : > { %v7389_v17 = vor.u32 %v8073_v23, %v7386_v56  ;;  %v6986_v37 = vld [vmem:[%s9202_s20 + $0x70] sm:$0xf0]  ;;  %v8005_v58 = vld [vmem:[%s9202_s20 + $0x164] sm:$0xf]  ;;  %3350 = vmatpush.bf16.msra.mxu1 %v7133_v34 }
 0x23b   : > { %v9978_v28 = vadd.f32 %v3084_v48, %v3036_v0  ;;  %v2990_v41 = vadd.f32 %v2989_v1, %v2941_v7  ;;  %3135 = vmatmul.bf16.gmra.mxu0 %v9961_v22  ;;  %v7114_v12 = vld [vmem:[%s9202_s20 + $0x170] sm:$0xf0]  ;;  %3399 = vmatpush.bf16.msra.mxu2 %v7261_v62  ;;  %v6989_v47 = vor.u32 %v7973_v55, %v6986_v37  ;;  %v8037_v36 = vld [vmem:[%s9202_s20 + $0x264] sm:$0xf] }
 0x23c   : > { %3184 = vmatmul.bf16.gmra.mxu1 %v9966_v11  ;;  %3301 = vmatpush.bf16.msra.mxu0 %v7005_v54  ;;  %v7117_v13 = vor.u32 %v8005_v58, %v7114_v12  ;;  %v7242_v46 = vld [vmem:[%s9202_s20 + $0x270] sm:$0xf0]  ;;  %v7969_v38 = vld [vmem:[%s9202_s20 + $0x44] sm:$0xf] }
 0x23d   : > { %13617 = vst [vmem:[#allocation79_spill] sm:$0xff] %v9978_v28  ;;  %3233 = vmatmul.bf16.gmra.mxu2 %v9968_v61  ;;  %3448 = vmatpush.bf16.msra.mxu3 %v7389_v17  ;;  %v7245_v48 = vor.u32 %v8037_v36, %v7242_v46  ;;  %v7370_v60 = vld [vmem:[%s9202_s20 + $0x370] sm:$0xf0]  ;;  %v8001_v34 = vld [vmem:[%s9202_s20 + $0x144] sm:$0xf] }
 0x23e   : > { %3282 = vmatmul.bf16.gmra.mxu3 %v9974_v15  ;;  %v6970_v7 = vld [vmem:[%s9202_s20 + $0x50] sm:$0xf0]  ;;  %v7373_v56 = vor.u32 %v8069_v10, %v7370_v60  ;;  %v8033_v55 = vld [vmem:[%s9202_s20 + $0x244] sm:$0xf]  ;;  %v8271_v10 = vld [vmem:[%s13370_s1 + $0x1ac] sm:$0xf0]  ;;  %3351 = vmatpush.bf16.msra.mxu1 %v7117_v13 }
 0x23f   : > { %v7098_v62 = vld [vmem:[%s9202_s20 + $0x150] sm:$0xf0]  ;;  %v6973_v12 = vor.u32 %v7969_v38, %v6970_v7  ;;  %v8065_v36 = vld [vmem:[%s9202_s20 + $0x344] sm:$0xf]  ;;  %3400 = vmatpush.bf16.msra.mxu2 %v7245_v48 }
 0x240   : > { %v3038_v0 = vpop.f32.mrf.mxu2  ;;  %v2942_v23 = vpop.f32.mrf.mxu0  ;;  %3302 = vmatpush.bf16.msra.mxu0 %v6989_v47  ;;  %v7226_v17 = vld [vmem:[%s9202_s20 + $0x250] sm:$0xf0]  ;;  %v7101_v47 = vor.u32 %v8001_v34, %v7098_v62  ;;  %v7965_v48 = vld [vmem:[%s9202_s20 + $0x24] sm:$0xf] }
 0x241   : > { %v3039_v1 = vadd.f32 %v3038_v0, %v2990_v41  ;;  %v3087_v54 = vpop.f32.mrf.mxu3  ;;  %v2943_v37 = vadd.f32 %v2942_v23, %v9619_v8  ;;  %v2991_v58 = vpop.f32.mrf.mxu1  ;;  %v7354_v46 = vld [vmem:[%s9202_s20 + $0x350] sm:$0xf0]  ;;  %v6888_v41 = vld [vmem:[%s13370_s1 + $0x190] sm:$0xf]  ;;  %v7229_v0 = vor.u32 %v8033_v55, %v7226_v17  ;;  %3449 = vmatpush.bf16.msra.mxu3 %v7373_v56  ;;  %v7997_v23 = vld [vmem:[%s9202_s20 + $0x124] sm:$0xf] }
 0x242   : > { %v8267_v38 = vld [vmem:[%s13370_s1 + $0x194] sm:$0xf]  ;;  %v7357_v13 = vor.u32 %v8065_v36, %v7354_v46  ;;  %v8029_v62 = vld [vmem:[%s9202_s20 + $0x224] sm:$0xf]  ;;  %v8268_v56 = vld [vmem:[%s13370_s1 + $0x19c] sm:$0xf]  ;;  %3352 = vmatpush.bf16.msra.mxu1 %v7101_v47  ;;  %v10035_v11 = vor.u32 %v8271_v10, %v6888_v41 }
 0x243   : > { %v10001_v15 = vadd.f32 %v3087_v54, %v3039_v1  ;;  %v2992_v60 = vadd.f32 %v2991_v58, %v2943_v37  ;;  %v6890_v7 = vld [vmem:[%s13370_s1 + $0x1b0] sm:$0xf0]  ;;  %v6896_v1 = vld [vmem:[%s13370_s1 + $0x198] sm:$0xf]  ;;  %v8061_v17 = vld [vmem:[%s9202_s20 + $0x324] sm:$0xf]  ;;  %3401 = vmatpush.bf16.msra.mxu2 %v7229_v0 }
 0x244   : > { %v6954_v54 = vld [vmem:[%s9202_s20 + $0x30] sm:$0xf0]  ;;  %v8272_v37 = vld [vmem:[%s13370_s1 + $0x1b4] sm:$0xf0]  ;;  %3303 = vmatpush.bf16.msra.mxu0 %v6973_v12  ;;  %v6898_v36 = vld [vmem:[%s13370_s1 + $0x1b8] sm:$0xf0]  ;;  %v10040_v47 = vor.u32 %v8267_v38, %v6890_v7 }
 0x245   : > { %13618 = vst [vmem:[#allocation80_spill] sm:$0xff] %v10001_v15  ;;  %v7082_v34 = vld [vmem:[%s9202_s20 + $0x130] sm:$0xf0]  ;;  %v6957_v58 = vor.u32 %v7965_v48, %v6954_v54  ;;  %3450 = vmatpush.bf16.msra.mxu3 %v7357_v13  ;;  %v7961_v54 = vld [vmem:[%s9202_s20 + $0x4] sm:$0xf]  ;;  %v10042_v0 = vor.u32 %v8272_v37, %v6896_v1  ;;  %v10048_v13 = vor.u32 %v8268_v56, %v6898_v36 }
 0x246   : > { %v7210_v55 = vld [vmem:[%s9202_s20 + $0x230] sm:$0xf0]  ;;  %v7085_v46 = vor.u32 %v7997_v23, %v7082_v34  ;;  %13619 = vst [vmem:[#allocation81_spill] sm:$0xff] %v10035_v11  ;;  %v7993_v39 = vld [vmem:[%s9202_s20 + $0x104] sm:$0xf] }
 0x247   : > { %v7338_v8 = vld [vmem:[%s9202_s20 + $0x330] sm:$0xf0]  ;;  %v7213_v61 = vor.u32 %v8029_v62, %v7210_v55  ;;  %13620 = vst [vmem:[#allocation82_spill] sm:$0xff] %v10040_v47  ;;  %v8025_v34 = vld [vmem:[%s9202_s20 + $0x204] sm:$0xf] }
 0x248   : > { %v3040_v12 = vpop.f32.mrf.mxu2  ;;  %v7341_v48 = vor.u32 %v8061_v17, %v7338_v8  ;;  %v6938_v22 = vld [vmem:[%s9202_s20 + $0x10] sm:$0xf0]  ;;  %v2945_v15 = vpop.f32.mrf.mxu0  ;;  %13621 = vst [vmem:[#allocation83_spill] sm:$0xff] %v10042_v0  ;;  %3304 = vmatpush.bf16.msra.mxu0 %v6957_v58  ;;  %v8057_v55 = vld [vmem:[%s9202_s20 + $0x304] sm:$0xf]  ;;  %3353 = vmatpush.bf16.msra.mxu1 %v7085_v46 }
 0x249   : > { %v3041_v57 = vadd.f32 %v3040_v12, %v2992_v60  ;;  %v3089_v53 = vpop.f32.mrf.mxu3  ;;  %v7066_v23 = vld [vmem:[%s9202_s20 + $0x110] sm:$0xf0]  ;;  %v2946_v41 = vadd.f32 %v2945_v15, %v9683_v2  ;;  %v2994_v10 = vpop.f32.mrf.mxu1  ;;  %13622 = vst [vmem:[#allocation84_spill] sm:$0xff] %v10048_v13  ;;  %v6941_v8 = vor.u32 %v7961_v54, %v6938_v22  ;;  %3402 = vmatpush.bf16.msra.mxu2 %v7213_v61  ;;  %v6920_v56 = vld [vmem:[%s13370_s1 + $0x1d0] sm:$0xf] }
 0x24a   : > { %v7194_v62 = vld [vmem:[%s9202_s20 + $0x210] sm:$0xf0]  ;;  %v7069_v60 = vor.u32 %v7993_v39, %v7066_v23  ;;  %3451 = vmatpush.bf16.msra.mxu3 %v7341_v48  ;;  %v8279_v36 = vld [vmem:[%s13370_s1 + $0x1ec] sm:$0xf0]  ;;  %v6928_v48 = vld [vmem:[%s13370_s1 + $0x1d8] sm:$0xf] }
 0x24b   : > { %v7322_v17 = vld [vmem:[%s9202_s20 + $0x310] sm:$0xf0]  ;;  %v10052_v28 = vadd.f32 %v3089_v53, %v3041_v57  ;;  %v7197_v38 = vor.u32 %v8025_v34, %v7194_v62  ;;  %v2995_v7 = vadd.f32 %v2994_v10, %v2946_v41  ;;  %3140 = vmatmul.bf16.gmra.mxu0 %v10035_v11  ;;  %v8280_v54 = vld [vmem:[%s13370_s1 + $0x1f4] sm:$0xf0]  ;;  %v8276_v23 = vld [vmem:[%s13370_s1 + $0x1dc] sm:$0xf]  ;;  %v10085_v41 = vor.u32 %v8279_v36, %v6920_v56 }
 0x24c   : > { %v7325_v1 = vor.u32 %v8057_v55, %v7322_v17  ;;  %3189 = vmatmul.bf16.gmra.mxu1 %v10040_v47  ;;  %3305 = vmatpush.bf16.msra.mxu0 %v6941_v8  ;;  %v8275_v46 = vld [vmem:[%s13370_s1 + $0x1d4] sm:$0xf]  ;;  %v6930_v34 = vld [vmem:[%s13370_s1 + $0x1f8] sm:$0xf0] }
 0x24d   : > { %3238 = vmatmul.bf16.gmra.mxu2 %v10042_v0  ;;  %3354 = vmatpush.bf16.msra.mxu1 %v7069_v60  ;;  %v6922_v12 = vld [vmem:[%s13370_s1 + $0x1f0] sm:$0xf0]  ;;  %13623 = vst [vmem:[#allocation85_spill] sm:$0xff] %v10085_v41  ;;  %v10089_v60 = vor.u32 %v8280_v54, %v6928_v48  ;;  %v4846_v54 = vld [vmem:[%s13375_s6] sm:$0xff] }
 0x24e   : > { %3287 = vmatmul.bf16.gmra.mxu3 %v10048_v13  ;;  %3403 = vmatpush.bf16.msra.mxu2 %v7197_v38  ;;  %v10087_v17 = vor.u32 %v8275_v46, %v6922_v12  ;;  %v4808_v48 = vld [vmem:[%s13374_s5 + $0x10] sm:$0xff] }
 0x24f   : > { %3452 = vmatpush.bf16.msra.mxu3 %v7325_v1  ;;  %13625 = vst [vmem:[#allocation87_spill] sm:$0xff] %v10089_v60  ;;  %v10092_v1 = vor.u32 %v8276_v23, %v6930_v34  ;;  %4822 = vperm.xlu0 %8371, %v4808_v48   ;;  %v4807_v48 = vld [vmem:[%s13374_s5 + $0x8] sm:$0xff] }
 0x250   : > { %v3043_v53 = vpop.f32.mrf.mxu2  ;;  %v2947_v22 = vpop.f32.mrf.mxu0  ;;  %13624 = vst [vmem:[#allocation86_spill] sm:$0xff] %v10087_v17  ;;  %4817 = vperm.xlu2 %8373, %v4807_v48  }
 0x251   : > { %v3044_v57 = vadd.f32 %v3043_v53, %v2995_v7  ;;  %v3092_v61 = vpop.f32.mrf.mxu3  ;;  %v2948_v39 = vadd.f32 %v2947_v22, %v9647_v40  ;;  %v2996_v15 = vpop.f32.mrf.mxu1  ;;  %13626 = vst [vmem:[#allocation88_spill] sm:$0xff] %v10092_v1 }
 0x253   : > { %v10059_v37 = vadd.f32 %v3092_v61, %v3044_v57  ;;  %v2997_v58 = vadd.f32 %v2996_v15, %v2948_v39  ;;  %v4806_v61 = vld [vmem:[%s13374_s5] sm:$0xff] }
 0x254   : > { %4812 = vperm.xlu1 %8372, %v4806_v61  }
 0x258   : > { %v3045_v62 = vpop.f32.mrf.mxu2  ;;  %v2950_v55 = vpop.f32.mrf.mxu0 }
 0x259   : > { %v3046_v10 = vadd.f32 %v3045_v62, %v2997_v58  ;;  %v3094_v8 = vpop.f32.mrf.mxu3  ;;  %v2951_v38 = vadd.f32 %v2950_v55, %v9626_v16  ;;  %v2999_v7 = vpop.f32.mrf.mxu1 }
 0x25b   : > { %v10094_v53 = vadd.f32 %v3094_v8, %v3046_v10  ;;  %v3000_v57 = vadd.f32 %v2999_v7, %v2951_v38  ;;  %3145 = vmatmul.bf16.gmra.mxu0 %v10085_v41 }
 0x25c   : > { %3194 = vmatmul.bf16.gmra.mxu1 %v10087_v17  ;;  %4852 = vperm.xlu1 %8372, %v4846_v54  }
 0x25d   : > { %3243 = vmatmul.bf16.gmra.mxu2 %v10089_v60 }
 0x25e   : > { %3292 = vmatmul.bf16.gmra.mxu3 %v10092_v1 }
 0x260   : > { %v3048_v22 = vpop.f32.mrf.mxu2  ;;  %v2952_v58 = vpop.f32.mrf.mxu0 }
 0x261   : > { %v3049_v39 = vadd.f32 %v3048_v22, %v3000_v57  ;;  %v3097_v15 = vpop.f32.mrf.mxu3  ;;  %v2953_v56 = vadd.f32 %v2952_v58, %v9581_v26  ;;  %v3001_v36 = vpop.f32.mrf.mxu1  ;;  %v4809_v57 = vld [vmem:[%s13374_s5 + $0x18] sm:$0xff] }
 0x262   : > { %4827 = vperm.xlu0 %8371, %v4809_v57  }
 0x263   : > { %v10104_v46 = vadd.f32 %v3097_v15, %v3049_v39  ;;  %v3002_v12 = vadd.f32 %v3001_v36, %v2953_v56 }
 0x268   : > { %v3050_v23 = vpop.f32.mrf.mxu2  ;;  %v3111_v10 = vpop.f32.mrf.mxu0 }
 0x269   : > { %v3051_v34 = vadd.f32 %v3050_v23, %v3002_v12  ;;  %v3099_v62 = vpop.f32.mrf.mxu3  ;;  %v3112_v8 = vadd.f32 %v3111_v10, %v9741_v25  ;;  %v3160_v55 = vpop.f32.mrf.mxu1  ;;  %v4848_v25 = vld [vmem:[%s13375_s6 + $0x10] sm:$0xff] }
 0x26a   : > { %4862 = vperm.xlu1 %8372, %v4848_v25  }
 0x26b   : > { %v10113_v38 = vadd.f32 %v3099_v62, %v3051_v34  ;;  %v3161_v7 = vadd.f32 %v3160_v55, %v3112_v8  ;;  %3306 = vmatmul.bf16.vlgmr.msra.gmra.mxu0 %v9318_v49 }
 0x26c   : > { %3355 = vmatmul.bf16.vlgmr.msra.gmra.mxu1 %v9320_v50 }
 0x26d   : > { %3404 = vmatmul.bf16.vlgmr.msra.gmra.mxu2 %v9322_v51 }
 0x26e   : > { %3453 = vmatmul.bf16.vlgmr.msra.gmra.mxu3 %v9324_v52 }
 0x270   : > { %v3209_v61 = vpop.f32.mrf.mxu2  ;;  %v3113_v15 = vpop.f32.mrf.mxu0 }
 0x271   : > { %v3210_v22 = vadd.f32 %v3209_v61, %v3161_v7  ;;  %v3258_v39 = vpop.f32.mrf.mxu3  ;;  %v3114_v58 = vadd.f32 %v3113_v15, %v9778_v63  ;;  %v3162_v56 = vpop.f32.mrf.mxu1  ;;  %v4847_v63 = vld [vmem:[%s13375_s6 + $0x8] sm:$0xff] }
 0x272   : > { %4857 = vperm.xlu2 %8373, %v4847_v63  }
 0x273   : > { %v10126_v36 = vadd.f32 %v3258_v39, %v3210_v22  ;;  %v3163_v12 = vadd.f32 %v3162_v56, %v3114_v58  ;;  %v4849_v56 = vld [vmem:[%s13375_s6 + $0x18] sm:$0xff] }
 0x275   : > { %13627 = vst [vmem:[#allocation89_spill] sm:$0xff] %v10126_v36  ;;  %v8209_v36 = vld [vmem:[%s9202_s20 + $0x7c4] sm:$0xf] }
 0x278   : > { %v3211_v54 = vpop.f32.mrf.mxu2  ;;  %v3116_v62 = vpop.f32.mrf.mxu0 }
 0x279   : > { %v3212_v23 = vadd.f32 %v3211_v54, %v3163_v12  ;;  %v3260_v34 = vpop.f32.mrf.mxu3  ;;  %v3117_v10 = vadd.f32 %v3116_v62, %v9785_v59  ;;  %v3165_v8 = vpop.f32.mrf.mxu1 }
 0x27a   : > { %4867 = vperm.xlu2 %8373, %v4849_v56  }
 0x27b   : > { %v10132_v55 = vadd.f32 %v3260_v34, %v3212_v23  ;;  %v3166_v7 = vadd.f32 %v3165_v8, %v3117_v10  ;;  %3311 = vmatmul.bf16.gmra.mxu0 %v9372_v3 }
 0x27c   : > { %3360 = vmatmul.bf16.gmra.mxu1 %v9374_v4 }
 0x27d   : > { %13628 = vst [vmem:[#allocation90_spill] sm:$0xff] %v10132_v55  ;;  %3409 = vmatmul.bf16.gmra.mxu2 %v9376_v5  ;;  %v8201_v55 = vld [vmem:[%s9202_s20 + $0x784] sm:$0xf] }
 0x27e   : > { %3458 = vmatmul.bf16.gmra.mxu3 %v9378_v6 }
 0x280   : > { %v3214_v57 = vpop.f32.mrf.mxu2  ;;  %v3118_v61 = vpop.f32.mrf.mxu0 }
 0x281   : > { %v3215_v25 = vadd.f32 %v3214_v57, %v3166_v7  ;;  %v3263_v59 = vpop.f32.mrf.mxu3  ;;  %v3119_v22 = vadd.f32 %v3118_v61, %v9820_v24  ;;  %v3167_v39 = vpop.f32.mrf.mxu1 }
 0x283   : > { %v10142_v15 = vadd.f32 %v3263_v59, %v3215_v25  ;;  %v3168_v58 = vadd.f32 %v3167_v39, %v3119_v22 }
 0x285   : > { %13629 = vst [vmem:[#allocation91_spill] sm:$0xff] %v10142_v15 }
 0x288   : > { %v3216_v12 = vpop.f32.mrf.mxu2  ;;  %v3121_v23 = vpop.f32.mrf.mxu0 }
 0x289   : > { %v3217_v48 = vadd.f32 %v3216_v12, %v3168_v58  ;;  %v3265_v54 = vpop.f32.mrf.mxu3  ;;  %v3122_v34 = vadd.f32 %v3121_v23, %v9827_v14  ;;  %v3170_v62 = vpop.f32.mrf.mxu1 }
 0x28b   : > { %v10148_v10 = vadd.f32 %v3265_v54, %v3217_v48  ;;  %v3171_v8 = vadd.f32 %v3170_v62, %v3122_v34  ;;  %3316 = vmatmul.bf16.gmra.mxu0 %v9417_v18 }
 0x28c   : > { %3365 = vmatmul.bf16.gmra.mxu1 %v9419_v19 }
 0x28d   : > { %13630 = vst [vmem:[#allocation92_spill] sm:$0xff] %v10148_v10  ;;  %3414 = vmatmul.bf16.gmra.mxu2 %v9421_v20  ;;  %v8129_v10 = vld [vmem:[%s9202_s20 + $0x544] sm:$0xf] }
 0x28e   : > { %3463 = vmatmul.bf16.gmra.mxu3 %v9423_v21 }
 0x290   : > { %v3219_v24 = vpop.f32.mrf.mxu2  ;;  %v3123_v57 = vpop.f32.mrf.mxu0 }
 0x291   : > { %v3220_v7 = vadd.f32 %v3219_v24, %v3171_v8  ;;  %v3268_v63 = vpop.f32.mrf.mxu3  ;;  %v3124_v25 = vadd.f32 %v3123_v57, %v9862_v29  ;;  %v3172_v59 = vpop.f32.mrf.mxu1 }
 0x293   : > { %v10155_v14 = vadd.f32 %v3268_v63, %v3220_v7  ;;  %v3173_v61 = vadd.f32 %v3172_v59, %v3124_v25 }
 0x295   : > { %13631 = vst [vmem:[#allocation93_spill] sm:$0xff] %v10155_v14 }
 0x298   : > { %v3221_v22 = vpop.f32.mrf.mxu2  ;;  %v3126_v56 = vpop.f32.mrf.mxu0 }
 0x299   : > { %v3222_v39 = vadd.f32 %v3221_v22, %v3173_v61  ;;  %v3270_v58 = vpop.f32.mrf.mxu3  ;;  %v3127_v12 = vadd.f32 %v3126_v56, %v9869_v35  ;;  %v3175_v48 = vpop.f32.mrf.mxu1 }
 0x29b   : > { %v10158_v54 = vadd.f32 %v3270_v58, %v3222_v39  ;;  %v3176_v23 = vadd.f32 %v3175_v48, %v3127_v12  ;;  %3321 = vmatmul.bf16.gmra.mxu0 %v9453_v30  ;;  %v7562_v12 = vld [vmem:[%s9202_s20 + $0x4f0] sm:$0xf0]  ;;  %v8149_v48 = vld [vmem:[%s9202_s20 + $0x5e4] sm:$0xf] }
 0x29c   : > { %3370 = vmatmul.bf16.gmra.mxu1 %v9455_v31 }
 0x29d   : > { %13632 = vst [vmem:[#allocation94_spill] sm:$0xff] %v10158_v54  ;;  %3419 = vmatmul.bf16.gmra.mxu2 %v9457_v32  ;;  %v7610_v54 = vld [vmem:[%s9202_s20 + $0x550] sm:$0xf0] }
 0x29e   : > { %3468 = vmatmul.bf16.gmra.mxu3 %v9459_v33 }
 0x2a0   : > { %v3224_v29 = vpop.f32.mrf.mxu2  ;;  %v3128_v8 = vpop.f32.mrf.mxu0 }
 0x2a1   : > { %v3225_v34 = vadd.f32 %v3224_v29, %v3176_v23  ;;  %v3273_v62 = vpop.f32.mrf.mxu3  ;;  %v3129_v35 = vadd.f32 %v3128_v8, %v9904_v9  ;;  %v3177_v24 = vpop.f32.mrf.mxu1  ;;  %v8117_v9 = vld [vmem:[%s9202_s20 + $0x4e4] sm:$0xf] }
 0x2a2   : > { %v7565_v23 = vor.u32 %v8117_v9, %v7562_v12  ;;  %v8181_v29 = vld [vmem:[%s9202_s20 + $0x6e4] sm:$0xf] }
 0x2a3   : > { %v10165_v7 = vadd.f32 %v3273_v62, %v3225_v34  ;;  %v3178_v63 = vadd.f32 %v3177_v24, %v3129_v35  ;;  %v7818_v62 = vld [vmem:[%s9202_s20 + $0x6f0] sm:$0xf0]  ;;  %v8213_v8 = vld [vmem:[%s9202_s20 + $0x7e4] sm:$0xf] }
 0x2a4   : > { %v7946_v35 = vld [vmem:[%s9202_s20 + $0x7f0] sm:$0xf0]  ;;  %3494 = vmatpush.bf16.msrb.mxu0 %v7565_v23  ;;  %v7821_v24 = vor.u32 %v8181_v29, %v7818_v62  ;;  %v8177_v23 = vld [vmem:[%s9202_s20 + $0x6c4] sm:$0xf] }
 0x2a5   : > { %13633 = vst [vmem:[#allocation95_spill] sm:$0xff] %v10165_v7  ;;  %v13635_v29 = vld [vmem:[#allocation79_spill] sm:$0xff] }
 0x2a6   : > { %3592 = vmatpush.bf16.msrb.mxu2 %v7821_v24  ;;  %v8161_v7 = vld [vmem:[%s9202_s20 + $0x644] sm:$0xf] }
 0x2a8   : > { %v3226_v57 = vpop.f32.mrf.mxu2  ;;  %v3131_v61 = vpop.f32.mrf.mxu0 }
 0x2a9   : > { %v3227_v25 = vadd.f32 %v3226_v57, %v3178_v63  ;;  %v3275_v59 = vpop.f32.mrf.mxu3  ;;  %v3132_v22 = vadd.f32 %v3131_v61, %v9927_v27  ;;  %v3180_v39 = vpop.f32.mrf.mxu1  ;;  %v7690_v27 = vld [vmem:[%s9202_s20 + $0x5f0] sm:$0xf0]  ;;  %v7949_v63 = vor.u32 %v8213_v8, %v7946_v35  ;;  %v8145_v61 = vld [vmem:[%s9202_s20 + $0x5c4] sm:$0xf] }
 0x2aa   : > { %v7693_v34 = vor.u32 %v8149_v48, %v7690_v27  ;;  %v7674_v48 = vld [vmem:[%s9202_s20 + $0x5d0] sm:$0xf0] }
 0x2ab   : > { %v10168_v58 = vadd.f32 %v3275_v59, %v3227_v25  ;;  %v3181_v56 = vadd.f32 %v3180_v39, %v3132_v22  ;;  %3326 = vmatmul.bf16.gmra.mxu0 %v9489_v42  ;;  %v8113_v25 = vld [vmem:[%s9202_s20 + $0x4c4] sm:$0xf]  ;;  %v7546_v59 = vld [vmem:[%s9202_s20 + $0x4d0] sm:$0xf0]  ;;  %3641 = vmatpush.bf16.msrb.mxu3 %v7949_v63  ;;  %v7677_v8 = vor.u32 %v8145_v61, %v7674_v48 }
 0x2ac   : > { %3375 = vmatmul.bf16.gmra.mxu1 %v9491_v43  ;;  %v7549_v12 = vor.u32 %v8113_v25, %v7546_v59  ;;  %v7802_v27 = vld [vmem:[%s9202_s20 + $0x6d0] sm:$0xf0]  ;;  %v8109_v25 = vld [vmem:[%s9202_s20 + $0x4a4] sm:$0xf] }
 0x2ad   : > { %13634 = vst [vmem:[#allocation96_spill] sm:$0xff] %v10168_v58  ;;  %3424 = vmatmul.bf16.gmra.mxu2 %v9493_v44  ;;  %3543 = vmatpush.bf16.msrb.mxu1 %v7693_v34  ;;  %v7805_v35 = vor.u32 %v8177_v23, %v7802_v27  ;;  %v7530_v59 = vld [vmem:[%s9202_s20 + $0x4b0] sm:$0xf0]  ;;  %v8173_v23 = vld [vmem:[%s9202_s20 + $0x6a4] sm:$0xf] }
 0x2ae   : > { %3473 = vmatmul.bf16.gmra.mxu3 %v9495_v45  ;;  %3495 = vmatpush.bf16.msrb.mxu0 %v7549_v12  ;;  %v7533_v61 = vor.u32 %v8109_v25, %v7530_v59  ;;  %v7658_v48 = vld [vmem:[%s9202_s20 + $0x5b0] sm:$0xf0] }
 0x2af   : > { %3593 = vmatpush.bf16.msrb.mxu2 %v7805_v35  ;;  %v8137_v35 = vld [vmem:[%s9202_s20 + $0x584] sm:$0xf]  ;;  %v7738_v58 = vld [vmem:[%s9202_s20 + $0x650] sm:$0xf0] }
 0x2b0   : > { %v3229_v57 = vpop.f32.mrf.mxu2  ;;  %v3133_v9 = vpop.f32.mrf.mxu0 }
 0x2b1   : > { %v3230_v22 = vadd.f32 %v3229_v57, %v3181_v56  ;;  %v3278_v39 = vpop.f32.mrf.mxu3  ;;  %v3134_v62 = vadd.f32 %v3133_v9, %v13635_v29  ;;  %v3182_v34 = vpop.f32.mrf.mxu1  ;;  %v7930_v56 = vld [vmem:[%s9202_s20 + $0x7d0] sm:$0xf0]  ;;  %3544 = vmatpush.bf16.msrb.mxu1 %v7677_v8  ;;  %v8141_v9 = vld [vmem:[%s9202_s20 + $0x5a4] sm:$0xf] }
 0x2b2   : > { %v7933_v63 = vor.u32 %v8209_v36, %v7930_v56  ;;  %v7661_v27 = vor.u32 %v8141_v9, %v7658_v48  ;;  %v7786_v29 = vld [vmem:[%s9202_s20 + $0x6b0] sm:$0xf0]  ;;  %3496 = vmatpush.bf16.msrb.mxu0 %v7533_v61  ;;  %v8169_v61 = vld [vmem:[%s9202_s20 + $0x684] sm:$0xf] }
 0x2b3   : > { %v10191_v24 = vadd.f32 %v3278_v39, %v3230_v22  ;;  %v3183_v57 = vadd.f32 %v3182_v34, %v3134_v62  ;;  %v8205_v22 = vld [vmem:[%s9202_s20 + $0x7a4] sm:$0xf]  ;;  %v7914_v39 = vld [vmem:[%s9202_s20 + $0x7b0] sm:$0xf0]  ;;  %v7789_v36 = vor.u32 %v8173_v23, %v7786_v29  ;;  %v13637_v23 = vld [vmem:[#allocation80_spill] sm:$0xff] }
 0x2b4   : > { %3642 = vmatpush.bf16.msrb.mxu3 %v7933_v63  ;;  %v7917_v12 = vor.u32 %v8205_v22, %v7914_v39  ;;  %v8105_v34 = vld [vmem:[%s9202_s20 + $0x484] sm:$0xf]  ;;  %v7514_v8 = vld [vmem:[%s9202_s20 + $0x490] sm:$0xf0] }
 0x2b5   : > { %13636 = vst [vmem:[#allocation79_spill] sm:$0xff] %v10191_v24  ;;  %3545 = vmatpush.bf16.msrb.mxu1 %v7661_v27  ;;  %3594 = vmatpush.bf16.msrb.mxu2 %v7789_v36  ;;  %v7517_v59 = vor.u32 %v8105_v34, %v7514_v8  ;;  %v7642_v9 = vld [vmem:[%s9202_s20 + $0x590] sm:$0xf0]  ;;  %v13639_v34 = vld [vmem:[#allocation27_spill] sm:$0xff] }
 0x2b6   : > { %v7770_v48 = vld [vmem:[%s9202_s20 + $0x690] sm:$0xf0]  ;;  %v7645_v22 = vor.u32 %v8137_v35, %v7642_v9  ;;  %v8101_v8 = vld [vmem:[%s9202_s20 + $0x464] sm:$0xf]  ;;  %v13640_v35 = vld [vmem:[#allocation28_spill] sm:$0xff] }
 0x2b7   : > { %v7773_v39 = vor.u32 %v8169_v61, %v7770_v48  ;;  %3497 = vmatpush.bf16.msrb.mxu0 %v7517_v59  ;;  %v13641_v9 = vld [vmem:[#allocation29_spill] sm:$0xff] }
 0x2b8   : > { %v3231_v62 = vpop.f32.mrf.mxu2  ;;  %v3136_v25 = vpop.f32.mrf.mxu0  ;;  %3643 = vmatpush.bf16.msrb.mxu3 %v7917_v12  ;;  %v7754_v48 = vld [vmem:[%s9202_s20 + $0x670] sm:$0xf0] }
 0x2b9   : > { %v3232_v56 = vadd.f32 %v3231_v62, %v3183_v57  ;;  %v3280_v63 = vpop.f32.mrf.mxu3  ;;  %v3137_v29 = vadd.f32 %v3136_v25, %v13637_v23  ;;  %v3185_v27 = vpop.f32.mrf.mxu1  ;;  %v7898_v57 = vld [vmem:[%s9202_s20 + $0x790] sm:$0xf0]  ;;  %3546 = vmatpush.bf16.msrb.mxu1 %v7645_v22  ;;  %v8133_v23 = vld [vmem:[%s9202_s20 + $0x564] sm:$0xf]  ;;  %3595 = vmatpush.bf16.msrb.mxu2 %v7773_v39 }
 0x2ba   : > { %v7901_v36 = vor.u32 %v8201_v55, %v7898_v57  ;;  %v7498_v25 = vld [vmem:[%s9202_s20 + $0x470] sm:$0xf0]  ;;  %v13642_v55 = vld [vmem:[#allocation30_spill] sm:$0xff] }
 0x2bb   : > { %v10210_v62 = vadd.f32 %v3280_v63, %v3232_v56  ;;  %v3186_v12 = vadd.f32 %v3185_v27, %v3137_v29  ;;  %3331 = vmatmul.bf16.gmra.mxu0 %v13639_v34  ;;  %v7501_v61 = vor.u32 %v8101_v8, %v7498_v25  ;;  %v7626_v56 = vld [vmem:[%s9202_s20 + $0x570] sm:$0xf0]  ;;  %v8165_v63 = vld [vmem:[%s9202_s20 + $0x664] sm:$0xf] }
 0x2bc   : > { %3380 = vmatmul.bf16.gmra.mxu1 %v13640_v35  ;;  %v7629_v59 = vor.u32 %v8133_v23, %v7626_v56  ;;  %v8197_v29 = vld [vmem:[%s9202_s20 + $0x764] sm:$0xf]  ;;  %v7882_v27 = vld [vmem:[%s9202_s20 + $0x770] sm:$0xf0]  ;;  %3644 = vmatpush.bf16.msrb.mxu3 %v7901_v36  ;;  %v7757_v22 = vor.u32 %v8165_v63, %v7754_v48  ;;  %v7613_v63 = vor.u32 %v8129_v10, %v7610_v54  ;;  %v6960_v35 = vld [vmem:[%s9202_s20 + $0x28] sm:$0xf] }
 0x2bd   : > { %13638 = vst [vmem:[#allocation80_spill] sm:$0xff] %v10210_v62  ;;  %3429 = vmatmul.bf16.gmra.mxu2 %v13641_v9  ;;  %3498 = vmatpush.bf16.msrb.mxu0 %v7501_v61  ;;  %v7885_v57 = vor.u32 %v8197_v29, %v7882_v27  ;;  %v8097_v8 = vld [vmem:[%s9202_s20 + $0x444] sm:$0xf]  ;;  %v7482_v25 = vld [vmem:[%s9202_s20 + $0x450] sm:$0xf0]  ;;  %v13692_v9 = vld [vmem:[#allocation32_spill] sm:$0xff] }
 0x2be   : > { %3478 = vmatmul.bf16.gmra.mxu3 %v13642_v55  ;;  %3547 = vmatpush.bf16.msrb.mxu1 %v7629_v59  ;;  %v7485_v56 = vor.u32 %v8097_v8, %v7482_v25  ;;  %v7741_v59 = vor.u32 %v8161_v7, %v7738_v58  ;;  %v8193_v48 = vld [vmem:[%s9202_s20 + $0x744] sm:$0xf]  ;;  %v7594_v10 = vld [vmem:[%s9202_s20 + $0x530] sm:$0xf0]  ;;  %v6992_v55 = vld [vmem:[%s9202_s20 + $0x68] sm:$0xf] }
 0x2bf   : > { %3596 = vmatpush.bf16.msrb.mxu2 %v7757_v22  ;;  %v8093_v8 = vld [vmem:[%s9202_s20 + $0x424] sm:$0xf]  ;;  %v7722_v58 = vld [vmem:[%s9202_s20 + $0x630] sm:$0xf0] }
 0x2c0   : > { %v3234_v15 = vpop.f32.mrf.mxu2  ;;  %v3138_v23 = vpop.f32.mrf.mxu0  ;;  %3645 = vmatpush.bf16.msrb.mxu3 %v7885_v57  ;;  %v8125_v25 = vld [vmem:[%s9202_s20 + $0x524] sm:$0xf]  ;;  %v7850_v57 = vld [vmem:[%s9202_s20 + $0x730] sm:$0xf0] }
 0x2c1   : > { %v3235_v14 = vadd.f32 %v3234_v15, %v3186_v12  ;;  %v3283_v39 = vpop.f32.mrf.mxu3  ;;  %v3139_v36 = vadd.f32 %v3138_v23, %v10052_v28  ;;  %v3187_v61 = vpop.f32.mrf.mxu1  ;;  %v7866_v15 = vld [vmem:[%s9202_s20 + $0x750] sm:$0xf0]  ;;  %3499 = vmatpush.bf16.msrb.mxu0 %v7485_v56  ;;  %v8157_v54 = vld [vmem:[%s9202_s20 + $0x624] sm:$0xf]  ;;  %v7597_v7 = vor.u32 %v8125_v25, %v7594_v10 }
 0x2c2   : > { %v7869_v29 = vor.u32 %v8193_v48, %v7866_v15  ;;  %3548 = vmatpush.bf16.msrb.mxu1 %v7613_v63  ;;  %v7466_v28 = vld [vmem:[%s9202_s20 + $0x430] sm:$0xf0]  ;;  %v8121_v63 = vld [vmem:[%s9202_s20 + $0x504] sm:$0xf] }
 0x2c3   : > { %v10233_v12 = vadd.f32 %v3283_v39, %v3235_v14  ;;  %v3188_v27 = vadd.f32 %v3187_v61, %v3139_v36  ;;  %v7469_v22 = vor.u32 %v8093_v8, %v7466_v28  ;;  %3597 = vmatpush.bf16.msrb.mxu2 %v7741_v59  ;;  %v8189_v14 = vld [vmem:[%s9202_s20 + $0x724] sm:$0xf]  ;;  %v7725_v39 = vor.u32 %v8157_v54, %v7722_v58  ;;  %v7450_v61 = vld [vmem:[%s9202_s20 + $0x410] sm:$0xf0] }
 0x2c4   : > { %3646 = vmatpush.bf16.msrb.mxu3 %v7869_v29  ;;  %v7853_v23 = vor.u32 %v8189_v14, %v7850_v57  ;;  %v8089_v36 = vld [vmem:[%s9202_s20 + $0x404] sm:$0xf]  ;;  %v7578_v28 = vld [vmem:[%s9202_s20 + $0x510] sm:$0xf0] }
 0x2c5   : > { %13643 = vst [vmem:[#allocation97_spill] sm:$0xff] %v10233_v12  ;;  %3500 = vmatpush.bf16.msrb.mxu0 %v7469_v22  ;;  %v7453_v8 = vor.u32 %v8089_v36, %v7450_v61  ;;  %v8153_v25 = vld [vmem:[%s9202_s20 + $0x604] sm:$0xf]  ;;  %v7706_v10 = vld [vmem:[%s9202_s20 + $0x610] sm:$0xf0]  ;;  %v7581_v22 = vor.u32 %v8121_v63, %v7578_v28  ;;  %v13647_v61 = vld [vmem:[#allocation36_spill] sm:$0xff] }
 0x2c6   : > { %3549 = vmatpush.bf16.msrb.mxu1 %v7597_v7  ;;  %v7709_v54 = vor.u32 %v8153_v25, %v7706_v10  ;;  %v8185_v58 = vld [vmem:[%s9202_s20 + $0x704] sm:$0xf]  ;;  %v7834_v7 = vld [vmem:[%s9202_s20 + $0x710] sm:$0xf0] }
 0x2c7   : > { %3598 = vmatpush.bf16.msrb.mxu2 %v7725_v39  ;;  %v7837_v57 = vor.u32 %v8185_v58, %v7834_v7  ;;  %v13646_v36 = vld [vmem:[#allocation35_spill] sm:$0xff] }
 0x2c8   : > { %v3236_v56 = vpop.f32.mrf.mxu2  ;;  %v3141_v15 = vpop.f32.mrf.mxu0  ;;  %3647 = vmatpush.bf16.msrb.mxu3 %v7853_v23 }
 0x2c9   : > { %v3237_v48 = vadd.f32 %v3236_v56, %v3188_v27  ;;  %v3285_v59 = vpop.f32.mrf.mxu3  ;;  %v3142_v24 = vadd.f32 %v3141_v15, %v10059_v37  ;;  %v3190_v29 = vpop.f32.mrf.mxu1  ;;  %3501 = vmatpush.bf16.msrb.mxu0 %v7453_v8  ;;  %v13645_v56 = vld [vmem:[#allocation33_spill] sm:$0xff] }
 0x2ca   : > { %3550 = vmatpush.bf16.msrb.mxu1 %v7581_v22  ;;  %v13648_v37 = vld [vmem:[#allocation37_spill] sm:$0xff] }
 0x2cb   : > { %v10252_v14 = vadd.f32 %v3285_v59, %v3237_v48  ;;  %v3191_v27 = vadd.f32 %v3190_v29, %v3142_v24  ;;  %3336 = vmatmul.bf16.gmra.mxu0 %v13645_v56  ;;  %3599 = vmatpush.bf16.msrb.mxu2 %v7709_v54  ;;  %v7984_v56 = vld [vmem:[%s9202_s20 + $0xb4] sm:$0xf0] }
 0x2cc   : > { %3385 = vmatmul.bf16.gmra.mxu1 %v13646_v36  ;;  %3648 = vmatpush.bf16.msrb.mxu3 %v7837_v57  ;;  %v13651_v57 = vld [vmem:[#allocation41_spill] sm:$0xff]  ;;  %v7424_v36 = vld [vmem:[%s9202_s20 + $0x3c8] sm:$0xf] }
 0x2cd   : > { %13644 = vst [vmem:[#allocation98_spill] sm:$0xff] %v10252_v14  ;;  %3434 = vmatmul.bf16.gmra.mxu2 %v13647_v61 }
 0x2ce   : > { %3483 = vmatmul.bf16.gmra.mxu3 %v13648_v37 }
 0x2d0   : > { %v3239_v39 = vpop.f32.mrf.mxu2  ;;  %v3143_v48 = vpop.f32.mrf.mxu0 }
 0x2d1   : > { %v3240_v63 = vadd.f32 %v3239_v39, %v3191_v27  ;;  %v3288_v15 = vpop.f32.mrf.mxu3  ;;  %v3144_v23 = vadd.f32 %v3143_v48, %v10094_v53  ;;  %v3192_v59 = vpop.f32.mrf.mxu1  ;;  %v13652_v27 = vld [vmem:[#allocation43_spill] sm:$0xff]  ;;  %v13653_v39 = vld [vmem:[#allocation44_spill] sm:$0xff]  ;;  %v13654_v53 = vld [vmem:[#allocation45_spill] sm:$0xff] }
 0x2d3   : > { %v10259_v8 = vadd.f32 %v3288_v15, %v3240_v63  ;;  %v3193_v24 = vadd.f32 %v3192_v59, %v3144_v23 }
 0x2d5   : > { %13649 = vst [vmem:[#allocation99_spill] sm:$0xff] %v10259_v8 }
 0x2d8   : > { %v3241_v28 = vpop.f32.mrf.mxu2  ;;  %v3146_v29 = vpop.f32.mrf.mxu0 }
 0x2d9   : > { %v3242_v25 = vadd.f32 %v3241_v28, %v3193_v24  ;;  %v3290_v10 = vpop.f32.mrf.mxu3  ;;  %v3147_v22 = vadd.f32 %v3146_v29, %v10104_v46  ;;  %v3195_v58 = vpop.f32.mrf.mxu1 }
 0x2db   : > { %v10262_v7 = vadd.f32 %v3290_v10, %v3242_v25  ;;  %v3196_v54 = vadd.f32 %v3195_v58, %v3147_v22  ;;  %3341 = vmatmul.bf16.gmra.mxu0 %v13651_v57  ;;  %v13656_v58 = vld [vmem:[#allocation52_spill] sm:$0xff]  ;;  %v13676_v57 = vld [vmem:[#allocation67_spill] sm:$0xff] }
 0x2dc   : > { %3390 = vmatmul.bf16.gmra.mxu1 %v13652_v27 }
 0x2dd   : > { %13650 = vst [vmem:[#allocation100_spill] sm:$0xff] %v10262_v7  ;;  %3439 = vmatmul.bf16.gmra.mxu2 %v13653_v39  ;;  %v13658_v7 = vld [vmem:[#allocation51_spill] sm:$0xff] }
 0x2de   : > { %3488 = vmatmul.bf16.gmra.mxu3 %v13654_v53  ;;  %v13670_v39 = vld [vmem:[#allocation63_spill] sm:$0xff] }
 0x2e0   : > { %v3244_v63 = vpop.f32.mrf.mxu2  ;;  %v3148_v23 = vpop.f32.mrf.mxu0 }
 0x2e1   : > { %v3245_v15 = vadd.f32 %v3244_v63, %v3196_v54  ;;  %v3293_v48 = vpop.f32.mrf.mxu3  ;;  %v3149_v59 = vadd.f32 %v3148_v23, %v10113_v38  ;;  %v3197_v24 = vpop.f32.mrf.mxu1  ;;  %v13659_v54 = vld [vmem:[#allocation53_spill] sm:$0xff]  ;;  %v13660_v63 = vld [vmem:[#allocation54_spill] sm:$0xff]  ;;  %v13661_v38 = vld [vmem:[#allocation55_spill] sm:$0xff] }
 0x2e3   : > { %v10269_v46 = vadd.f32 %v3293_v48, %v3245_v15  ;;  %v3198_v28 = vadd.f32 %v3197_v24, %v3149_v59  ;;  %v13662_v24 = vld [vmem:[#allocation57_spill] sm:$0xff] }
 0x2e5   : > { %13655 = vst [vmem:[#allocation101_spill] sm:$0xff] %v10269_v46 }
 0x2e8   : > { %v3246_v25 = vpop.f32.mrf.mxu2  ;;  %v3307_v22 = vpop.f32.mrf.mxu0 }
 0x2e9   : > { %v3247_v10 = vadd.f32 %v3246_v25, %v3198_v28  ;;  %v3295_v29 = vpop.f32.mrf.mxu3  ;;  %v3308_v62 = vadd.f32 %v3307_v22, %v13656_v58  ;;  %v3356_v12 = vpop.f32.mrf.mxu1  ;;  %v13664_v58 = vld [vmem:[#allocation59_spill] sm:$0xff] }
 0x2eb   : > { %v10272_v14 = vadd.f32 %v3295_v29, %v3247_v10  ;;  %v3357_v8 = vadd.f32 %v3356_v12, %v3308_v62  ;;  %3502 = vmatmul.bf16.vlgmr.msrb.gmra.mxu0 %v13658_v7 }
 0x2ec   : > { %3551 = vmatmul.bf16.vlgmr.msrb.gmra.mxu1 %v13659_v54 }
 0x2ed   : > { %13657 = vst [vmem:[#allocation102_spill] sm:$0xff] %v10272_v14  ;;  %3600 = vmatmul.bf16.vlgmr.msrb.gmra.mxu2 %v13660_v63  ;;  %v13663_v14 = vld [vmem:[#allocation58_spill] sm:$0xff] }
 0x2ee   : > { %3649 = vmatmul.bf16.vlgmr.msrb.gmra.mxu3 %v13661_v38 }
 0x2f0   : > { %v3405_v15 = vpop.f32.mrf.mxu2  ;;  %v3309_v59 = vpop.f32.mrf.mxu0 }
 0x2f1   : > { %v3406_v48 = vadd.f32 %v3405_v15, %v3357_v8  ;;  %v3454_v23 = vpop.f32.mrf.mxu3  ;;  %v3310_v28 = vadd.f32 %v3309_v59, %v13662_v24  ;;  %v3358_v25 = vpop.f32.mrf.mxu1  ;;  %v13665_v8 = vld [vmem:[#allocation60_spill] sm:$0xff]  ;;  %v13666_v15 = vld [vmem:[#allocation61_spill] sm:$0xff]  ;;  %v13667_v59 = vld [vmem:[#allocation62_spill] sm:$0xff] }
 0x2f3   : > { %v10279_v22 = vadd.f32 %v3454_v23, %v3406_v48  ;;  %v3359_v10 = vadd.f32 %v3358_v25, %v3310_v28 }
 0x2f8   : > { %v3407_v29 = vpop.f32.mrf.mxu2  ;;  %v3312_v46 = vpop.f32.mrf.mxu0 }
 0x2f9   : > { %v3408_v62 = vadd.f32 %v3407_v29, %v3359_v10  ;;  %v3456_v12 = vpop.f32.mrf.mxu3  ;;  %v3313_v54 = vadd.f32 %v3312_v46, %v13663_v14  ;;  %v3361_v7 = vpop.f32.mrf.mxu1  ;;  %v13668_v10 = vld [vmem:[#allocation48_spill] sm:$0xff]  ;;  %v13669_v14 = vld [vmem:[#allocation50_spill] sm:$0xff] }
 0x2fb   : > { %v10282_v63 = vadd.f32 %v3456_v12, %v3408_v62  ;;  %v3362_v38 = vadd.f32 %v3361_v7, %v3313_v54  ;;  %3507 = vmatmul.bf16.gmra.mxu0 %v13664_v58 }
 0x2fc   : > { %3556 = vmatmul.bf16.gmra.mxu1 %v13665_v8 }
 0x2fd   : > { %3605 = vmatmul.bf16.gmra.mxu2 %v13666_v15 }
 0x2fe   : > { %3654 = vmatmul.bf16.gmra.mxu3 %v13667_v59 }
 0x300   : > { %v3410_v48 = vpop.f32.mrf.mxu2  ;;  %v3314_v25 = vpop.f32.mrf.mxu0 }
 0x301   : > { %v3411_v23 = vadd.f32 %v3410_v48, %v3362_v38  ;;  %v3459_v28 = vpop.f32.mrf.mxu3  ;;  %v3315_v29 = vadd.f32 %v3314_v25, %v13668_v10  ;;  %v3363_v24 = vpop.f32.mrf.mxu1  ;;  %v13671_v38 = vld [vmem:[#allocation64_spill] sm:$0xff]  ;;  %v13672_v48 = vld [vmem:[#allocation65_spill] sm:$0xff]  ;;  %v13673_v25 = vld [vmem:[#allocation66_spill] sm:$0xff] }
 0x303   : > { %v10289_v46 = vadd.f32 %v3459_v28, %v3411_v23  ;;  %v3364_v62 = vadd.f32 %v3363_v24, %v3315_v29 }
 0x308   : > { %v3412_v12 = vpop.f32.mrf.mxu2  ;;  %v3317_v58 = vpop.f32.mrf.mxu0 }
 0x309   : > { %v3413_v7 = vadd.f32 %v3412_v12, %v3364_v62  ;;  %v3461_v54 = vpop.f32.mrf.mxu3  ;;  %v3318_v8 = vadd.f32 %v3317_v58, %v13669_v14  ;;  %v3366_v53 = vpop.f32.mrf.mxu1  ;;  %v13674_v62 = vld [vmem:[#allocation56_spill] sm:$0xff]  ;;  %v13675_v14 = vld [vmem:[#allocation42_spill] sm:$0xff] }
 0x30b   : > { %v10292_v15 = vadd.f32 %v3461_v54, %v3413_v7  ;;  %v3367_v59 = vadd.f32 %v3366_v53, %v3318_v8  ;;  %3512 = vmatmul.bf16.gmra.mxu0 %v13670_v39 }
 0x30c   : > { %3561 = vmatmul.bf16.gmra.mxu1 %v13671_v38 }
 0x30d   : > { %3610 = vmatmul.bf16.gmra.mxu2 %v13672_v48 }
 0x30e   : > { %3659 = vmatmul.bf16.gmra.mxu3 %v13673_v25 }
 0x310   : > { %v3415_v23 = vpop.f32.mrf.mxu2  ;;  %v3319_v29 = vpop.f32.mrf.mxu0 }
 0x311   : > { %v3416_v24 = vadd.f32 %v3415_v23, %v3367_v59  ;;  %v3464_v28 = vpop.f32.mrf.mxu3  ;;  %v3320_v12 = vadd.f32 %v3319_v29, %v13674_v62  ;;  %v3368_v10 = vpop.f32.mrf.mxu1  ;;  %v13677_v59 = vld [vmem:[#allocation68_spill] sm:$0xff]  ;;  %v13678_v23 = vld [vmem:[#allocation69_spill] sm:$0xff]  ;;  %v13679_v29 = vld [vmem:[#allocation70_spill] sm:$0xff] }
 0x313   : > { %v10299_v58 = vadd.f32 %v3464_v28, %v3416_v24  ;;  %v3369_v7 = vadd.f32 %v3368_v10, %v3320_v12 }
 0x318   : > { %v3417_v54 = vpop.f32.mrf.mxu2  ;;  %v3322_v39 = vpop.f32.mrf.mxu0 }
 0x319   : > { %v3418_v53 = vadd.f32 %v3417_v54, %v3369_v7  ;;  %v3466_v8 = vpop.f32.mrf.mxu3  ;;  %v3323_v38 = vadd.f32 %v3322_v39, %v13675_v14  ;;  %v3371_v27 = vpop.f32.mrf.mxu1  ;;  %v13680_v7 = vld [vmem:[#allocation47_spill] sm:$0xff] }
 0x31b   : > { %v10302_v48 = vadd.f32 %v3466_v8, %v3418_v53  ;;  %v3372_v25 = vadd.f32 %v3371_v27, %v3323_v38  ;;  %3517 = vmatmul.bf16.gmra.mxu0 %v13676_v57 }
 0x31c   : > { %3566 = vmatmul.bf16.gmra.mxu1 %v13677_v59  ;;  %v13681_v59 = vld [vmem:[#allocation49_spill] sm:$0xff] }
 0x31d   : > { %3615 = vmatmul.bf16.gmra.mxu2 %v13678_v23 }
 0x31e   : > { %3664 = vmatmul.bf16.gmra.mxu3 %v13679_v29 }
 0x320   : > { %v3420_v24 = vpop.f32.mrf.mxu2  ;;  %v3324_v12 = vpop.f32.mrf.mxu0 }
 0x321   : > { %v3421_v10 = vadd.f32 %v3420_v24, %v3372_v25  ;;  %v3469_v28 = vpop.f32.mrf.mxu3  ;;  %v3325_v39 = vadd.f32 %v3324_v12, %v13680_v7  ;;  %v3373_v54 = vpop.f32.mrf.mxu1  ;;  %v13682_v12 = vld [vmem:[#allocation71_spill] sm:$0xff]  ;;  %v13684_v7 = vld [vmem:[#allocation73_spill] sm:$0xff] }
 0x323   : > { %v10309_v53 = vadd.f32 %v3469_v28, %v3421_v10  ;;  %v3374_v27 = vadd.f32 %v3373_v54, %v3325_v39  ;;  %v7056_v10 = vld [vmem:[%s9202_s20 + $0xe8] sm:$0xf]  ;;  %v7992_v28 = vld [vmem:[%s9202_s20 + $0xf4] sm:$0xf0] }
 0x324   : > { %v7184_v39 = vld [vmem:[%s9202_s20 + $0x1e8] sm:$0xf] }
 0x325   : > { %v13683_v54 = vld [vmem:[#allocation72_spill] sm:$0xff] }
 0x328   : > { %v3422_v38 = vpop.f32.mrf.mxu2  ;;  %v3327_v29 = vpop.f32.mrf.mxu0 }
 0x329   : > { %v3423_v8 = vadd.f32 %v3422_v38, %v3374_v27  ;;  %v3471_v23 = vpop.f32.mrf.mxu3  ;;  %v3328_v25 = vadd.f32 %v3327_v29, %v13681_v59  ;;  %v3376_v24 = vpop.f32.mrf.mxu1  ;;  %v7057_v27 = vor.u32 %v7992_v28, %v7056_v10  ;;  %v8024_v29 = vld [vmem:[%s9202_s20 + $0x1f4] sm:$0xf0]  ;;  %v7312_v38 = vld [vmem:[%s9202_s20 + $0x2e8] sm:$0xf] }
 0x32a   : > { %v8056_v59 = vld [vmem:[%s9202_s20 + $0x2f4] sm:$0xf0]  ;;  %v7040_v10 = vld [vmem:[%s9202_s20 + $0xc8] sm:$0xf] }
 0x32b   : > { %v10312_v57 = vadd.f32 %v3471_v23, %v3423_v8  ;;  %v3377_v14 = vadd.f32 %v3376_v24, %v3328_v25  ;;  %3522 = vmatmul.bf16.gmra.mxu0 %v13682_v12  ;;  %v13685_v23 = vld [vmem:[#allocation74_spill] sm:$0xff]  ;;  %v7185_v8 = vor.u32 %v8024_v29, %v7184_v39  ;;  %v7313_v25 = vor.u32 %v8056_v59, %v7312_v38  ;;  %v7440_v24 = vld [vmem:[%s9202_s20 + $0x3e8] sm:$0xf] }
 0x32c   : > { %3571 = vmatmul.bf16.gmra.mxu1 %v13683_v54  ;;  %v8088_v12 = vld [vmem:[%s9202_s20 + $0x3f4] sm:$0xf0]  ;;  %3690 = vmatpush.bf16.msra.mxu0 %v7057_v27  ;;  %v7296_v29 = vld [vmem:[%s9202_s20 + $0x2c8] sm:$0xf] }
 0x32d   : > { %3620 = vmatmul.bf16.gmra.mxu2 %v13684_v7  ;;  %v7441_v54 = vor.u32 %v8088_v12, %v7440_v24  ;;  %3739 = vmatpush.bf16.msra.mxu1 %v7185_v8  ;;  %v7988_v28 = vld [vmem:[%s9202_s20 + $0xd4] sm:$0xf0]  ;;  %v7168_v7 = vld [vmem:[%s9202_s20 + $0x1c8] sm:$0xf] }
 0x32e   : > { %3669 = vmatmul.bf16.gmra.mxu3 %v13685_v23  ;;  %3788 = vmatpush.bf16.msra.mxu2 %v7313_v25  ;;  %v7041_v59 = vor.u32 %v7988_v28, %v7040_v10  ;;  %v8020_v39 = vld [vmem:[%s9202_s20 + $0x1d4] sm:$0xf0]  ;;  %v7024_v28 = vld [vmem:[%s9202_s20 + $0xa8] sm:$0xf] }
 0x32f   : > { %3837 = vmatpush.bf16.msra.mxu3 %v7441_v54  ;;  %v8052_v27 = vld [vmem:[%s9202_s20 + $0x2d4] sm:$0xf0]  ;;  %v7169_v25 = vor.u32 %v8020_v39, %v7168_v7  ;;  %v7025_v7 = vor.u32 %v7984_v56, %v7024_v28  ;;  %v7136_v56 = vld [vmem:[%s9202_s20 + $0x188] sm:$0xf] }
 0x330   : > { %v3425_v62 = vpop.f32.mrf.mxu2  ;;  %v3329_v23 = vpop.f32.mrf.mxu0  ;;  %v13686_v12 = vld [vmem:[#allocation38_spill] sm:$0xff]  ;;  %v7297_v24 = vor.u32 %v8052_v27, %v7296_v29  ;;  %3691 = vmatpush.bf16.msra.mxu0 %v7041_v59  ;;  %v7280_v29 = vld [vmem:[%s9202_s20 + $0x2a8] sm:$0xf] }
 0x331   : > { %v3426_v37 = vadd.f32 %v3425_v62, %v3377_v14  ;;  %v3474_v61 = vpop.f32.mrf.mxu3  ;;  %v3330_v38 = vadd.f32 %v3329_v23, %v13686_v12  ;;  %v3378_v8 = vpop.f32.mrf.mxu1  ;;  %v8084_v14 = vld [vmem:[%s9202_s20 + $0x3d4] sm:$0xf0]  ;;  %3740 = vmatpush.bf16.msra.mxu1 %v7169_v25  ;;  %v7152_v23 = vld [vmem:[%s9202_s20 + $0x1a8] sm:$0xf] }
 0x332   : > { %v7425_v54 = vor.u32 %v8084_v14, %v7424_v36  ;;  %3789 = vmatpush.bf16.msra.mxu2 %v7297_v24  ;;  %v8016_v39 = vld [vmem:[%s9202_s20 + $0x1b4] sm:$0xf0]  ;;  %v7408_v59 = vld [vmem:[%s9202_s20 + $0x3a8] sm:$0xf] }
 0x333   : > { %v10335_v62 = vadd.f32 %v3474_v61, %v3426_v37  ;;  %v3379_v10 = vadd.f32 %v3378_v8, %v3330_v38  ;;  %v8048_v27 = vld [vmem:[%s9202_s20 + $0x2b4] sm:$0xf0]  ;;  %v7153_v61 = vor.u32 %v8016_v39, %v7152_v23  ;;  %v7008_v25 = vld [vmem:[%s9202_s20 + $0x88] sm:$0xf] }
 0x334   : > { %3838 = vmatpush.bf16.msra.mxu3 %v7425_v54  ;;  %v7281_v37 = vor.u32 %v8048_v27, %v7280_v29  ;;  %v8080_v36 = vld [vmem:[%s9202_s20 + $0x3b4] sm:$0xf0]  ;;  %3692 = vmatpush.bf16.msra.mxu0 %v7025_v7  ;;  %v7264_v29 = vld [vmem:[%s9202_s20 + $0x288] sm:$0xf] }
 0x335   : > { %v7409_v38 = vor.u32 %v8080_v36, %v7408_v59  ;;  %3741 = vmatpush.bf16.msra.mxu1 %v7153_v61  ;;  %v7980_v24 = vld [vmem:[%s9202_s20 + $0x94] sm:$0xf0]  ;;  %v13687_v27 = vld [vmem:[#allocation39_spill] sm:$0xff] }
 0x336   : > { %3790 = vmatpush.bf16.msra.mxu2 %v7281_v37  ;;  %v7009_v23 = vor.u32 %v7980_v24, %v7008_v25  ;;  %v8012_v39 = vld [vmem:[%s9202_s20 + $0x194] sm:$0xf0]  ;;  %v7392_v12 = vld [vmem:[%s9202_s20 + $0x388] sm:$0xf] }
 0x337   : > { %v8044_v7 = vld [vmem:[%s9202_s20 + $0x294] sm:$0xf0]  ;;  %v7137_v37 = vor.u32 %v8012_v39, %v7136_v56  ;;  %v13688_v24 = vld [vmem:[#allocation75_spill] sm:$0xff]  ;;  %v13689_v56 = vld [vmem:[#allocation76_spill] sm:$0xff] }
 0x338   : > { %v3427_v8 = vpop.f32.mrf.mxu2  ;;  %v3332_v28 = vpop.f32.mrf.mxu0  ;;  %3839 = vmatpush.bf16.msra.mxu3 %v7409_v38  ;;  %v7265_v36 = vor.u32 %v8044_v7, %v7264_v29  ;;  %3693 = vmatpush.bf16.msra.mxu0 %v7009_v23  ;;  %v13690_v39 = vld [vmem:[#allocation77_spill] sm:$0xff]  ;;  %v13691_v23 = vld [vmem:[#allocation78_spill] sm:$0xff] }
 0x339   : > { %v3428_v14 = vadd.f32 %v3427_v8, %v3379_v10  ;;  %v3476_v54 = vpop.f32.mrf.mxu3  ;;  %v3333_v59 = vadd.f32 %v3332_v28, %v13687_v27  ;;  %v3381_v61 = vpop.f32.mrf.mxu1  ;;  %v8076_v10 = vld [vmem:[%s9202_s20 + $0x394] sm:$0xf0]  ;;  %3742 = vmatpush.bf16.msra.mxu1 %v7137_v37  ;;  %v7120_v27 = vld [vmem:[%s9202_s20 + $0x168] sm:$0xf] }
 0x33a   : > { %v7393_v38 = vor.u32 %v8076_v10, %v7392_v12  ;;  %v7976_v28 = vld [vmem:[%s9202_s20 + $0x74] sm:$0xf0]  ;;  %3791 = vmatpush.bf16.msra.mxu2 %v7265_v36 }
 0x33b   : > { %v10354_v8 = vadd.f32 %v3476_v54, %v3428_v14  ;;  %v3382_v25 = vadd.f32 %v3381_v61, %v3333_v59  ;;  %3527 = vmatmul.bf16.gmra.mxu0 %v13688_v24  ;;  %v6993_v29 = vor.u32 %v7976_v28, %v6992_v55  ;;  %v8008_v14 = vld [vmem:[%s9202_s20 + $0x174] sm:$0xf0]  ;;  %v7248_v54 = vld [vmem:[%s9202_s20 + $0x268] sm:$0xf] }
 0x33c   : > { %3576 = vmatmul.bf16.gmra.mxu1 %v13689_v56  ;;  %v8040_v12 = vld [vmem:[%s9202_s20 + $0x274] sm:$0xf0]  ;;  %v7121_v7 = vor.u32 %v8008_v14, %v7120_v27  ;;  %v7376_v61 = vld [vmem:[%s9202_s20 + $0x368] sm:$0xf]  ;;  %3840 = vmatpush.bf16.msra.mxu3 %v7393_v38 }
 0x33d   : > { %3625 = vmatmul.bf16.gmra.mxu2 %v13690_v39  ;;  %v7249_v59 = vor.u32 %v8040_v12, %v7248_v54  ;;  %v8072_v37 = vld [vmem:[%s9202_s20 + $0x374] sm:$0xf0]  ;;  %3694 = vmatpush.bf16.msra.mxu0 %v6993_v29  ;;  %v6976_v55 = vld [vmem:[%s9202_s20 + $0x48] sm:$0xf] }
 0x33e   : > { %3674 = vmatmul.bf16.gmra.mxu3 %v13691_v23  ;;  %v7377_v10 = vor.u32 %v8072_v37, %v7376_v61  ;;  %3743 = vmatpush.bf16.msra.mxu1 %v7121_v7  ;;  %v7972_v28 = vld [vmem:[%s9202_s20 + $0x54] sm:$0xf0]  ;;  %v7104_v56 = vld [vmem:[%s9202_s20 + $0x148] sm:$0xf] }
 0x33f   : > { %v6977_v27 = vor.u32 %v7972_v28, %v6976_v55  ;;  %v8004_v14 = vld [vmem:[%s9202_s20 + $0x154] sm:$0xf0]  ;;  %v7232_v54 = vld [vmem:[%s9202_s20 + $0x248] sm:$0xf]  ;;  %3792 = vmatpush.bf16.msra.mxu2 %v7249_v59 }
 0x340   : > { %v3430_v39 = vpop.f32.mrf.mxu2  ;;  %v3334_v36 = vpop.f32.mrf.mxu0  ;;  %v8036_v12 = vld [vmem:[%s9202_s20 + $0x254] sm:$0xf0]  ;;  %v7105_v7 = vor.u32 %v8004_v14, %v7104_v56  ;;  %v7360_v37 = vld [vmem:[%s9202_s20 + $0x348] sm:$0xf]  ;;  %3841 = vmatpush.bf16.msra.mxu3 %v7377_v10 }
 0x341   : > { %v3431_v24 = vadd.f32 %v3430_v39, %v3382_v25  ;;  %v3479_v23 = vpop.f32.mrf.mxu3  ;;  %v3335_v38 = vadd.f32 %v3334_v36, %v13692_v9  ;;  %v3383_v29 = vpop.f32.mrf.mxu1  ;;  %v7233_v61 = vor.u32 %v8036_v12, %v7232_v54  ;;  %v8068_v25 = vld [vmem:[%s9202_s20 + $0x354] sm:$0xf0]  ;;  %3695 = vmatpush.bf16.msra.mxu0 %v6977_v27  ;;  %v7088_v9 = vld [vmem:[%s9202_s20 + $0x128] sm:$0xf] }
 0x342   : > { %v7361_v55 = vor.u32 %v8068_v25, %v7360_v37  ;;  %3744 = vmatpush.bf16.msra.mxu1 %v7105_v7  ;;  %v7968_v36 = vld [vmem:[%s9202_s20 + $0x34] sm:$0xf0]  ;;  %v7216_v14 = vld [vmem:[%s9202_s20 + $0x228] sm:$0xf] }
 0x343   : > { %v10377_v39 = vadd.f32 %v3479_v23, %v3431_v24  ;;  %v3384_v28 = vadd.f32 %v3383_v29, %v3335_v38  ;;  %v6961_v59 = vor.u32 %v7968_v36, %v6960_v35  ;;  %v8000_v56 = vld [vmem:[%s9202_s20 + $0x134] sm:$0xf0]  ;;  %3793 = vmatpush.bf16.msra.mxu2 %v7233_v61  ;;  %v7344_v10 = vld [vmem:[%s9202_s20 + $0x328] sm:$0xf] }
 0x344   : > { %v8032_v54 = vld [vmem:[%s9202_s20 + $0x234] sm:$0xf0]  ;;  %v7089_v24 = vor.u32 %v8000_v56, %v7088_v9  ;;  %3842 = vmatpush.bf16.msra.mxu3 %v7361_v55  ;;  %v6944_v29 = vld [vmem:[%s9202_s20 + $0x8] sm:$0xf] }
 0x345   : > { %13693 = vst [vmem:[#allocation103_spill] sm:$0xff] %v10377_v39  ;;  %v7217_v23 = vor.u32 %v8032_v54, %v7216_v14  ;;  %v8064_v27 = vld [vmem:[%s9202_s20 + $0x334] sm:$0xf0]  ;;  %3696 = vmatpush.bf16.msra.mxu0 %v6961_v59  ;;  %v7072_v7 = vld [vmem:[%s9202_s20 + $0x108] sm:$0xf] }
 0x346   : > { %v7345_v12 = vor.u32 %v8064_v27, %v7344_v10  ;;  %3745 = vmatpush.bf16.msra.mxu1 %v7089_v24  ;;  %v7964_v35 = vld [vmem:[%s9202_s20 + $0x14] sm:$0xf0]  ;;  %v7200_v56 = vld [vmem:[%s9202_s20 + $0x208] sm:$0xf] }
 0x347   : > { %v6945_v9 = vor.u32 %v7964_v35, %v6944_v29  ;;  %v7996_v36 = vld [vmem:[%s9202_s20 + $0x114] sm:$0xf0]  ;;  %3794 = vmatpush.bf16.msra.mxu2 %v7217_v23  ;;  %v7328_v10 = vld [vmem:[%s9202_s20 + $0x308] sm:$0xf] }
 0x348   : > { %v3432_v38 = vpop.f32.mrf.mxu2  ;;  %v3337_v61 = vpop.f32.mrf.mxu0  ;;  %v8028_v14 = vld [vmem:[%s9202_s20 + $0x214] sm:$0xf0]  ;;  %v7073_v55 = vor.u32 %v7996_v36, %v7072_v7  ;;  %3843 = vmatpush.bf16.msra.mxu3 %v7345_v12 }
 0x349   : > { %v3433_v37 = vadd.f32 %v3432_v38, %v3384_v28  ;;  %v3481_v25 = vpop.f32.mrf.mxu3  ;;  %v3338_v54 = vadd.f32 %v3337_v61, %v9683_v2  ;;  %v3386_v34 = vpop.f32.mrf.mxu1  ;;  %v7201_v59 = vor.u32 %v8028_v14, %v7200_v56  ;;  %v8060_v24 = vld [vmem:[%s9202_s20 + $0x314] sm:$0xf0]  ;;  %3697 = vmatpush.bf16.msra.mxu0 %v6945_v9 }
 0x34a   : > { %v7329_v39 = vor.u32 %v8060_v24, %v7328_v10  ;;  %3746 = vmatpush.bf16.msra.mxu1 %v7073_v55 }
 0x34b   : > { %v10396_v27 = vadd.f32 %v3481_v25, %v3433_v37  ;;  %v3387_v28 = vadd.f32 %v3386_v34, %v3338_v54  ;;  %3532 = vmatmul.bf16.gmra.mxu0 %v10035_v11  ;;  %3795 = vmatpush.bf16.msra.mxu2 %v7201_v59 }
 0x34c   : > { %3581 = vmatmul.bf16.gmra.mxu1 %v10040_v47  ;;  %3844 = vmatpush.bf16.msra.mxu3 %v7329_v39 }
 0x34d   : > { %3630 = vmatmul.bf16.gmra.mxu2 %v10042_v0 }
 0x34e   : > { %3679 = vmatmul.bf16.gmra.mxu3 %v10048_v13 }
 0x350   : > { %v3435_v23 = vpop.f32.mrf.mxu2  ;;  %v3339_v35 = vpop.f32.mrf.mxu0 }
 0x351   : > { %v3436_v38 = vadd.f32 %v3435_v23, %v3387_v28  ;;  %v3484_v29 = vpop.f32.mrf.mxu3  ;;  %v3340_v12 = vadd.f32 %v3339_v35, %v9647_v40  ;;  %v3388_v7 = vpop.f32.mrf.mxu1 }
 0x353   : > { %v10403_v37 = vadd.f32 %v3484_v29, %v3436_v38  ;;  %v3389_v34 = vadd.f32 %v3388_v7, %v3340_v12 }
 0x358   : > { %v3437_v25 = vpop.f32.mrf.mxu2  ;;  %v3342_v36 = vpop.f32.mrf.mxu0 }
 0x359   : > { %v3438_v61 = vadd.f32 %v3437_v25, %v3389_v34  ;;  %v3486_v9 = vpop.f32.mrf.mxu3  ;;  %v3343_v56 = vadd.f32 %v3342_v36, %v9626_v16  ;;  %v3391_v14 = vpop.f32.mrf.mxu1 }
 0x35b   : > { %v10406_v54 = vadd.f32 %v3486_v9, %v3438_v61  ;;  %v3392_v39 = vadd.f32 %v3391_v14, %v3343_v56  ;;  %3537 = vmatmul.bf16.gmra.mxu0 %v10085_v41 }
 0x35c   : > { %3586 = vmatmul.bf16.gmra.mxu1 %v10087_v17 }
 0x35d   : > { %3635 = vmatmul.bf16.gmra.mxu2 %v10089_v60 }
 0x35e   : > { %3684 = vmatmul.bf16.gmra.mxu3 %v10092_v1 }
 0x360   : > { %v3440_v55 = vpop.f32.mrf.mxu2  ;;  %v3344_v24 = vpop.f32.mrf.mxu0 }
 0x361   : > { %v3441_v59 = vadd.f32 %v3440_v55, %v3392_v39  ;;  %v3489_v10 = vpop.f32.mrf.mxu3  ;;  %v3345_v28 = vadd.f32 %v3344_v24, %v9581_v26  ;;  %v3393_v23 = vpop.f32.mrf.mxu1 }
 0x363   : > { %v10413_v38 = vadd.f32 %v3489_v10, %v3441_v59  ;;  %v3394_v29 = vadd.f32 %v3393_v23, %v3345_v28 }
 0x368   : > { %v3442_v35 = vpop.f32.mrf.mxu2  ;;  %v3503_v34 = vpop.f32.mrf.mxu0 }
 0x369   : > { %v3443_v12 = vadd.f32 %v3442_v35, %v3394_v29  ;;  %v3491_v7 = vpop.f32.mrf.mxu3  ;;  %v3504_v25 = vadd.f32 %v3503_v34, %v10279_v22  ;;  %v3552_v61 = vpop.f32.mrf.mxu1 }
 0x36b   : > { %v10416_v9 = vadd.f32 %v3491_v7, %v3443_v12  ;;  %v3553_v36 = vadd.f32 %v3552_v61, %v3504_v25  ;;  %3698 = vmatmul.bf16.vlgmr.msra.gmra.mxu0 %v9318_v49 }
 0x36c   : > { %3747 = vmatmul.bf16.vlgmr.msra.gmra.mxu1 %v9320_v50 }
 0x36d   : > { %3796 = vmatmul.bf16.vlgmr.msra.gmra.mxu2 %v9322_v51 }
 0x36e   : > { %3845 = vmatmul.bf16.vlgmr.msra.gmra.mxu3 %v9324_v52 }
 0x370   : > { %v3601_v56 = vpop.f32.mrf.mxu2  ;;  %v3505_v55 = vpop.f32.mrf.mxu0 }
 0x371   : > { %v3602_v14 = vadd.f32 %v3601_v56, %v3553_v36  ;;  %v3650_v39 = vpop.f32.mrf.mxu3  ;;  %v3506_v59 = vadd.f32 %v3505_v55, %v10282_v63  ;;  %v3554_v10 = vpop.f32.mrf.mxu1 }
 0x373   : > { %v10423_v22 = vadd.f32 %v3650_v39, %v3602_v14  ;;  %v3555_v24 = vadd.f32 %v3554_v10, %v3506_v59 }
 0x378   : > { %v3603_v28 = vpop.f32.mrf.mxu2  ;;  %v3508_v35 = vpop.f32.mrf.mxu0 }
 0x379   : > { %v3604_v23 = vadd.f32 %v3603_v28, %v3555_v24  ;;  %v3652_v29 = vpop.f32.mrf.mxu3  ;;  %v3509_v12 = vadd.f32 %v3508_v35, %v10289_v46  ;;  %v3557_v7 = vpop.f32.mrf.mxu1 }
 0x37b   : > { %v10426_v34 = vadd.f32 %v3652_v29, %v3604_v23  ;;  %v3558_v25 = vadd.f32 %v3557_v7, %v3509_v12  ;;  %3703 = vmatmul.bf16.gmra.mxu0 %v9372_v3 }
 0x37c   : > { %3752 = vmatmul.bf16.gmra.mxu1 %v9374_v4 }
 0x37d   : > { %3801 = vmatmul.bf16.gmra.mxu2 %v9376_v5 }
 0x37e   : > { %3850 = vmatmul.bf16.gmra.mxu3 %v9378_v6 }
 0x380   : > { %v3606_v63 = vpop.f32.mrf.mxu2  ;;  %v3510_v56 = vpop.f32.mrf.mxu0 }
 0x381   : > { %v3607_v61 = vadd.f32 %v3606_v63, %v3558_v25  ;;  %v3655_v36 = vpop.f32.mrf.mxu3  ;;  %v3511_v14 = vadd.f32 %v3510_v56, %v10292_v15  ;;  %v3559_v39 = vpop.f32.mrf.mxu1 }
 0x383   : > { %v10433_v46 = vadd.f32 %v3655_v36, %v3607_v61  ;;  %v3560_v55 = vadd.f32 %v3559_v39, %v3511_v14 }
 0x388   : > { %v3608_v59 = vpop.f32.mrf.mxu2  ;;  %v3513_v28 = vpop.f32.mrf.mxu0 }
 0x389   : > { %v3609_v10 = vadd.f32 %v3608_v59, %v3560_v55  ;;  %v3657_v24 = vpop.f32.mrf.mxu3  ;;  %v3514_v23 = vadd.f32 %v3513_v28, %v10299_v58  ;;  %v3562_v29 = vpop.f32.mrf.mxu1 }
 0x38b   : > { %v10436_v35 = vadd.f32 %v3657_v24, %v3609_v10  ;;  %v3563_v12 = vadd.f32 %v3562_v29, %v3514_v23  ;;  %3708 = vmatmul.bf16.gmra.mxu0 %v9417_v18  ;;  %v13744_v18 = vld [vmem:[#allocation76_spill] sm:$0xff] }
 0x38c   : > { %3757 = vmatmul.bf16.gmra.mxu1 %v9419_v19 }
 0x38d   : > { %3806 = vmatmul.bf16.gmra.mxu2 %v9421_v20 }
 0x38e   : > { %3855 = vmatmul.bf16.gmra.mxu3 %v9423_v21  ;;  %v7106_v21 = vld [vmem:[%s9202_s20 + $0x158] sm:$0xf0] }
 0x390   : > { %v3611_v15 = vpop.f32.mrf.mxu2  ;;  %v3515_v63 = vpop.f32.mrf.mxu0 }
 0x391   : > { %v3612_v7 = vadd.f32 %v3611_v15, %v3563_v12  ;;  %v3660_v25 = vpop.f32.mrf.mxu3  ;;  %v3516_v61 = vadd.f32 %v3515_v63, %v10302_v48  ;;  %v3564_v36 = vpop.f32.mrf.mxu1 }
 0x393   : > { %v10443_v58 = vadd.f32 %v3660_v25, %v3612_v7  ;;  %v3565_v56 = vadd.f32 %v3564_v36, %v3516_v61 }
 0x398   : > { %v3613_v14 = vpop.f32.mrf.mxu2  ;;  %v3518_v59 = vpop.f32.mrf.mxu0 }
 0x399   : > { %v3614_v39 = vadd.f32 %v3613_v14, %v3565_v56  ;;  %v3662_v55 = vpop.f32.mrf.mxu3  ;;  %v3519_v10 = vadd.f32 %v3518_v59, %v10309_v53  ;;  %v3567_v24 = vpop.f32.mrf.mxu1 }
 0x39b   : > { %v10446_v28 = vadd.f32 %v3662_v55, %v3614_v39  ;;  %v3568_v23 = vadd.f32 %v3567_v24, %v3519_v10  ;;  %3713 = vmatmul.bf16.gmra.mxu0 %v9453_v30  ;;  %v8120_v24 = vld [vmem:[%s9202_s20 + $0x4f4] sm:$0xf0] }
 0x39c   : > { %3762 = vmatmul.bf16.gmra.mxu1 %v9455_v31  ;;  %v7170_v31 = vld [vmem:[%s9202_s20 + $0x1d8] sm:$0xf0] }
 0x39d   : > { %3811 = vmatmul.bf16.gmra.mxu2 %v9457_v32 }
 0x39e   : > { %3860 = vmatmul.bf16.gmra.mxu3 %v9459_v33 }
 0x3a0   : > { %v3616_v48 = vpop.f32.mrf.mxu2  ;;  %v3520_v15 = vpop.f32.mrf.mxu0 }
 0x3a1   : > { %v3617_v29 = vadd.f32 %v3616_v48, %v3568_v23  ;;  %v3665_v12 = vpop.f32.mrf.mxu3  ;;  %v3521_v53 = vadd.f32 %v3520_v15, %v10312_v57  ;;  %v3569_v7 = vpop.f32.mrf.mxu1  ;;  %v7568_v57 = vld [vmem:[%s9202_s20 + $0x4e8] sm:$0xf]  ;;  %v8184_v15 = vld [vmem:[%s9202_s20 + $0x6f4] sm:$0xf0] }
 0x3a2   : > { %v7696_v23 = vld [vmem:[%s9202_s20 + $0x5e8] sm:$0xf]  ;;  %v7569_v48 = vor.u32 %v8120_v24, %v7568_v57 }
 0x3a3   : > { %v10453_v25 = vadd.f32 %v3665_v12, %v3617_v29  ;;  %v3570_v63 = vadd.f32 %v3569_v7, %v3521_v53  ;;  %v7824_v29 = vld [vmem:[%s9202_s20 + $0x6e8] sm:$0xf]  ;;  %v8216_v7 = vld [vmem:[%s9202_s20 + $0x7f4] sm:$0xf0] }
 0x3a4   : > { %v7952_v53 = vld [vmem:[%s9202_s20 + $0x7e8] sm:$0xf]  ;;  %3886 = vmatpush.bf16.msrb.mxu0 %v7569_v48 }
 0x3a5   : > { %v7808_v48 = vld [vmem:[%s9202_s20 + $0x6c8] sm:$0xf] }
 0x3a8   : > { %v3618_v61 = vpop.f32.mrf.mxu2  ;;  %v3523_v14 = vpop.f32.mrf.mxu0 }
 0x3a9   : > { %v3619_v36 = vadd.f32 %v3618_v61, %v3570_v63  ;;  %v3667_v56 = vpop.f32.mrf.mxu3  ;;  %v3524_v39 = vadd.f32 %v3523_v14, %v10335_v62  ;;  %v3572_v55 = vpop.f32.mrf.mxu1  ;;  %v8152_v62 = vld [vmem:[%s9202_s20 + $0x5f4] sm:$0xf0]  ;;  %v7825_v63 = vor.u32 %v8184_v15, %v7824_v29  ;;  %v7953_v61 = vor.u32 %v8216_v7, %v7952_v53 }
 0x3aa   : > { %v7697_v12 = vor.u32 %v8152_v62, %v7696_v23  ;;  %v8116_v14 = vld [vmem:[%s9202_s20 + $0x4d4] sm:$0xf0] }
 0x3ab   : > { %v10456_v59 = vadd.f32 %v3667_v56, %v3619_v36  ;;  %v3573_v10 = vadd.f32 %v3572_v55, %v3524_v39  ;;  %3718 = vmatmul.bf16.gmra.mxu0 %v9489_v42  ;;  %v7552_v56 = vld [vmem:[%s9202_s20 + $0x4c8] sm:$0xf]  ;;  %3984 = vmatpush.bf16.msrb.mxu2 %v7825_v63  ;;  %v8148_v62 = vld [vmem:[%s9202_s20 + $0x5d4] sm:$0xf0] }
 0x3ac   : > { %3767 = vmatmul.bf16.gmra.mxu1 %v9491_v43  ;;  %v7680_v39 = vld [vmem:[%s9202_s20 + $0x5c8] sm:$0xf]  ;;  %4033 = vmatpush.bf16.msrb.mxu3 %v7953_v61  ;;  %v7553_v23 = vor.u32 %v8116_v14, %v7552_v56  ;;  %v8180_v29 = vld [vmem:[%s9202_s20 + $0x6d4] sm:$0xf0] }
 0x3ad   : > { %3816 = vmatmul.bf16.gmra.mxu2 %v9493_v44  ;;  %3935 = vmatpush.bf16.msrb.mxu1 %v7697_v12  ;;  %v7681_v53 = vor.u32 %v8148_v62, %v7680_v39  ;;  %v7809_v7 = vor.u32 %v8180_v29, %v7808_v48  ;;  %v7536_v56 = vld [vmem:[%s9202_s20 + $0x4a8] sm:$0xf]  ;;  %v8112_v14 = vld [vmem:[%s9202_s20 + $0x4b4] sm:$0xf0] }
 0x3ae   : > { %3865 = vmatmul.bf16.gmra.mxu3 %v9495_v45  ;;  %v7936_v45 = vld [vmem:[%s9202_s20 + $0x7c8] sm:$0xf]  ;;  %3887 = vmatpush.bf16.msrb.mxu0 %v7553_v23  ;;  %v7537_v39 = vor.u32 %v8112_v14, %v7536_v56  ;;  %v8176_v29 = vld [vmem:[%s9202_s20 + $0x6b4] sm:$0xf0] }
 0x3af   : > { %3985 = vmatpush.bf16.msrb.mxu2 %v7809_v7  ;;  %v7792_v62 = vld [vmem:[%s9202_s20 + $0x6a8] sm:$0xf]  ;;  %v8164_v42 = vld [vmem:[%s9202_s20 + $0x654] sm:$0xf0] }
 0x3b0   : > { %v3621_v36 = vpop.f32.mrf.mxu2  ;;  %v3525_v24 = vpop.f32.mrf.mxu0  ;;  %v7648_v7 = vld [vmem:[%s9202_s20 + $0x588] sm:$0xf] }
 0x3b1   : > { %v3622_v55 = vadd.f32 %v3621_v36, %v3573_v10  ;;  %v3670_v57 = vpop.f32.mrf.mxu3  ;;  %v3526_v15 = vadd.f32 %v3525_v24, %v10354_v8  ;;  %v3574_v12 = vpop.f32.mrf.mxu1  ;;  %v8212_v10 = vld [vmem:[%s9202_s20 + $0x7d4] sm:$0xf0]  ;;  %3936 = vmatpush.bf16.msrb.mxu1 %v7681_v53  ;;  %v7664_v8 = vld [vmem:[%s9202_s20 + $0x5a8] sm:$0xf] }
 0x3b2   : > { %v7937_v61 = vor.u32 %v8212_v10, %v7936_v45  ;;  %v8144_v24 = vld [vmem:[%s9202_s20 + $0x5b4] sm:$0xf0]  ;;  %3888 = vmatpush.bf16.msrb.mxu0 %v7537_v39  ;;  %v7793_v45 = vor.u32 %v8176_v29, %v7792_v62  ;;  %v7776_v39 = vld [vmem:[%s9202_s20 + $0x688] sm:$0xf] }
 0x3b3   : > { %v10479_v63 = vadd.f32 %v3670_v57, %v3622_v55  ;;  %v3575_v36 = vadd.f32 %v3574_v12, %v3526_v15  ;;  %v7665_v48 = vor.u32 %v8144_v24, %v7664_v8  ;;  %v7920_v55 = vld [vmem:[%s9202_s20 + $0x7a8] sm:$0xf]  ;;  %v8208_v57 = vld [vmem:[%s9202_s20 + $0x7b4] sm:$0xf0] }
 0x3b4   : > { %4034 = vmatpush.bf16.msrb.mxu3 %v7937_v61  ;;  %v7921_v23 = vor.u32 %v8208_v57, %v7920_v55  ;;  %v7520_v12 = vld [vmem:[%s9202_s20 + $0x488] sm:$0xf]  ;;  %v8108_v53 = vld [vmem:[%s9202_s20 + $0x494] sm:$0xf0]  ;;  %3986 = vmatpush.bf16.msrb.mxu2 %v7793_v45 }
 0x3b5   : > { %3937 = vmatpush.bf16.msrb.mxu1 %v7665_v48  ;;  %v7521_v14 = vor.u32 %v8108_v53, %v7520_v12  ;;  %v8140_v8 = vld [vmem:[%s9202_s20 + $0x594] sm:$0xf0]  ;;  %v13694_v62 = vld [vmem:[#allocation103_spill] sm:$0xff] }
 0x3b6   : > { %v8172_v24 = vld [vmem:[%s9202_s20 + $0x694] sm:$0xf0]  ;;  %v7649_v55 = vor.u32 %v8140_v8, %v7648_v7  ;;  %v7904_v44 = vld [vmem:[%s9202_s20 + $0x788] sm:$0xf] }
 0x3b7   : > { %v7777_v57 = vor.u32 %v8172_v24, %v7776_v39  ;;  %3889 = vmatpush.bf16.msrb.mxu0 %v7521_v14  ;;  %v13695_v12 = vld [vmem:[#allocation27_spill] sm:$0xff]  ;;  %v13696_v7 = vld [vmem:[#allocation28_spill] sm:$0xff]  ;;  %v13697_v8 = vld [vmem:[#allocation29_spill] sm:$0xff] }
 0x3b8   : > { %v3623_v15 = vpop.f32.mrf.mxu2  ;;  %v3528_v56 = vpop.f32.mrf.mxu0  ;;  %4035 = vmatpush.bf16.msrb.mxu3 %v7921_v23  ;;  %v7504_v53 = vld [vmem:[%s9202_s20 + $0x468] sm:$0xf]  ;;  %v8168_v24 = vld [vmem:[%s9202_s20 + $0x674] sm:$0xf0] }
 0x3b9   : > { %v3624_v10 = vadd.f32 %v3623_v15, %v3575_v36  ;;  %v3672_v61 = vpop.f32.mrf.mxu3  ;;  %v3529_v29 = vadd.f32 %v3528_v56, %v13694_v62  ;;  %v3577_v48 = vpop.f32.mrf.mxu1  ;;  %v8204_v36 = vld [vmem:[%s9202_s20 + $0x794] sm:$0xf0]  ;;  %3938 = vmatpush.bf16.msrb.mxu1 %v7649_v55  ;;  %v7632_v62 = vld [vmem:[%s9202_s20 + $0x568] sm:$0xf]  ;;  %3987 = vmatpush.bf16.msrb.mxu2 %v7777_v57 }
 0x3ba   : > { %v7905_v45 = vor.u32 %v8204_v36, %v7904_v44  ;;  %v8104_v56 = vld [vmem:[%s9202_s20 + $0x474] sm:$0xf0]  ;;  %v7744_v43 = vld [vmem:[%s9202_s20 + $0x648] sm:$0xf] }
 0x3bb   : > { %v10498_v15 = vadd.f32 %v3672_v61, %v3624_v10  ;;  %v3578_v23 = vadd.f32 %v3577_v48, %v3529_v29  ;;  %3723 = vmatmul.bf16.gmra.mxu0 %v13695_v12  ;;  %v7505_v39 = vor.u32 %v8104_v56, %v7504_v53  ;;  %v8136_v10 = vld [vmem:[%s9202_s20 + $0x574] sm:$0xf0]  ;;  %v7760_v61 = vld [vmem:[%s9202_s20 + $0x668] sm:$0xf] }
 0x3bc   : > { %3772 = vmatmul.bf16.gmra.mxu1 %v13696_v7  ;;  %v13698_v44 = vld [vmem:[#allocation30_spill] sm:$0xff]  ;;  %v7633_v14 = vor.u32 %v8136_v10, %v7632_v62  ;;  %v7888_v29 = vld [vmem:[%s9202_s20 + $0x768] sm:$0xf]  ;;  %4036 = vmatpush.bf16.msrb.mxu3 %v7905_v45  ;;  %v7761_v55 = vor.u32 %v8168_v24, %v7760_v61 }
 0x3bd   : > { %3821 = vmatmul.bf16.gmra.mxu2 %v13697_v8  ;;  %v8200_v48 = vld [vmem:[%s9202_s20 + $0x774] sm:$0xf0]  ;;  %3890 = vmatpush.bf16.msrb.mxu0 %v7505_v39  ;;  %v7488_v53 = vld [vmem:[%s9202_s20 + $0x448] sm:$0xf] }
 0x3be   : > { %3870 = vmatmul.bf16.gmra.mxu3 %v13698_v44  ;;  %v7889_v36 = vor.u32 %v8200_v48, %v7888_v29  ;;  %3939 = vmatpush.bf16.msrb.mxu1 %v7633_v14  ;;  %v8100_v56 = vld [vmem:[%s9202_s20 + $0x454] sm:$0xf0]  ;;  %v7616_v7 = vld [vmem:[%s9202_s20 + $0x548] sm:$0xf]  ;;  %v7745_v14 = vor.u32 %v8164_v42, %v7744_v43 }
 0x3bf   : > { %v7489_v10 = vor.u32 %v8100_v56, %v7488_v53  ;;  %v8132_v12 = vld [vmem:[%s9202_s20 + $0x554] sm:$0xf0]  ;;  %3988 = vmatpush.bf16.msrb.mxu2 %v7761_v55  ;;  %v7872_v24 = vld [vmem:[%s9202_s20 + $0x748] sm:$0xf] }
 0x3c0   : > { %v3626_v8 = vpop.f32.mrf.mxu2  ;;  %v3530_v62 = vpop.f32.mrf.mxu0  ;;  %v7617_v61 = vor.u32 %v8132_v12, %v7616_v7  ;;  %4037 = vmatpush.bf16.msrb.mxu3 %v7889_v36  ;;  %v7472_v53 = vld [vmem:[%s9202_s20 + $0x428] sm:$0xf]  ;;  %v8128_v42 = vld [vmem:[%s9202_s20 + $0x534] sm:$0xf0] }
 0x3c1   : > { %v3627_v44 = vadd.f32 %v3626_v8, %v3578_v23  ;;  %v3675_v57 = vpop.f32.mrf.mxu3  ;;  %v3531_v45 = vadd.f32 %v3530_v62, %v10396_v27  ;;  %v3579_v39 = vpop.f32.mrf.mxu1  ;;  %v8196_v23 = vld [vmem:[%s9202_s20 + $0x754] sm:$0xf0]  ;;  %3891 = vmatpush.bf16.msrb.mxu0 %v7489_v10  ;;  %v7600_v56 = vld [vmem:[%s9202_s20 + $0x528] sm:$0xf] }
 0x3c2   : > { %v7873_v29 = vor.u32 %v8196_v23, %v7872_v24  ;;  %3940 = vmatpush.bf16.msrb.mxu1 %v7617_v61  ;;  %v8096_v27 = vld [vmem:[%s9202_s20 + $0x434] sm:$0xf0]  ;;  %v7728_v43 = vld [vmem:[%s9202_s20 + $0x628] sm:$0xf]  ;;  %v7601_v12 = vor.u32 %v8128_v42, %v7600_v56 }
 0x3c3   : > { %v10521_v8 = vadd.f32 %v3675_v57, %v3627_v44  ;;  %v3580_v48 = vadd.f32 %v3579_v39, %v3531_v45  ;;  %v7473_v55 = vor.u32 %v8096_v27, %v7472_v53  ;;  %3989 = vmatpush.bf16.msrb.mxu2 %v7745_v14  ;;  %v8160_v7 = vld [vmem:[%s9202_s20 + $0x634] sm:$0xf0]  ;;  %v7856_v44 = vld [vmem:[%s9202_s20 + $0x728] sm:$0xf] }
 0x3c4   : > { %v8192_v36 = vld [vmem:[%s9202_s20 + $0x734] sm:$0xf0]  ;;  %4038 = vmatpush.bf16.msrb.mxu3 %v7873_v29  ;;  %v7729_v57 = vor.u32 %v8160_v7, %v7728_v43  ;;  %v7456_v45 = vld [vmem:[%s9202_s20 + $0x408] sm:$0xf] }
 0x3c5   : > { %3892 = vmatpush.bf16.msrb.mxu0 %v7473_v55  ;;  %v7857_v62 = vor.u32 %v8192_v36, %v7856_v44  ;;  %v8092_v39 = vld [vmem:[%s9202_s20 + $0x414] sm:$0xf0]  ;;  %v7584_v61 = vld [vmem:[%s9202_s20 + $0x508] sm:$0xf] }
 0x3c6   : > { %3941 = vmatpush.bf16.msrb.mxu1 %v7601_v12  ;;  %v7457_v53 = vor.u32 %v8092_v39, %v7456_v45  ;;  %v8124_v27 = vld [vmem:[%s9202_s20 + $0x514] sm:$0xf0]  ;;  %v7712_v56 = vld [vmem:[%s9202_s20 + $0x608] sm:$0xf] }
 0x3c7   : > { %v8156_v42 = vld [vmem:[%s9202_s20 + $0x614] sm:$0xf0]  ;;  %3990 = vmatpush.bf16.msrb.mxu2 %v7729_v57  ;;  %v7585_v55 = vor.u32 %v8124_v27, %v7584_v61  ;;  %v7840_v7 = vld [vmem:[%s9202_s20 + $0x708] sm:$0xf] }
 0x3c8   : > { %v3628_v10 = vpop.f32.mrf.mxu2  ;;  %v3533_v23 = vpop.f32.mrf.mxu0  ;;  %v7713_v43 = vor.u32 %v8156_v42, %v7712_v56  ;;  %v8188_v12 = vld [vmem:[%s9202_s20 + $0x714] sm:$0xf0]  ;;  %4039 = vmatpush.bf16.msrb.mxu3 %v7857_v62  ;;  %v13700_v45 = vld [vmem:[#allocation35_spill] sm:$0xff]  ;;  %v13701_v39 = vld [vmem:[#allocation36_spill] sm:$0xff] }
 0x3c9   : > { %v3629_v24 = vadd.f32 %v3628_v10, %v3580_v48  ;;  %v3677_v14 = vpop.f32.mrf.mxu3  ;;  %v3534_v33 = vadd.f32 %v3533_v23, %v10403_v37  ;;  %v3582_v29 = vpop.f32.mrf.mxu1  ;;  %3893 = vmatpush.bf16.msrb.mxu0 %v7457_v53  ;;  %v7841_v36 = vor.u32 %v8188_v12, %v7840_v7  ;;  %v13699_v10 = vld [vmem:[#allocation33_spill] sm:$0xff] }
 0x3ca   : > { %3942 = vmatpush.bf16.msrb.mxu1 %v7585_v55  ;;  %v13702_v37 = vld [vmem:[#allocation37_spill] sm:$0xff] }
 0x3cb   : > { %v10540_v44 = vadd.f32 %v3677_v14, %v3629_v24  ;;  %v3583_v48 = vadd.f32 %v3582_v29, %v3534_v33  ;;  %3728 = vmatmul.bf16.gmra.mxu0 %v13699_v10  ;;  %3991 = vmatpush.bf16.msrb.mxu2 %v7713_v43  ;;  %v8018_v10 = vld [vmem:[%s9202_s20 + $0x1cc] sm:$0xf] }
 0x3cc   : > { %3777 = vmatmul.bf16.gmra.mxu1 %v13700_v45  ;;  %4040 = vmatpush.bf16.msrb.mxu3 %v7841_v36  ;;  %v13703_v36 = vld [vmem:[#allocation41_spill] sm:$0xff]  ;;  %v13714_v45 = vld [vmem:[#allocation59_spill] sm:$0xff]  ;;  %v7173_v30 = vor.u32 %v8018_v10, %v7170_v31 }
 0x3cd   : > { %3826 = vmatmul.bf16.gmra.mxu2 %v13701_v39  ;;  %v13727_v10 = vld [vmem:[#allocation67_spill] sm:$0xff] }
 0x3ce   : > { %3875 = vmatmul.bf16.gmra.mxu3 %v13702_v37  ;;  %v13708_v37 = vld [vmem:[#allocation51_spill] sm:$0xff] }
 0x3d0   : > { %v3631_v57 = vpop.f32.mrf.mxu2  ;;  %v3535_v24 = vpop.f32.mrf.mxu0 }
 0x3d1   : > { %v3632_v61 = vadd.f32 %v3631_v57, %v3583_v48  ;;  %v3680_v23 = vpop.f32.mrf.mxu3  ;;  %v3536_v62 = vadd.f32 %v3535_v24, %v10406_v54  ;;  %v3584_v14 = vpop.f32.mrf.mxu1  ;;  %v13704_v48 = vld [vmem:[#allocation43_spill] sm:$0xff]  ;;  %v13705_v57 = vld [vmem:[#allocation44_spill] sm:$0xff]  ;;  %v13706_v54 = vld [vmem:[#allocation45_spill] sm:$0xff] }
 0x3d3   : > { %v10547_v53 = vadd.f32 %v3680_v23, %v3632_v61  ;;  %v3585_v33 = vadd.f32 %v3584_v14, %v3536_v62 }
 0x3d8   : > { %v3633_v27 = vpop.f32.mrf.mxu2  ;;  %v3538_v29 = vpop.f32.mrf.mxu0 }
 0x3d9   : > { %v3634_v56 = vadd.f32 %v3633_v27, %v3585_v33  ;;  %v3682_v42 = vpop.f32.mrf.mxu3  ;;  %v3539_v55 = vadd.f32 %v3538_v29, %v10413_v38  ;;  %v3587_v7 = vpop.f32.mrf.mxu1 }
 0x3db   : > { %v10550_v12 = vadd.f32 %v3682_v42, %v3634_v56  ;;  %v3588_v43 = vadd.f32 %v3587_v7, %v3539_v55  ;;  %3733 = vmatmul.bf16.gmra.mxu0 %v13703_v36  ;;  %v13707_v7 = vld [vmem:[#allocation52_spill] sm:$0xff] }
 0x3dc   : > { %3782 = vmatmul.bf16.gmra.mxu1 %v13704_v48 }
 0x3dd   : > { %3831 = vmatmul.bf16.gmra.mxu2 %v13705_v57 }
 0x3de   : > { %3880 = vmatmul.bf16.gmra.mxu3 %v13706_v54 }
 0x3e0   : > { %v3636_v61 = vpop.f32.mrf.mxu2  ;;  %v3540_v62 = vpop.f32.mrf.mxu0 }
 0x3e1   : > { %v3637_v23 = vadd.f32 %v3636_v61, %v3588_v43  ;;  %v3685_v24 = vpop.f32.mrf.mxu3  ;;  %v3541_v14 = vadd.f32 %v3540_v62, %v10416_v9  ;;  %v3589_v33 = vpop.f32.mrf.mxu1  ;;  %v13709_v43 = vld [vmem:[#allocation53_spill] sm:$0xff]  ;;  %v13710_v61 = vld [vmem:[#allocation54_spill] sm:$0xff]  ;;  %v13711_v9 = vld [vmem:[#allocation55_spill] sm:$0xff] }
 0x3e3   : > { %v10557_v38 = vadd.f32 %v3685_v24, %v3637_v23  ;;  %v3590_v27 = vadd.f32 %v3589_v33, %v3541_v14  ;;  %v13712_v33 = vld [vmem:[#allocation57_spill] sm:$0xff] }
 0x3e8   : > { %v3638_v56 = vpop.f32.mrf.mxu2  ;;  %v3699_v55 = vpop.f32.mrf.mxu0 }
 0x3e9   : > { %v3639_v42 = vadd.f32 %v3638_v56, %v3590_v27  ;;  %v3687_v29 = vpop.f32.mrf.mxu3  ;;  %v3700_v48 = vadd.f32 %v3699_v55, %v13707_v7  ;;  %v3748_v36 = vpop.f32.mrf.mxu1  ;;  %v13713_v7 = vld [vmem:[#allocation58_spill] sm:$0xff] }
 0x3eb   : > { %v10560_v57 = vadd.f32 %v3687_v29, %v3639_v42  ;;  %v3749_v54 = vadd.f32 %v3748_v36, %v3700_v48  ;;  %3894 = vmatmul.bf16.vlgmr.msrb.gmra.mxu0 %v13708_v37 }
 0x3ec   : > { %3943 = vmatmul.bf16.vlgmr.msrb.gmra.mxu1 %v13709_v43 }
 0x3ed   : > { %3992 = vmatmul.bf16.vlgmr.msrb.gmra.mxu2 %v13710_v61 }
 0x3ee   : > { %4041 = vmatmul.bf16.vlgmr.msrb.gmra.mxu3 %v13711_v9 }
 0x3f0   : > { %v3797_v23 = vpop.f32.mrf.mxu2  ;;  %v3701_v14 = vpop.f32.mrf.mxu0 }
 0x3f1   : > { %v3798_v24 = vadd.f32 %v3797_v23, %v3749_v54  ;;  %v3846_v62 = vpop.f32.mrf.mxu3  ;;  %v3702_v27 = vadd.f32 %v3701_v14, %v13712_v33  ;;  %v3750_v56 = vpop.f32.mrf.mxu1  ;;  %v13715_v54 = vld [vmem:[#allocation60_spill] sm:$0xff]  ;;  %v13716_v23 = vld [vmem:[#allocation61_spill] sm:$0xff]  ;;  %v13717_v14 = vld [vmem:[#allocation62_spill] sm:$0xff] }
 0x3f3   : > { %v10567_v55 = vadd.f32 %v3846_v62, %v3798_v24  ;;  %v3751_v42 = vadd.f32 %v3750_v56, %v3702_v27 }
 0x3f8   : > { %v3799_v29 = vpop.f32.mrf.mxu2  ;;  %v3704_v37 = vpop.f32.mrf.mxu0 }
 0x3f9   : > { %v3800_v36 = vadd.f32 %v3799_v29, %v3751_v42  ;;  %v3848_v48 = vpop.f32.mrf.mxu3  ;;  %v3705_v43 = vadd.f32 %v3704_v37, %v13713_v7  ;;  %v3753_v39 = vpop.f32.mrf.mxu1  ;;  %v13718_v42 = vld [vmem:[#allocation48_spill] sm:$0xff] }
 0x3fb   : > { %v10570_v61 = vadd.f32 %v3848_v48, %v3800_v36  ;;  %v3754_v9 = vadd.f32 %v3753_v39, %v3705_v43  ;;  %3899 = vmatmul.bf16.gmra.mxu0 %v13714_v45 }
 0x3fc   : > { %3948 = vmatmul.bf16.gmra.mxu1 %v13715_v54 }
 0x3fd   : > { %3997 = vmatmul.bf16.gmra.mxu2 %v13716_v23  ;;  %v13719_v23 = vld [vmem:[#allocation50_spill] sm:$0xff] }
 0x3fe   : > { %4046 = vmatmul.bf16.gmra.mxu3 %v13717_v14 }
 0x400   : > { %v3802_v24 = vpop.f32.mrf.mxu2  ;;  %v3706_v56 = vpop.f32.mrf.mxu0 }
 0x401   : > { %v3803_v62 = vadd.f32 %v3802_v24, %v3754_v9  ;;  %v3851_v27 = vpop.f32.mrf.mxu3  ;;  %v3707_v29 = vadd.f32 %v3706_v56, %v13718_v42  ;;  %v3755_v33 = vpop.f32.mrf.mxu1  ;;  %v13720_v24 = vld [vmem:[#allocation63_spill] sm:$0xff]  ;;  %v13721_v56 = vld [vmem:[#allocation64_spill] sm:$0xff] }
 0x403   : > { %v10577_v37 = vadd.f32 %v3851_v27, %v3803_v62  ;;  %v3756_v36 = vadd.f32 %v3755_v33, %v3707_v29  ;;  %v13722_v62 = vld [vmem:[#allocation65_spill] sm:$0xff]  ;;  %v13723_v33 = vld [vmem:[#allocation66_spill] sm:$0xff] }
 0x408   : > { %v3804_v48 = vpop.f32.mrf.mxu2  ;;  %v3709_v54 = vpop.f32.mrf.mxu0 }
 0x409   : > { %v3805_v39 = vadd.f32 %v3804_v48, %v3756_v36  ;;  %v3853_v43 = vpop.f32.mrf.mxu3  ;;  %v3710_v45 = vadd.f32 %v3709_v54, %v13719_v23  ;;  %v3758_v14 = vpop.f32.mrf.mxu1  ;;  %v7990_v48 = vld [vmem:[%s9202_s20 + $0xec] sm:$0xf] }
 0x40b   : > { %v10580_v7 = vadd.f32 %v3853_v43, %v3805_v39  ;;  %v3759_v9 = vadd.f32 %v3758_v14, %v3710_v45  ;;  %3904 = vmatmul.bf16.gmra.mxu0 %v13720_v24  ;;  %v7058_v39 = vld [vmem:[%s9202_s20 + $0xf8] sm:$0xf0]  ;;  %v8022_v43 = vld [vmem:[%s9202_s20 + $0x1ec] sm:$0xf] }
 0x40c   : > { %3953 = vmatmul.bf16.gmra.mxu1 %v13721_v56  ;;  %v13724_v45 = vld [vmem:[#allocation56_spill] sm:$0xff]  ;;  %v7061_v23 = vor.u32 %v7990_v48, %v7058_v39  ;;  %v7186_v56 = vld [vmem:[%s9202_s20 + $0x1f8] sm:$0xf0] }
 0x40d   : > { %4002 = vmatmul.bf16.gmra.mxu2 %v13722_v62  ;;  %v7189_v62 = vor.u32 %v8022_v43, %v7186_v56  ;;  %v8014_v56 = vld [vmem:[%s9202_s20 + $0x1ac] sm:$0xf] }
 0x40e   : > { %4051 = vmatmul.bf16.gmra.mxu3 %v13723_v33  ;;  %4082 = vmatpush.bf16.msra.mxu0 %v7061_v23  ;;  %v7026_v23 = vld [vmem:[%s9202_s20 + $0xb8] sm:$0xf0] }
 0x40f   : > { %4131 = vmatpush.bf16.msra.mxu1 %v7189_v62 }
 0x410   : > { %v3807_v27 = vpop.f32.mrf.mxu2  ;;  %v3711_v54 = vpop.f32.mrf.mxu0 }
 0x411   : > { %v3808_v29 = vadd.f32 %v3807_v27, %v3759_v9  ;;  %v3856_v36 = vpop.f32.mrf.mxu3  ;;  %v3712_v14 = vadd.f32 %v3711_v54, %v13724_v45  ;;  %v3760_v24 = vpop.f32.mrf.mxu1  ;;  %v7986_v9 = vld [vmem:[%s9202_s20 + $0xcc] sm:$0xf]  ;;  %v7042_v27 = vld [vmem:[%s9202_s20 + $0xd8] sm:$0xf0] }
 0x412   : > { %v7045_v32 = vor.u32 %v7986_v9, %v7042_v27  ;;  %v7154_v9 = vld [vmem:[%s9202_s20 + $0x1b8] sm:$0xf0] }
 0x413   : > { %v10591_v42 = vadd.f32 %v3856_v36, %v3808_v29  ;;  %v3761_v33 = vadd.f32 %v3760_v24, %v3712_v14  ;;  %4132 = vmatpush.bf16.msra.mxu1 %v7173_v30  ;;  %v7982_v24 = vld [vmem:[%s9202_s20 + $0xac] sm:$0xf]  ;;  %v13725_v36 = vld [vmem:[#allocation42_spill] sm:$0xff]  ;;  %v7157_v31 = vor.u32 %v8014_v56, %v7154_v9  ;;  %v13729_v30 = vld [vmem:[#allocation69_spill] sm:$0xff] }
 0x414   : > { %4083 = vmatpush.bf16.msra.mxu0 %v7045_v32  ;;  %v7029_v14 = vor.u32 %v7982_v24, %v7026_v23  ;;  %v7010_v45 = vld [vmem:[%s9202_s20 + $0x98] sm:$0xf0]  ;;  %v7974_v9 = vld [vmem:[%s9202_s20 + $0x6c] sm:$0xf] }
 0x417   : > { %4133 = vmatpush.bf16.msra.mxu1 %v7157_v31 }
 0x418   : > { %v3809_v54 = vpop.f32.mrf.mxu2  ;;  %v3714_v29 = vpop.f32.mrf.mxu0  ;;  %4084 = vmatpush.bf16.msra.mxu0 %v7029_v14 }
 0x419   : > { %v3810_v48 = vadd.f32 %v3809_v54, %v3761_v33  ;;  %v3858_v39 = vpop.f32.mrf.mxu3  ;;  %v3715_v43 = vadd.f32 %v3714_v29, %v13725_v36  ;;  %v3763_v62 = vpop.f32.mrf.mxu1  ;;  %v13728_v33 = vld [vmem:[#allocation68_spill] sm:$0xff]  ;;  %v13730_v36 = vld [vmem:[#allocation70_spill] sm:$0xff] }
 0x41a   : > { %v7978_v54 = vld [vmem:[%s9202_s20 + $0x8c] sm:$0xf] }
 0x41b   : > { %v10602_v27 = vadd.f32 %v3858_v39, %v3810_v48  ;;  %v3764_v32 = vadd.f32 %v3763_v62, %v3715_v43  ;;  %3909 = vmatmul.bf16.gmra.mxu0 %v13727_v10  ;;  %v8010_v29 = vld [vmem:[%s9202_s20 + $0x18c] sm:$0xf]  ;;  %v7013_v48 = vor.u32 %v7978_v54, %v7010_v45  ;;  %v7138_v39 = vld [vmem:[%s9202_s20 + $0x198] sm:$0xf0]  ;;  %v13731_v10 = vld [vmem:[#allocation47_spill] sm:$0xff] }
 0x41c   : > { %3958 = vmatmul.bf16.gmra.mxu1 %v13728_v33  ;;  %v7141_v24 = vor.u32 %v8010_v29, %v7138_v39  ;;  %v8006_v33 = vld [vmem:[%s9202_s20 + $0x16c] sm:$0xf]  ;;  %v7122_v45 = vld [vmem:[%s9202_s20 + $0x178] sm:$0xf0] }
 0x41d   : > { %13726 = vst [vmem:[#allocation103_spill] sm:$0xff] %v10602_v27  ;;  %4007 = vmatmul.bf16.gmra.mxu2 %v13729_v30  ;;  %v6994_v30 = vld [vmem:[%s9202_s20 + $0x78] sm:$0xf0]  ;;  %4085 = vmatpush.bf16.msra.mxu0 %v7013_v48  ;;  %v7125_v31 = vor.u32 %v8006_v33, %v7122_v45  ;;  %v7970_v29 = vld [vmem:[%s9202_s20 + $0x4c] sm:$0xf] }
 0x41e   : > { %4056 = vmatmul.bf16.gmra.mxu3 %v13730_v36  ;;  %v6997_v14 = vor.u32 %v7974_v9, %v6994_v30  ;;  %4134 = vmatpush.bf16.msra.mxu1 %v7141_v24  ;;  %v6978_v39 = vld [vmem:[%s9202_s20 + $0x58] sm:$0xf0]  ;;  %v7966_v24 = vld [vmem:[%s9202_s20 + $0x2c] sm:$0xf] }
 0x41f   : > { %v6981_v20 = vor.u32 %v7970_v29, %v6978_v39  ;;  %v6962_v33 = vld [vmem:[%s9202_s20 + $0x38] sm:$0xf0]  ;;  %v7998_v9 = vld [vmem:[%s9202_s20 + $0x12c] sm:$0xf]  ;;  %v13735_v39 = vld [vmem:[#allocation71_spill] sm:$0xff] }
 0x420   : > { %v3812_v23 = vpop.f32.mrf.mxu2  ;;  %v3716_v62 = vpop.f32.mrf.mxu0 }
 0x421   : > { %v3813_v56 = vadd.f32 %v3812_v23, %v3764_v32  ;;  %v3861_v43 = vpop.f32.mrf.mxu3  ;;  %v3717_v27 = vadd.f32 %v3716_v62, %v13731_v10  ;;  %v3765_v36 = vpop.f32.mrf.mxu1  ;;  %v8002_v23 = vld [vmem:[%s9202_s20 + $0x14c] sm:$0xf]  ;;  %4086 = vmatpush.bf16.msra.mxu0 %v6997_v14  ;;  %v6965_v14 = vor.u32 %v7966_v24, %v6962_v33  ;;  %v13737_v10 = vld [vmem:[#allocation73_spill] sm:$0xff]  ;;  %v13738_v24 = vld [vmem:[#allocation74_spill] sm:$0xff] }
 0x422   : > { %4135 = vmatpush.bf16.msra.mxu1 %v7125_v31  ;;  %v7109_v62 = vor.u32 %v8002_v23, %v7106_v21  ;;  %v7090_v31 = vld [vmem:[%s9202_s20 + $0x138] sm:$0xf0]  ;;  %v8054_v23 = vld [vmem:[%s9202_s20 + $0x2ec] sm:$0xf] }
 0x423   : > { %v10617_v54 = vadd.f32 %v3861_v43, %v3813_v56  ;;  %v3766_v32 = vadd.f32 %v3765_v36, %v3717_v27  ;;  %v13733_v36 = vld [vmem:[#allocation49_spill] sm:$0xff] }
 0x425   : > { %13732 = vst [vmem:[#allocation104_spill] sm:$0xff] %v10617_v54  ;;  %4087 = vmatpush.bf16.msra.mxu0 %v6981_v20  ;;  %v7426_v54 = vld [vmem:[%s9202_s20 + $0x3d8] sm:$0xf0] }
 0x426   : > { %4136 = vmatpush.bf16.msra.mxu1 %v7109_v62  ;;  %v7962_v62 = vld [vmem:[%s9202_s20 + $0xc] sm:$0xf] }
 0x428   : > { %v3814_v48 = vpop.f32.mrf.mxu2  ;;  %v3719_v43 = vpop.f32.mrf.mxu0 }
 0x429   : > { %v3815_v30 = vadd.f32 %v3814_v48, %v3766_v32  ;;  %v3863_v56 = vpop.f32.mrf.mxu3  ;;  %v3720_v27 = vadd.f32 %v3719_v43, %v13733_v36  ;;  %v3768_v45 = vpop.f32.mrf.mxu1  ;;  %v7093_v32 = vor.u32 %v7998_v9, %v7090_v31  ;;  %v7314_v48 = vld [vmem:[%s9202_s20 + $0x2f8] sm:$0xf0]  ;;  %v8086_v43 = vld [vmem:[%s9202_s20 + $0x3ec] sm:$0xf]  ;;  %4088 = vmatpush.bf16.msra.mxu0 %v6965_v14 }
 0x42a   : > { %v13736_v36 = vld [vmem:[#allocation72_spill] sm:$0xff]  ;;  %v7317_v20 = vor.u32 %v8054_v23, %v7314_v48  ;;  %v7570_v23 = vld [vmem:[%s9202_s20 + $0x4f8] sm:$0xf0] }
 0x42b   : > { %v10628_v21 = vadd.f32 %v3863_v56, %v3815_v30  ;;  %v3769_v29 = vadd.f32 %v3768_v45, %v3720_v27  ;;  %3914 = vmatmul.bf16.gmra.mxu0 %v13735_v39  ;;  %v7442_v30 = vld [vmem:[%s9202_s20 + $0x3f8] sm:$0xf0]  ;;  %v7994_v27 = vld [vmem:[%s9202_s20 + $0x10c] sm:$0xf]  ;;  %4137 = vmatpush.bf16.msra.mxu1 %v7093_v32 }
 0x42c   : > { %3963 = vmatmul.bf16.gmra.mxu1 %v13736_v36  ;;  %v6946_v56 = vld [vmem:[%s9202_s20 + $0x18] sm:$0xf0]  ;;  %v7445_v33 = vor.u32 %v8086_v43, %v7442_v30  ;;  %v8118_v31 = vld [vmem:[%s9202_s20 + $0x4ec] sm:$0xf]  ;;  %4180 = vmatpush.bf16.msra.mxu2 %v7317_v20 }
 0x42d   : > { %13734 = vst [vmem:[#allocation105_spill] sm:$0xff] %v10628_v21  ;;  %4012 = vmatmul.bf16.gmra.mxu2 %v13737_v10  ;;  %v6949_v9 = vor.u32 %v7962_v62, %v6946_v56  ;;  %v7074_v45 = vld [vmem:[%s9202_s20 + $0x118] sm:$0xf0]  ;;  %v8150_v48 = vld [vmem:[%s9202_s20 + $0x5ec] sm:$0xf]  ;;  %v7573_v14 = vor.u32 %v8118_v31, %v7570_v23 }
 0x42e   : > { %4061 = vmatmul.bf16.gmra.mxu3 %v13738_v24  ;;  %v7077_v10 = vor.u32 %v7994_v27, %v7074_v45  ;;  %v7698_v36 = vld [vmem:[%s9202_s20 + $0x5f8] sm:$0xf0]  ;;  %v8050_v30 = vld [vmem:[%s9202_s20 + $0x2cc] sm:$0xf] }
 0x42f   : > { %4229 = vmatpush.bf16.msra.mxu3 %v7445_v33  ;;  %v7701_v43 = vor.u32 %v8150_v48, %v7698_v36  ;;  %v7298_v62 = vld [vmem:[%s9202_s20 + $0x2d8] sm:$0xf0]  ;;  %v8082_v56 = vld [vmem:[%s9202_s20 + $0x3cc] sm:$0xf]  ;;  %4089 = vmatpush.bf16.msra.mxu0 %v6949_v9 }
 0x430   : > { %v3817_v39 = vpop.f32.mrf.mxu2  ;;  %v3721_v32 = vpop.f32.mrf.mxu0  ;;  %v7301_v20 = vor.u32 %v8050_v30, %v7298_v62  ;;  %v13739_v27 = vld [vmem:[#allocation38_spill] sm:$0xff]  ;;  %v7429_v33 = vor.u32 %v8082_v56, %v7426_v54  ;;  %v8114_v31 = vld [vmem:[%s9202_s20 + $0x4cc] sm:$0xf]  ;;  %4138 = vmatpush.bf16.msra.mxu1 %v7077_v10 }
 0x431   : > { %v3818_v24 = vadd.f32 %v3817_v39, %v3769_v29  ;;  %v3866_v21 = vpop.f32.mrf.mxu3  ;;  %v3722_v45 = vadd.f32 %v3721_v32, %v13739_v27  ;;  %v3770_v19 = vpop.f32.mrf.mxu1  ;;  %v7554_v23 = vld [vmem:[%s9202_s20 + $0x4d8] sm:$0xf0]  ;;  %v8146_v36 = vld [vmem:[%s9202_s20 + $0x5cc] sm:$0xf] }
 0x432   : > { %v7557_v29 = vor.u32 %v8114_v31, %v7554_v23  ;;  %v7682_v39 = vld [vmem:[%s9202_s20 + $0x5d8] sm:$0xf0]  ;;  %4181 = vmatpush.bf16.msra.mxu2 %v7301_v20  ;;  %v8046_v62 = vld [vmem:[%s9202_s20 + $0x2ac] sm:$0xf] }
 0x433   : > { %v10654_v48 = vadd.f32 %v3866_v21, %v3818_v24  ;;  %4278 = vmatpush.bf16.msrb.mxu0 %v7573_v14  ;;  %v3771_v30 = vadd.f32 %v3770_v19, %v3722_v45  ;;  %v7685_v9 = vor.u32 %v8146_v36, %v7682_v39  ;;  %v7282_v54 = vld [vmem:[%s9202_s20 + $0x2b8] sm:$0xf0]  ;;  %v8078_v56 = vld [vmem:[%s9202_s20 + $0x3ac] sm:$0xf]  ;;  %4230 = vmatpush.bf16.msra.mxu3 %v7429_v33 }
 0x434   : > { %4327 = vmatpush.bf16.msrb.mxu1 %v7701_v43  ;;  %v7285_v21 = vor.u32 %v8046_v62, %v7282_v54  ;;  %v7410_v24 = vld [vmem:[%s9202_s20 + $0x3b8] sm:$0xf0]  ;;  %v8110_v32 = vld [vmem:[%s9202_s20 + $0x4ac] sm:$0xf] }
 0x435   : > { %13740 = vst [vmem:[#allocation106_spill] sm:$0xff] %v10654_v48  ;;  %v7413_v10 = vor.u32 %v8078_v56, %v7410_v24  ;;  %v7538_v14 = vld [vmem:[%s9202_s20 + $0x4b8] sm:$0xf0]  ;;  %v8142_v31 = vld [vmem:[%s9202_s20 + $0x5ac] sm:$0xf]  ;;  %v13741_v24 = vld [vmem:[#allocation39_spill] sm:$0xff] }
 0x436   : > { %v7541_v19 = vor.u32 %v8110_v32, %v7538_v14  ;;  %v7666_v45 = vld [vmem:[%s9202_s20 + $0x5b8] sm:$0xf0]  ;;  %4182 = vmatpush.bf16.msra.mxu2 %v7285_v21  ;;  %v8042_v23 = vld [vmem:[%s9202_s20 + $0x28c] sm:$0xf]  ;;  %v13743_v48 = vld [vmem:[#allocation75_spill] sm:$0xff] }
 0x437   : > { %4279 = vmatpush.bf16.msrb.mxu0 %v7557_v29  ;;  %v7669_v20 = vor.u32 %v8142_v31, %v7666_v45  ;;  %v7266_v33 = vld [vmem:[%s9202_s20 + $0x298] sm:$0xf0]  ;;  %v8074_v36 = vld [vmem:[%s9202_s20 + $0x38c] sm:$0xf]  ;;  %4231 = vmatpush.bf16.msra.mxu3 %v7413_v10 }
 0x438   : > { %v3819_v43 = vpop.f32.mrf.mxu2  ;;  %4328 = vmatpush.bf16.msrb.mxu1 %v7685_v9  ;;  %v3724_v54 = vpop.f32.mrf.mxu0  ;;  %v7394_v56 = vld [vmem:[%s9202_s20 + $0x398] sm:$0xf0]  ;;  %v7269_v14 = vor.u32 %v8042_v23, %v7266_v33  ;;  %v8106_v9 = vld [vmem:[%s9202_s20 + $0x48c] sm:$0xf] }
 0x439   : > { %v3820_v39 = vadd.f32 %v3819_v43, %v3771_v30  ;;  %v3868_v62 = vpop.f32.mrf.mxu3  ;;  %v3725_v29 = vadd.f32 %v3724_v54, %v13741_v24  ;;  %v3773_v32 = vpop.f32.mrf.mxu1  ;;  %v7522_v27 = vld [vmem:[%s9202_s20 + $0x498] sm:$0xf0]  ;;  %v8138_v21 = vld [vmem:[%s9202_s20 + $0x58c] sm:$0xf]  ;;  %v7397_v45 = vor.u32 %v8074_v36, %v7394_v56 }
 0x43a   : > { %v7525_v30 = vor.u32 %v8106_v9, %v7522_v27  ;;  %v7650_v10 = vld [vmem:[%s9202_s20 + $0x598] sm:$0xf0]  ;;  %v8038_v24 = vld [vmem:[%s9202_s20 + $0x26c] sm:$0xf]  ;;  %4183 = vmatpush.bf16.msra.mxu2 %v7269_v14 }
 0x43b   : > { %v10673_v31 = vadd.f32 %v3868_v62, %v3820_v39  ;;  %4280 = vmatpush.bf16.msrb.mxu0 %v7541_v19  ;;  %v3774_v43 = vadd.f32 %v3773_v32, %v3725_v29  ;;  %v7653_v54 = vor.u32 %v8138_v21, %v7650_v10  ;;  %v7250_v23 = vld [vmem:[%s9202_s20 + $0x278] sm:$0xf0]  ;;  %v8070_v33 = vld [vmem:[%s9202_s20 + $0x36c] sm:$0xf]  ;;  %v13745_v39 = vld [vmem:[#allocation77_spill] sm:$0xff]  ;;  %4232 = vmatpush.bf16.msra.mxu3 %v7397_v45 }
 0x43c   : > { %3919 = vmatmul.bf16.gmra.mxu0 %v13743_v48  ;;  %4329 = vmatpush.bf16.msrb.mxu1 %v7669_v20  ;;  %v7378_v19 = vld [vmem:[%s9202_s20 + $0x378] sm:$0xf0]  ;;  %v7253_v27 = vor.u32 %v8038_v24, %v7250_v23  ;;  %v8102_v62 = vld [vmem:[%s9202_s20 + $0x46c] sm:$0xf] }
 0x43d   : > { %13742 = vst [vmem:[#allocation107_spill] sm:$0xff] %v10673_v31  ;;  %3968 = vmatmul.bf16.gmra.mxu1 %v13744_v18  ;;  %4017 = vmatmul.bf16.gmra.mxu2 %v13745_v39  ;;  %v13746_v36 = vld [vmem:[#allocation78_spill] sm:$0xff]  ;;  %v8134_v20 = vld [vmem:[%s9202_s20 + $0x56c] sm:$0xf]  ;;  %v7381_v29 = vor.u32 %v8070_v33, %v7378_v19 }
 0x43e   : > { %4066 = vmatmul.bf16.gmra.mxu3 %v13746_v36  ;;  %v7506_v56 = vld [vmem:[%s9202_s20 + $0x478] sm:$0xf0]  ;;  %v8034_v39 = vld [vmem:[%s9202_s20 + $0x24c] sm:$0xf]  ;;  %4184 = vmatpush.bf16.msra.mxu2 %v7253_v27 }
 0x43f   : > { %4281 = vmatpush.bf16.msrb.mxu0 %v7525_v30  ;;  %v7509_v32 = vor.u32 %v8102_v62, %v7506_v56  ;;  %v7634_v9 = vld [vmem:[%s9202_s20 + $0x578] sm:$0xf0]  ;;  %v8066_v18 = vld [vmem:[%s9202_s20 + $0x34c] sm:$0xf]  ;;  %4233 = vmatpush.bf16.msra.mxu3 %v7381_v29 }
 0x440   : > { %v3822_v21 = vpop.f32.mrf.mxu2  ;;  %4330 = vmatpush.bf16.msrb.mxu1 %v7653_v54  ;;  %v7637_v10 = vor.u32 %v8134_v20, %v7634_v9  ;;  %v7234_v36 = vld [vmem:[%s9202_s20 + $0x258] sm:$0xf0]  ;;  %v3726_v23 = vpop.f32.mrf.mxu0  ;;  %v13747_v31 = vld [vmem:[#allocation32_spill] sm:$0xff] }
 0x441   : > { %v3823_v14 = vadd.f32 %v3822_v21, %v3774_v43  ;;  %v3871_v24 = vpop.f32.mrf.mxu3  ;;  %v7362_v48 = vld [vmem:[%s9202_s20 + $0x358] sm:$0xf0]  ;;  %v3727_v45 = vadd.f32 %v3726_v23, %v13747_v31  ;;  %v3775_v30 = vpop.f32.mrf.mxu1  ;;  %v7237_v33 = vor.u32 %v8034_v39, %v7234_v36  ;;  %v8098_v19 = vld [vmem:[%s9202_s20 + $0x44c] sm:$0xf] }
 0x442   : > { %v7490_v54 = vld [vmem:[%s9202_s20 + $0x458] sm:$0xf0]  ;;  %v8130_v62 = vld [vmem:[%s9202_s20 + $0x54c] sm:$0xf]  ;;  %v7365_v43 = vor.u32 %v8066_v18, %v7362_v48 }
 0x443   : > { %v10696_v56 = vadd.f32 %v3871_v24, %v3823_v14  ;;  %4282 = vmatpush.bf16.msrb.mxu0 %v7509_v32  ;;  %v7493_v20 = vor.u32 %v8098_v19, %v7490_v54  ;;  %v7618_v9 = vld [vmem:[%s9202_s20 + $0x558] sm:$0xf0]  ;;  %v3776_v21 = vadd.f32 %v3775_v30, %v3727_v45  ;;  %v8030_v23 = vld [vmem:[%s9202_s20 + $0x22c] sm:$0xf]  ;;  %4185 = vmatpush.bf16.msra.mxu2 %v7237_v33 }
 0x444   : > { %4331 = vmatpush.bf16.msrb.mxu1 %v7637_v10  ;;  %v7621_v27 = vor.u32 %v8130_v62, %v7618_v9  ;;  %v7218_v39 = vld [vmem:[%s9202_s20 + $0x238] sm:$0xf0]  ;;  %v8062_v36 = vld [vmem:[%s9202_s20 + $0x32c] sm:$0xf]  ;;  %4234 = vmatpush.bf16.msra.mxu3 %v7365_v43 }
 0x445   : > { %13748 = vst [vmem:[#allocation108_spill] sm:$0xff] %v10696_v56  ;;  %v7346_v31 = vld [vmem:[%s9202_s20 + $0x338] sm:$0xf0]  ;;  %v7221_v14 = vor.u32 %v8030_v23, %v7218_v39  ;;  %v8094_v24 = vld [vmem:[%s9202_s20 + $0x42c] sm:$0xf] }
 0x446   : > { %v7474_v29 = vld [vmem:[%s9202_s20 + $0x438] sm:$0xf0]  ;;  %v8126_v32 = vld [vmem:[%s9202_s20 + $0x52c] sm:$0xf]  ;;  %v7349_v18 = vor.u32 %v8062_v36, %v7346_v31 }
 0x447   : > { %4283 = vmatpush.bf16.msrb.mxu0 %v7493_v20  ;;  %v7477_v48 = vor.u32 %v8094_v24, %v7474_v29  ;;  %v7602_v10 = vld [vmem:[%s9202_s20 + $0x538] sm:$0xf0]  ;;  %v8026_v19 = vld [vmem:[%s9202_s20 + $0x20c] sm:$0xf]  ;;  %4186 = vmatpush.bf16.msra.mxu2 %v7221_v14 }
 0x448   : > { %v3824_v45 = vpop.f32.mrf.mxu2  ;;  %4332 = vmatpush.bf16.msrb.mxu1 %v7621_v27  ;;  %v7605_v30 = vor.u32 %v8126_v32, %v7602_v10  ;;  %v7202_v54 = vld [vmem:[%s9202_s20 + $0x218] sm:$0xf0]  ;;  %v8058_v62 = vld [vmem:[%s9202_s20 + $0x30c] sm:$0xf]  ;;  %v3729_v23 = vpop.f32.mrf.mxu0  ;;  %4235 = vmatpush.bf16.msra.mxu3 %v7349_v18 }
 0x449   : > { %v3825_v33 = vadd.f32 %v3824_v45, %v3776_v21  ;;  %v3873_v9 = vpop.f32.mrf.mxu3  ;;  %v7330_v39 = vld [vmem:[%s9202_s20 + $0x318] sm:$0xf0]  ;;  %v3730_v43 = vadd.f32 %v3729_v23, %v9683_v2  ;;  %v3778_v20 = vpop.f32.mrf.mxu1  ;;  %v7205_v31 = vor.u32 %v8026_v19, %v7202_v54  ;;  %v8090_v36 = vld [vmem:[%s9202_s20 + $0x40c] sm:$0xf] }
 0x44a   : > { %v7458_v24 = vld [vmem:[%s9202_s20 + $0x418] sm:$0xf0]  ;;  %v8122_v29 = vld [vmem:[%s9202_s20 + $0x50c] sm:$0xf]  ;;  %v7333_v27 = vor.u32 %v8058_v62, %v7330_v39 }
 0x44b   : > { %v10715_v56 = vadd.f32 %v3873_v9, %v3825_v33  ;;  %4284 = vmatpush.bf16.msrb.mxu0 %v7477_v48  ;;  %v7461_v32 = vor.u32 %v8090_v36, %v7458_v24  ;;  %v7586_v10 = vld [vmem:[%s9202_s20 + $0x518] sm:$0xf0]  ;;  %v3779_v21 = vadd.f32 %v3778_v20, %v3730_v43  ;;  %4187 = vmatpush.bf16.msra.mxu2 %v7205_v31 }
 0x44c   : > { %3924 = vmatmul.bf16.gmra.mxu0 %v10035_v11  ;;  %4333 = vmatpush.bf16.msrb.mxu1 %v7605_v30  ;;  %v7589_v45 = vor.u32 %v8122_v29, %v7586_v10  ;;  %v13800_v11 = vld [vmem:[#allocation28_spill] sm:$0xff] }
 0x44d   : > { %3973 = vmatmul.bf16.gmra.mxu1 %v10040_v47  ;;  %4022 = vmatmul.bf16.gmra.mxu2 %v10042_v0  ;;  %v8182_v0 = vld [vmem:[%s9202_s20 + $0x6ec] sm:$0xf] }
 0x44e   : > { %4071 = vmatmul.bf16.gmra.mxu3 %v10048_v13  ;;  %v13789_v13 = vld [vmem:[#allocation19_spill] sm:$0xff] }
 0x44f   : > { %4236 = vmatpush.bf16.msra.mxu3 %v7333_v27  ;;  %4285 = vmatpush.bf16.msrb.mxu0 %v7461_v32 }
 0x450   : > { %v3827_v14 = vpop.f32.mrf.mxu2  ;;  %4334 = vmatpush.bf16.msrb.mxu1 %v7589_v45  ;;  %v3731_v19 = vpop.f32.mrf.mxu0 }
 0x451   : > { %v3828_v18 = vadd.f32 %v3827_v14, %v3779_v21  ;;  %v3876_v48 = vpop.f32.mrf.mxu3  ;;  %v3732_v54 = vadd.f32 %v3731_v19, %v9647_v40  ;;  %v3780_v62 = vpop.f32.mrf.mxu1 }
 0x453   : > { %v10723_v33 = vadd.f32 %v3876_v48, %v3828_v18  ;;  %v3781_v30 = vadd.f32 %v3780_v62, %v3732_v54 }
 0x458   : > { %v3829_v9 = vpop.f32.mrf.mxu2  ;;  %v3734_v43 = vpop.f32.mrf.mxu0 }
 0x459   : > { %v3830_v23 = vadd.f32 %v3829_v9, %v3781_v30  ;;  %v3878_v39 = vpop.f32.mrf.mxu3  ;;  %v3735_v20 = vadd.f32 %v3734_v43, %v9626_v16  ;;  %v3783_v31 = vpop.f32.mrf.mxu1 }
 0x45b   : > { %v10726_v36 = vadd.f32 %v3878_v39, %v3830_v23  ;;  %v3784_v24 = vadd.f32 %v3783_v31, %v3735_v20  ;;  %v13749_v39 = vld [vmem:[#allocation102_spill] sm:$0xff]  ;;  %v10743_v31 = vmax.f32 %v10560_v57, 0.0 }
 0x45c   : > { %3929 = vmatmul.bf16.gmra.mxu0 %v10085_v41  ;;  %v10739_v43 = vmax.f32 %v13749_v39, 0.0 }
 0x45d   : > { %3978 = vmatmul.bf16.gmra.mxu1 %v10087_v17  ;;  %4027 = vmatmul.bf16.gmra.mxu2 %v10089_v60  ;;  %13751 = vst [vmem:[#allocation109_spill] sm:$0xff] %v10743_v31  ;;  %v13788_v17 = vld [vmem:[#allocation104_spill] sm:$0xff] }
 0x45e   : > { %4076 = vmatmul.bf16.gmra.mxu3 %v10092_v1  ;;  %13750 = vst [vmem:[#allocation102_spill] sm:$0xff] %v10739_v43 }
 0x460   : > { %v3832_v29 = vpop.f32.mrf.mxu2  ;;  %v3736_v10 = vpop.f32.mrf.mxu0 }
 0x461   : > { %v3833_v27 = vadd.f32 %v3832_v29, %v3784_v24  ;;  %v3881_v32 = vpop.f32.mrf.mxu3  ;;  %v3737_v21 = vadd.f32 %v3736_v10, %v9581_v26  ;;  %v3785_v45 = vpop.f32.mrf.mxu1  ;;  %v13752_v24 = vld [vmem:[#allocation101_spill] sm:$0xff]  ;;  %v13757_v10 = vld [vmem:[#allocation99_spill] sm:$0xff] }
 0x462   : > { %v10748_v29 = vmax.f32 %v13752_v24, 0.0  ;;  %v13787_v26 = vld [vmem:[#allocation103_spill] sm:$0xff] }
 0x463   : > { %v10733_v14 = vadd.f32 %v3881_v32, %v3833_v27  ;;  %v3786_v18 = vadd.f32 %v3785_v45, %v3737_v21  ;;  %v10765_v21 = vmax.f32 %v13757_v10, 0.0  ;;  %v10805_v10 = vmax.f32 %v10479_v63, 0.0  ;;  %v13765_v63 = vld [vmem:[#allocation95_spill] sm:$0xff] }
 0x464   : > { %13753 = vst [vmem:[#allocation101_spill] sm:$0xff] %v10748_v29 }
 0x468   : > { %v3834_v48 = vpop.f32.mrf.mxu2  ;;  %v3895_v62 = vpop.f32.mrf.mxu0 }
 0x469   : > { %v3835_v19 = vadd.f32 %v3834_v48, %v3786_v18  ;;  %v3883_v54 = vpop.f32.mrf.mxu3  ;;  %v3896_v30 = vadd.f32 %v3895_v62, %v10567_v55  ;;  %v3944_v9 = vpop.f32.mrf.mxu1  ;;  %v10753_v55 = vmax.f32 %v10557_v38, 0.0  ;;  %v10770_v18 = vmax.f32 %v10547_v53, 0.0 }
 0x46a   : > { %v10780_v62 = vmax.f32 %v10540_v44, 0.0  ;;  %v10788_v53 = vmax.f32 %v10521_v8, 0.0  ;;  %v10796_v44 = vmax.f32 %v10498_v15, 0.0 }
 0x46b   : > { %v10736_v23 = vadd.f32 %v3883_v54, %v3835_v19  ;;  %v3945_v20 = vadd.f32 %v3944_v9, %v3896_v30  ;;  %13754 = vst [vmem:[#allocation110_spill] sm:$0xff] %v10753_v55  ;;  %v13762_v9 = vld [vmem:[#allocation80_spill] sm:$0xff] }
 0x46c   : > { %4090 = vmatmul.bf16.vlgmr.msra.gmra.mxu0 %v9318_v49  ;;  %v13755_v49 = vld [vmem:[#allocation100_spill] sm:$0xff]  ;;  %13758 = vst [vmem:[#allocation99_spill] sm:$0xff] %v10770_v18  ;;  %v10792_v39 = vmax.f32 %v13762_v9, 0.0  ;;  %v13766_v9 = vld [vmem:[#allocation94_spill] sm:$0xff] }
 0x46d   : > { %4139 = vmatmul.bf16.vlgmr.msra.gmra.mxu1 %v9320_v50  ;;  %4188 = vmatmul.bf16.vlgmr.msra.gmra.mxu2 %v9322_v51  ;;  %v10757_v27 = vmax.f32 %v13755_v49, 0.0  ;;  %v10761_v51 = vmax.f32 %v10550_v12, 0.0  ;;  %v13759_v12 = vld [vmem:[#allocation98_spill] sm:$0xff] }
 0x46e   : > { %4237 = vmatmul.bf16.vlgmr.msra.gmra.mxu3 %v9324_v52  ;;  %4690 = vmatpush.msra.mxu0 %v10739_v43  ;;  %v10776_v19 = vmax.f32 %v13759_v12, 0.0  ;;  %13760 = vst [vmem:[#allocation98_spill] sm:$0xff] %v10780_v62 }
 0x46f   : > { %4719 = vmatpush.msra.mxu1 %v10743_v31  ;;  %13756 = vst [vmem:[#allocation100_spill] sm:$0xff] %v10761_v51 }
 0x470   : > { %4691 = vmatpush.msra.mxu0 %v10748_v29  ;;  %v3993_v50 = vpop.f32.mrf.mxu2  ;;  %v3897_v32 = vpop.f32.mrf.mxu0 }
 0x471   : > { %4720 = vmatpush.msra.mxu1 %v10753_v55  ;;  %v3994_v57 = vadd.f32 %v3993_v50, %v3945_v20  ;;  %v4042_v52 = vpop.f32.mrf.mxu3  ;;  %v3898_v38 = vadd.f32 %v3897_v32, %v10570_v61  ;;  %v3946_v45 = vpop.f32.mrf.mxu1  ;;  %v13761_v61 = vld [vmem:[#allocation97_spill] sm:$0xff] }
 0x472   : > { %4692 = vmatpush.msra.mxu0 %v10757_v27  ;;  %v10784_v30 = vmax.f32 %v13761_v61, 0.0  ;;  %v10827_v61 = vmax.f32 %v10453_v25, 0.0 }
 0x473   : > { %v10772_v48 = vadd.f32 %v4042_v52, %v3994_v57  ;;  %4721 = vmatpush.msra.mxu1 %v10761_v51  ;;  %v3947_v54 = vadd.f32 %v3946_v45, %v3898_v38  ;;  %v13763_v57 = vld [vmem:[#allocation79_spill] sm:$0xff]  ;;  %v13764_v45 = vld [vmem:[#allocation96_spill] sm:$0xff] }
 0x474   : > { %4693 = vmatpush.msra.mxu0 %v10765_v21  ;;  %v10800_v52 = vmax.f32 %v13763_v57, 0.0  ;;  %v10812_v12 = vmax.f32 %v13764_v45, 0.0  ;;  %v13774_v45 = vld [vmem:[#allocation91_spill] sm:$0xff] }
 0x475   : > { %4722 = vmatpush.msra.mxu1 %v10770_v18 }
 0x476   : > { %4694 = vmatpush.msra.mxu0 %v10776_v19 }
 0x477   : > { %4723 = vmatpush.msra.mxu1 %v10780_v62 }
 0x478   : > { %4695 = vmatpush.msra.mxu0 %v10784_v30  ;;  %v3995_v20 = vpop.f32.mrf.mxu2  ;;  %v3900_v50 = vpop.f32.mrf.mxu0 }
 0x479   : > { %4724 = vmatpush.msra.mxu1 %v10788_v53  ;;  %v3996_v24 = vadd.f32 %v3995_v20, %v3947_v54  ;;  %v4044_v49 = vpop.f32.mrf.mxu3  ;;  %v3901_v8 = vadd.f32 %v3900_v50, %v10577_v37  ;;  %v3949_v32 = vpop.f32.mrf.mxu1  ;;  %v10817_v37 = vmax.f32 %v10456_v59, 0.0  ;;  %v10822_v54 = vmax.f32 %v13765_v63, 0.0 }
 0x47a   : > { %4696 = vmatpush.msra.mxu0 %v10792_v39  ;;  %v10831_v59 = vmax.f32 %v13766_v9, 0.0  ;;  %v10858_v63 = vmax.f32 %v13774_v45, 0.0  ;;  %v13777_v9 = vld [vmem:[#allocation90_spill] sm:$0xff] }
 0x47b   : > { %v10807_v38 = vadd.f32 %v4044_v49, %v3996_v24  ;;  %4725 = vmatpush.msra.mxu1 %v10796_v44  ;;  %v3950_v15 = vadd.f32 %v3949_v32, %v3901_v8  ;;  %v10835_v24 = vmax.f32 %v10446_v28, 0.0  ;;  %v13768_v49 = vld [vmem:[#allocation93_spill] sm:$0xff]  ;;  %v10846_v8 = vmax.f32 %v10443_v58, 0.0  ;;  %v13771_v28 = vld [vmem:[#allocation92_spill] sm:$0xff] }
 0x47c   : > { %4697 = vmatpush.msra.mxu0 %v10800_v52  ;;  %v10840_v50 = vmax.f32 %v13768_v49, 0.0  ;;  %13775 = vst [vmem:[#allocation94_spill] sm:$0xff] %v10858_v63  ;;  %v10862_v58 = vmax.f32 %v10433_v46, 0.0  ;;  %v13780_v49 = vld [vmem:[#allocation89_spill] sm:$0xff] }
 0x47d   : > { %4726 = vmatpush.msra.mxu1 %v10805_v10  ;;  %4095 = vmatmul.bf16.gmra.mxu0 %v9372_v3  ;;  %13767 = vst [vmem:[#allocation97_spill] sm:$0xff] %v10835_v24 }
 0x47e   : > { %4144 = vmatmul.bf16.gmra.mxu1 %v9374_v4  ;;  %4193 = vmatmul.bf16.gmra.mxu2 %v9376_v5  ;;  %13769 = vst [vmem:[#allocation80_spill] sm:$0xff] %v10840_v50 }
 0x47f   : > { %4242 = vmatmul.bf16.gmra.mxu3 %v9378_v6  ;;  %4698 = vmatpush.msra.mxu0 %v10812_v12  ;;  %13770 = vst [vmem:[#allocation79_spill] sm:$0xff] %v10846_v8 }
 0x480   : > { %4727 = vmatpush.msra.mxu1 %v10817_v37  ;;  %v3998_v3 = vpop.f32.mrf.mxu2  ;;  %v3902_v20 = vpop.f32.mrf.mxu0  ;;  %13776 = vst [vmem:[#allocation93_spill] sm:$0xff] %v10862_v58 }
 0x481   : > { %4699 = vmatpush.msra.mxu0 %v10822_v54  ;;  %v3999_v4 = vadd.f32 %v3998_v3, %v3950_v15  ;;  %v4047_v5 = vpop.f32.mrf.mxu3  ;;  %v3903_v6 = vadd.f32 %v3902_v20, %v10580_v7  ;;  %v3951_v25 = vpop.f32.mrf.mxu1  ;;  %v10850_v15 = vmax.f32 %v13771_v28, 0.0  ;;  %v10854_v7 = vmax.f32 %v10436_v35, 0.0 }
 0x482   : > { %4728 = vmatpush.msra.mxu1 %v10827_v61  ;;  %v10875_v28 = vmax.f32 %v13780_v49, 0.0 }
 0x483   : > { %v10842_v57 = vadd.f32 %v4047_v5, %v3999_v4  ;;  %4700 = vmatpush.msra.mxu0 %v10831_v59  ;;  %v3952_v32 = vadd.f32 %v3951_v25, %v3903_v6  ;;  %13772 = vst [vmem:[#allocation96_spill] sm:$0xff] %v10850_v15  ;;  %v10866_v4 = vmax.f32 %v13777_v9, 0.0  ;;  %v10870_v6 = vmax.f32 %v10426_v34, 0.0  ;;  %v13783_v34 = vld [vmem:[#allocation15_spill] sm:$0xff] }
 0x484   : > { %4729 = vmatpush.msra.mxu1 %v10835_v24  ;;  %13773 = vst [vmem:[#allocation95_spill] sm:$0xff] %v10854_v7  ;;  %v10881_v9 = vmax.f32 %v10423_v22, 0.0 }
 0x485   : > { %4701 = vmatpush.msra.mxu0 %v10840_v50  ;;  %13778 = vst [vmem:[#allocation92_spill] sm:$0xff] %v10866_v4 }
 0x486   : > { %4730 = vmatpush.msra.mxu1 %v10846_v8  ;;  %13779 = vst [vmem:[#allocation91_spill] sm:$0xff] %v10870_v6 }
 0x487   : > { %4702 = vmatpush.msra.mxu0 %v10850_v15  ;;  %13781 = vst [vmem:[#allocation90_spill] sm:$0xff] %v10875_v28  ;;  %v13804_v15 = vld [vmem:[#allocation108_spill] sm:$0xff] }
 0x488   : > { %4731 = vmatpush.msra.mxu1 %v10854_v7  ;;  %v4000_v3 = vpop.f32.mrf.mxu2  ;;  %v3905_v20 = vpop.f32.mrf.mxu0  ;;  %13782 = vst [vmem:[#allocation89_spill] sm:$0xff] %v10881_v9  ;;  %v8186_v7 = vld [vmem:[%s9202_s20 + $0x70c] sm:$0xf] }
 0x489   : > { %4703 = vmatpush.msra.mxu0 %v10858_v63  ;;  %v4001_v35 = vadd.f32 %v4000_v3, %v3952_v32  ;;  %v4049_v5 = vpop.f32.mrf.mxu3  ;;  %v3906_v25 = vadd.f32 %v3905_v20, %v10591_v42  ;;  %v3954_v46 = vpop.f32.mrf.mxu1  ;;  %v13784_v42 = vld [vmem:[#allocation16_spill] sm:$0xff]  ;;  %v13785_v3 = vld [vmem:[#allocation17_spill] sm:$0xff] }
 0x48a   : > { %4732 = vmatpush.msra.mxu1 %v10862_v58  ;;  %v7858_v58 = vld [vmem:[%s9202_s20 + $0x738] sm:$0xf0] }
 0x48b   : > { %v10877_v45 = vadd.f32 %v4049_v5, %v4001_v35  ;;  %4704 = vmatpush.msra.mxu0 %v10866_v4  ;;  %v3955_v32 = vadd.f32 %v3954_v46, %v3906_v25  ;;  %v13786_v35 = vld [vmem:[#allocation18_spill] sm:$0xff]  ;;  %v8190_v4 = vld [vmem:[%s9202_s20 + $0x72c] sm:$0xf] }
 0x48c   : > { %4733 = vmatpush.msra.mxu1 %v10870_v6  ;;  %v8194_v6 = vld [vmem:[%s9202_s20 + $0x74c] sm:$0xf] }
 0x48d   : > { %4705 = vmatpush.msra.mxu0 %v10875_v28  ;;  %v7890_v28 = vld [vmem:[%s9202_s20 + $0x778] sm:$0xf0] }
 0x48e   : > { %4734 = vmatpush.msra.mxu1 %v10881_v9  ;;  %4100 = vmatmul.bf16.gmra.mxu0 %v13783_v34 }
 0x48f   : > { %4149 = vmatmul.bf16.gmra.mxu1 %v13784_v42  ;;  %4198 = vmatmul.bf16.gmra.mxu2 %v13785_v3 }
 0x490   : > { %4247 = vmatmul.bf16.gmra.mxu3 %v13786_v35  ;;  %v4003_v5 = vpop.f32.mrf.mxu2  ;;  %v3907_v22 = vpop.f32.mrf.mxu0 }
 0x491   : > { %v4004_v20 = vadd.f32 %v4003_v5, %v3955_v32  ;;  %v4052_v49 = vpop.f32.mrf.mxu3  ;;  %v3908_v16 = vadd.f32 %v3907_v22, %v13787_v26  ;;  %v3956_v40 = vpop.f32.mrf.mxu1  ;;  %v13790_v32 = vld [vmem:[#allocation20_spill] sm:$0xff]  ;;  %v13791_v5 = vld [vmem:[#allocation21_spill] sm:$0xff]  ;;  %v13792_v26 = vld [vmem:[#allocation22_spill] sm:$0xff] }
 0x493   : > { %v10891_v25 = vadd.f32 %v4052_v49, %v4004_v20  ;;  %v3957_v46 = vadd.f32 %v3956_v40, %v3908_v16  ;;  %v13793_v49 = vld [vmem:[#allocation105_spill] sm:$0xff] }
 0x498   : > { %v4005_v2 = vpop.f32.mrf.mxu2  ;;  %v3910_v34 = vpop.f32.mrf.mxu0 }
 0x499   : > { %v4006_v1 = vadd.f32 %v4005_v2, %v3957_v46  ;;  %v4054_v60 = vpop.f32.mrf.mxu3  ;;  %v3911_v42 = vadd.f32 %v3910_v34, %v13788_v17  ;;  %v3959_v41 = vpop.f32.mrf.mxu1 }
 0x49b   : > { %v10894_v3 = vadd.f32 %v4054_v60, %v4006_v1  ;;  %v3960_v35 = vadd.f32 %v3959_v41, %v3911_v42  ;;  %v13794_v42 = vld [vmem:[#allocation106_spill] sm:$0xff] }
 0x49e   : > { %4105 = vmatmul.bf16.gmra.mxu0 %v13789_v13 }
 0x49f   : > { %4154 = vmatmul.bf16.gmra.mxu1 %v13790_v32  ;;  %4203 = vmatmul.bf16.gmra.mxu2 %v13791_v5 }
 0x4a0   : > { %4252 = vmatmul.bf16.gmra.mxu3 %v13792_v26  ;;  %v4008_v20 = vpop.f32.mrf.mxu2  ;;  %v3912_v2 = vpop.f32.mrf.mxu0 }
 0x4a1   : > { %v4009_v16 = vadd.f32 %v4008_v20, %v3960_v35  ;;  %v4057_v40 = vpop.f32.mrf.mxu3  ;;  %v3913_v17 = vadd.f32 %v3912_v2, %v13793_v49  ;;  %v3961_v60 = vpop.f32.mrf.mxu1  ;;  %v13795_v20 = vld [vmem:[#allocation23_spill] sm:$0xff]  ;;  %v7826_v2 = vld [vmem:[%s9202_s20 + $0x6f8] sm:$0xf0]  ;;  %v13797_v49 = vld [vmem:[#allocation25_spill] sm:$0xff] }
 0x4a3   : > { %v10901_v1 = vadd.f32 %v4057_v40, %v4009_v16  ;;  %v3962_v41 = vadd.f32 %v3961_v60, %v3913_v17  ;;  %v8214_v16 = vld [vmem:[%s9202_s20 + $0x7ec] sm:$0xf]  ;;  %v7829_v17 = vor.u32 %v8182_v0, %v7826_v2  ;;  %v7954_v60 = vld [vmem:[%s9202_s20 + $0x7f8] sm:$0xf0] }
 0x4a4   : > { %v13796_v40 = vld [vmem:[#allocation24_spill] sm:$0xff]  ;;  %v7810_v0 = vld [vmem:[%s9202_s20 + $0x6d8] sm:$0xf0] }
 0x4a5   : > { %4376 = vmatpush.bf16.msrb.mxu2 %v7829_v17  ;;  %v7794_v17 = vld [vmem:[%s9202_s20 + $0x6b8] sm:$0xf0] }
 0x4a8   : > { %v4010_v13 = vpop.f32.mrf.mxu2  ;;  %v3915_v34 = vpop.f32.mrf.mxu0 }
 0x4a9   : > { %v4011_v22 = vadd.f32 %v4010_v13, %v3962_v41  ;;  %v4059_v46 = vpop.f32.mrf.mxu3  ;;  %v3916_v32 = vadd.f32 %v3915_v34, %v13794_v42  ;;  %v3964_v5 = vpop.f32.mrf.mxu1  ;;  %v13798_v41 = vld [vmem:[#allocation26_spill] sm:$0xff] }
 0x4ab   : > { %v10904_v35 = vadd.f32 %v4059_v46, %v4011_v22  ;;  %v3965_v26 = vadd.f32 %v3964_v5, %v3916_v32  ;;  %v7957_v22 = vor.u32 %v8214_v16, %v7954_v60  ;;  %v8178_v5 = vld [vmem:[%s9202_s20 + $0x6cc] sm:$0xf] }
 0x4ac   : > { %v8206_v60 = vld [vmem:[%s9202_s20 + $0x7ac] sm:$0xf] }
 0x4ad   : > { %4425 = vmatpush.bf16.msrb.mxu3 %v7957_v22 }
 0x4ae   : > { %4110 = vmatmul.bf16.gmra.mxu0 %v13795_v20  ;;  %v8210_v20 = vld [vmem:[%s9202_s20 + $0x7cc] sm:$0xf] }
 0x4af   : > { %4159 = vmatmul.bf16.gmra.mxu1 %v13796_v40  ;;  %4208 = vmatmul.bf16.gmra.mxu2 %v13797_v49  ;;  %v7813_v40 = vor.u32 %v8178_v5, %v7810_v0  ;;  %v7938_v49 = vld [vmem:[%s9202_s20 + $0x7d8] sm:$0xf0]  ;;  %v8170_v0 = vld [vmem:[%s9202_s20 + $0x68c] sm:$0xf] }
 0x4b0   : > { %4257 = vmatmul.bf16.gmra.mxu3 %v13798_v41  ;;  %v4013_v13 = vpop.f32.mrf.mxu2  ;;  %v10914_v42 = vpop.f32.mrf.mxu0  ;;  %v7941_v16 = vor.u32 %v8210_v20, %v7938_v49  ;;  %v7778_v20 = vld [vmem:[%s9202_s20 + $0x698] sm:$0xf0] }
 0x4b1   : > { %v4014_v46 = vadd.f32 %v4013_v13, %v3965_v26  ;;  %v4062_v34 = vpop.f32.mrf.mxu3  ;;  %v10916_v32 = vpop.f32.mrf.mxu1  ;;  %4377 = vmatpush.bf16.msrb.mxu2 %v7813_v40  ;;  %v8174_v26 = vld [vmem:[%s9202_s20 + $0x6ac] sm:$0xf]  ;;  %v7922_v13 = vld [vmem:[%s9202_s20 + $0x7b8] sm:$0xf0]  ;;  %v7781_v49 = vor.u32 %v8170_v0, %v7778_v20 }
 0x4b2   : > { %4426 = vmatpush.bf16.msrb.mxu3 %v7941_v16  ;;  %v7797_v41 = vor.u32 %v8174_v26, %v7794_v17  ;;  %v7925_v47 = vor.u32 %v8206_v60, %v7922_v13  ;;  %v8202_v40 = vld [vmem:[%s9202_s20 + $0x78c] sm:$0xf]  ;;  %v7906_v16 = vld [vmem:[%s9202_s20 + $0x798] sm:$0xf0]  ;;  %v13799_v17 = vld [vmem:[#allocation27_spill] sm:$0xff] }
 0x4b3   : > { %v10921_v2 = vadd.f32 %v4062_v34, %v4014_v46  ;;  %v7909_v26 = vor.u32 %v8202_v40, %v7906_v16  ;;  %v8166_v60 = vld [vmem:[%s9202_s20 + $0x66c] sm:$0xf]  ;;  %v7762_v13 = vld [vmem:[%s9202_s20 + $0x678] sm:$0xf0] }
 0x4b4   : > { %v7765_v9 = vor.u32 %v8166_v60, %v7762_v13  ;;  %v13802_v0 = vld [vmem:[#allocation30_spill] sm:$0xff] }
 0x4b5   : > { %4378 = vmatpush.bf16.msrb.mxu2 %v7797_v41  ;;  %v8198_v41 = vld [vmem:[%s9202_s20 + $0x76c] sm:$0xf]  ;;  %v7874_v60 = vld [vmem:[%s9202_s20 + $0x758] sm:$0xf0] }
 0x4b6   : > { %4427 = vmatpush.bf16.msrb.mxu3 %v7925_v47  ;;  %v13801_v47 = vld [vmem:[#allocation29_spill] sm:$0xff]  ;;  %v7893_v40 = vor.u32 %v8198_v41, %v7890_v28  ;;  %v7877_v13 = vor.u32 %v8194_v6, %v7874_v60  ;;  %v8158_v28 = vld [vmem:[%s9202_s20 + $0x62c] sm:$0xf]  ;;  %v7730_v41 = vld [vmem:[%s9202_s20 + $0x638] sm:$0xf0] }
 0x4b8   : > { %v10928_v22 = vpop.f32.mrf.mxu2 }
 0x4b9   : > { %v10930_v46 = vpop.f32.mrf.mxu3  ;;  %v3920_v34 = vpop.f32.mrf.mxu0  ;;  %4379 = vmatpush.bf16.msrb.mxu2 %v7781_v49 }
 0x4ba   : > { %v10932_v5 = vpop.f32.mrf.mxu1  ;;  %4428 = vmatpush.bf16.msrb.mxu3 %v7909_v26  ;;  %v3921_v8 = vadd.f32 %v3920_v34, %v13804_v15  ;;  %v10989_v34 = vmax.f32 %v10894_v3, 0.0  ;;  %v11000_v3 = vmax.f32 %v10901_v1, 0.0 }
 0x4bd   : > { %4380 = vmatpush.bf16.msrb.mxu2 %v7765_v9  ;;  %v7733_v9 = vor.u32 %v8158_v28, %v7730_v41  ;;  %v8154_v41 = vld [vmem:[%s9202_s20 + $0x60c] sm:$0xf] }
 0x4be   : > { %4115 = vmatmul.bf16.gmra.mxu0 %v13799_v17  ;;  %4429 = vmatpush.bf16.msrb.mxu3 %v7893_v40  ;;  %v7746_v17 = vld [vmem:[%s9202_s20 + $0x658] sm:$0xf0]  ;;  %v10960_v40 = vmax.f32 %v10772_v48, 0.0 }
 0x4bf   : > { %4164 = vmatmul.bf16.gmra.mxu1 %v13800_v11  ;;  %4213 = vmatmul.bf16.gmra.mxu2 %v13801_v47  ;;  %v8162_v11 = vld [vmem:[%s9202_s20 + $0x64c] sm:$0xf] }
 0x4c0   : > { %4262 = vmatmul.bf16.gmra.mxu3 %v13802_v0  ;;  %v4018_v20 = vpop.f32.mrf.mxu2  ;;  %v7749_v47 = vor.u32 %v8162_v11, %v7746_v17  ;;  %v10953_v0 = vmax.f32 %v10807_v38, 0.0  ;;  %v10963_v11 = vmax.f32 %v10842_v57, 0.0  ;;  %v7861_v38 = vor.u32 %v8190_v4, %v7858_v58  ;;  %v7714_v57 = vld [vmem:[%s9202_s20 + $0x618] sm:$0xf0] }
 0x4c1   : > { %v10946_v49 = vpop.f32.mrf.mxu3  ;;  %v3922_v16 = vpop.f32.mrf.mxu0  ;;  %v10966_v17 = vmax.f32 %v10877_v45, 0.0  ;;  %v7717_v58 = vor.u32 %v8154_v41, %v7714_v57  ;;  %v7842_v4 = vld [vmem:[%s9202_s20 + $0x718] sm:$0xf0]  ;;  %v4540_v45 = vmul.f32 %v10960_v40, %v10960_v40  ;;  %v13805_v41 = vld [vmem:[#allocation33_spill] sm:$0xff] }
 0x4c2   : > { %v3971_v26 = vpop.f32.mrf.mxu1  ;;  %4381 = vmatpush.bf16.msrb.mxu2 %v7749_v47  ;;  %4430 = vmatpush.bf16.msrb.mxu3 %v7877_v13  ;;  %v13803_v47 = vld [vmem:[#allocation107_spill] sm:$0xff]  ;;  %v4544_v28 = vmul.f32 %v10953_v0, %v10953_v0 }
 0x4c3   : > { %v3918_v60 = vadd.f32 %v10914_v42, %v13803_v47  ;;  %v4548_v42 = vmul.f32 %v10963_v11, %v10963_v11  ;;  %v7845_v47 = vor.u32 %v8186_v7, %v7842_v4  ;;  %v4552_v15 = vmul.f32 %v10966_v17, %v10966_v17 }
 0x4c4   : > { %v4644_v24 = vadd.f32 %v4544_v28, %v4540_v45  ;;  %v13808_v28 = vld [vmem:[#allocation37_spill] sm:$0xff] }
 0x4c5   : > { %v3967_v50 = vadd.f32 %v10916_v32, %v3918_v60  ;;  %v13806_v32 = vld [vmem:[#allocation35_spill] sm:$0xff] }
 0x4c6   : > { %4382 = vmatpush.bf16.msrb.mxu2 %v7733_v9  ;;  %4431 = vmatpush.bf16.msrb.mxu3 %v7861_v38  ;;  %v10982_v9 = vmax.f32 %v10891_v25, 0.0  ;;  %v3923_v38 = vadd.f32 %v3922_v16, %v10715_v56  ;;  %v3970_v25 = vadd.f32 %v10932_v5, %v3921_v8  ;;  %v13807_v56 = vld [vmem:[#allocation36_spill] sm:$0xff]  ;;  %v4645_v16 = vadd.f32 %v4644_v24, %v4548_v42 }
 0x4c7   : > { %v4016_v57 = vadd.f32 %v10928_v22, %v3967_v50 }
 0x4c8   : > { %v4020_v6 = vpop.f32.mrf.mxu2  ;;  %v4556_v60 = vmul.f32 %v10982_v9, %v10982_v9  ;;  %v4019_v4 = vadd.f32 %v4018_v20, %v3970_v25  ;;  %v3972_v50 = vadd.f32 %v3971_v26, %v3923_v38  ;;  %v4646_v5 = vadd.f32 %v4645_v16, %v4552_v15 }
 0x4c9   : > { %v4069_v13 = vpop.f32.mrf.mxu3  ;;  %v3925_v63 = vpop.f32.mrf.mxu0  ;;  %v4065_v45 = vadd.f32 %v10930_v46, %v4016_v57  ;;  %v4564_v20 = vmul.f32 %v11000_v3, %v11000_v3  ;;  %v11013_v26 = vmax.f32 %v10921_v2, 0.0 }
 0x4ca   : > { %v3974_v48 = vpop.f32.mrf.mxu1  ;;  %4383 = vmatpush.bf16.msrb.mxu2 %v7717_v58  ;;  %4432 = vmatpush.bf16.msrb.mxu3 %v7845_v47  ;;  %v3926_v7 = vadd.f32 %v3925_v63, %v10723_v33  ;;  %v4560_v33 = vmul.f32 %v10989_v34, %v10989_v34  ;;  %v11006_v63 = vmax.f32 %v10904_v35, 0.0  ;;  %v4021_v42 = vadd.f32 %v4020_v6, %v3972_v50 }
 0x4cb   : > { %v4068_v38 = vadd.f32 %v10946_v49, %v4019_v4  ;;  %v4572_v57 = vmul.f32 %v11013_v26, %v11013_v26 }
 0x4cc   : > { %v3975_v1 = vadd.f32 %v3974_v48, %v3926_v7  ;;  %v4568_v35 = vmul.f32 %v11006_v63, %v11006_v63  ;;  %v4070_v46 = vadd.f32 %v4069_v13, %v4021_v42 }
 0x4cd   : > { %v11022_v7 = vmax.f32 %v4068_v38, 0.0 }
 0x4ce   : > { %4120 = vmatmul.bf16.gmra.mxu0 %v13805_v41  ;;  %v4647_v41 = vadd.f32 %v4646_v5, %v4556_v60  ;;  %v11026_v4 = vmax.f32 %v4070_v46, 0.0 }
 0x4cf   : > { %4169 = vmatmul.bf16.gmra.mxu1 %v13806_v32  ;;  %4218 = vmatmul.bf16.gmra.mxu2 %v13807_v56  ;;  %v11018_v32 = vmax.f32 %v4065_v45, 0.0  ;;  %v4580_v5 = vmul.f32 %v11022_v7, %v11022_v7 }
 0x4d0   : > { %4267 = vmatmul.bf16.gmra.mxu3 %v13808_v28  ;;  %v4023_v58 = vpop.f32.mrf.mxu2  ;;  %v4648_v25 = vadd.f32 %v4647_v41, %v4560_v33  ;;  %v4584_v45 = vmul.f32 %v11026_v4, %v11026_v4  ;;  %v13811_v41 = vld [vmem:[#allocation44_spill] sm:$0xff] }
 0x4d1   : > { %v4072_v22 = vpop.f32.mrf.mxu3  ;;  %v3927_v8 = vpop.f32.mrf.mxu0  ;;  %v4024_v15 = vadd.f32 %v4023_v58, %v3975_v1  ;;  %v4576_v58 = vmul.f32 %v11018_v32, %v11018_v32 }
 0x4d2   : > { %v3976_v24 = vpop.f32.mrf.mxu1  ;;  %v3928_v47 = vadd.f32 %v3927_v8, %v10726_v36  ;;  %v4649_v48 = vadd.f32 %v4648_v25, %v4564_v20 }
 0x4d3   : > { %v4073_v2 = vadd.f32 %v4072_v22, %v4024_v15  ;;  %v13809_v22 = vld [vmem:[#allocation41_spill] sm:$0xff] }
 0x4d4   : > { %v3977_v6 = vadd.f32 %v3976_v24, %v3928_v47  ;;  %v4650_v60 = vadd.f32 %v4649_v48, %v4568_v35  ;;  %v13810_v47 = vld [vmem:[#allocation43_spill] sm:$0xff] }
 0x4d5   : > { %v11031_v33 = vmax.f32 %v4073_v2, 0.0 }
 0x4d6   : > { %v4651_v8 = vadd.f32 %v4650_v60, %v4572_v57 }
 0x4d7   : > { %v4588_v15 = vmul.f32 %v11031_v33, %v11031_v33 }
 0x4d8   : > { %v4025_v36 = vpop.f32.mrf.mxu2  ;;  %v4652_v24 = vadd.f32 %v4651_v8, %v4576_v58 }
 0x4d9   : > { %v4026_v56 = vadd.f32 %v4025_v36, %v3977_v6  ;;  %v4074_v16 = vpop.f32.mrf.mxu3  ;;  %v3930_v49 = vpop.f32.mrf.mxu0 }
 0x4da   : > { %v3979_v28 = vpop.f32.mrf.mxu1  ;;  %v3931_v50 = vadd.f32 %v3930_v49, %v10733_v14  ;;  %v13812_v14 = vld [vmem:[#allocation45_spill] sm:$0xff]  ;;  %v4653_v38 = vadd.f32 %v4652_v24, %v4580_v5 }
 0x4db   : > { %v4075_v13 = vadd.f32 %v4074_v16, %v4026_v56 }
 0x4dc   : > { %v3980_v1 = vadd.f32 %v3979_v28, %v3931_v50  ;;  %v4654_v48 = vadd.f32 %v4653_v38, %v4584_v45  ;;  %v13816_v38 = vld [vmem:[#allocation54_spill] sm:$0xff] }
 0x4dd   : > { %v11036_v42 = vmax.f32 %v4075_v13, 0.0 }
 0x4de   : > { %4125 = vmatmul.bf16.gmra.mxu0 %v13809_v22  ;;  %v4655_v56 = vadd.f32 %v4654_v48, %v4588_v15  ;;  %v13813_v22 = vld [vmem:[#allocation52_spill] sm:$0xff]  ;;  %v13817_v15 = vld [vmem:[#allocation55_spill] sm:$0xff] }
 0x4df   : > { %4174 = vmatmul.bf16.gmra.mxu1 %v13810_v47  ;;  %4223 = vmatmul.bf16.gmra.mxu2 %v13811_v41  ;;  %v4592_v36 = vmul.f32 %v11036_v42, %v11036_v42 }
 0x4e0   : > { %4272 = vmatmul.bf16.gmra.mxu3 %v13812_v14  ;;  %v4028_v20 = vpop.f32.mrf.mxu2 }
 0x4e1   : > { %v4029_v25 = vadd.f32 %v4028_v20, %v3980_v1  ;;  %v4077_v35 = vpop.f32.mrf.mxu3  ;;  %v3932_v46 = vpop.f32.mrf.mxu0  ;;  %v4656_v49 = vadd.f32 %v4655_v56, %v4592_v36  ;;  %v13815_v20 = vld [vmem:[#allocation53_spill] sm:$0xff] }
 0x4e2   : > { %v3981_v6 = vpop.f32.mrf.mxu1  ;;  %v3933_v2 = vadd.f32 %v3932_v46, %v10736_v23  ;;  %v13814_v23 = vld [vmem:[#allocation51_spill] sm:$0xff]  ;;  %v13819_v36 = vld [vmem:[#allocation57_spill] sm:$0xff] }
 0x4e3   : > { %v4078_v57 = vadd.f32 %v4077_v35, %v4029_v25 }
 0x4e4   : > { %v3982_v28 = vadd.f32 %v3981_v6, %v3933_v2 }
 0x4e5   : > { %v11046_v16 = vmax.f32 %v4078_v57, 0.0 }
 0x4e7   : > { %v4596_v60 = vmul.f32 %v11046_v16, %v11046_v16 }
 0x4e8   : > { %v4030_v58 = vpop.f32.mrf.mxu2 }
 0x4e9   : > { %v4657_v13 = vadd.f32 %v4656_v49, %v4596_v60  ;;  %v4031_v50 = vadd.f32 %v4030_v58, %v3982_v28  ;;  %v4079_v8 = vpop.f32.mrf.mxu3  ;;  %v4091_v5 = vpop.f32.mrf.mxu0 }
 0x4ea   : > { %v4092_v24 = vadd.f32 %v4091_v5, %v13813_v22  ;;  %v4140_v45 = vpop.f32.mrf.mxu1 }
 0x4eb   : > { %v4080_v1 = vadd.f32 %v4079_v8, %v4031_v50  ;;  %v13820_v8 = vld [vmem:[#allocation58_spill] sm:$0xff] }
 0x4ec   : > { %v4141_v47 = vadd.f32 %v4140_v45, %v4092_v24  ;;  %v13821_v45 = vld [vmem:[#allocation59_spill] sm:$0xff] }
 0x4ed   : > { %v11051_v41 = vmax.f32 %v4080_v1, 0.0  ;;  %v13822_v1 = vld [vmem:[#allocation60_spill] sm:$0xff] }
 0x4ee   : > { %4286 = vmatmul.bf16.vlgmr.msrb.gmra.mxu0 %v13814_v23  ;;  %v13824_v23 = vld [vmem:[#allocation62_spill] sm:$0xff] }
 0x4ef   : > { %v4600_v14 = vmul.f32 %v11051_v41, %v11051_v41  ;;  %4335 = vmatmul.bf16.vlgmr.msrb.gmra.mxu1 %v13815_v20  ;;  %4384 = vmatmul.bf16.vlgmr.msrb.gmra.mxu2 %v13816_v38 }
 0x4f0   : > { %4433 = vmatmul.bf16.vlgmr.msrb.gmra.mxu3 %v13817_v15  ;;  %5046 = vmatpush.xpose.msrb.mxu0 %v10739_v43  ;;  %v4189_v25 = vpop.f32.mrf.mxu2 }
 0x4f1   : > { %v11060_v35 = vadd.f32 %v4657_v13, %v4600_v14  ;;  %5075 = vmatpush.xpose.msrb.mxu1 %v10743_v31  ;;  %4748 = vmatpush.msra.mxu2 %v11051_v41  ;;  %v4190_v46 = vadd.f32 %v4189_v25, %v4141_v47  ;;  %v4238_v6 = vpop.f32.mrf.mxu3  ;;  %v4093_v48 = vpop.f32.mrf.mxu0  ;;  %v13823_v47 = vld [vmem:[#allocation61_spill] sm:$0xff]  ;;  %v13825_v25 = vld [vmem:[#allocation48_spill] sm:$0xff] }
 0x4f2   : > { %v4094_v57 = vadd.f32 %v4093_v48, %v13819_v36  ;;  %v4142_v2 = vpop.f32.mrf.mxu1  ;;  %v13863_v31 = vld [vmem:[#allocation84_spill] sm:$0xff] }
 0x4f3   : > { %13818 = vst [vmem:[#allocation15_spill] sm:$0xff] %v11060_v35  ;;  %v11065_v56 = vadd.f32 %v4238_v6, %v4190_v46  ;;  %4749 = vmatpush.msra.mxu2 %v11046_v16  ;;  %v13862_v35 = vld [vmem:[#allocation83_spill] sm:$0xff] }
 0x4f4   : > { %5047 = vmatpush.xpose.msrb.mxu0 %v10748_v29  ;;  %v4143_v49 = vadd.f32 %v4142_v2, %v4094_v57 }
 0x4f5   : > { %5076 = vmatpush.xpose.msrb.mxu1 %v10753_v55  ;;  %4750 = vmatpush.msra.mxu2 %v11036_v42 }
 0x4f7   : > { %4751 = vmatpush.msra.mxu2 %v11031_v33 }
 0x4f8   : > { %5048 = vmatpush.xpose.msrb.mxu0 %v10757_v27  ;;  %v4191_v60 = vpop.f32.mrf.mxu2 }
 0x4f9   : > { %5077 = vmatpush.xpose.msrb.mxu1 %v10761_v51  ;;  %4752 = vmatpush.msra.mxu2 %v11026_v4  ;;  %v4192_v28 = vadd.f32 %v4191_v60, %v4143_v49  ;;  %v4240_v58 = vpop.f32.mrf.mxu3 }
 0x4fa   : > { %v4096_v13 = vpop.f32.mrf.mxu0 }
 0x4fb   : > { %v11075_v50 = vadd.f32 %v4240_v58, %v4192_v28  ;;  %4753 = vmatpush.msra.mxu2 %v11022_v7  ;;  %v4097_v5 = vadd.f32 %v4096_v13, %v13820_v8  ;;  %v4145_v22 = vpop.f32.mrf.mxu1  ;;  %v13826_v58 = vld [vmem:[#allocation50_spill] sm:$0xff] }
 0x4fc   : > { %5049 = vmatpush.xpose.msrb.mxu0 %v10765_v21 }
 0x4fd   : > { %5078 = vmatpush.xpose.msrb.mxu1 %v10770_v18  ;;  %v4146_v24 = vadd.f32 %v4145_v22, %v4097_v5  ;;  %4754 = vmatpush.msra.mxu2 %v11018_v32  ;;  %v13827_v22 = vld [vmem:[#allocation63_spill] sm:$0xff] }
 0x4fe   : > { %4291 = vmatmul.bf16.gmra.mxu0 %v13821_v45  ;;  %v13829_v45 = vld [vmem:[#allocation65_spill] sm:$0xff] }
 0x4ff   : > { %4340 = vmatmul.bf16.gmra.mxu1 %v13822_v1  ;;  %4389 = vmatmul.bf16.gmra.mxu2 %v13823_v47  ;;  %v13830_v1 = vld [vmem:[#allocation66_spill] sm:$0xff] }
 0x500   : > { %4438 = vmatmul.bf16.gmra.mxu3 %v13824_v23  ;;  %4755 = vmatpush.msra.mxu2 %v11013_v26 }
 0x501   : > { %5050 = vmatpush.xpose.msrb.mxu0 %v10776_v19  ;;  %5079 = vmatpush.xpose.msrb.mxu1 %v10780_v62  ;;  %v4194_v14 = vpop.f32.mrf.mxu2  ;;  %v13875_v62 = vld [vmem:[#allocation88_spill] sm:$0xff] }
 0x502   : > { %4756 = vmatpush.msra.mxu2 %v11006_v63  ;;  %v4195_v20 = vadd.f32 %v4194_v14, %v4146_v24  ;;  %v4243_v38 = vpop.f32.mrf.mxu3  ;;  %v4098_v15 = vpop.f32.mrf.mxu0  ;;  %v13828_v24 = vld [vmem:[#allocation64_spill] sm:$0xff] }
 0x503   : > { %v4099_v46 = vadd.f32 %v4098_v15, %v13825_v25  ;;  %v4147_v6 = vpop.f32.mrf.mxu1 }
 0x504   : > { %v11091_v48 = vadd.f32 %v4243_v38, %v4195_v20  ;;  %4757 = vmatpush.msra.mxu2 %v11000_v3  ;;  %v13831_v38 = vld [vmem:[#allocation56_spill] sm:$0xff] }
 0x505   : > { %5051 = vmatpush.xpose.msrb.mxu0 %v10784_v30  ;;  %5080 = vmatpush.xpose.msrb.mxu1 %v10788_v53  ;;  %v4148_v36 = vadd.f32 %v4147_v6, %v4099_v46 }
 0x506   : > { %4758 = vmatpush.msra.mxu2 %v10989_v34 }
 0x508   : > { %4759 = vmatpush.msra.mxu2 %v10982_v9 }
 0x509   : > { %5052 = vmatpush.xpose.msrb.mxu0 %v10792_v39  ;;  %5081 = vmatpush.xpose.msrb.mxu1 %v10796_v44  ;;  %v4196_v57 = vpop.f32.mrf.mxu2 }
 0x50a   : > { %4760 = vmatpush.msra.mxu2 %v10966_v17  ;;  %v4197_v2 = vadd.f32 %v4196_v57, %v4148_v36  ;;  %v4245_v49 = vpop.f32.mrf.mxu3  ;;  %v13832_v36 = vld [vmem:[#allocation97_spill] sm:$0xff] }
 0x50b   : > { %v4101_v60 = vpop.f32.mrf.mxu0 }
 0x50c   : > { %v11101_v28 = vadd.f32 %v4245_v49, %v4197_v2  ;;  %4761 = vmatpush.msra.mxu2 %v10963_v11  ;;  %v4102_v13 = vadd.f32 %v4101_v60, %v13826_v58  ;;  %v4150_v8 = vpop.f32.mrf.mxu1  ;;  %v13833_v60 = vld [vmem:[#allocation42_spill] sm:$0xff] }
 0x50d   : > { %5053 = vmatpush.xpose.msrb.mxu0 %v10800_v52  ;;  %5082 = vmatpush.xpose.msrb.mxu1 %v10805_v10 }
 0x50e   : > { %v4151_v5 = vadd.f32 %v4150_v8, %v4102_v13  ;;  %4762 = vmatpush.msra.mxu2 %v10953_v0  ;;  %4296 = vmatmul.bf16.gmra.mxu0 %v13827_v22  ;;  %v13835_v22 = vld [vmem:[#allocation79_spill] sm:$0xff] }
 0x50f   : > { %4345 = vmatmul.bf16.gmra.mxu1 %v13828_v24  ;;  %4394 = vmatmul.bf16.gmra.mxu2 %v13829_v45  ;;  %v13836_v24 = vld [vmem:[#allocation67_spill] sm:$0xff]  ;;  %v13837_v45 = vld [vmem:[#allocation68_spill] sm:$0xff] }
 0x510   : > { %4443 = vmatmul.bf16.gmra.mxu3 %v13830_v1  ;;  %4763 = vmatpush.msra.mxu2 %v10960_v40  ;;  %v13839_v1 = vld [vmem:[#allocation70_spill] sm:$0xff] }
 0x511   : > { %5054 = vmatpush.xpose.msrb.mxu0 %v10812_v12  ;;  %5083 = vmatpush.xpose.msrb.mxu1 %v10817_v37 }
 0x512   : > { %5104 = vmatpush.xpose.msrb.mxu2 %v11051_v41  ;;  %v4199_v47 = vpop.f32.mrf.mxu2 }
 0x513   : > { %v4200_v23 = vadd.f32 %v4199_v47, %v4151_v5  ;;  %v4248_v14 = vpop.f32.mrf.mxu3  ;;  %v4103_v20 = vpop.f32.mrf.mxu0  ;;  %v13834_v5 = vld [vmem:[#allocation80_spill] sm:$0xff] }
 0x514   : > { %v4104_v15 = vadd.f32 %v4103_v20, %v13831_v38  ;;  %v4152_v25 = vpop.f32.mrf.mxu1  ;;  %v13840_v47 = vld [vmem:[#allocation96_spill] sm:$0xff] }
 0x515   : > { %v11117_v46 = vadd.f32 %v4248_v14, %v4200_v23  ;;  %5055 = vmatpush.xpose.msrb.mxu0 %v10822_v54  ;;  %5084 = vmatpush.xpose.msrb.mxu1 %v10827_v61  ;;  %v13841_v23 = vld [vmem:[#allocation95_spill] sm:$0xff] }
 0x516   : > { %v4153_v6 = vadd.f32 %v4152_v25, %v4104_v15  ;;  %5105 = vmatpush.xpose.msrb.mxu2 %v11046_v16  ;;  %v13842_v25 = vld [vmem:[#allocation47_spill] sm:$0xff] }
 0x519   : > { %5056 = vmatpush.xpose.msrb.mxu0 %v10831_v59  ;;  %5085 = vmatpush.xpose.msrb.mxu1 %v13832_v36 }
 0x51a   : > { %5106 = vmatpush.xpose.msrb.mxu2 %v11036_v42  ;;  %v4201_v41 = vpop.f32.mrf.mxu2  ;;  %v13838_v42 = vld [vmem:[#allocation69_spill] sm:$0xff] }
 0x51b   : > { %v4202_v57 = vadd.f32 %v4201_v41, %v4153_v6  ;;  %v4250_v2 = vpop.f32.mrf.mxu3  ;;  %v4106_v49 = vpop.f32.mrf.mxu0 }
 0x51c   : > { %v4107_v58 = vadd.f32 %v4106_v49, %v13833_v60  ;;  %v4155_v13 = vpop.f32.mrf.mxu1  ;;  %v13845_v60 = vld [vmem:[#allocation92_spill] sm:$0xff] }
 0x51d   : > { %v11126_v8 = vadd.f32 %v4250_v2, %v4202_v57  ;;  %5057 = vmatpush.xpose.msrb.mxu0 %v13834_v5  ;;  %5086 = vmatpush.xpose.msrb.mxu1 %v13835_v22  ;;  %v13843_v57 = vld [vmem:[#allocation94_spill] sm:$0xff]  ;;  %v13844_v2 = vld [vmem:[#allocation93_spill] sm:$0xff] }
 0x51e   : > { %v4156_v16 = vadd.f32 %v4155_v13, %v4107_v58  ;;  %5107 = vmatpush.xpose.msrb.mxu2 %v11031_v33  ;;  %4301 = vmatmul.bf16.gmra.mxu0 %v13836_v24  ;;  %v13846_v58 = vld [vmem:[#allocation91_spill] sm:$0xff] }
 0x51f   : > { %4350 = vmatmul.bf16.gmra.mxu1 %v13837_v45  ;;  %4399 = vmatmul.bf16.gmra.mxu2 %v13838_v42 }
 0x520   : > { %4448 = vmatmul.bf16.gmra.mxu3 %v13839_v1  ;;  %v13847_v1 = vld [vmem:[#allocation90_spill] sm:$0xff] }
 0x521   : > { %5058 = vmatpush.xpose.msrb.mxu0 %v13840_v47  ;;  %5087 = vmatpush.xpose.msrb.mxu1 %v13841_v23 }
 0x522   : > { %5108 = vmatpush.xpose.msrb.mxu2 %v11026_v4  ;;  %v4204_v14 = vpop.f32.mrf.mxu2 }
 0x523   : > { %v4205_v20 = vadd.f32 %v4204_v14, %v4156_v16  ;;  %v4253_v38 = vpop.f32.mrf.mxu3  ;;  %v4108_v15 = vpop.f32.mrf.mxu0  ;;  %v13848_v14 = vld [vmem:[#allocation89_spill] sm:$0xff] }
 0x524   : > { %v4109_v33 = vadd.f32 %v4108_v15, %v13842_v25  ;;  %v4157_v6 = vpop.f32.mrf.mxu1 }
 0x525   : > { %v11139_v41 = vadd.f32 %v4253_v38, %v4205_v20  ;;  %5059 = vmatpush.xpose.msrb.mxu0 %v13843_v57  ;;  %5088 = vmatpush.xpose.msrb.mxu1 %v13844_v2  ;;  %v13850_v20 = vld [vmem:[#allocation72_spill] sm:$0xff]  ;;  %v13852_v38 = vld [vmem:[#allocation74_spill] sm:$0xff] }
 0x526   : > { %v4158_v49 = vadd.f32 %v4157_v6, %v4109_v33  ;;  %5109 = vmatpush.xpose.msrb.mxu2 %v11022_v7  ;;  %v13849_v7 = vld [vmem:[#allocation71_spill] sm:$0xff] }
 0x529   : > { %5060 = vmatpush.xpose.msrb.mxu0 %v13845_v60  ;;  %5089 = vmatpush.xpose.msrb.mxu1 %v13846_v58 }
 0x52a   : > { %5110 = vmatpush.xpose.msrb.mxu2 %v11018_v32  ;;  %v4206_v4 = vpop.f32.mrf.mxu2  ;;  %v13851_v32 = vld [vmem:[#allocation73_spill] sm:$0xff] }
 0x52b   : > { %v4207_v13 = vadd.f32 %v4206_v4, %v4158_v49  ;;  %v4255_v16 = vpop.f32.mrf.mxu3  ;;  %v11147_v24 = vpop.f32.mrf.mxu0 }
 0x52c   : > { %v11149_v45 = vpop.f32.mrf.mxu1 }
 0x52d   : > { %v11151_v42 = vadd.f32 %v4255_v16, %v4207_v13  ;;  %5061 = vmatpush.xpose.msrb.mxu0 %v13847_v1  ;;  %5090 = vmatpush.xpose.msrb.mxu1 %v13848_v14  ;;  %v13854_v16 = vld [vmem:[#allocation76_spill] sm:$0xff] }
 0x52e   : > { %5111 = vmatpush.xpose.msrb.mxu2 %v11013_v26  ;;  %4306 = vmatmul.bf16.gmra.mxu0 %v13849_v7  ;;  %v13855_v7 = vld [vmem:[#allocation77_spill] sm:$0xff] }
 0x52f   : > { %4355 = vmatmul.bf16.gmra.mxu1 %v13850_v20  ;;  %4404 = vmatmul.bf16.gmra.mxu2 %v13851_v32  ;;  %v13856_v20 = vld [vmem:[#allocation78_spill] sm:$0xff] }
 0x530   : > { %4453 = vmatmul.bf16.gmra.mxu3 %v13852_v38 }
 0x532   : > { %5112 = vmatpush.xpose.msrb.mxu2 %v11006_v63  ;;  %v11161_v15 = vpop.f32.mrf.mxu2  ;;  %v13853_v63 = vld [vmem:[#allocation75_spill] sm:$0xff] }
 0x533   : > { %v11163_v25 = vpop.f32.mrf.mxu3  ;;  %v11165_v33 = vpop.f32.mrf.mxu0 }
 0x534   : > { %v11167_v6 = vpop.f32.mrf.mxu1 }
 0x536   : > { %5113 = vmatpush.xpose.msrb.mxu2 %v11000_v3 }
 0x53a   : > { %5114 = vmatpush.xpose.msrb.mxu2 %v10989_v34  ;;  %v11171_v26 = vpop.f32.mrf.mxu2 }
 0x53b   : > { %v11173_v49 = vpop.f32.mrf.mxu3  ;;  %v11175_v4 = vpop.f32.mrf.mxu0 }
 0x53c   : > { %v11177_v13 = vpop.f32.mrf.mxu1 }
 0x53e   : > { %5115 = vmatpush.xpose.msrb.mxu2 %v10982_v9  ;;  %4311 = vmatmul.bf16.gmra.mxu0 %v13853_v63 }
 0x53f   : > { %4360 = vmatmul.bf16.gmra.mxu1 %v13854_v16  ;;  %4409 = vmatmul.bf16.gmra.mxu2 %v13855_v7 }
 0x540   : > { %4458 = vmatmul.bf16.gmra.mxu3 %v13856_v20  ;;  %v13861_v20 = vld [vmem:[#allocation82_spill] sm:$0xff] }
 0x542   : > { %5116 = vmatpush.xpose.msrb.mxu2 %v10966_v17  ;;  %v11185_v34 = vpop.f32.mrf.mxu2  ;;  %v13860_v17 = vld [vmem:[#allocation81_spill] sm:$0xff] }
 0x543   : > { %v11187_v3 = vpop.f32.mrf.mxu3  ;;  %v11189_v32 = vpop.f32.mrf.mxu0 }
 0x544   : > { %13857 = vst [vmem:[#allocation16_spill] sm:$0xff] %v11187_v3  ;;  %v11191_v38 = vpop.f32.mrf.mxu1 }
 0x546   : > { %5117 = vmatpush.xpose.msrb.mxu2 %v10963_v11 }
 0x54a   : > { %5118 = vmatpush.xpose.msrb.mxu2 %v10953_v0  ;;  %v11195_v9 = vpop.f32.mrf.mxu2 }
 0x54b   : > { %13858 = vst [vmem:[#allocation17_spill] sm:$0xff] %v11195_v9  ;;  %v11197_v63 = vpop.f32.mrf.mxu3  ;;  %v11199_v16 = vpop.f32.mrf.mxu0 }
 0x54c   : > { %13859 = vst [vmem:[#allocation18_spill] sm:$0xff] %v11197_v63  ;;  %v11201_v7 = vpop.f32.mrf.mxu1 }
 0x54e   : > { %5119 = vmatpush.xpose.msrb.mxu2 %v10960_v40  ;;  %4316 = vmatmul.bf16.gmra.mxu0 %v13860_v17 }
 0x54f   : > { %4365 = vmatmul.bf16.gmra.mxu1 %v13861_v20  ;;  %4414 = vmatmul.bf16.gmra.mxu2 %v13862_v35  ;;  %v13872_v20 = vld [vmem:[#allocation85_spill] sm:$0xff]  ;;  %v13873_v35 = vld [vmem:[#allocation86_spill] sm:$0xff] }
 0x550   : > { %4463 = vmatmul.bf16.gmra.mxu3 %v13863_v31  ;;  %v13874_v31 = vld [vmem:[#allocation87_spill] sm:$0xff] }
 0x552   : > { %v11208_v11 = vpop.f32.mrf.mxu2 }
 0x553   : > { %13864 = vst [vmem:[#allocation103_spill] sm:$0xff] %v11208_v11  ;;  %v11210_v0 = vpop.f32.mrf.mxu3  ;;  %v11212_v55 = vpop.f32.mrf.mxu0  ;;  %v11263_v11 = vld [vmem:[%s13372_s3 + $0x10] sm:$0xff] }
 0x554   : > { %13865 = vst [vmem:[#allocation104_spill] sm:$0xff] %v11210_v0  ;;  %v11214_v51 = vpop.f32.mrf.mxu1 }
 0x555   : > { %13866 = vst [vmem:[#allocation19_spill] sm:$0xff] %v11212_v55 }
 0x556   : > { %13867 = vst [vmem:[#allocation20_spill] sm:$0xff] %v11214_v51 }
 0x557   : > { %13885 = vst [vmem:[#allocation108_spill] sm:$0xff] %v11263_v11 }
 0x55a   : > { %v11216_v18 = vpop.f32.mrf.mxu2 }
 0x55b   : > { %13868 = vst [vmem:[#allocation21_spill] sm:$0xff] %v11216_v18  ;;  %v11218_v63 = vpop.f32.mrf.mxu3  ;;  %v11220_v40 = vpop.f32.mrf.mxu0 }
 0x55c   : > { %13869 = vst [vmem:[#allocation22_spill] sm:$0xff] %v11218_v63  ;;  %v11222_v17 = vpop.f32.mrf.mxu1 }
 0x55d   : > { %13870 = vst [vmem:[#allocation105_spill] sm:$0xff] %v11220_v40 }
 0x55e   : > { %13871 = vst [vmem:[#allocation106_spill] sm:$0xff] %v11222_v17  ;;  %4321 = vmatmul.bf16.gmra.mxu0 %v13872_v20  ;;  %v11243_v20 = vld [vmem:[%s13372_s3] sm:$0xff] }
 0x55f   : > { %4370 = vmatmul.bf16.gmra.mxu1 %v13873_v35  ;;  %4419 = vmatmul.bf16.gmra.mxu2 %v13874_v31  ;;  %13882 = vst [vmem:[#allocation29_spill] sm:$0xff] %v11243_v20 }
 0x560   : > { %4468 = vmatmul.bf16.gmra.mxu3 %v13875_v62 }
 0x562   : > { %v11228_v0 = vpop.f32.mrf.mxu2 }
 0x563   : > { %13876 = vst [vmem:[#allocation23_spill] sm:$0xff] %v11228_v0  ;;  %v11230_v43 = vpop.f32.mrf.mxu3  ;;  %v11232_v51 = vpop.f32.mrf.mxu0 }
 0x564   : > { %13877 = vst [vmem:[#allocation24_spill] sm:$0xff] %v11230_v43  ;;  %v11234_v18 = vpop.f32.mrf.mxu1 }
 0x565   : > { %13878 = vst [vmem:[#allocation25_spill] sm:$0xff] %v11232_v51  ;;  %v11252_v51 = vld [vmem:[%s13372_s3 + $0x8] sm:$0xff] }
 0x566   : > { %13879 = vst [vmem:[#allocation26_spill] sm:$0xff] %v11234_v18 }
 0x567   : > { %13883 = vst [vmem:[#allocation30_spill] sm:$0xff] %v11252_v51 }
 0x56a   : > { %v11236_v63 = vpop.f32.mrf.mxu2 }
 0x56b   : > { %13880 = vst [vmem:[#allocation27_spill] sm:$0xff] %v11236_v63  ;;  %v11238_v40 = vpop.f32.mrf.mxu3  ;;  %v4287_v17 = vpop.f32.mrf.mxu0 }
 0x56c   : > { %13881 = vst [vmem:[#allocation28_spill] sm:$0xff] %v11238_v40  ;;  %v4288_v62 = vadd.f32 %v4287_v17, %v11065_v56  ;;  %v4336_v35 = vpop.f32.mrf.mxu1 }
 0x56e   : > { %v4337_v31 = vadd.f32 %v4336_v35, %v4288_v62  ;;  %4706 = vmatmul.f32.vlgmr.msra.gmra.mxu0 %v11243_v20 }
 0x56f   : > { %4735 = vmatmul.f32.vlgmr.msra.gmra.mxu1 %v11243_v20  ;;  %4764 = vmatmul.f32.vlgmr.msra.gmra.mxu2 %v11243_v20 }
 0x572   : > { %v4385_v18 = vpop.f32.mrf.mxu2 }
 0x573   : > { %v4386_v63 = vadd.f32 %v4385_v18, %v4337_v31  ;;  %v4434_v43 = vpop.f32.mrf.mxu3  ;;  %v4289_v40 = vpop.f32.mrf.mxu0 }
 0x574   : > { %v4290_v0 = vadd.f32 %v4289_v40, %v11075_v50  ;;  %v4338_v56 = vpop.f32.mrf.mxu1 }
 0x575   : > { %v11255_v17 = vadd.f32 %v4434_v43, %v4386_v63 }
 0x576   : > { %v4339_v62 = vadd.f32 %v4338_v56, %v4290_v0  ;;  %4709 = vmatmul.f32.gmra.mxu0 %v11252_v51 }
 0x577   : > { %13884 = vst [vmem:[#allocation107_spill] sm:$0xff] %v11255_v17  ;;  %4738 = vmatmul.f32.gmra.mxu1 %v11252_v51  ;;  %4767 = vmatmul.f32.gmra.mxu2 %v11252_v51  ;;  %v11274_v51 = vld [vmem:[%s13372_s3 + $0x18] sm:$0xff] }
 0x578   : > { %13886 = vst [vmem:[#allocation33_spill] sm:$0xff] %v11274_v51 }
 0x57a   : > { %v4387_v18 = vpop.f32.mrf.mxu2 }
 0x57b   : > { %v4388_v35 = vadd.f32 %v4387_v18, %v4339_v62  ;;  %v4436_v31 = vpop.f32.mrf.mxu3  ;;  %v4292_v20 = vpop.f32.mrf.mxu0 }
 0x57c   : > { %v4293_v50 = vadd.f32 %v4292_v20, %v11091_v48  ;;  %v4341_v43 = vpop.f32.mrf.mxu1 }
 0x57d   : > { %v11266_v63 = vadd.f32 %v4436_v31, %v4388_v35 }
 0x57e   : > { %v4342_v0 = vadd.f32 %v4341_v43, %v4293_v50  ;;  %4712 = vmatmul.f32.gmra.mxu0 %v11263_v11 }
 0x57f   : > { %4741 = vmatmul.f32.gmra.mxu1 %v11263_v11  ;;  %4770 = vmatmul.f32.gmra.mxu2 %v11263_v11 }
 0x582   : > { %v4390_v40 = vpop.f32.mrf.mxu2 }
 0x583   : > { %v4391_v56 = vadd.f32 %v4390_v40, %v4342_v0  ;;  %v4439_v62 = vpop.f32.mrf.mxu3  ;;  %v4294_v18 = vpop.f32.mrf.mxu0 }
 0x584   : > { %v4295_v48 = vadd.f32 %v4294_v18, %v11101_v28  ;;  %v4343_v20 = vpop.f32.mrf.mxu1 }
 0x585   : > { %v11277_v35 = vadd.f32 %v4439_v62, %v4391_v56 }
 0x586   : > { %v4344_v31 = vadd.f32 %v4343_v20, %v4295_v48  ;;  %4715 = vmatmul.f32.gmra.mxu0 %v11274_v51 }
 0x587   : > { %13887 = vst [vmem:[#allocation35_spill] sm:$0xff] %v11277_v35  ;;  %4744 = vmatmul.f32.gmra.mxu1 %v11274_v51  ;;  %4773 = vmatmul.f32.gmra.mxu2 %v11274_v51 }
 0x58a   : > { %v4392_v50 = vpop.f32.mrf.mxu2 }
 0x58b   : > { %v4393_v43 = vadd.f32 %v4392_v50, %v4344_v31  ;;  %v4441_v0 = vpop.f32.mrf.mxu3  ;;  %v4297_v40 = vpop.f32.mrf.mxu0 }
 0x58c   : > { %v4298_v11 = vadd.f32 %v4297_v40, %v11117_v46  ;;  %v4346_v3 = vpop.f32.mrf.mxu1 }
 0x58d   : > { %v11283_v29 = vadd.f32 %v4441_v0, %v4393_v43 }
 0x58e   : > { %v4347_v28 = vadd.f32 %v4346_v3, %v4298_v11  ;;  %v13888_v3 = vld [vmem:[#allocation49_spill] sm:$0xff] }
 0x58f   : > { %v4112_v11 = vadd.f32 %v11147_v24, %v13888_v3  ;;  %v4542_v3 = vmul.f32 %v13845_v60, %v13845_v60  ;;  %v4554_v60 = vmul.f32 %v13834_v5, %v13834_v5  ;;  %v4547_v5 = vmul.f32 %v13844_v2, %v13844_v2 }
 0x590   : > { %v4555_v2 = vmul.f32 %v13835_v22, %v13835_v22  ;;  %v4578_v22 = vmul.f32 %v10784_v30, %v10784_v30 }
 0x592   : > { %v4395_v18 = vpop.f32.mrf.mxu2 }
 0x593   : > { %v4396_v56 = vadd.f32 %v4395_v18, %v4347_v28  ;;  %v4444_v62 = vpop.f32.mrf.mxu3  ;;  %v4299_v48 = vpop.f32.mrf.mxu0  ;;  %v4161_v28 = vadd.f32 %v11149_v45, %v4112_v11  ;;  %v4538_v11 = vmul.f32 %v13847_v1, %v13847_v1 }
 0x594   : > { %v4300_v20 = vadd.f32 %v4299_v48, %v11126_v8  ;;  %v4348_v35 = vpop.f32.mrf.mxu1 }
 0x595   : > { %v11286_v17 = vadd.f32 %v4444_v62, %v4396_v56 }
 0x596   : > { %v4349_v51 = vadd.f32 %v4348_v35, %v4300_v20 }
 0x59a   : > { %v4397_v55 = vpop.f32.mrf.mxu2 }
 0x59b   : > { %v4398_v31 = vadd.f32 %v4397_v55, %v4349_v51  ;;  %v4446_v50 = vpop.f32.mrf.mxu3  ;;  %v4302_v9 = vpop.f32.mrf.mxu0 }
 0x59c   : > { %v4303_v46 = vadd.f32 %v4302_v9, %v11139_v41  ;;  %v4351_v40 = vpop.f32.mrf.mxu1  ;;  %v4210_v41 = vadd.f32 %v11161_v15, %v4161_v28  ;;  %v4546_v15 = vmul.f32 %v13843_v57, %v13843_v57  ;;  %v4558_v57 = vmul.f32 %v10831_v59, %v10831_v59 }
 0x59d   : > { %v11289_v43 = vadd.f32 %v4446_v50, %v4398_v31  ;;  %v4551_v59 = vmul.f32 %v13841_v23, %v13841_v23  ;;  %v4574_v23 = vmul.f32 %v10792_v39, %v10792_v39  ;;  %v4582_v39 = vmul.f32 %v10776_v19, %v10776_v19 }
 0x59e   : > { %v4352_v0 = vadd.f32 %v4351_v40, %v4303_v46  ;;  %v4259_v48 = vadd.f32 %v11163_v25, %v4210_v41  ;;  %v4550_v25 = vmul.f32 %v13840_v47, %v13840_v47  ;;  %v4543_v47 = vmul.f32 %v13846_v58, %v13846_v58 }
 0x5a2   : > { %v4400_v8 = vpop.f32.mrf.mxu2 }
 0x5a3   : > { %v4401_v18 = vadd.f32 %v4400_v8, %v4352_v0  ;;  %v4449_v56 = vpop.f32.mrf.mxu3  ;;  %v4304_v62 = vpop.f32.mrf.mxu0  ;;  %v4602_v0 = vadd.f32 %v4542_v3, %v4538_v11  ;;  %v4559_v11 = vmul.f32 %v13832_v36, %v13832_v36  ;;  %v4567_v36 = vmul.f32 %v10817_v37, %v10817_v37 }
 0x5a4   : > { %v4305_v35 = vadd.f32 %v4304_v62, %v11151_v42  ;;  %v4353_v55 = vpop.f32.mrf.mxu1 }
 0x5a5   : > { %v11295_v51 = vadd.f32 %v4449_v56, %v4401_v18  ;;  %v4603_v62 = vadd.f32 %v4602_v0, %v4546_v15  ;;  %v13889_v15 = vld [vmem:[#allocation38_spill] sm:$0xff] }
 0x5a6   : > { %v4354_v9 = vadd.f32 %v4353_v55, %v4305_v35  ;;  %v4114_v0 = vadd.f32 %v11165_v33, %v13889_v15 }
 0x5a7   : > { %v4604_v1 = vadd.f32 %v4603_v62, %v4550_v25  ;;  %v13890_v25 = vld [vmem:[#allocation39_spill] sm:$0xff] }
 0x5a9   : > { %v4605_v41 = vadd.f32 %v4604_v1, %v4554_v60 }
 0x5aa   : > { %v4402_v20 = vpop.f32.mrf.mxu2 }
 0x5ab   : > { %v4403_v31 = vadd.f32 %v4402_v20, %v4354_v9  ;;  %v4451_v24 = vpop.f32.mrf.mxu3  ;;  %v4307_v50 = vpop.f32.mrf.mxu0  ;;  %v4562_v9 = vmul.f32 %v10822_v54, %v10822_v54  ;;  %v4606_v20 = vadd.f32 %v4605_v41, %v4558_v57  ;;  %v13891_v57 = vld [vmem:[#allocation32_spill] sm:$0xff] }
 0x5ac   : > { %v4308_v46 = vadd.f32 %v4307_v50, %v4259_v48  ;;  %v4356_v45 = vpop.f32.mrf.mxu1  ;;  %v4539_v48 = vmul.f32 %v13848_v14, %v13848_v14  ;;  %v4570_v14 = vmul.f32 %v10800_v52, %v10800_v52  ;;  %v4117_v52 = vadd.f32 %v11175_v4, %v13890_v25 }
 0x5ad   : > { %v11299_v40 = vadd.f32 %v4451_v24, %v4403_v31  ;;  %v4566_v31 = vmul.f32 %v10812_v12, %v10812_v12  ;;  %v4607_v54 = vadd.f32 %v4606_v20, %v4562_v9  ;;  %v4163_v4 = vadd.f32 %v11167_v6, %v4114_v0  ;;  %v13898_v0 = vld [vmem:[#allocation101_spill] sm:$0xff] }
 0x5ae   : > { %v4357_v42 = vadd.f32 %v4356_v45, %v4308_v46  ;;  %v4623_v24 = vadd.f32 %v4543_v47, %v4539_v48  ;;  %v4166_v1 = vadd.f32 %v11177_v13, %v4117_v52  ;;  %v4119_v30 = vadd.f32 %v11189_v32, %v13891_v57  ;;  %v13892_v47 = vld [vmem:[#allocation46_spill] sm:$0xff]  ;;  %v13900_v52 = vld [vmem:[#allocation103_spill] sm:$0xff] }
 0x5af   : > { %v4608_v12 = vadd.f32 %v4607_v54, %v4566_v31  ;;  %v4586_v48 = vmul.f32 %v10765_v21, %v10765_v21  ;;  %v4212_v13 = vadd.f32 %v11171_v26, %v4163_v4  ;;  %v4590_v32 = vmul.f32 %v10757_v27, %v10757_v27  ;;  %v13902_v57 = vld [vmem:[#allocation98_spill] sm:$0xff] }
 0x5b0   : > { %v4624_v45 = vadd.f32 %v4623_v24, %v4547_v5  ;;  %v4571_v5 = vmul.f32 %v10805_v10, %v10805_v10  ;;  %v4215_v24 = vadd.f32 %v11185_v34, %v4166_v1  ;;  %v4579_v10 = vmul.f32 %v10788_v53, %v10788_v53 }
 0x5b1   : > { %v11384_v26 = vmax.f32 %v11266_v63, 0.0  ;;  %v4261_v27 = vadd.f32 %v11173_v49, %v4212_v13  ;;  %v11400_v63 = vmul.f32 %v13898_v0, %v13898_v0  ;;  %v13899_v49 = vld [vmem:[#allocation16_spill] sm:$0xff]  ;;  %v11412_v4 = vmax.f32 %v11283_v29, 0.0 }
 0x5b2   : > { %v4405_v28 = vpop.f32.mrf.mxu2  ;;  %v4264_v25 = vadd.f32 %v13899_v49, %v4215_v24  ;;  %v13908_v24 = vld [vmem:[#allocation21_spill] sm:$0xff]  ;;  %v13911_v0 = vld [vmem:[#allocation100_spill] sm:$0xff]  ;;  %v13912_v49 = vld [vmem:[#allocation22_spill] sm:$0xff] }
 0x5b3   : > { %v4406_v8 = vadd.f32 %v4405_v28, %v4357_v42  ;;  %v4454_v18 = vpop.f32.mrf.mxu3  ;;  %v11309_v56 = vpop.f32.mrf.mxu0  ;;  %v4625_v42 = vadd.f32 %v4624_v45, %v4551_v59  ;;  %v4609_v28 = vadd.f32 %v4608_v12, %v4570_v14  ;;  %v4168_v59 = vadd.f32 %v11191_v38, %v4119_v30  ;;  %v13893_v45 = vld [vmem:[#allocation17_spill] sm:$0xff]  ;;  %v13894_v12 = vld [vmem:[#allocation40_spill] sm:$0xff] }
 0x5b4   : > { %v11313_v35 = vpop.f32.mrf.mxu1  ;;  %v4583_v30 = vmul.f32 %v13902_v57, %v13902_v57 }
 0x5b5   : > { %v11315_v55 = vadd.f32 %v4454_v18, %v4406_v8  ;;  %v4626_v8 = vadd.f32 %v4625_v42, %v4555_v2  ;;  %v4563_v18 = vmul.f32 %v10827_v61, %v10827_v61  ;;  %v4610_v62 = vadd.f32 %v4609_v28, %v4574_v23  ;;  %v13896_v42 = vld [vmem:[#allocation107_spill] sm:$0xff] }
 0x5b6   : > { %v4122_v61 = vadd.f32 %v11199_v16, %v13892_v47  ;;  %v4575_v16 = vmul.f32 %v10796_v44, %v10796_v44  ;;  %v4217_v2 = vadd.f32 %v13893_v45, %v4168_v59  ;;  %v13895_v44 = vld [vmem:[#allocation19_spill] sm:$0xff]  ;;  %v13903_v47 = vld [vmem:[#allocation18_spill] sm:$0xff]  ;;  %v11436_v45 = vmax.f32 %v11289_v43, 0.0 }
 0x5b7   : > { %v4627_v60 = vadd.f32 %v4626_v8, %v4559_v11  ;;  %v4611_v19 = vadd.f32 %v4610_v62, %v4578_v22  ;;  %v4124_v23 = vadd.f32 %v13895_v44, %v13894_v12  ;;  %v13897_v11 = vld [vmem:[#allocation35_spill] sm:$0xff]  ;;  %v4310_v22 = vadd.f32 %v11309_v56, %v4261_v27  ;;  %v13901_v62 = vld [vmem:[#allocation102_spill] sm:$0xff]  ;;  %v13904_v56 = vld [vmem:[#allocation20_spill] sm:$0xff] }
 0x5b8   : > { %v4171_v21 = vadd.f32 %v11201_v7, %v4122_v61  ;;  %v11393_v7 = vmax.f32 %v13896_v42, 0.0  ;;  %v11396_v15 = vmax.f32 %v13897_v11, 0.0  ;;  %v4266_v61 = vadd.f32 %v13903_v47, %v4217_v2 }
 0x5b9   : > { %v4628_v37 = vadd.f32 %v4627_v60, %v4563_v18  ;;  %v4612_v20 = vadd.f32 %v4611_v19, %v4582_v39  ;;  %v11407_v39 = vmul.f32 %v13901_v62, %v13901_v62  ;;  %v4173_v19 = vadd.f32 %v13904_v56, %v4124_v23  ;;  %v13910_v23 = vld [vmem:[#allocation106_spill] sm:$0xff] }
 0x5ba   : > { %v11331_v50 = vpop.f32.mrf.mxu2  ;;  %v4220_v28 = vadd.f32 %v13900_v52, %v4171_v21  ;;  %v4549_v29 = vmul.f32 %v11396_v15, %v11396_v15  ;;  %v4359_v21 = vadd.f32 %v11313_v35, %v4310_v22  ;;  %v4553_v27 = vmul.f32 %v11412_v4, %v11412_v4 }
 0x5bb   : > { %v11333_v58 = vpop.f32.mrf.mxu3  ;;  %v11335_v46 = vpop.f32.mrf.mxu0  ;;  %v4629_v31 = vadd.f32 %v4628_v37, %v4567_v36  ;;  %v4613_v54 = vadd.f32 %v4612_v20, %v4586_v48  ;;  %v4545_v36 = vmul.f32 %v11384_v26, %v11384_v26  ;;  %v13905_v37 = vld [vmem:[#allocation34_spill] sm:$0xff]  ;;  %v4541_v20 = vmul.f32 %v11393_v7, %v11393_v7 }
 0x5bc   : > { %v11341_v3 = vpop.f32.mrf.mxu1  ;;  %v4313_v48 = vadd.f32 %v11335_v46, %v4264_v25  ;;  %v4222_v59 = vadd.f32 %v13908_v24, %v4173_v19  ;;  %v13909_v46 = vld [vmem:[#allocation99_spill] sm:$0xff]  ;;  %v11444_v42 = vmax.f32 %v11295_v51, 0.0  ;;  %v4591_v43 = vmul.f32 %v13911_v0, %v13911_v0 }
 0x5bd   : > { %v4630_v14 = vadd.f32 %v4629_v31, %v4571_v5  ;;  %v11390_v34 = vadd.f32 %v4613_v54, %v4590_v32  ;;  %v13906_v5 = vld [vmem:[#allocation105_spill] sm:$0xff]  ;;  %v11426_v32 = vmax.f32 %v11286_v17, 0.0  ;;  %v13907_v31 = vld [vmem:[#allocation104_spill] sm:$0xff]  ;;  %v4408_v17 = vadd.f32 %v11331_v50, %v4359_v21 }
 0x5be   : > { %v4127_v13 = vadd.f32 %v13906_v5, %v13905_v37  ;;  %v4362_v12 = vadd.f32 %v11341_v3, %v4313_v48  ;;  %v4271_v25 = vadd.f32 %v13912_v49, %v4222_v59  ;;  %v4561_v62 = vmul.f32 %v11436_v45, %v11436_v45 }
 0x5bf   : > { %v4631_v38 = vadd.f32 %v4630_v14, %v4575_v16  ;;  %v4269_v16 = vadd.f32 %v13907_v31, %v4220_v28  ;;  %v4587_v14 = vmul.f32 %v13909_v46, %v13909_v46  ;;  %v4565_v48 = vmul.f32 %v11444_v42, %v11444_v42 }
 0x5c0   : > { %v11462_v5 = vmax.f32 %v11315_v55, 0.0  ;;  %v4615_v55 = vadd.f32 %v11390_v34, %v11400_v63 }
 0x5c1   : > { %v4632_v60 = vadd.f32 %v4631_v38, %v4579_v10  ;;  %v4665_v10 = vadd.f32 %v4545_v36, %v4541_v20  ;;  %v4176_v38 = vadd.f32 %v13910_v23, %v4127_v13  ;;  %v4457_v36 = vadd.f32 %v11333_v58, %v4408_v17  ;;  %v13915_v58 = vld [vmem:[#allocation109_spill] sm:$0xff] }
 0x5c2   : > { %v11359_v33 = vpop.f32.mrf.mxu2  ;;  %v13917_v20 = vld [vmem:[#allocation25_spill] sm:$0xff] }
 0x5c3   : > { %v11367_v41 = vpop.f32.mrf.mxu3  ;;  %v4314_v9 = vpop.f32.mrf.mxu0  ;;  %v4633_v2 = vadd.f32 %v4632_v60, %v4583_v30  ;;  %v4666_v35 = vadd.f32 %v4665_v10, %v4549_v29  ;;  %v4411_v50 = vadd.f32 %v11359_v33, %v4362_v12  ;;  %v11453_v60 = vmax.f32 %v11299_v40, 0.0 }
 0x5c4   : > { %v4363_v6 = vpop.f32.mrf.mxu1  ;;  %v4315_v54 = vadd.f32 %v4314_v9, %v4266_v61  ;;  %v4557_v9 = vmul.f32 %v11426_v32, %v11426_v32  ;;  %v13913_v61 = vld [vmem:[#allocation110_spill] sm:$0xff]  ;;  %v11471_v24 = vmax.f32 %v4457_v36, 0.0 }
 0x5c5   : > { %v4634_v22 = vadd.f32 %v4633_v2, %v4587_v14  ;;  %v4595_v33 = vmul.f32 %v13913_v61, %v13913_v61  ;;  %v4460_v40 = vadd.f32 %v11367_v41, %v4411_v50  ;;  %v13918_v41 = vld [vmem:[#allocation24_spill] sm:$0xff] }
 0x5c6   : > { %v4364_v52 = vadd.f32 %v4363_v6, %v4315_v54  ;;  %v13914_v6 = vld [vmem:[#allocation23_spill] sm:$0xff] }
 0x5c7   : > { %v4225_v56 = vadd.f32 %v13914_v6, %v4176_v38  ;;  %v4635_v37 = vadd.f32 %v4634_v22, %v4591_v43  ;;  %v11478_v2 = vmax.f32 %v4460_v40, 0.0 }
 0x5c9   : > { %v4636_v54 = vadd.f32 %v4635_v37, %v4595_v33  ;;  %v4274_v46 = vadd.f32 %v13918_v41, %v4225_v56 }
 0x5ca   : > { %v4412_v53 = vpop.f32.mrf.mxu2 }
 0x5cb   : > { %v4461_v8 = vpop.f32.mrf.mxu3  ;;  %v4317_v18 = vpop.f32.mrf.mxu0  ;;  %v4413_v57 = vadd.f32 %v4412_v53, %v4364_v52  ;;  %v4599_v53 = vmul.f32 %v13915_v58, %v13915_v58 }
 0x5cc   : > { %v4366_v1 = vpop.f32.mrf.mxu1  ;;  %v4318_v44 = vadd.f32 %v4317_v18, %v4269_v16  ;;  %v4667_v18 = vadd.f32 %v4666_v35, %v4553_v27  ;;  %v4569_v16 = vmul.f32 %v11453_v60, %v11453_v60  ;;  %v4573_v27 = vmul.f32 %v11462_v5, %v11462_v5  ;;  %v13919_v35 = vld [vmem:[#allocation26_spill] sm:$0xff] }
 0x5cd   : > { %v4462_v59 = vadd.f32 %v4461_v8, %v4413_v57  ;;  %v4616_v8 = vadd.f32 %v4615_v55, %v11407_v39  ;;  %v4637_v38 = vadd.f32 %v4636_v54, %v4599_v53 }
 0x5ce   : > { %v4367_v30 = vadd.f32 %v4366_v1, %v4318_v44  ;;  %v4668_v19 = vadd.f32 %v4667_v18, %v4557_v9  ;;  %v13916_v1 = vld [vmem:[#allocation31_spill] sm:$0xff] }
 0x5cf   : > { %v4129_v29 = vadd.f32 %v13917_v20, %v13916_v1  ;;  %v11484_v0 = vmax.f32 %v4462_v59, 0.0  ;;  %v4617_v39 = vrot.slane %v4616_v8, 4  ;;  %v4638_v22 = vrot.slane %v4637_v38, 4  ;;  %v11500_v20 = vpop.permute.xlu1 %4812 }
 0x5d0   : > { %v4669_v31 = vadd.f32 %v4668_v19, %v4561_v62 }
 0x5d1   : > { %v4178_v9 = vadd.f32 %v13919_v35, %v4129_v29  ;;  %v4585_v62 = vmul.f32 %v11484_v0, %v11484_v0  ;;  %v4639_v37 = vadd.f32 %v4638_v22, %v4637_v38  ;;  %v13922_v29 = vld [vmem:[#allocation15_spill] sm:$0xff] }
 0x5d2   : > { %v4415_v11 = vpop.f32.mrf.mxu2  ;;  %v4670_v14 = vadd.f32 %v4669_v31, %v4565_v48  ;;  %v4618_v48 = vadd.f32 %v4617_v39, %v4616_v8  ;;  %v4659_v31 = vrot.slane %v13922_v29, 4 }
 0x5d3   : > { %v4464_v3 = vpop.f32.mrf.mxu3  ;;  %v4319_v28 = vpop.f32.mrf.mxu0  ;;  %v4416_v13 = vadd.f32 %v4415_v11, %v4367_v30  ;;  %v4577_v11 = vmul.f32 %v11471_v24, %v11471_v24  ;;  %v13921_v30 = vld [vmem:[#allocation28_spill] sm:$0xff]  ;;  %v4640_v55 = vrot.slane %v4639_v37, 2 }
 0x5d4   : > { %v4368_v51 = vpop.f32.mrf.mxu1  ;;  %v4320_v47 = vadd.f32 %v4319_v28, %v4271_v25  ;;  %v4671_v34 = vadd.f32 %v4670_v14, %v4569_v16  ;;  %v13920_v25 = vld [vmem:[#allocation27_spill] sm:$0xff] }
 0x5d5   : > { %v4465_v17 = vadd.f32 %v4464_v3, %v4416_v13  ;;  %v4227_v50 = vadd.f32 %v13920_v25, %v4178_v9  ;;  %v4581_v3 = vmul.f32 %v11478_v2, %v11478_v2  ;;  %v4641_v35 = vadd.f32 %v4640_v55, %v4639_v37 }
 0x5d6   : > { %v4369_v21 = vadd.f32 %v4368_v51, %v4320_v47  ;;  %v4672_v52 = vadd.f32 %v4671_v34, %v4573_v27  ;;  %v4660_v27 = vadd.f32 %v4659_v31, %v13922_v29 }
 0x5d7   : > { %v11489_v28 = vmax.f32 %v4465_v17, 0.0  ;;  %v4276_v47 = vadd.f32 %v13921_v30, %v4227_v50  ;;  %v4642_v50 = vrot.slane %v4641_v35, 1 }
 0x5d8   : > { %v4673_v18 = vadd.f32 %v4672_v52, %v4577_v11  ;;  %v4661_v34 = vrot.slane %v4660_v27, 2  ;;  %v11512_v11 = vpop.permute.xlu0 %4822 }
 0x5d9   : > { %v4589_v33 = vmul.f32 %v11489_v28, %v11489_v28 }
 0x5da   : > { %v4417_v10 = vpop.f32.mrf.mxu2  ;;  %v4674_v61 = vadd.f32 %v4673_v18, %v4581_v3  ;;  %v4662_v3 = vadd.f32 %v4661_v34, %v4660_v27 }
 0x5db   : > { %v4418_v12 = vadd.f32 %v4417_v10, %v4369_v21  ;;  %v4466_v44 = vpop.f32.mrf.mxu3  ;;  %v4322_v23 = vpop.f32.mrf.mxu0  ;;  %v4619_v21 = vrot.slane %v4618_v48, 2 }
 0x5dc   : > { %v4371_v63 = vpop.f32.mrf.mxu1  ;;  %v4323_v49 = vadd.f32 %v4322_v23, %v4274_v46  ;;  %v4675_v13 = vadd.f32 %v4674_v61, %v4585_v62  ;;  %v11507_v10 = vpop.permute.xlu2 %4817  ;;  %v4663_v30 = vrot.slane %v4662_v3, 1 }
 0x5dd   : > { %v4467_v43 = vadd.f32 %v4466_v44, %v4418_v12  ;;  %v4620_v23 = vadd.f32 %v4619_v21, %v4618_v48 }
 0x5de   : > { %v4372_v36 = vadd.f32 %v4371_v63, %v4323_v49  ;;  %v4676_v16 = vadd.f32 %v4675_v13, %v4589_v33  ;;  %v11514_v49 = vpop.permute.xlu1 %4852 }
 0x5df   : > { %v11493_v51 = vmax.f32 %v4467_v43, 0.0  ;;  %v4621_v43 = vrot.slane %v4620_v23, 1 }
 0x5e0   : > { %v11531_v33 = vpop.permute.xlu0 %4827 }
 0x5e1   : > { %v4593_v58 = vmul.f32 %v11493_v51, %v11493_v51  ;;  %v4622_v18 = vadd.f32 %v4621_v43, %v4620_v23 }
 0x5e2   : > { %v4420_v57 = vpop.f32.mrf.mxu2 }
 0x5e3   : > { %v4421_v6 = vadd.f32 %v4420_v57, %v4372_v36  ;;  %v4469_v56 = vpop.f32.mrf.mxu3  ;;  %v4324_v19 = vpop.f32.mrf.mxu0  ;;  %v4677_v54 = vadd.f32 %v4676_v16, %v4593_v58  ;;  %v4643_v57 = vadd.f32 %v4642_v50, %v4641_v35  ;;  %v4842_v31 = vmul.f32 %v11531_v33, %v4622_v18 }
 0x5e4   : > { %v4373_v40 = vpop.f32.mrf.mxu1  ;;  %v4325_v1 = vadd.f32 %v4324_v19, %v4276_v47  ;;  %v11524_v36 = vpop.permute.xlu2 %4857  ;;  %v4834_v47 = vmul.f32 %v11507_v10, %v4622_v18  ;;  %v4838_v19 = vmul.f32 %v11512_v11, %v4622_v18 }
 0x5e5   : > { %v4470_v53 = vadd.f32 %v4469_v56, %v4421_v6  ;;  %v4835_v61 = vmul.f32 %v11507_v10, %v4643_v57  ;;  %v4830_v6 = vmul.f32 %v11500_v20, %v4622_v18  ;;  %v4831_v37 = vmul.f32 %v11500_v20, %v4643_v57 }
 0x5e6   : > { %v4374_v46 = vadd.f32 %v4373_v40, %v4325_v1  ;;  %v11535_v48 = vpop.permute.xlu1 %4862  ;;  %v4664_v40 = vadd.f32 %v4663_v30, %v4662_v3  ;;  %v4839_v58 = vmul.f32 %v11512_v11, %v4643_v57 }
 0x5e7   : > { %v11503_v59 = vmax.f32 %v4470_v53, 0.0  ;;  %v4874_v53 = vadd.f32 %v11524_v36, %v4834_v47  ;;  %v4875_v29 = vadd.f32 %v11524_v36, %v4835_v61  ;;  %v4870_v16 = vadd.f32 %v11514_v49, %v4830_v6 }
 0x5e8   : > { %v4878_v55 = vadd.f32 %v11535_v48, %v4838_v19  ;;  %v4836_v27 = vmul.f32 %v11507_v10, %v4664_v40  ;;  %v4832_v23 = vmul.f32 %v11500_v20, %v4664_v40  ;;  %v4840_v34 = vmul.f32 %v11512_v11, %v4664_v40 }
 0x5e9   : > { %v4597_v41 = vmul.f32 %v11503_v59, %v11503_v59  ;;  %v4844_v47 = vmul.f32 %v11531_v33, %v4664_v40 }
 0x5ea   : > { %v4422_v14 = vpop.f32.mrf.mxu2  ;;  %v4876_v3 = vadd.f32 %v11524_v36, %v4836_v27  ;;  %v4872_v18 = vadd.f32 %v11514_v49, %v4832_v23  ;;  %v4880_v19 = vadd.f32 %v11535_v48, %v4840_v34 }
 0x5eb   : > { %v4678_v17 = vadd.f32 %v4677_v54, %v4597_v41  ;;  %v4423_v12 = vadd.f32 %v4422_v14, %v4374_v46  ;;  %v4707_v44 = vpop.f32.mrf.mxu0  ;;  %v4471_v8 = vpop.f32.mrf.mxu3  ;;  %v4843_v54 = vmul.f32 %v11531_v33, %v4643_v57  ;;  %v4871_v46 = vadd.f32 %v11514_v49, %v4831_v37 }
 0x5ec   : > { %v4736_v38 = vpop.f32.mrf.mxu1  ;;  %v11549_v41 = vpop.permute.xlu2 %4867 }
 0x5ed   : > { %v4472_v9 = vadd.f32 %v4471_v8, %v4423_v12  ;;  %v11557_v12 = vsub.f32 %v4870_v16, %v4707_v44  ;;  %v11562_v35 = vsub.f32 %v4871_v46, %v4736_v38  ;;  %v4882_v50 = vadd.f32 %v11549_v41, %v4842_v31 }
 0x5ee   : > { %v4884_v31 = vadd.f32 %v11549_v41, %v4844_v47 }
 0x5ef   : > { %v11510_v63 = vmax.f32 %v4472_v9, 0.0 }
 0x5f1   : > { %v4601_v25 = vmul.f32 %v11510_v63, %v11510_v63  ;;  %4777 = vmatpush.msra.mxu3 %v11510_v63 }
 0x5f2   : > { %v11519_v52 = vpop.f32.mrf.mxu2 }
 0x5f3   : > { %v11521_v39 = vadd.f32 %v4678_v17, %v4601_v25  ;;  %4778 = vmatpush.msra.mxu3 %v11503_v59  ;;  %v4710_v22 = vpop.f32.mrf.mxu0  ;;  %v4879_v17 = vadd.f32 %v11535_v48, %v4839_v58  ;;  %v11585_v58 = vsub.f32 %v4872_v18, %v11519_v52 }
 0x5f4   : > { %v4739_v62 = vpop.f32.mrf.mxu1  ;;  %v11545_v21 = vsub.f32 %v4874_v53, %v4710_v22  ;;  %v4883_v22 = vadd.f32 %v11549_v41, %v4843_v54 }
 0x5f5   : > { %4779 = vmatpush.msra.mxu3 %v11493_v51  ;;  %v11552_v14 = vsub.f32 %v4875_v29, %v4739_v62 }
 0x5f6   : > { %v4902_v43 = vmax.f32 %v11557_v12, %v11545_v21 }
 0x5f7   : > { %4780 = vmatpush.msra.mxu3 %v11489_v28  ;;  %v4911_v44 = vmax.f32 %v11562_v35, %v11552_v14 }
 0x5f9   : > { %4781 = vmatpush.msra.mxu3 %v11484_v0 }
 0x5fa   : > { %v4768_v56 = vpop.f32.mrf.mxu2 }
 0x5fb   : > { %4782 = vmatpush.msra.mxu3 %v11478_v2  ;;  %v4713_v13 = vpop.f32.mrf.mxu0  ;;  %v11579_v61 = vsub.f32 %v4876_v3, %v4768_v56 }
 0x5fc   : > { %v4742_v1 = vpop.f32.mrf.mxu1  ;;  %v11560_v8 = vsub.f32 %v4878_v55, %v4713_v13 }
 0x5fd   : > { %4783 = vmatpush.msra.mxu3 %v11471_v24  ;;  %v11564_v9 = vsub.f32 %v4879_v17, %v4742_v1  ;;  %v4920_v56 = vmax.f32 %v11585_v58, %v11579_v61 }
 0x5fe   : > { %v4903_v62 = vmax.f32 %v4902_v43, %v11560_v8 }
 0x5ff   : > { %4784 = vmatpush.msra.mxu3 %v11462_v5  ;;  %v4912_v6 = vmax.f32 %v4911_v44, %v11564_v9  ;;  %v13923_v44 = vld [vmem:[#allocation29_spill] sm:$0xff] }
 0x601   : > { %4785 = vmatpush.msra.mxu3 %v11453_v60 }
 0x602   : > { %v4771_v25 = vpop.f32.mrf.mxu2 }
 0x603   : > { %4786 = vmatpush.msra.mxu3 %v11444_v42  ;;  %v4716_v38 = vpop.f32.mrf.mxu0  ;;  %v11587_v53 = vsub.f32 %v4880_v19, %v4771_v25 }
 0x604   : > { %v4898_v57 = vsub.f32 %v4882_v50, %v4716_v38  ;;  %v4745_v30 = vpop.f32.mrf.mxu1 }
 0x605   : > { %v4899_v37 = vsub.f32 %v4883_v22, %v4745_v30  ;;  %4787 = vmatpush.msra.mxu3 %v11436_v45  ;;  %v4921_v54 = vmax.f32 %v4920_v56, %v11587_v53 }
 0x606   : > { %v4904_v13 = vmax.f32 %v4903_v62, %v4898_v57 }
 0x607   : > { %v4913_v1 = vmax.f32 %v4912_v6, %v4899_v37  ;;  %4788 = vmatpush.msra.mxu3 %v11426_v32 }
 0x608   : > { %v4905_v29 = vrot.slane %v4904_v13, 4 }
 0x609   : > { %v4914_v40 = vrot.slane %v4913_v1, 4  ;;  %4789 = vmatpush.msra.mxu3 %v11412_v4 }
 0x60a   : > { %v4906_v16 = vmax.f32 %v4904_v13, %v4905_v29  ;;  %v4774_v55 = vpop.f32.mrf.mxu2 }
 0x60b   : > { %v4915_v52 = vmax.f32 %v4913_v1, %v4914_v40  ;;  %v11595_v46 = vsub.f32 %v4884_v31, %v4774_v55  ;;  %4790 = vmatpush.msra.mxu3 %v11396_v15 }
 0x60c   : > { %v4907_v27 = vrot.slane %v4906_v16, 2 }
 0x60d   : > { %v4916_v17 = vrot.slane %v4915_v52, 2  ;;  %v4922_v23 = vmax.f32 %v4921_v54, %v11595_v46  ;;  %4791 = vmatpush.msra.mxu3 %v11384_v26  ;;  %v13924_v54 = vld [vmem:[#allocation30_spill] sm:$0xff] }
 0x60e   : > { %v4908_v34 = vmax.f32 %v4906_v16, %v4907_v27 }
 0x60f   : > { %v4917_v43 = vmax.f32 %v4915_v52, %v4916_v17  ;;  %v4923_v25 = vrot.slane %v4922_v23, 4  ;;  %4792 = vmatpush.msra.mxu3 %v11393_v7 }
 0x610   : > { %v4909_v50 = vrot.slane %v4908_v34, 1  ;;  %4793 = vmatmul.f32.vlgmr.msra.gmra.mxu3 %v13923_v44 }
 0x611   : > { %v4918_v3 = vrot.slane %v4917_v43, 1  ;;  %v4924_v38 = vmax.f32 %v4922_v23, %v4923_v25  ;;  %5133 = vmatpush.xpose.msrb.mxu3 %v11510_v63 }
 0x612   : > { %v4910_v22 = vmax.f32 %v4908_v34, %v4909_v50 }
 0x613   : > { %v4919_v18 = vmax.f32 %v4917_v43, %v4918_v3  ;;  %v4925_v62 = vrot.slane %v4924_v38, 2 }
 0x614   : > { %v4938_v30 = vsub.f32 %v11557_v12, %v4910_v22  ;;  %v4942_v47 = vsub.f32 %v11545_v21, %v4910_v22  ;;  %v4946_v6 = vsub.f32 %v11560_v8, %v4910_v22  ;;  %v4950_v19 = vsub.f32 %v4898_v57, %v4910_v22 }
 0x615   : > { %v4939_v13 = vsub.f32 %v11562_v35, %v4919_v18  ;;  %v4943_v1 = vsub.f32 %v11552_v14, %v4919_v18  ;;  %v4947_v29 = vsub.f32 %v11564_v9, %v4919_v18  ;;  %5134 = vmatpush.xpose.msrb.mxu3 %v11503_v59  ;;  %v4926_v31 = vmax.f32 %v4924_v38, %v4925_v62 }
 0x616   : > { %v4954_v56 = vmul.f32 1.442695, %v4938_v30  ;;  %v4962_v63 = vmul.f32 1.442695, %v4942_v47  ;;  %v4970_v40 = vmul.f32 1.442695, %v4946_v6  ;;  %v4951_v55 = vsub.f32 %v4899_v37, %v4919_v18 }
 0x617   : > { %v4978_v16 = vmul.f32 1.442695, %v4950_v19  ;;  %v4956_v12 = vmul.f32 1.442695, %v4939_v13  ;;  %v4927_v21 = vrot.slane %v4926_v31, 1 }
 0x618   : > { %8374 = vpow2.f32 %v4954_v56  ;;  %4796 = vmatmul.f32.gmra.mxu3 %v13924_v54  ;;  %v4964_v8 = vmul.f32 1.442695, %v4943_v1  ;;  %v4972_v14 = vmul.f32 1.442695, %v4947_v29  ;;  %v4980_v59 = vmul.f32 1.442695, %v4951_v55 }
 0x619   : > { %8376 = vpow2.f32 %v4962_v63  ;;  %5135 = vmatpush.xpose.msrb.mxu3 %v11493_v51  ;;  %v4928_v35 = vmax.f32 %v4926_v31, %v4927_v21  ;;  %v13926_v1 = vld [vmem:[#allocation33_spill] sm:$0xff] }
 0x61a   : > { %8378 = vpow2.f32 %v4970_v40 }
 0x61b   : > { %8380 = vpow2.f32 %v4978_v16  ;;  %v4940_v9 = vsub.f32 %v11585_v58, %v4928_v35  ;;  %v4944_v57 = vsub.f32 %v11579_v61, %v4928_v35  ;;  %v4948_v37 = vsub.f32 %v11587_v53, %v4928_v35  ;;  %v13925_v58 = vld [vmem:[#allocation108_spill] sm:$0xff] }
 0x61c   : > { %8382 = vpow2.f32 %v4956_v12  ;;  %v4952_v52 = vsub.f32 %v11595_v46, %v4928_v35 }
 0x61d   : > { %8384 = vpow2.f32 %v4964_v8  ;;  %5136 = vmatpush.xpose.msrb.mxu3 %v11489_v28  ;;  %v4958_v51 = vmul.f32 1.442695, %v4940_v9  ;;  %v4966_v17 = vmul.f32 1.442695, %v4944_v57  ;;  %v4974_v34 = vmul.f32 1.442695, %v4948_v37 }
 0x61e   : > { %v8375_v27 = vpop.eup %8374  ;;  %8386 = vpow2.f32 %v4972_v14  ;;  %v4982_v53 = vmul.f32 1.442695, %v4952_v52 }
 0x61f   : > { %v8377_v23 = vpop.eup %8376  ;;  %8388 = vpow2.f32 %v4980_v59 }
 0x620   : > { %v8379_v43 = vpop.eup %8378  ;;  %v4986_v25 = vadd.f32 %v8377_v23, %v8375_v27  ;;  %8390 = vpow2.f32 %v4958_v51  ;;  %4799 = vmatmul.f32.gmra.mxu3 %v13925_v58 }
 0x621   : > { %v8381_v61 = vpop.eup %8380  ;;  %8392 = vpow2.f32 %v4966_v17  ;;  %5137 = vmatpush.xpose.msrb.mxu3 %v11484_v0 }
 0x622   : > { %v8383_v46 = vpop.eup %8382  ;;  %v4987_v50 = vadd.f32 %v8379_v43, %v4986_v25  ;;  %8394 = vpow2.f32 %v4974_v34 }
 0x623   : > { %v8385_v28 = vpop.eup %8384  ;;  %8396 = vpow2.f32 %v4982_v53 }
 0x624   : > { %v8387_v44 = vpop.eup %8386  ;;  %v4988_v3 = vadd.f32 %v8381_v61, %v4987_v50  ;;  %v4995_v38 = vadd.f32 %v8385_v28, %v8383_v46 }
 0x625   : > { %v8389_v22 = vpop.eup %8388  ;;  %5138 = vmatpush.xpose.msrb.mxu3 %v11478_v2 }
 0x626   : > { %v8391_v18 = vpop.eup %8390  ;;  %v4989_v62 = vrot.slane %v4988_v3, 4  ;;  %v4996_v30 = vadd.f32 %v8387_v44, %v4995_v38 }
 0x627   : > { %v8393_v47 = vpop.eup %8392 }
 0x628   : > { %v4990_v6 = vadd.f32 %v4989_v62, %v4988_v3  ;;  %v4997_v19 = vadd.f32 %v8389_v22, %v4996_v30  ;;  %v5004_v13 = vadd.f32 %v8393_v47, %v8391_v18  ;;  %4802 = vmatmul.f32.gmra.mxu3 %v13926_v1  ;;  %v8395_v0 = vpop.eup %8394 }
 0x629   : > { %5139 = vmatpush.xpose.msrb.mxu3 %v11471_v24  ;;  %v8397_v40 = vpop.eup %8396 }
 0x62a   : > { %v4991_v29 = vrot.slane %v4990_v6, 2  ;;  %v4998_v56 = vrot.slane %v4997_v19, 4  ;;  %v5005_v63 = vadd.f32 %v8395_v0, %v5004_v13 }
 0x62c   : > { %v4992_v31 = vadd.f32 %v4991_v29, %v4990_v6  ;;  %v4999_v16 = vadd.f32 %v4998_v56, %v4997_v19  ;;  %v5006_v55 = vadd.f32 %v8397_v40, %v5005_v63 }
 0x62d   : > { %5140 = vmatpush.xpose.msrb.mxu3 %v11462_v5 }
 0x62e   : > { %v4993_v2 = vrot.slane %v4992_v31, 1  ;;  %v5000_v12 = vrot.slane %v4999_v16, 2  ;;  %v5007_v21 = vrot.slane %v5006_v55, 4 }
 0x630   : > { %v4994_v54 = vadd.f32 %v4993_v2, %v4992_v31  ;;  %v5001_v8 = vadd.f32 %v5000_v12, %v4999_v16  ;;  %v5008_v14 = vadd.f32 %v5007_v21, %v5006_v55 }
 0x631   : > { %5141 = vmatpush.xpose.msrb.mxu3 %v11453_v60 }
 0x632   : > { %8398 = vrcp.f32 %v4994_v54  ;;  %v5002_v35 = vrot.slane %v5001_v8, 1  ;;  %v5009_v24 = vrot.slane %v5008_v14, 2 }
 0x634   : > { %v5003_v59 = vadd.f32 %v5002_v35, %v5001_v8  ;;  %v5010_v9 = vadd.f32 %v5009_v24, %v5008_v14 }
 0x635   : > { %5142 = vmatpush.xpose.msrb.mxu3 %v11444_v42 }
 0x636   : > { %8400 = vrcp.f32 %v5003_v59  ;;  %v5011_v57 = vrot.slane %v5010_v9, 1 }
 0x638   : > { %v8399_v37 = vpop.eup %8398  ;;  %v5012_v52 = vadd.f32 %v5011_v57, %v5010_v9 }
 0x639   : > { %5143 = vmatpush.xpose.msrb.mxu3 %v11436_v45  ;;  %v5026_v5 = vmul.f32 %v8399_v37, %v8375_v27  ;;  %v5030_v51 = vmul.f32 %v8399_v37, %v8377_v23  ;;  %v5034_v17 = vmul.f32 %v8399_v37, %v8379_v43  ;;  %v5038_v34 = vmul.f32 %v8399_v37, %v8381_v61 }
 0x63a   : > { %8402 = vrcp.f32 %v5012_v52 }
 0x63b   : > { %5062 = vmatmul.f32.vlgmr.msrb.gmra.mxu0 %v5026_v5 }
 0x63c   : > { %v8401_v60 = vpop.eup %8400 }
 0x63d   : > { %v5027_v25 = vmul.f32 %v8401_v60, %v8383_v46  ;;  %5144 = vmatpush.xpose.msrb.mxu3 %v11426_v32  ;;  %v5031_v58 = vmul.f32 %v8401_v60, %v8385_v28  ;;  %v5035_v53 = vmul.f32 %v8401_v60, %v8387_v44  ;;  %v5039_v50 = vmul.f32 %v8401_v60, %v8389_v22 }
 0x63f   : > { %5091 = vmatmul.f32.vlgmr.msrb.gmra.mxu1 %v5027_v25  ;;  %v5184_v42 = vadd.f32 %v5035_v53, %v5034_v17  ;;  %v5179_v3 = vadd.f32 %v5031_v58, %v5030_v51  ;;  %v5174_v38 = vadd.f32 %v5027_v25, %v5026_v5  ;;  %v5189_v62 = vadd.f32 %v5039_v50, %v5038_v34 }
 0x640   : > { %v8403_v30 = vpop.eup %8402 }
 0x641   : > { %5145 = vmatpush.xpose.msrb.mxu3 %v11412_v4  ;;  %v5028_v45 = vmul.f32 %v8403_v30, %v8391_v18  ;;  %v5032_v27 = vmul.f32 %v8403_v30, %v8393_v47  ;;  %v5036_v23 = vmul.f32 %v8403_v30, %v8395_v0  ;;  %v5040_v43 = vmul.f32 %v8403_v30, %v8397_v40 }
 0x642   : > { %v4680_v4 = vrot.slane %v11521_v39, 4 }
 0x643   : > { %5120 = vmatmul.f32.vlgmr.msrb.gmra.mxu2 %v5028_v45  ;;  %5065 = vmatmul.f32.gmra.mxu0 %v5030_v51  ;;  %v11628_v61 = vadd.f32 %v5184_v42, %v5036_v23  ;;  %v11630_v32 = vadd.f32 %v5179_v3, %v5032_v27  ;;  %v11632_v46 = vadd.f32 %v5174_v38, %v5028_v45 }
 0x644   : > { %v11634_v28 = vadd.f32 %v5189_v62, %v5040_v43  ;;  %v4681_v44 = vadd.f32 %v4680_v4, %v11521_v39 }
 0x645   : > { %5146 = vmatpush.xpose.msrb.mxu3 %v11396_v15 }
 0x646   : > { %v4682_v22 = vrot.slane %v4681_v44, 2 }
 0x647   : > { %5094 = vmatmul.f32.gmra.mxu1 %v5031_v58 }
 0x648   : > { %v4683_v47 = vadd.f32 %v4682_v22, %v4681_v44  ;;  %v5172_v44 = vld [vmem:[#allocation3 + $0x10] sm:$0xff]  ;;  %v5171_v22 = vld [vmem:[#allocation3 + $0x8] sm:$0xff] }
 0x649   : > { %5147 = vmatpush.xpose.msrb.mxu3 %v11384_v26 }
 0x64a   : > { %v4684_v15 = vrot.slane %v4683_v47, 1 }
 0x64b   : > { %5123 = vmatmul.f32.gmra.mxu2 %v5032_v27  ;;  %5068 = vmatmul.f32.gmra.mxu0 %v5034_v17 }
 0x64c   : > { %v4685_v19 = vadd.f32 %v4684_v15, %v4683_v47 }
 0x64d   : > { %5148 = vmatpush.xpose.msrb.mxu3 %v11393_v7 }
 0x64e   : > { %v4837_v26 = vmul.f32 %v11507_v10, %v4685_v19  ;;  %v4833_v13 = vmul.f32 %v11500_v20, %v4685_v19  ;;  %v4841_v7 = vmul.f32 %v11512_v11, %v4685_v19  ;;  %v4845_v63 = vmul.f32 %v11531_v33, %v4685_v19 }
 0x64f   : > { %5097 = vmatmul.f32.gmra.mxu1 %v5035_v53 }
 0x650   : > { %v4877_v0 = vadd.f32 %v11524_v36, %v4837_v26  ;;  %v4873_v29 = vadd.f32 %v11514_v49, %v4833_v13  ;;  %v4881_v39 = vadd.f32 %v11535_v48, %v4841_v7  ;;  %v4885_v55 = vadd.f32 %v11549_v41, %v4845_v63  ;;  %v5173_v13 = vld [vmem:[#allocation3 + $0x18] sm:$0xff] }
 0x653   : > { %5126 = vmatmul.f32.gmra.mxu2 %v5036_v23  ;;  %5071 = vmatmul.f32.gmra.mxu0 %v5038_v34 }
 0x657   : > { %5100 = vmatmul.f32.gmra.mxu1 %v5039_v50 }
 0x65b   : > { %5129 = vmatmul.f32.gmra.mxu2 %v5040_v43 }
 0x693   : > { %v4794_v18 = vpop.f32.mrf.mxu3 }
 0x694   : > { %v4889_v40 = vsub.f32 %v4873_v29, %v4794_v18  ;;  %v5170_v18 = vld [vmem:[#allocation3] sm:$0xff] }
 0x69b   : > { %v4797_v6 = vpop.f32.mrf.mxu3 }
 0x69c   : > { %v4893_v56 = vsub.f32 %v4877_v0, %v4797_v6 }
 0x69e   : > { %v4929_v16 = vmax.f32 %v4889_v40, %v4893_v56 }
 0x6a3   : > { %v4800_v1 = vpop.f32.mrf.mxu3 }
 0x6a4   : > { %v4897_v31 = vsub.f32 %v4881_v39, %v4800_v1 }
 0x6a6   : > { %v4930_v2 = vmax.f32 %v4929_v16, %v4897_v31 }
 0x6ab   : > { %v4803_v10 = vpop.f32.mrf.mxu3 }
 0x6ac   : > { %v4901_v20 = vsub.f32 %v4885_v55, %v4803_v10 }
 0x6ae   : > { %v4931_v12 = vmax.f32 %v4930_v2, %v4901_v20 }
 0x6b0   : > { %v4932_v11 = vrot.slane %v4931_v12, 4 }
 0x6b2   : > { %v4933_v21 = vmax.f32 %v4931_v12, %v4932_v11  ;;  %v5043_v11 = vld [vmem:[#allocation2 + $0x8] sm:$0xff] }
 0x6b4   : > { %v4934_v54 = vrot.slane %v4933_v21, 2 }
 0x6b6   : > { %v4935_v36 = vmax.f32 %v4933_v21, %v4934_v54 }
 0x6b8   : > { %v4936_v8 = vrot.slane %v4935_v36, 1 }
 0x6ba   : > { %v4937_v49 = vmax.f32 %v4935_v36, %v4936_v8 }
 0x6bc   : > { %v4941_v14 = vsub.f32 %v4889_v40, %v4937_v49  ;;  %v4945_v35 = vsub.f32 %v4893_v56, %v4937_v49  ;;  %v4949_v48 = vsub.f32 %v4897_v31, %v4937_v49  ;;  %v4953_v24 = vsub.f32 %v4901_v20, %v4937_v49  ;;  %v5042_v40 = vld [vmem:[#allocation2] sm:$0xff] }
 0x6be   : > { %v4960_v33 = vmul.f32 1.442695, %v4941_v14  ;;  %v4968_v59 = vmul.f32 1.442695, %v4945_v35  ;;  %v4976_v9 = vmul.f32 1.442695, %v4949_v48 }
 0x6bf   : > { %v4984_v41 = vmul.f32 1.442695, %v4953_v24  ;;  %v5044_v35 = vld [vmem:[#allocation2 + $0x10] sm:$0xff] }
 0x6c0   : > { %8404 = vpow2.f32 %v4960_v33 }
 0x6c1   : > { %8406 = vpow2.f32 %v4968_v59 }
 0x6c2   : > { %8408 = vpow2.f32 %v4976_v9 }
 0x6c3   : > { %8410 = vpow2.f32 %v4984_v41 }
 0x6c6   : > { %v8405_v57 = vpop.eup %8404 }
 0x6c7   : > { %v8407_v37 = vpop.eup %8406 }
 0x6c8   : > { %v5013_v52 = vadd.f32 %v8407_v37, %v8405_v57  ;;  %v8409_v5 = vpop.eup %8408 }
 0x6c9   : > { %v8411_v17 = vpop.eup %8410 }
 0x6ca   : > { %v5014_v51 = vadd.f32 %v8409_v5, %v5013_v52  ;;  %v5045_v52 = vld [vmem:[#allocation2 + $0x18] sm:$0xff] }
 0x6cc   : > { %v5015_v34 = vadd.f32 %v8411_v17, %v5014_v51 }
 0x6ce   : > { %v5016_v60 = vrot.slane %v5015_v34, 4 }
 0x6d0   : > { %v5017_v25 = vadd.f32 %v5016_v60, %v5015_v34 }
 0x6d2   : > { %v5018_v58 = vrot.slane %v5017_v25, 2 }
 0x6d4   : > { %v5019_v53 = vadd.f32 %v5018_v58, %v5017_v25 }
 0x6d6   : > { %v5020_v50 = vrot.slane %v5019_v53, 1 }
 0x6d8   : > { %v5021_v42 = vadd.f32 %v5020_v50, %v5019_v53 }
 0x6da   : > { %8412 = vrcp.f32 %v5021_v42 }
 0x6e0   : > { %v8413_v3 = vpop.eup %8412 }
 0x6e1   : > { %v5029_v38 = vmul.f32 %v8413_v3, %v8405_v57  ;;  %v5037_v62 = vmul.f32 %v8413_v3, %v8409_v5  ;;  %v5033_v30 = vmul.f32 %v8413_v3, %v8407_v37  ;;  %v5041_v45 = vmul.f32 %v8413_v3, %v8411_v17 }
 0x6e3   : > { %5149 = vmatmul.f32.vlgmr.msrb.gmra.mxu3 %v5029_v38  ;;  %v5186_v27 = vadd.f32 %v11628_v61, %v5037_v62  ;;  %v5181_v23 = vadd.f32 %v11630_v32, %v5033_v30  ;;  %v5176_v43 = vadd.f32 %v11632_v46, %v5029_v38  ;;  %v5191_v4 = vadd.f32 %v11634_v28, %v5041_v45  ;;  %v5063_v61 = vpop.f32.mrf.mxu0  ;;  %v5092_v46 = vpop.f32.mrf.mxu1 }
 0x6e4   : > { %v5121_v28 = vpop.f32.mrf.mxu2  ;;  %v5093_v0 = vadd.f32 %v5092_v46, %v5063_v61 }
 0x6e5   : > { %5187 = vadd.xlane.f32.xlu2 %v5186_v27  ;;  %5182 = vadd.xlane.f32.xlu1 %v5181_v23 }
 0x6e6   : > { %5177 = vadd.xlane.f32.xlu0 %v5176_v43  ;;  %v5122_v39 = vadd.f32 %v5121_v28, %v5093_v0 }
 0x6eb   : > { %5152 = vmatmul.f32.gmra.mxu3 %v5033_v30  ;;  %v5066_v29 = vpop.f32.mrf.mxu0  ;;  %v5095_v56 = vpop.f32.mrf.mxu1 }
 0x6ec   : > { %v5124_v63 = vpop.f32.mrf.mxu2  ;;  %v5096_v10 = vadd.f32 %v5095_v56, %v5066_v29 }
 0x6ed   : > { %5192 = vadd.xlane.f32.xlu2 %v5191_v4 }
 0x6ee   : > { %v5125_v20 = vadd.f32 %v5124_v63, %v5096_v10 }
 0x6f3   : > { %5155 = vmatmul.f32.gmra.mxu3 %v5037_v62  ;;  %v5069_v2 = vpop.f32.mrf.mxu0  ;;  %v5098_v12 = vpop.f32.mrf.mxu1 }
 0x6f4   : > { %v5127_v36 = vpop.f32.mrf.mxu2  ;;  %v5099_v49 = vadd.f32 %v5098_v12, %v5069_v2 }
 0x6f6   : > { %v5128_v14 = vadd.f32 %v5127_v36, %v5099_v49 }
 0x6fb   : > { %5158 = vmatmul.f32.gmra.mxu3 %v5041_v45  ;;  %v5072_v33 = vpop.f32.mrf.mxu0  ;;  %v5101_v59 = vpop.f32.mrf.mxu1 }
 0x6fc   : > { %v5130_v41 = vpop.f32.mrf.mxu2  ;;  %v5102_v57 = vadd.f32 %v5101_v59, %v5072_v33 }
 0x6fe   : > { %v5131_v37 = vadd.f32 %v5130_v41, %v5102_v57 }
 0x758   : > { %v5188_v47 = vpop.xlane.xlu2 %5187  ;;  %v5183_v15 = vpop.xlane.xlu1 %5182 }
 0x759   : > { %v5196_v6 = vadd.f32 %v5188_v47, %v5172_v44  ;;  %v5195_v32 = vadd.f32 %v5183_v15, %v5171_v22  ;;  %v5178_v19 = vpop.xlane.xlu0 %5177 }
 0x75a   : > { %v5194_v26 = vadd.f32 %v5178_v19, %v5170_v18 }
 0x75b   : > { %5201 = vst.msk [vmem:[#allocation3 + $0x10] sm:$0xff] %vm5198_vm1, %v5196_v6 }
 0x75c   : > { %5200 = vst.msk [vmem:[#allocation3 + $0x8] sm:$0xff] %vm5198_vm1, %v5195_v32 }
 0x75d   : > { %5199 = vst.msk [vmem:[#allocation3] sm:$0xff] %vm5198_vm1, %v5194_v26 }
 0x760   : > { %v5193_v7 = vpop.xlane.xlu2 %5192 }
 0x761   : > { %v5197_v1 = vadd.f32 %v5193_v7, %v5173_v13 }
 0x763   : > { %5202 = vst.msk [vmem:[#allocation3 + $0x18] sm:$0xff] %vm5198_vm1, %v5197_v1 }
 0x766   : > { %v5150_v31 = vpop.f32.mrf.mxu3 }
 0x767   : > { %v5151_v16 = vadd.f32 %v5150_v31, %v5122_v39 }
 0x769   : > { %v5162_v55 = vadd.f32 %v5151_v16, %v5042_v40 }
 0x76b   : > { %5166 = vst [vmem:[#allocation2] sm:$0xff] %v5162_v55 }
 0x76e   : > { %v5153_v21 = vpop.f32.mrf.mxu3 }
 0x76f   : > { %v5154_v54 = vadd.f32 %v5153_v21, %v5125_v20 }
 0x771   : > { %v5163_v8 = vadd.f32 %v5154_v54, %v5043_v11 }
 0x773   : > { %5167 = vst [vmem:[#allocation2 + $0x8] sm:$0xff] %v5163_v8 }
 0x776   : > { %v5156_v48 = vpop.f32.mrf.mxu3 }
 0x777   : > { %v5157_v24 = vadd.f32 %v5156_v48, %v5128_v14 }
 0x779   : > { %v5164_v9 = vadd.f32 %v5157_v24, %v5044_v35 }
 0x77b   : > { %5168 = vst [vmem:[#allocation2 + $0x10] sm:$0xff] %v5164_v9 }
 0x77e   : > { %v5159_v5 = vpop.f32.mrf.mxu3 }
 0x77f   : > { %v5160_v51 = vadd.f32 %v5159_v5, %v5131_v37  ;;  %5206 = sbr.rel (%p7958_p4) target bundleno = 2430 (0x97e), region = 87 }
 0x781   : > { %v5165_v17 = vadd.f32 %v5160_v51, %v5045_v52 }
 0x783   : > { %5169 = vst [vmem:[#allocation2 + $0x18] sm:$0xff] %v5165_v17 }
 0x784   : > { %v5211_v34 = vld [vmem:[#allocation3] sm:$0xff]  ;;  %v5213_v60 = vld [vmem:[#allocation3 + $0x10] sm:$0xff]  ;;  %v8532_v25 = vmov 0   ;;  %v5370_v58 = vld [vmem:[%s13376_s7 + $0x78] sm:$0xff] }
 0x785   : > { %8414 = vset.pattern.permute.xlu0 %v8532_v25  ;;  %8415 = vset.pattern.permute.xlu1 %v8532_v25  ;;  %v5386_v53 = vld [vmem:[%s13376_s7 + $0xf8] sm:$0xff]  ;;  %v5369_v3 = vld [vmem:[%s13376_s7 + $0x70] sm:$0xff]  ;;  %v5368_v45 = vld [vmem:[%s13376_s7 + $0x68] sm:$0xff] }
 0x786   : > { %5221 = vperm.xlu0 %8414, %v5211_v34   ;;  %5231 = vperm.xlu1 %8415, %v5213_v60   ;;  %v5402_v50 = vld [vmem:[%s13376_s7 + $0x178] sm:$0xff]  ;;  %v5385_v38 = vld [vmem:[%s13376_s7 + $0xf0] sm:$0xff]  ;;  %v5384_v27 = vld [vmem:[%s13376_s7 + $0xe8] sm:$0xff] }
 0x787   : > { %v5418_v42 = vld [vmem:[%s13376_s7 + $0x1f8] sm:$0xff]  ;;  %5935 = vmatpush.msra.mxu0 %v5370_v58  ;;  %5955 = vmatpush.msra.mxu1 %v5386_v53  ;;  %v5401_v62 = vld [vmem:[%s13376_s7 + $0x170] sm:$0xff]  ;;  %v5400_v23 = vld [vmem:[%s13376_s7 + $0x168] sm:$0xff] }
 0x788   : > { %v5417_v30 = vld [vmem:[%s13376_s7 + $0x1f0] sm:$0xff]  ;;  %5975 = vmatpush.msra.mxu2 %v5402_v50  ;;  %5995 = vmatpush.msra.mxu3 %v5418_v42  ;;  %v5416_v43 = vld [vmem:[%s13376_s7 + $0x1e8] sm:$0xff]  ;;  %v5367_v4 = vld [vmem:[%s13376_s7 + $0x60] sm:$0xff] }
 0x789   : > { %5936 = vmatpush.msra.mxu0 %v5369_v3  ;;  %5956 = vmatpush.msra.mxu1 %v5385_v38  ;;  %v5383_v44 = vld [vmem:[%s13376_s7 + $0xe0] sm:$0xff]  ;;  %v5212_v22 = vld [vmem:[#allocation3 + $0x8] sm:$0xff]  ;;  %v5214_v18 = vld [vmem:[#allocation3 + $0x18] sm:$0xff] }
 0x78a   : > { %5976 = vmatpush.msra.mxu2 %v5401_v62  ;;  %5996 = vmatpush.msra.mxu3 %v5417_v30  ;;  %v5399_v47 = vld [vmem:[%s13376_s7 + $0x160] sm:$0xff]  ;;  %v5366_v61 = vld [vmem:[%s13376_s7 + $0x58] sm:$0xff]  ;;  %v5365_v46 = vld [vmem:[%s13376_s7 + $0x50] sm:$0xff] }
 0x78b   : > { %5937 = vmatpush.msra.mxu0 %v5368_v45  ;;  %5957 = vmatpush.msra.mxu1 %v5384_v27  ;;  %v5415_v15 = vld [vmem:[%s13376_s7 + $0x1e0] sm:$0xff]  ;;  %v5382_v6 = vld [vmem:[%s13376_s7 + $0xd8] sm:$0xff]  ;;  %v5381_v26 = vld [vmem:[%s13376_s7 + $0xd0] sm:$0xff] }
 0x78c   : > { %5977 = vmatpush.msra.mxu2 %v5400_v23  ;;  %5997 = vmatpush.msra.mxu3 %v5416_v43  ;;  %v5398_v32 = vld [vmem:[%s13376_s7 + $0x158] sm:$0xff]  ;;  %v5397_v28 = vld [vmem:[%s13376_s7 + $0x150] sm:$0xff]  ;;  %v5364_v7 = vld [vmem:[%s13376_s7 + $0x48] sm:$0xff] }
 0x78d   : > { %5938 = vmatpush.msra.mxu0 %v5367_v4  ;;  %5958 = vmatpush.msra.mxu1 %v5383_v44  ;;  %v5414_v19 = vld [vmem:[%s13376_s7 + $0x1d8] sm:$0xff]  ;;  %v5413_v13 = vld [vmem:[%s13376_s7 + $0x1d0] sm:$0xff]  ;;  %v5380_v1 = vld [vmem:[%s13376_s7 + $0xc8] sm:$0xff] }
 0x78e   : > { %5226 = vperm.xlu0 %8414, %v5212_v22   ;;  %5236 = vperm.xlu1 %8415, %v5214_v18   ;;  %v5396_v0 = vld [vmem:[%s13376_s7 + $0x148] sm:$0xff]  ;;  %v5363_v56 = vld [vmem:[%s13376_s7 + $0x40] sm:$0xff]  ;;  %v5362_v31 = vld [vmem:[%s13376_s7 + $0x38] sm:$0xff] }
 0x78f   : > { %5978 = vmatpush.msra.mxu2 %v5399_v47  ;;  %5998 = vmatpush.msra.mxu3 %v5415_v15  ;;  %v5412_v29 = vld [vmem:[%s13376_s7 + $0x1c8] sm:$0xff]  ;;  %v5379_v39 = vld [vmem:[%s13376_s7 + $0xc0] sm:$0xff]  ;;  %v5378_v16 = vld [vmem:[%s13376_s7 + $0xb8] sm:$0xff] }
 0x790   : > { %5939 = vmatpush.msra.mxu0 %v5366_v61  ;;  %5959 = vmatpush.msra.mxu1 %v5382_v6  ;;  %v5395_v63 = vld [vmem:[%s13376_s7 + $0x140] sm:$0xff]  ;;  %v5394_v55 = vld [vmem:[%s13376_s7 + $0x138] sm:$0xff]  ;;  %v5361_v2 = vld [vmem:[%s13376_s7 + $0x30] sm:$0xff] }
 0x791   : > { %5979 = vmatpush.msra.mxu2 %v5398_v32  ;;  %5999 = vmatpush.msra.mxu3 %v5414_v19  ;;  %v5411_v40 = vld [vmem:[%s13376_s7 + $0x1c0] sm:$0xff]  ;;  %v5410_v10 = vld [vmem:[%s13376_s7 + $0x1b8] sm:$0xff]  ;;  %v5377_v20 = vld [vmem:[%s13376_s7 + $0xb0] sm:$0xff] }
 0x792   : > { %5940 = vmatpush.msra.mxu0 %v5365_v46  ;;  %5960 = vmatpush.msra.mxu1 %v5381_v26  ;;  %v5393_v12 = vld [vmem:[%s13376_s7 + $0x130] sm:$0xff]  ;;  %v5360_v21 = vld [vmem:[%s13376_s7 + $0x28] sm:$0xff]  ;;  %v5359_v49 = vld [vmem:[%s13376_s7 + $0x20] sm:$0xff] }
 0x793   : > { %5980 = vmatpush.msra.mxu2 %v5397_v28  ;;  %6000 = vmatpush.msra.mxu3 %v5413_v13  ;;  %v5409_v11 = vld [vmem:[%s13376_s7 + $0x1b0] sm:$0xff]  ;;  %v5376_v54 = vld [vmem:[%s13376_s7 + $0xa8] sm:$0xff]  ;;  %v5375_v14 = vld [vmem:[%s13376_s7 + $0xa0] sm:$0xff] }
 0x794   : > { %5941 = vmatpush.msra.mxu0 %v5364_v7  ;;  %5961 = vmatpush.msra.mxu1 %v5380_v1  ;;  %v5392_v36 = vld [vmem:[%s13376_s7 + $0x128] sm:$0xff]  ;;  %v5391_v35 = vld [vmem:[%s13376_s7 + $0x120] sm:$0xff]  ;;  %v5358_v24 = vld [vmem:[%s13376_s7 + $0x18] sm:$0xff] }
 0x795   : > { %5981 = vmatpush.msra.mxu2 %v5396_v0  ;;  %6001 = vmatpush.msra.mxu3 %v5412_v29  ;;  %v5408_v8 = vld [vmem:[%s13376_s7 + $0x1a8] sm:$0xff]  ;;  %v5407_v48 = vld [vmem:[%s13376_s7 + $0x1a0] sm:$0xff]  ;;  %v5374_v33 = vld [vmem:[%s13376_s7 + $0x98] sm:$0xff] }
 0x796   : > { %5942 = vmatpush.msra.mxu0 %v5363_v56  ;;  %5962 = vmatpush.msra.mxu1 %v5379_v39  ;;  %v5390_v59 = vld [vmem:[%s13376_s7 + $0x118] sm:$0xff]  ;;  %v5357_v41 = vld [vmem:[%s13376_s7 + $0x10] sm:$0xff]  ;;  %v5356_v5 = vld [vmem:[%s13376_s7 + $0x8] sm:$0xff] }
 0x797   : > { %5982 = vmatpush.msra.mxu2 %v5395_v63  ;;  %6002 = vmatpush.msra.mxu3 %v5411_v40  ;;  %v5406_v9 = vld [vmem:[%s13376_s7 + $0x198] sm:$0xff]  ;;  %v5373_v57 = vld [vmem:[%s13376_s7 + $0x90] sm:$0xff]  ;;  %v5372_v51 = vld [vmem:[%s13376_s7 + $0x88] sm:$0xff] }
 0x798   : > { %5943 = vmatpush.msra.mxu0 %v5362_v31  ;;  %5963 = vmatpush.msra.mxu1 %v5378_v16  ;;  %v5389_v37 = vld [vmem:[%s13376_s7 + $0x110] sm:$0xff]  ;;  %v5388_v17 = vld [vmem:[%s13376_s7 + $0x108] sm:$0xff]  ;;  %v5355_v60 = vld [vmem:[%s13376_s7] sm:$0xff] }
 0x799   : > { %5983 = vmatpush.msra.mxu2 %v5394_v55  ;;  %6003 = vmatpush.msra.mxu3 %v5410_v10  ;;  %v5405_v52 = vld [vmem:[%s13376_s7 + $0x190] sm:$0xff]  ;;  %v5404_v34 = vld [vmem:[%s13376_s7 + $0x188] sm:$0xff]  ;;  %v5371_v25 = vld [vmem:[%s13376_s7 + $0x80] sm:$0xff] }
 0x79a   : > { %5944 = vmatpush.msra.mxu0 %v5361_v2  ;;  %5964 = vmatpush.msra.mxu1 %v5377_v20  ;;  %v5387_v58 = vld [vmem:[%s13376_s7 + $0x100] sm:$0xff]  ;;  %v5434_v50 = vld [vmem:[%s13376_s7 + $0x278] sm:$0xff]  ;;  %v5433_v62 = vld [vmem:[%s13376_s7 + $0x270] sm:$0xff] }
 0x79b   : > { %5984 = vmatpush.msra.mxu2 %v5393_v12  ;;  %6004 = vmatpush.msra.mxu3 %v5409_v11  ;;  %v5403_v53 = vld [vmem:[%s13376_s7 + $0x180] sm:$0xff]  ;;  %v5450_v42 = vld [vmem:[%s13376_s7 + $0x2f8] sm:$0xff]  ;;  %v5449_v30 = vld [vmem:[%s13376_s7 + $0x2f0] sm:$0xff] }
 0x79c   : > { %5945 = vmatpush.msra.mxu0 %v5360_v21  ;;  %5965 = vmatpush.msra.mxu1 %v5376_v54  ;;  %v5466_v3 = vld [vmem:[%s13376_s7 + $0x378] sm:$0xff]  ;;  %v5465_v45 = vld [vmem:[%s13376_s7 + $0x370] sm:$0xff]  ;;  %v5432_v23 = vld [vmem:[%s13376_s7 + $0x268] sm:$0xff] }
 0x79d   : > { %5985 = vmatpush.msra.mxu2 %v5392_v36  ;;  %6005 = vmatpush.msra.mxu3 %v5408_v8  ;;  %v5482_v38 = vld [vmem:[%s13376_s7 + $0x3f8] sm:$0xff]  ;;  %v5481_v27 = vld [vmem:[%s13376_s7 + $0x3f0] sm:$0xff]  ;;  %v5448_v43 = vld [vmem:[%s13376_s7 + $0x2e8] sm:$0xff] }
 0x79e   : > { %5946 = vmatpush.msra.mxu0 %v5359_v49  ;;  %5966 = vmatpush.msra.mxu1 %v5375_v14  ;;  %v5464_v4 = vld [vmem:[%s13376_s7 + $0x368] sm:$0xff]  ;;  %v5431_v22 = vld [vmem:[%s13376_s7 + $0x260] sm:$0xff]  ;;  %v5430_v61 = vld [vmem:[%s13376_s7 + $0x258] sm:$0xff] }
 0x79f   : > { %5986 = vmatpush.msra.mxu2 %v5391_v35  ;;  %6006 = vmatpush.msra.mxu3 %v5407_v48  ;;  %v5480_v44 = vld [vmem:[%s13376_s7 + $0x3e8] sm:$0xff]  ;;  %v5447_v18 = vld [vmem:[%s13376_s7 + $0x2e0] sm:$0xff]  ;;  %v5446_v6 = vld [vmem:[%s13376_s7 + $0x2d8] sm:$0xff] }
 0x7a0   : > { %5947 = vmatpush.msra.mxu0 %v5358_v24  ;;  %5967 = vmatpush.msra.mxu1 %v5374_v33  ;;  %v5463_v47 = vld [vmem:[%s13376_s7 + $0x360] sm:$0xff]  ;;  %v5462_v32 = vld [vmem:[%s13376_s7 + $0x358] sm:$0xff]  ;;  %v5429_v46 = vld [vmem:[%s13376_s7 + $0x250] sm:$0xff] }
 0x7a1   : > { %5987 = vmatpush.msra.mxu2 %v5390_v59  ;;  %6007 = vmatpush.msra.mxu3 %v5406_v9  ;;  %v5479_v15 = vld [vmem:[%s13376_s7 + $0x3e0] sm:$0xff]  ;;  %v5478_v19 = vld [vmem:[%s13376_s7 + $0x3d8] sm:$0xff]  ;;  %v5445_v26 = vld [vmem:[%s13376_s7 + $0x2d0] sm:$0xff] }
 0x7a2   : > { %5948 = vmatpush.msra.mxu0 %v5357_v41  ;;  %5968 = vmatpush.msra.mxu1 %v5373_v57  ;;  %v5461_v28 = vld [vmem:[%s13376_s7 + $0x350] sm:$0xff]  ;;  %v5428_v7 = vld [vmem:[%s13376_s7 + $0x248] sm:$0xff]  ;;  %v5427_v56 = vld [vmem:[%s13376_s7 + $0x240] sm:$0xff] }
 0x7a3   : > { %5988 = vmatpush.msra.mxu2 %v5389_v37  ;;  %6008 = vmatpush.msra.mxu3 %v5405_v52  ;;  %v5477_v13 = vld [vmem:[%s13376_s7 + $0x3d0] sm:$0xff]  ;;  %v5444_v1 = vld [vmem:[%s13376_s7 + $0x2c8] sm:$0xff]  ;;  %v5443_v39 = vld [vmem:[%s13376_s7 + $0x2c0] sm:$0xff] }
 0x7a4   : > { %5949 = vmatpush.msra.mxu0 %v5356_v5  ;;  %5969 = vmatpush.msra.mxu1 %v5372_v51  ;;  %v5460_v0 = vld [vmem:[%s13376_s7 + $0x348] sm:$0xff]  ;;  %v5459_v63 = vld [vmem:[%s13376_s7 + $0x340] sm:$0xff]  ;;  %v5426_v31 = vld [vmem:[%s13376_s7 + $0x238] sm:$0xff] }
 0x7a5   : > { %5989 = vmatpush.msra.mxu2 %v5388_v17  ;;  %6009 = vmatpush.msra.mxu3 %v5404_v34  ;;  %v5476_v29 = vld [vmem:[%s13376_s7 + $0x3c8] sm:$0xff]  ;;  %v5475_v40 = vld [vmem:[%s13376_s7 + $0x3c0] sm:$0xff]  ;;  %v5442_v16 = vld [vmem:[%s13376_s7 + $0x2b8] sm:$0xff] }
 0x7a6   : > { %5950 = vmatpush.msra.mxu0 %v5355_v60  ;;  %5970 = vmatpush.msra.mxu1 %v5371_v25  ;;  %v5458_v55 = vld [vmem:[%s13376_s7 + $0x338] sm:$0xff]  ;;  %v5215_v2 = vld [vmem:[%s13373_s4] sm:$0xff]  ;;  %v5217_v20 = vld [vmem:[%s13373_s4 + $0x10] sm:$0xff] }
 0x7a7   : > { %5990 = vmatpush.msra.mxu2 %v5387_v58  ;;  %6010 = vmatpush.msra.mxu3 %v5403_v53  ;;  %v5474_v10 = vld [vmem:[%s13376_s7 + $0x3b8] sm:$0xff]  ;;  %v5209_v12 = vld [vmem:[#allocation2 + $0x10] sm:$0xff]  ;;  %v5207_v11 = vld [vmem:[#allocation2] sm:$0xff] }
 0x7a8   : > { %6015 = vmatpush.msrb.mxu0 %v5434_v50  ;;  %6035 = vmatpush.msrb.mxu1 %v5450_v42  ;;  %v5425_v36 = vld [vmem:[%s13376_s7 + $0x230] sm:$0xff]  ;;  %v5424_v24 = vld [vmem:[%s13376_s7 + $0x228] sm:$0xff]  ;;  %v5423_v37 = vld [vmem:[%s13376_s7 + $0x220] sm:$0xff]  ;;  %v5284_v42 = vlaneseq }
 0x7a9   : > { %6055 = vmatpush.msrb.mxu2 %v5466_v3  ;;  %6075 = vmatpush.msrb.mxu3 %v5482_v38  ;;  %v5441_v8 = vld [vmem:[%s13376_s7 + $0x2b0] sm:$0xff]  ;;  %v5440_v33 = vld [vmem:[%s13376_s7 + $0x2a8] sm:$0xff]  ;;  %v5439_v52 = vld [vmem:[%s13376_s7 + $0x2a0] sm:$0xff] }
 0x7aa   : > { %6016 = vmatpush.msrb.mxu0 %v5433_v62  ;;  %6036 = vmatpush.msrb.mxu1 %v5449_v30  ;;  %v5457_v49 = vld [vmem:[%s13376_s7 + $0x330] sm:$0xff]  ;;  %v5456_v59 = vld [vmem:[%s13376_s7 + $0x328] sm:$0xff]  ;;  %v5455_v5 = vld [vmem:[%s13376_s7 + $0x320] sm:$0xff]  ;;  %vm12039_vm2 = vcmp.lt.s32.totalorder %v5284_v42, 128 }
 0x7ab   : > { %6056 = vmatpush.msrb.mxu2 %v5465_v45  ;;  %6076 = vmatpush.msrb.mxu3 %v5481_v27  ;;  %v5473_v48 = vld [vmem:[%s13376_s7 + $0x3b0] sm:$0xff]  ;;  %v5472_v57 = vld [vmem:[%s13376_s7 + $0x3a8] sm:$0xff]  ;;  %v5218_v34 = vld [vmem:[%s13373_s4 + $0x18] sm:$0xff] }
 0x7ac   : > { %6017 = vmatpush.msrb.mxu0 %v5432_v23  ;;  %6037 = vmatpush.msrb.mxu1 %v5448_v43  ;;  %v5216_v17 = vld [vmem:[%s13373_s4 + $0x8] sm:$0xff]  ;;  %v5471_v60 = vld [vmem:[%s13376_s7 + $0x3a0] sm:$0xff]  ;;  %v5422_v25 = vld [vmem:[%s13376_s7 + $0x218] sm:$0xff] }
 0x7ad   : > { %6057 = vmatpush.msrb.mxu2 %v5464_v4  ;;  %6077 = vmatpush.msrb.mxu3 %v5480_v44  ;;  %v5438_v58 = vld [vmem:[%s13376_s7 + $0x298] sm:$0xff]  ;;  %v5208_v3 = vld [vmem:[#allocation2 + $0x8] sm:$0xff]  ;;  %v5421_v27 = vld [vmem:[%s13376_s7 + $0x210] sm:$0xff] }
 0x7ae   : > { %6018 = vmatpush.msrb.mxu0 %v5431_v22  ;;  %6038 = vmatpush.msrb.mxu1 %v5447_v18  ;;  %v5454_v53 = vld [vmem:[%s13376_s7 + $0x318] sm:$0xff]  ;;  %v5437_v23 = vld [vmem:[%s13376_s7 + $0x290] sm:$0xff]  ;;  %v5420_v18 = vld [vmem:[%s13376_s7 + $0x208] sm:$0xff] }
 0x7af   : > { %6058 = vmatpush.msrb.mxu2 %v5463_v47  ;;  %6078 = vmatpush.msrb.mxu3 %v5479_v15  ;;  %v5210_v38 = vld [vmem:[#allocation2 + $0x18] sm:$0xff]  ;;  %v5453_v43 = vld [vmem:[%s13376_s7 + $0x310] sm:$0xff]  ;;  %v5436_v47 = vld [vmem:[%s13376_s7 + $0x288] sm:$0xff] }
 0x7b0   : > { %6019 = vmatpush.msrb.mxu0 %v5430_v61  ;;  %6039 = vmatpush.msrb.mxu1 %v5446_v6  ;;  %v5470_v62 = vld [vmem:[%s13376_s7 + $0x398] sm:$0xff]  ;;  %v5469_v22 = vld [vmem:[%s13376_s7 + $0x390] sm:$0xff]  ;;  %v5452_v15 = vld [vmem:[%s13376_s7 + $0x308] sm:$0xff] }
 0x7b1   : > { %6059 = vmatpush.msrb.mxu2 %v5462_v32  ;;  %6079 = vmatpush.msrb.mxu3 %v5478_v19  ;;  %v5468_v19 = vld [vmem:[%s13376_s7 + $0x388] sm:$0xff]  ;;  %v5513_v42 = vld [vmem:[%s13376_s7 + $0x4f0] sm:$0xff]  ;;  %v5510_v61 = vld [vmem:[%s13376_s7 + $0x4d8] sm:$0xff] }
 0x7b2   : > { %6020 = vmatpush.msrb.mxu0 %v5429_v46  ;;  %6040 = vmatpush.msrb.mxu1 %v5445_v26 }
 0x7b3   : > { %6060 = vmatpush.msrb.mxu2 %v5461_v28  ;;  %6080 = vmatpush.msrb.mxu3 %v5477_v13 }
 0x7b4   : > { %6021 = vmatpush.msrb.mxu0 %v5428_v7  ;;  %6041 = vmatpush.msrb.mxu1 %v5444_v1 }
 0x7b5   : > { %6061 = vmatpush.msrb.mxu2 %v5460_v0  ;;  %6081 = vmatpush.msrb.mxu3 %v5476_v29 }
 0x7b6   : > { %6022 = vmatpush.msrb.mxu0 %v5427_v56  ;;  %6042 = vmatpush.msrb.mxu1 %v5443_v39 }
 0x7b7   : > { %6062 = vmatpush.msrb.mxu2 %v5459_v63  ;;  %6082 = vmatpush.msrb.mxu3 %v5475_v40 }
 0x7b8   : > { %6023 = vmatpush.msrb.mxu0 %v5426_v31  ;;  %6043 = vmatpush.msrb.mxu1 %v5442_v16  ;;  %v5419_v31 = vld [vmem:[%s13376_s7 + $0x200] sm:$0xff] }
 0x7b9   : > { %6063 = vmatpush.msrb.mxu2 %v5458_v55  ;;  %6083 = vmatpush.msrb.mxu3 %v5474_v10  ;;  %v5435_v16 = vld [vmem:[%s13376_s7 + $0x280] sm:$0xff] }
 0x7ba   : > { %6024 = vmatpush.msrb.mxu0 %v5425_v36  ;;  %6044 = vmatpush.msrb.mxu1 %v5441_v8  ;;  %v5451_v10 = vld [vmem:[%s13376_s7 + $0x300] sm:$0xff] }
 0x7bb   : > { %6064 = vmatpush.msrb.mxu2 %v5457_v49  ;;  %6084 = vmatpush.msrb.mxu3 %v5473_v48 }
 0x7bc   : > { %6025 = vmatpush.msrb.mxu0 %v5424_v24  ;;  %6045 = vmatpush.msrb.mxu1 %v5440_v33 }
 0x7bd   : > { %6065 = vmatpush.msrb.mxu2 %v5456_v59  ;;  %6085 = vmatpush.msrb.mxu3 %v5472_v57  ;;  %v5514_v57 = vld [vmem:[%s13376_s7 + $0x4f8] sm:$0xff] }
 0x7be   : > { %6026 = vmatpush.msrb.mxu0 %v5423_v37  ;;  %6046 = vmatpush.msrb.mxu1 %v5439_v52 }
 0x7bf   : > { %6066 = vmatpush.msrb.mxu2 %v5455_v5  ;;  %6086 = vmatpush.msrb.mxu3 %v5471_v60 }
 0x7c0   : > { %6027 = vmatpush.msrb.mxu0 %v5422_v25  ;;  %6047 = vmatpush.msrb.mxu1 %v5438_v58  ;;  %v5530_v25 = vld [vmem:[%s13376_s7 + $0x578] sm:$0xff] }
 0x7c1   : > { %6067 = vmatpush.msrb.mxu2 %v5454_v53  ;;  %6087 = vmatpush.msrb.mxu3 %v5470_v62  ;;  %v5546_v58 = vld [vmem:[%s13376_s7 + $0x5f8] sm:$0xff]  ;;  %v5545_v62 = vld [vmem:[%s13376_s7 + $0x5f0] sm:$0xff] }
 0x7c2   : > { %6028 = vmatpush.msrb.mxu0 %v5421_v27  ;;  %6048 = vmatpush.msrb.mxu1 %v5437_v23  ;;  %v5512_v27 = vld [vmem:[%s13376_s7 + $0x4e8] sm:$0xff] }
 0x7c3   : > { %6068 = vmatpush.msrb.mxu2 %v5453_v43  ;;  %6088 = vmatpush.msrb.mxu3 %v5469_v22  ;;  %v5528_v43 = vld [vmem:[%s13376_s7 + $0x568] sm:$0xff]  ;;  %v5511_v22 = vld [vmem:[%s13376_s7 + $0x4e0] sm:$0xff] }
 0x7c4   : > { %6029 = vmatpush.msrb.mxu0 %v5420_v18  ;;  %6049 = vmatpush.msrb.mxu1 %v5436_v47  ;;  %v5527_v18 = vld [vmem:[%s13376_s7 + $0x560] sm:$0xff] }
 0x7c5   : > { %6069 = vmatpush.msrb.mxu2 %v5452_v15  ;;  %6089 = vmatpush.msrb.mxu3 %v5468_v19  ;;  %v5543_v47 = vld [vmem:[%s13376_s7 + $0x5e0] sm:$0xff] }
 0x7c6   : > { %6030 = vmatpush.msrb.mxu0 %v5419_v31  ;;  %6050 = vmatpush.msrb.mxu1 %v5435_v16  ;;  %v5507_v31 = vld [vmem:[%s13376_s7 + $0x4c0] sm:$0xff] }
 0x7c7   : > { %6070 = vmatpush.msrb.mxu2 %v5451_v10  ;;  %v5523_v16 = vld [vmem:[%s13376_s7 + $0x540] sm:$0xff]  ;;  %v5490_v10 = vld [vmem:[%s13376_s7 + $0x438] sm:$0xff] }
 0x7f8   : > { %v5222_v21 = vpop.permute.xlu0 %5221  ;;  %v5232_v54 = vpop.permute.xlu1 %5231 }
 0x7f9   : > { %v5239_v14 = vmul.f32 %v5222_v21, %v5215_v2  ;;  %v5241_v35 = vmul.f32 %v5232_v54, %v5217_v20  ;;  %v5467_v2 = vld [vmem:[%s13376_s7 + $0x380] sm:$0xff] }
 0x7fa   : > { %6090 = vmatpush.msrb.mxu3 %v5467_v2  ;;  %v5506_v2 = vld [vmem:[%s13376_s7 + $0x4b8] sm:$0xff] }
 0x7fb   : > { %v5245_v9 = vsub.f32 %v5209_v12, %v5241_v35  ;;  %v5243_v41 = vsub.f32 %v5207_v11, %v5239_v14 }
 0x7fd   : > { %5281 = vst [vmem:[#allocation2 + $0x10] sm:$0xff] %v5245_v9  ;;  %v5247_v51 = vmul.f32 %v5243_v41, %v5243_v41  ;;  %v5249_v50 = vmul.f32 %v5245_v9, %v5245_v9 }
 0x7fe   : > { %5279 = vst [vmem:[#allocation2] sm:$0xff] %v5243_v41  ;;  %v5498_v41 = vld [vmem:[%s13376_s7 + $0x478] sm:$0xff] }
 0x7ff   : > { %5251 = vadd.xlane.f32.xlu2 %v5247_v51  ;;  %5255 = vadd.xlane.f32.xlu0 %v5249_v50  ;;  %v5497_v50 = vld [vmem:[%s13376_s7 + $0x470] sm:$0xff] }
 0x800   : > { %v5227_v30 = vpop.permute.xlu0 %5226  ;;  %v5237_v45 = vpop.permute.xlu1 %5236 }
 0x801   : > { %v5240_v4 = vmul.f32 %v5227_v30, %v5216_v17  ;;  %v5242_v44 = vmul.f32 %v5237_v45, %v5218_v34  ;;  %v5496_v45 = vld [vmem:[%s13376_s7 + $0x468] sm:$0xff] }
 0x803   : > { %v5244_v6 = vsub.f32 %v5208_v3, %v5240_v4  ;;  %v5246_v32 = vsub.f32 %v5210_v38, %v5242_v44  ;;  %v5529_v38 = vld [vmem:[%s13376_s7 + $0x570] sm:$0xff]  ;;  %v5544_v4 = vld [vmem:[%s13376_s7 + $0x5e8] sm:$0xff]  ;;  %v5495_v44 = vld [vmem:[%s13376_s7 + $0x460] sm:$0xff] }
 0x804   : > { %v5319_v46 = vld [vmem:[#allocation2 + $0x10] sm:$0x1]  ;;  %v5321_v26 = vld [vmem:[#allocation2 + $0x11] sm:$0x1]  ;;  %v5323_v28 = vld [vmem:[#allocation2 + $0x12] sm:$0x1] }
 0x805   : > { %5320 = vst.msk [vmem:[#allocation4 + $0x10] sm:$0x1] %vm12039_vm2, %v5319_v46  ;;  %v5325_v13 = vld [vmem:[#allocation2 + $0x13] sm:$0x1]  ;;  %v5248_v7 = vmul.f32 %v5244_v6, %v5244_v6  ;;  %v5250_v1 = vmul.f32 %v5246_v32, %v5246_v32  ;;  %v5327_v0 = vld [vmem:[#allocation2 + $0x14] sm:$0x1] }
 0x806   : > { %5322 = vst.msk [vmem:[#allocation4 + $0x11] sm:$0x1] %vm12039_vm2, %v5321_v26  ;;  %v5329_v29 = vld [vmem:[#allocation2 + $0x15] sm:$0x1]  ;;  %v5331_v56 = vld [vmem:[#allocation2 + $0x16] sm:$0x1] }
 0x807   : > { %5324 = vst.msk [vmem:[#allocation4 + $0x12] sm:$0x1] %vm12039_vm2, %v5323_v28  ;;  %5253 = vadd.xlane.f32.xlu2 %v5248_v7  ;;  %5257 = vadd.xlane.f32.xlu1 %v5250_v1  ;;  %v5333_v39 = vld [vmem:[#allocation2 + $0x17] sm:$0x1]  ;;  %v5283_v63 = vld [vmem:[#allocation2] sm:$0x1] }
 0x808   : > { %5326 = vst.msk [vmem:[#allocation4 + $0x13] sm:$0x1] %vm12039_vm2, %v5325_v13  ;;  %v5289_v40 = vld [vmem:[#allocation2 + $0x1] sm:$0x1]  ;;  %v5291_v55 = vld [vmem:[#allocation2 + $0x2] sm:$0x1] }
 0x809   : > { %5328 = vst.msk [vmem:[#allocation4 + $0x14] sm:$0x1] %vm12039_vm2, %v5327_v0  ;;  %v5293_v20 = vld [vmem:[#allocation2 + $0x3] sm:$0x1]  ;;  %v5295_v12 = vld [vmem:[#allocation2 + $0x4] sm:$0x1] }
 0x80a   : > { %5330 = vst.msk [vmem:[#allocation4 + $0x15] sm:$0x1] %vm12039_vm2, %v5329_v29  ;;  %v5297_v11 = vld [vmem:[#allocation2 + $0x5] sm:$0x1]  ;;  %v5299_v21 = vld [vmem:[#allocation2 + $0x6] sm:$0x1] }
 0x80b   : > { %5332 = vst.msk [vmem:[#allocation4 + $0x16] sm:$0x1] %vm12039_vm2, %v5331_v56  ;;  %v5301_v54 = vld [vmem:[#allocation2 + $0x7] sm:$0x1]  ;;  %v5494_v46 = vld [vmem:[%s13376_s7 + $0x458] sm:$0xff]  ;;  %v5493_v13 = vld [vmem:[%s13376_s7 + $0x450] sm:$0xff] }
 0x80c   : > { %5334 = vst.msk [vmem:[#allocation4 + $0x17] sm:$0x1] %vm12039_vm2, %v5333_v39  ;;  %v5526_v26 = vld [vmem:[%s13376_s7 + $0x558] sm:$0xff]  ;;  %v5509_v7 = vld [vmem:[%s13376_s7 + $0x4d0] sm:$0xff]  ;;  %v5492_v29 = vld [vmem:[%s13376_s7 + $0x448] sm:$0xff] }
 0x80d   : > { %5288 = vst.msk [vmem:[#allocation4] sm:$0x1] %vm12039_vm2, %v5283_v63  ;;  %v5542_v28 = vld [vmem:[%s13376_s7 + $0x5d8] sm:$0xff]  ;;  %v5525_v1 = vld [vmem:[%s13376_s7 + $0x550] sm:$0xff]  ;;  %v5508_v56 = vld [vmem:[%s13376_s7 + $0x4c8] sm:$0xff] }
 0x80e   : > { %5290 = vst.msk [vmem:[#allocation4 + $0x1] sm:$0x1] %vm12039_vm2, %v5289_v40  ;;  %v5541_v0 = vld [vmem:[%s13376_s7 + $0x5d0] sm:$0xff]  ;;  %v5524_v39 = vld [vmem:[%s13376_s7 + $0x548] sm:$0xff]  ;;  %v5491_v40 = vld [vmem:[%s13376_s7 + $0x440] sm:$0xff] }
 0x80f   : > { %5292 = vst.msk [vmem:[#allocation4 + $0x2] sm:$0x1] %vm12039_vm2, %v5291_v55  ;;  %v5540_v63 = vld [vmem:[%s13376_s7 + $0x5c8] sm:$0xff]  ;;  %v5539_v55 = vld [vmem:[%s13376_s7 + $0x5c0] sm:$0xff] }
 0x810   : > { %5294 = vst.msk [vmem:[#allocation4 + $0x3] sm:$0x1] %vm12039_vm2, %v5293_v20  ;;  %v5522_v20 = vld [vmem:[%s13376_s7 + $0x538] sm:$0xff] }
 0x811   : > { %5296 = vst.msk [vmem:[#allocation4 + $0x4] sm:$0x1] %vm12039_vm2, %v5295_v12  ;;  %v5538_v12 = vld [vmem:[%s13376_s7 + $0x5b8] sm:$0xff] }
 0x812   : > { %5298 = vst.msk [vmem:[#allocation4 + $0x5] sm:$0x1] %vm12039_vm2, %v5297_v11  ;;  %v5489_v11 = vld [vmem:[%s13376_s7 + $0x430] sm:$0xff] }
 0x813   : > { %5300 = vst.msk [vmem:[#allocation4 + $0x6] sm:$0x1] %vm12039_vm2, %v5299_v21  ;;  %v5505_v21 = vld [vmem:[%s13376_s7 + $0x4b0] sm:$0xff] }
 0x814   : > { %5302 = vst.msk [vmem:[#allocation4 + $0x7] sm:$0x1] %vm12039_vm2, %v5301_v54  ;;  %v5521_v54 = vld [vmem:[%s13376_s7 + $0x530] sm:$0xff] }
 0x815   : > { %5280 = vst [vmem:[#allocation2 + $0x8] sm:$0xff] %v5244_v6 }
 0x816   : > { %5282 = vst [vmem:[#allocation2 + $0x18] sm:$0xff] %v5246_v32 }
 0x81b   : > { %v12098_v33 = vld [vmem:[#allocation4] sm:$0xff] }
 0x81c   : > { %v5303_v36 = vld [vmem:[#allocation2 + $0x8] sm:$0x1]  ;;  %v5305_v8 = vld [vmem:[#allocation2 + $0x9] sm:$0x1]  ;;  %v5307_v49 = vld [vmem:[#allocation2 + $0xa] sm:$0x1] }
 0x81d   : > { %5304 = vst.msk [vmem:[#allocation4 + $0x8] sm:$0x1] %vm12039_vm2, %v5303_v36  ;;  %v5309_v14 = vld [vmem:[#allocation2 + $0xb] sm:$0x1]  ;;  %v5311_v35 = vld [vmem:[#allocation2 + $0xc] sm:$0x1] }
 0x81e   : > { %5306 = vst.msk [vmem:[#allocation4 + $0x9] sm:$0x1] %vm12039_vm2, %v5305_v8  ;;  %v5313_v48 = vld [vmem:[#allocation2 + $0xd] sm:$0x1]  ;;  %v5315_v24 = vld [vmem:[#allocation2 + $0xe] sm:$0x1] }
 0x81f   : > { %5308 = vst.msk [vmem:[#allocation4 + $0xa] sm:$0x1] %vm12039_vm2, %v5307_v49  ;;  %v5317_v59 = vld [vmem:[#allocation2 + $0xf] sm:$0x1]  ;;  %v5335_v9 = vld [vmem:[#allocation2 + $0x18] sm:$0x1] }
 0x820   : > { %5310 = vst.msk [vmem:[#allocation4 + $0xb] sm:$0x1] %vm12039_vm2, %v5309_v14  ;;  %v5337_v37 = vld [vmem:[#allocation2 + $0x19] sm:$0x1]  ;;  %v5871_v52 = vperm.slane %v12098_v33, 0  ;;  %v5872_v5 = vperm.slane %v12098_v33, 1 }
 0x821   : > { %5312 = vst.msk [vmem:[#allocation4 + $0xc] sm:$0x1] %vm12039_vm2, %v5311_v35  ;;  %v5339_v51 = vld [vmem:[#allocation2 + $0x1a] sm:$0x1]  ;;  %v5873_v17 = vperm.slane %v12098_v33, 2  ;;  %v5874_v34 = vperm.slane %v12098_v33, 3 }
 0x822   : > { %5314 = vst.msk [vmem:[#allocation4 + $0xd] sm:$0x1] %vm12039_vm2, %v5313_v48  ;;  %v5341_v60 = vld [vmem:[#allocation2 + $0x1b] sm:$0x1]  ;;  %5951 = vmatmul.f32.vlgmr.msra.gmra.mxu0 %v5871_v52  ;;  %5971 = vmatmul.f32.vlgmr.msra.gmra.mxu1 %v5872_v5  ;;  %v5343_v53 = vld [vmem:[#allocation2 + $0x1c] sm:$0x1] }
 0x823   : > { %5316 = vst.msk [vmem:[#allocation4 + $0xe] sm:$0x1] %vm12039_vm2, %v5315_v24  ;;  %5991 = vmatmul.f32.vlgmr.msra.gmra.mxu2 %v5873_v17  ;;  %6011 = vmatmul.f32.vlgmr.msra.gmra.mxu3 %v5874_v34  ;;  %v5345_v3 = vld [vmem:[#allocation2 + $0x1d] sm:$0x1]  ;;  %v5347_v30 = vld [vmem:[#allocation2 + $0x1e] sm:$0x1] }
 0x824   : > { %5318 = vst.msk [vmem:[#allocation4 + $0xf] sm:$0x1] %vm12039_vm2, %v5317_v59  ;;  %6095 = vmatpush.msra.mxu0 %v5498_v41  ;;  %6115 = vmatpush.msra.mxu1 %v5514_v57  ;;  %v5349_v23 = vld [vmem:[#allocation2 + $0x1f] sm:$0x1]  ;;  %v5875_v15 = vperm.slane %v12098_v33, 4  ;;  %v5876_v6 = vperm.slane %v12098_v33, 5 }
 0x825   : > { %5336 = vst.msk [vmem:[#allocation4 + $0x18] sm:$0x1] %vm12039_vm2, %v5335_v9  ;;  %6135 = vmatpush.msra.mxu2 %v5530_v25  ;;  %6155 = vmatpush.msra.mxu3 %v5546_v58  ;;  %v5877_v32 = vperm.slane %v12098_v33, 6  ;;  %v5878_v19 = vperm.slane %v12098_v33, 7  ;;  %v5537_v36 = vld [vmem:[%s13376_s7 + $0x5b0] sm:$0xff]  ;;  %v5488_v8 = vld [vmem:[%s13376_s7 + $0x428] sm:$0xff] }
 0x826   : > { %5338 = vst.msk [vmem:[#allocation4 + $0x19] sm:$0x1] %vm12039_vm2, %v5337_v37  ;;  %6096 = vmatpush.msra.mxu0 %v5497_v50  ;;  %6116 = vmatpush.msra.mxu1 %v5513_v42  ;;  %v5504_v49 = vld [vmem:[%s13376_s7 + $0x4a8] sm:$0xff]  ;;  %v5487_v48 = vld [vmem:[%s13376_s7 + $0x420] sm:$0xff]  ;;  %v5486_v9 = vld [vmem:[%s13376_s7 + $0x418] sm:$0xff] }
 0x827   : > { %5340 = vst.msk [vmem:[#allocation4 + $0x1a] sm:$0x1] %vm12039_vm2, %v5339_v51  ;;  %6136 = vmatpush.msra.mxu2 %v5529_v38  ;;  %6156 = vmatpush.msra.mxu3 %v5545_v62  ;;  %v5520_v14 = vld [vmem:[%s13376_s7 + $0x528] sm:$0xff]  ;;  %v5503_v24 = vld [vmem:[%s13376_s7 + $0x4a0] sm:$0xff]  ;;  %v5502_v41 = vld [vmem:[%s13376_s7 + $0x498] sm:$0xff] }
 0x828   : > { %5342 = vst.msk [vmem:[#allocation4 + $0x1b] sm:$0x1] %vm12039_vm2, %v5341_v60  ;;  %6097 = vmatpush.msra.mxu0 %v5496_v45  ;;  %6117 = vmatpush.msra.mxu1 %v5512_v27  ;;  %v5536_v35 = vld [vmem:[%s13376_s7 + $0x5a8] sm:$0xff]  ;;  %v5519_v33 = vld [vmem:[%s13376_s7 + $0x520] sm:$0xff]  ;;  %v5518_v57 = vld [vmem:[%s13376_s7 + $0x518] sm:$0xff] }
 0x829   : > { %5344 = vst.msk [vmem:[#allocation4 + $0x1c] sm:$0x1] %vm12039_vm2, %v5343_v53  ;;  %6137 = vmatpush.msra.mxu2 %v5528_v43  ;;  %6157 = vmatpush.msra.mxu3 %v5544_v4  ;;  %v5535_v59 = vld [vmem:[%s13376_s7 + $0x5a0] sm:$0xff]  ;;  %v5534_v37 = vld [vmem:[%s13376_s7 + $0x598] sm:$0xff]  ;;  %v5485_v52 = vld [vmem:[%s13376_s7 + $0x410] sm:$0xff] }
 0x82a   : > { %5346 = vst.msk [vmem:[#allocation4 + $0x1d] sm:$0x1] %vm12039_vm2, %v5345_v3  ;;  %6098 = vmatpush.msra.mxu0 %v5495_v44  ;;  %6118 = vmatpush.msra.mxu1 %v5511_v22  ;;  %v5501_v5 = vld [vmem:[%s13376_s7 + $0x490] sm:$0xff]  ;;  %v5484_v34 = vld [vmem:[%s13376_s7 + $0x408] sm:$0xff]  ;;  %v5483_v53 = vld [vmem:[%s13376_s7 + $0x400] sm:$0xff] }
 0x82b   : > { %5348 = vst.msk [vmem:[#allocation4 + $0x1e] sm:$0x1] %vm12039_vm2, %v5347_v30  ;;  %6138 = vmatpush.msra.mxu2 %v5527_v18  ;;  %6158 = vmatpush.msra.mxu3 %v5543_v47  ;;  %v5517_v51 = vld [vmem:[%s13376_s7 + $0x510] sm:$0xff]  ;;  %v5500_v60 = vld [vmem:[%s13376_s7 + $0x488] sm:$0xff]  ;;  %v5499_v50 = vld [vmem:[%s13376_s7 + $0x480] sm:$0xff] }
 0x82c   : > { %5350 = vst.msk [vmem:[#allocation4 + $0x1f] sm:$0x1] %vm12039_vm2, %v5349_v23  ;;  %6031 = vmatmul.f32.vlgmr.msrb.gmra.mxu0 %v5875_v15  ;;  %6051 = vmatmul.f32.vlgmr.msrb.gmra.mxu1 %v5876_v6  ;;  %v5533_v17 = vld [vmem:[%s13376_s7 + $0x590] sm:$0xff]  ;;  %v5516_v25 = vld [vmem:[%s13376_s7 + $0x508] sm:$0xff]  ;;  %v5515_v3 = vld [vmem:[%s13376_s7 + $0x500] sm:$0xff] }
 0x82d   : > { %6071 = vmatmul.f32.vlgmr.msrb.gmra.mxu2 %v5877_v32  ;;  %6091 = vmatmul.f32.vlgmr.msrb.gmra.mxu3 %v5878_v19  ;;  %v5532_v58 = vld [vmem:[%s13376_s7 + $0x588] sm:$0xff]  ;;  %v5531_v38 = vld [vmem:[%s13376_s7 + $0x580] sm:$0xff]  ;;  %v5562_v23 = vld [vmem:[%s13376_s7 + $0x678] sm:$0xff] }
 0x82e   : > { %6099 = vmatpush.msra.mxu0 %v5494_v46  ;;  %6119 = vmatpush.msra.mxu1 %v5510_v61  ;;  %v12318_v42 = vld [vmem:[#allocation4 + $0x8] sm:$0xff]  ;;  %v5578_v43 = vld [vmem:[%s13376_s7 + $0x6f8] sm:$0xff]  ;;  %v5561_v22 = vld [vmem:[%s13376_s7 + $0x670] sm:$0xff] }
 0x82f   : > { %6139 = vmatpush.msra.mxu2 %v5526_v26  ;;  %6159 = vmatpush.msra.mxu3 %v5542_v28  ;;  %v5879_v62 = vperm.slane %v12318_v42, 0  ;;  %v5880_v30 = vperm.slane %v12318_v42, 1  ;;  %v5881_v45 = vperm.slane %v12318_v42, 2  ;;  %v5882_v27 = vperm.slane %v12318_v42, 3  ;;  %v5594_v4 = vld [vmem:[%s13376_s7 + $0x778] sm:$0xff]  ;;  %v5577_v18 = vld [vmem:[%s13376_s7 + $0x6f0] sm:$0xff] }
 0x830   : > { %6100 = vmatpush.msra.mxu0 %v5493_v13  ;;  %6120 = vmatpush.msra.mxu1 %v5509_v7  ;;  %v5610_v44 = vld [vmem:[%s13376_s7 + $0x7f8] sm:$0xff]  ;;  %v5593_v47 = vld [vmem:[%s13376_s7 + $0x770] sm:$0xff]  ;;  %v5560_v6 = vld [vmem:[%s13376_s7 + $0x668] sm:$0xff] }
 0x831   : > { %6140 = vmatpush.msra.mxu2 %v5525_v1  ;;  %6160 = vmatpush.msra.mxu3 %v5541_v0  ;;  %v5609_v15 = vld [vmem:[%s13376_s7 + $0x7f0] sm:$0xff]  ;;  %v5576_v32 = vld [vmem:[%s13376_s7 + $0x6e8] sm:$0xff]  ;;  %v5559_v61 = vld [vmem:[%s13376_s7 + $0x660] sm:$0xff] }
 0x832   : > { %6101 = vmatpush.msra.mxu0 %v5492_v29  ;;  %6121 = vmatpush.msra.mxu1 %v5508_v56  ;;  %v5592_v19 = vld [vmem:[%s13376_s7 + $0x768] sm:$0xff]  ;;  %v5575_v26 = vld [vmem:[%s13376_s7 + $0x6e0] sm:$0xff]  ;;  %v5558_v7 = vld [vmem:[%s13376_s7 + $0x658] sm:$0xff] }
 0x833   : > { %6141 = vmatpush.msra.mxu2 %v5524_v39  ;;  %6161 = vmatpush.msra.mxu3 %v5540_v63  ;;  %v5608_v46 = vld [vmem:[%s13376_s7 + $0x7e8] sm:$0xff]  ;;  %v5591_v28 = vld [vmem:[%s13376_s7 + $0x760] sm:$0xff]  ;;  %v5574_v1 = vld [vmem:[%s13376_s7 + $0x6d8] sm:$0xff] }
 0x834   : > { %6102 = vmatpush.msra.mxu0 %v5491_v40  ;;  %6122 = vmatpush.msra.mxu1 %v5507_v31  ;;  %v5607_v13 = vld [vmem:[%s13376_s7 + $0x7e0] sm:$0xff]  ;;  %v5590_v0 = vld [vmem:[%s13376_s7 + $0x758] sm:$0xff]  ;;  %v5557_v56 = vld [vmem:[%s13376_s7 + $0x650] sm:$0xff] }
 0x835   : > { %6142 = vmatpush.msra.mxu2 %v5523_v16  ;;  %6162 = vmatpush.msra.mxu3 %v5539_v55  ;;  %v5606_v29 = vld [vmem:[%s13376_s7 + $0x7d8] sm:$0xff]  ;;  %v5573_v39 = vld [vmem:[%s13376_s7 + $0x6d0] sm:$0xff]  ;;  %v5556_v31 = vld [vmem:[%s13376_s7 + $0x648] sm:$0xff] }
 0x836   : > { %6103 = vmatpush.msra.mxu0 %v5490_v10  ;;  %6123 = vmatpush.msra.mxu1 %v5506_v2  ;;  %v5589_v63 = vld [vmem:[%s13376_s7 + $0x750] sm:$0xff]  ;;  %v5572_v16 = vld [vmem:[%s13376_s7 + $0x6c8] sm:$0xff]  ;;  %v5555_v2 = vld [vmem:[%s13376_s7 + $0x640] sm:$0xff] }
 0x837   : > { %6143 = vmatpush.msra.mxu2 %v5522_v20  ;;  %6163 = vmatpush.msra.mxu3 %v5538_v12  ;;  %v5605_v40 = vld [vmem:[%s13376_s7 + $0x7d0] sm:$0xff]  ;;  %v5588_v55 = vld [vmem:[%s13376_s7 + $0x748] sm:$0xff]  ;;  %v5571_v20 = vld [vmem:[%s13376_s7 + $0x6c0] sm:$0xff] }
 0x838   : > { %6104 = vmatpush.msra.mxu0 %v5489_v11  ;;  %6124 = vmatpush.msra.mxu1 %v5505_v21  ;;  %v5604_v10 = vld [vmem:[%s13376_s7 + $0x7c8] sm:$0xff]  ;;  %v5587_v12 = vld [vmem:[%s13376_s7 + $0x740] sm:$0xff]  ;;  %v5554_v21 = vld [vmem:[%s13376_s7 + $0x638] sm:$0xff] }
 0x839   : > { %6144 = vmatpush.msra.mxu2 %v5521_v54  ;;  %6164 = vmatpush.msra.mxu3 %v5537_v36  ;;  %v5603_v11 = vld [vmem:[%s13376_s7 + $0x7c0] sm:$0xff]  ;;  %v5570_v54 = vld [vmem:[%s13376_s7 + $0x6b8] sm:$0xff] }
 0x83a   : > { %6105 = vmatpush.msra.mxu0 %v5488_v8  ;;  %6125 = vmatpush.msra.mxu1 %v5504_v49  ;;  %v5586_v36 = vld [vmem:[%s13376_s7 + $0x738] sm:$0xff]  ;;  %v5553_v49 = vld [vmem:[%s13376_s7 + $0x630] sm:$0xff] }
 0x83b   : > { %6145 = vmatpush.msra.mxu2 %v5520_v14  ;;  %6165 = vmatpush.msra.mxu3 %v5536_v35  ;;  %v5602_v8 = vld [vmem:[%s13376_s7 + $0x7b8] sm:$0xff]  ;;  %v5569_v14 = vld [vmem:[%s13376_s7 + $0x6b0] sm:$0xff] }
 0x83c   : > { %6106 = vmatpush.msra.mxu0 %v5487_v48  ;;  %6126 = vmatpush.msra.mxu1 %v5503_v24  ;;  %v5585_v35 = vld [vmem:[%s13376_s7 + $0x730] sm:$0xff]  ;;  %v5552_v24 = vld [vmem:[%s13376_s7 + $0x628] sm:$0xff] }
 0x83d   : > { %6146 = vmatpush.msra.mxu2 %v5519_v33  ;;  %6166 = vmatpush.msra.mxu3 %v5535_v59  ;;  %v5601_v48 = vld [vmem:[%s13376_s7 + $0x7b0] sm:$0xff]  ;;  %v5568_v33 = vld [vmem:[%s13376_s7 + $0x6a8] sm:$0xff] }
 0x83e   : > { %6107 = vmatpush.msra.mxu0 %v5486_v9  ;;  %6127 = vmatpush.msra.mxu1 %v5502_v41  ;;  %v5584_v59 = vld [vmem:[%s13376_s7 + $0x728] sm:$0xff]  ;;  %v5551_v41 = vld [vmem:[%s13376_s7 + $0x620] sm:$0xff] }
 0x83f   : > { %6147 = vmatpush.msra.mxu2 %v5518_v57  ;;  %6167 = vmatpush.msra.mxu3 %v5534_v37  ;;  %v5600_v9 = vld [vmem:[%s13376_s7 + $0x7a8] sm:$0xff]  ;;  %v5567_v57 = vld [vmem:[%s13376_s7 + $0x6a0] sm:$0xff] }
 0x840   : > { %6108 = vmatpush.msra.mxu0 %v5485_v52  ;;  %6128 = vmatpush.msra.mxu1 %v5501_v5  ;;  %v5583_v37 = vld [vmem:[%s13376_s7 + $0x720] sm:$0xff]  ;;  %v5550_v5 = vld [vmem:[%s13376_s7 + $0x618] sm:$0xff] }
 0x841   : > { %6148 = vmatpush.msra.mxu2 %v5517_v51  ;;  %6168 = vmatpush.msra.mxu3 %v5533_v17  ;;  %v5599_v52 = vld [vmem:[%s13376_s7 + $0x7a0] sm:$0xff]  ;;  %v5566_v51 = vld [vmem:[%s13376_s7 + $0x698] sm:$0xff] }
 0x842   : > { %6109 = vmatpush.msra.mxu0 %v5484_v34  ;;  %6129 = vmatpush.msra.mxu1 %v5500_v60  ;;  %v5582_v17 = vld [vmem:[%s13376_s7 + $0x718] sm:$0xff]  ;;  %v5549_v60 = vld [vmem:[%s13376_s7 + $0x610] sm:$0xff] }
 0x843   : > { %6149 = vmatpush.msra.mxu2 %v5516_v25  ;;  %6169 = vmatpush.msra.mxu3 %v5532_v58  ;;  %v5598_v34 = vld [vmem:[%s13376_s7 + $0x798] sm:$0xff]  ;;  %v5565_v25 = vld [vmem:[%s13376_s7 + $0x690] sm:$0xff] }
 0x844   : > { %6110 = vmatpush.msra.mxu0 %v5483_v53  ;;  %6130 = vmatpush.msra.mxu1 %v5499_v50  ;;  %v5581_v58 = vld [vmem:[%s13376_s7 + $0x710] sm:$0xff]  ;;  %v5548_v50 = vld [vmem:[%s13376_s7 + $0x608] sm:$0xff] }
 0x845   : > { %6150 = vmatpush.msra.mxu2 %v5515_v3  ;;  %6170 = vmatpush.msra.mxu3 %v5531_v38  ;;  %v5597_v53 = vld [vmem:[%s13376_s7 + $0x790] sm:$0xff]  ;;  %v5564_v3 = vld [vmem:[%s13376_s7 + $0x688] sm:$0xff] }
 0x846   : > { %6111 = vmatmul.f32.vlgmr.msra.gmra.mxu0 %v5879_v62  ;;  %6131 = vmatmul.f32.vlgmr.msra.gmra.mxu1 %v5880_v30  ;;  %v5580_v38 = vld [vmem:[%s13376_s7 + $0x708] sm:$0xff]  ;;  %v5547_v30 = vld [vmem:[%s13376_s7 + $0x600] sm:$0xff] }
 0x847   : > { %6151 = vmatmul.f32.vlgmr.msra.gmra.mxu2 %v5881_v45  ;;  %6171 = vmatmul.f32.vlgmr.msra.gmra.mxu3 %v5882_v27  ;;  %v5596_v62 = vld [vmem:[%s13376_s7 + $0x788] sm:$0xff]  ;;  %v5563_v45 = vld [vmem:[%s13376_s7 + $0x680] sm:$0xff] }
 0x848   : > { %6175 = vmatpush.msrb.mxu0 %v5562_v23  ;;  %6195 = vmatpush.msrb.mxu1 %v5578_v43  ;;  %v5579_v27 = vld [vmem:[%s13376_s7 + $0x700] sm:$0xff]  ;;  %v5883_v43 = vperm.slane %v12318_v42, 4 }
 0x849   : > { %6215 = vmatpush.msrb.mxu2 %v5594_v4  ;;  %6235 = vmatpush.msrb.mxu3 %v5610_v44  ;;  %v5595_v23 = vld [vmem:[%s13376_s7 + $0x780] sm:$0xff]  ;;  %v5884_v4 = vperm.slane %v12318_v42, 5  ;;  %v5885_v44 = vperm.slane %v12318_v42, 6 }
 0x84a   : > { %6176 = vmatpush.msrb.mxu0 %v5561_v22  ;;  %6196 = vmatpush.msrb.mxu1 %v5577_v18  ;;  %v5886_v22 = vperm.slane %v12318_v42, 7  ;;  %v5626_v18 = vld [vmem:[%s13376_s7 + $0x878] sm:$0xff]  ;;  %v5625_v42 = vld [vmem:[%s13376_s7 + $0x870] sm:$0xff] }
 0x84b   : > { %6216 = vmatpush.msrb.mxu2 %v5593_v47  ;;  %6236 = vmatpush.msrb.mxu3 %v5609_v15  ;;  %v5642_v47 = vld [vmem:[%s13376_s7 + $0x8f8] sm:$0xff] }
 0x84c   : > { %6177 = vmatpush.msrb.mxu0 %v5560_v6  ;;  %6197 = vmatpush.msrb.mxu1 %v5576_v32  ;;  %v5658_v15 = vld [vmem:[%s13376_s7 + $0x978] sm:$0xff]  ;;  %v5641_v32 = vld [vmem:[%s13376_s7 + $0x8f0] sm:$0xff] }
 0x84d   : > { %6217 = vmatpush.msrb.mxu2 %v5592_v19  ;;  %6237 = vmatpush.msrb.mxu3 %v5608_v46  ;;  %v5674_v6 = vld [vmem:[%s13376_s7 + $0x9f8] sm:$0xff]  ;;  %v5657_v19 = vld [vmem:[%s13376_s7 + $0x970] sm:$0xff] }
 0x84e   : > { %6178 = vmatpush.msrb.mxu0 %v5559_v61  ;;  %6198 = vmatpush.msrb.mxu1 %v5575_v26  ;;  %v5673_v46 = vld [vmem:[%s13376_s7 + $0x9f0] sm:$0xff]  ;;  %v5624_v61 = vld [vmem:[%s13376_s7 + $0x868] sm:$0xff] }
 0x84f   : > { %6218 = vmatpush.msrb.mxu2 %v5591_v28  ;;  %6238 = vmatpush.msrb.mxu3 %v5607_v13  ;;  %v5640_v26 = vld [vmem:[%s13376_s7 + $0x8e8] sm:$0xff] }
 0x850   : > { %6179 = vmatpush.msrb.mxu0 %v5558_v7  ;;  %6199 = vmatpush.msrb.mxu1 %v5574_v1  ;;  %v5656_v28 = vld [vmem:[%s13376_s7 + $0x968] sm:$0xff]  ;;  %v5623_v7 = vld [vmem:[%s13376_s7 + $0x860] sm:$0xff] }
 0x851   : > { %6219 = vmatpush.msrb.mxu2 %v5590_v0  ;;  %6239 = vmatpush.msrb.mxu3 %v5606_v29  ;;  %v5672_v13 = vld [vmem:[%s13376_s7 + $0x9e8] sm:$0xff]  ;;  %v5639_v1 = vld [vmem:[%s13376_s7 + $0x8e0] sm:$0xff] }
 0x852   : > { %6180 = vmatpush.msrb.mxu0 %v5557_v56  ;;  %6200 = vmatpush.msrb.mxu1 %v5573_v39  ;;  %v5655_v0 = vld [vmem:[%s13376_s7 + $0x960] sm:$0xff]  ;;  %v5622_v56 = vld [vmem:[%s13376_s7 + $0x858] sm:$0xff] }
 0x853   : > { %6220 = vmatpush.msrb.mxu2 %v5589_v63  ;;  %6240 = vmatpush.msrb.mxu3 %v5605_v40  ;;  %v5671_v29 = vld [vmem:[%s13376_s7 + $0x9e0] sm:$0xff]  ;;  %v5638_v39 = vld [vmem:[%s13376_s7 + $0x8d8] sm:$0xff] }
 0x854   : > { %6181 = vmatpush.msrb.mxu0 %v5556_v31  ;;  %6201 = vmatpush.msrb.mxu1 %v5572_v16  ;;  %v5654_v63 = vld [vmem:[%s13376_s7 + $0x958] sm:$0xff]  ;;  %v5621_v31 = vld [vmem:[%s13376_s7 + $0x850] sm:$0xff] }
 0x855   : > { %6221 = vmatpush.msrb.mxu2 %v5588_v55  ;;  %6241 = vmatpush.msrb.mxu3 %v5604_v10  ;;  %v5670_v40 = vld [vmem:[%s13376_s7 + $0x9d8] sm:$0xff]  ;;  %v5637_v16 = vld [vmem:[%s13376_s7 + $0x8d0] sm:$0xff] }
 0x856   : > { %6182 = vmatpush.msrb.mxu0 %v5555_v2  ;;  %6202 = vmatpush.msrb.mxu1 %v5571_v20  ;;  %v5653_v55 = vld [vmem:[%s13376_s7 + $0x950] sm:$0xff]  ;;  %v5620_v2 = vld [vmem:[%s13376_s7 + $0x848] sm:$0xff] }
 0x857   : > { %6222 = vmatpush.msrb.mxu2 %v5587_v12  ;;  %6242 = vmatpush.msrb.mxu3 %v5603_v11  ;;  %v5669_v10 = vld [vmem:[%s13376_s7 + $0x9d0] sm:$0xff]  ;;  %v5636_v20 = vld [vmem:[%s13376_s7 + $0x8c8] sm:$0xff] }
 0x858   : > { %6183 = vmatpush.msrb.mxu0 %v5554_v21  ;;  %6203 = vmatpush.msrb.mxu1 %v5570_v54  ;;  %v5652_v12 = vld [vmem:[%s13376_s7 + $0x948] sm:$0xff]  ;;  %v5619_v21 = vld [vmem:[%s13376_s7 + $0x840] sm:$0xff] }
 0x859   : > { %6223 = vmatpush.msrb.mxu2 %v5586_v36  ;;  %6243 = vmatpush.msrb.mxu3 %v5602_v8  ;;  %v5668_v11 = vld [vmem:[%s13376_s7 + $0x9c8] sm:$0xff]  ;;  %v5635_v54 = vld [vmem:[%s13376_s7 + $0x8c0] sm:$0xff] }
 0x85a   : > { %6184 = vmatpush.msrb.mxu0 %v5553_v49  ;;  %6204 = vmatpush.msrb.mxu1 %v5569_v14  ;;  %v5651_v36 = vld [vmem:[%s13376_s7 + $0x940] sm:$0xff]  ;;  %v5618_v49 = vld [vmem:[%s13376_s7 + $0x838] sm:$0xff] }
 0x85b   : > { %6224 = vmatpush.msrb.mxu2 %v5585_v35  ;;  %6244 = vmatpush.msrb.mxu3 %v5601_v48  ;;  %v5667_v8 = vld [vmem:[%s13376_s7 + $0x9c0] sm:$0xff]  ;;  %v5634_v14 = vld [vmem:[%s13376_s7 + $0x8b8] sm:$0xff] }
 0x85c   : > { %6185 = vmatpush.msrb.mxu0 %v5552_v24  ;;  %6205 = vmatpush.msrb.mxu1 %v5568_v33  ;;  %v5650_v35 = vld [vmem:[%s13376_s7 + $0x938] sm:$0xff]  ;;  %v5617_v24 = vld [vmem:[%s13376_s7 + $0x830] sm:$0xff] }
 0x85d   : > { %6225 = vmatpush.msrb.mxu2 %v5584_v59  ;;  %6245 = vmatpush.msrb.mxu3 %v5600_v9  ;;  %v5666_v48 = vld [vmem:[%s13376_s7 + $0x9b8] sm:$0xff]  ;;  %v5633_v33 = vld [vmem:[%s13376_s7 + $0x8b0] sm:$0xff] }
 0x85e   : > { %6186 = vmatpush.msrb.mxu0 %v5551_v41  ;;  %6206 = vmatpush.msrb.mxu1 %v5567_v57  ;;  %v5649_v59 = vld [vmem:[%s13376_s7 + $0x930] sm:$0xff]  ;;  %v5616_v41 = vld [vmem:[%s13376_s7 + $0x828] sm:$0xff] }
 0x85f   : > { %6226 = vmatpush.msrb.mxu2 %v5583_v37  ;;  %6246 = vmatpush.msrb.mxu3 %v5599_v52  ;;  %v5665_v9 = vld [vmem:[%s13376_s7 + $0x9b0] sm:$0xff]  ;;  %v5632_v57 = vld [vmem:[%s13376_s7 + $0x8a8] sm:$0xff] }
 0x860   : > { %6187 = vmatpush.msrb.mxu0 %v5550_v5  ;;  %6207 = vmatpush.msrb.mxu1 %v5566_v51  ;;  %v5648_v37 = vld [vmem:[%s13376_s7 + $0x928] sm:$0xff]  ;;  %v5615_v5 = vld [vmem:[%s13376_s7 + $0x820] sm:$0xff] }
 0x861   : > { %6227 = vmatpush.msrb.mxu2 %v5582_v17  ;;  %6247 = vmatpush.msrb.mxu3 %v5598_v34  ;;  %v5664_v52 = vld [vmem:[%s13376_s7 + $0x9a8] sm:$0xff]  ;;  %v5631_v51 = vld [vmem:[%s13376_s7 + $0x8a0] sm:$0xff] }
 0x862   : > { %6188 = vmatpush.msrb.mxu0 %v5549_v60  ;;  %6208 = vmatpush.msrb.mxu1 %v5565_v25  ;;  %v5647_v17 = vld [vmem:[%s13376_s7 + $0x920] sm:$0xff]  ;;  %v5614_v60 = vld [vmem:[%s13376_s7 + $0x818] sm:$0xff] }
 0x863   : > { %6228 = vmatpush.msrb.mxu2 %v5581_v58  ;;  %6248 = vmatpush.msrb.mxu3 %v5597_v53  ;;  %v5663_v34 = vld [vmem:[%s13376_s7 + $0x9a0] sm:$0xff]  ;;  %v5630_v25 = vld [vmem:[%s13376_s7 + $0x898] sm:$0xff] }
 0x864   : > { %6189 = vmatpush.msrb.mxu0 %v5548_v50  ;;  %6209 = vmatpush.msrb.mxu1 %v5564_v3  ;;  %v5646_v58 = vld [vmem:[%s13376_s7 + $0x918] sm:$0xff]  ;;  %v5613_v50 = vld [vmem:[%s13376_s7 + $0x810] sm:$0xff] }
 0x865   : > { %6229 = vmatpush.msrb.mxu2 %v5580_v38  ;;  %6249 = vmatpush.msrb.mxu3 %v5596_v62  ;;  %v5662_v53 = vld [vmem:[%s13376_s7 + $0x998] sm:$0xff]  ;;  %v5629_v3 = vld [vmem:[%s13376_s7 + $0x890] sm:$0xff] }
 0x866   : > { %6190 = vmatpush.msrb.mxu0 %v5547_v30  ;;  %6210 = vmatpush.msrb.mxu1 %v5563_v45  ;;  %v5645_v38 = vld [vmem:[%s13376_s7 + $0x910] sm:$0xff]  ;;  %v5612_v30 = vld [vmem:[%s13376_s7 + $0x808] sm:$0xff] }
 0x867   : > { %6230 = vmatpush.msrb.mxu2 %v5579_v27  ;;  %6250 = vmatpush.msrb.mxu3 %v5595_v23  ;;  %v5661_v62 = vld [vmem:[%s13376_s7 + $0x990] sm:$0xff]  ;;  %v5628_v45 = vld [vmem:[%s13376_s7 + $0x888] sm:$0xff] }
 0x868   : > { %6191 = vmatmul.f32.vlgmr.msrb.gmra.mxu0 %v5883_v43  ;;  %6211 = vmatmul.f32.vlgmr.msrb.gmra.mxu1 %v5884_v4  ;;  %v12700_v27 = vld [vmem:[#allocation4 + $0x10] sm:$0xff]  ;;  %v5644_v23 = vld [vmem:[%s13376_s7 + $0x908] sm:$0xff]  ;;  %v5611_v4 = vld [vmem:[%s13376_s7 + $0x800] sm:$0xff] }
 0x869   : > { %6231 = vmatmul.f32.vlgmr.msrb.gmra.mxu2 %v5885_v44  ;;  %6251 = vmatmul.f32.vlgmr.msrb.gmra.mxu3 %v5886_v22  ;;  %v5660_v43 = vld [vmem:[%s13376_s7 + $0x988] sm:$0xff]  ;;  %v5627_v44 = vld [vmem:[%s13376_s7 + $0x880] sm:$0xff] }
 0x86a   : > { %6255 = vmatpush.msra.mxu0 %v5626_v18  ;;  %6275 = vmatpush.msra.mxu1 %v5642_v47  ;;  %v5643_v22 = vld [vmem:[%s13376_s7 + $0x900] sm:$0xff]  ;;  %v5887_v47 = vperm.slane %v12700_v27, 0 }
 0x86b   : > { %6295 = vmatpush.msra.mxu2 %v5658_v15  ;;  %6315 = vmatpush.msra.mxu3 %v5674_v6  ;;  %v5659_v18 = vld [vmem:[%s13376_s7 + $0x980] sm:$0xff]  ;;  %v5889_v15 = vperm.slane %v12700_v27, 2  ;;  %v5690_v6 = vld [vmem:[%s13376_s7 + $0xa78] sm:$0xff] }
 0x86c   : > { %6256 = vmatpush.msra.mxu0 %v5625_v42  ;;  %6276 = vmatpush.msra.mxu1 %v5641_v32  ;;  %v5706_v42 = vld [vmem:[%s13376_s7 + $0xaf8] sm:$0xff] }
 0x86d   : > { %6296 = vmatpush.msra.mxu2 %v5657_v19  ;;  %6316 = vmatpush.msra.mxu3 %v5673_v46  ;;  %v5722_v32 = vld [vmem:[%s13376_s7 + $0xb78] sm:$0xff]  ;;  %v5888_v46 = vperm.slane %v12700_v27, 1 }
 0x86e   : > { %6257 = vmatpush.msra.mxu0 %v5624_v61  ;;  %6277 = vmatpush.msra.mxu1 %v5640_v26  ;;  %v5738_v19 = vld [vmem:[%s13376_s7 + $0xbf8] sm:$0xff]  ;;  %v5890_v61 = vperm.slane %v12700_v27, 3  ;;  %v5689_v26 = vld [vmem:[%s13376_s7 + $0xa70] sm:$0xff] }
 0x86f   : > { %6297 = vmatpush.msra.mxu2 %v5656_v28  ;;  %6317 = vmatpush.msra.mxu3 %v5672_v13  ;;  %v5705_v28 = vld [vmem:[%s13376_s7 + $0xaf0] sm:$0xff] }
 0x870   : > { %6258 = vmatpush.msra.mxu0 %v5623_v7  ;;  %6278 = vmatpush.msra.mxu1 %v5639_v1  ;;  %v5721_v13 = vld [vmem:[%s13376_s7 + $0xb70] sm:$0xff]  ;;  %v5688_v1 = vld [vmem:[%s13376_s7 + $0xa68] sm:$0xff] }
 0x871   : > { %6298 = vmatpush.msra.mxu2 %v5655_v0  ;;  %6318 = vmatpush.msra.mxu3 %v5671_v29  ;;  %v5737_v7 = vld [vmem:[%s13376_s7 + $0xbf0] sm:$0xff]  ;;  %v5704_v0 = vld [vmem:[%s13376_s7 + $0xae8] sm:$0xff] }
 0x872   : > { %6259 = vmatpush.msra.mxu0 %v5622_v56  ;;  %6279 = vmatpush.msra.mxu1 %v5638_v39  ;;  %v5720_v29 = vld [vmem:[%s13376_s7 + $0xb68] sm:$0xff]  ;;  %v5687_v39 = vld [vmem:[%s13376_s7 + $0xa60] sm:$0xff] }
 0x873   : > { %6299 = vmatpush.msra.mxu2 %v5654_v63  ;;  %6319 = vmatpush.msra.mxu3 %v5670_v40  ;;  %v5736_v56 = vld [vmem:[%s13376_s7 + $0xbe8] sm:$0xff]  ;;  %v5703_v63 = vld [vmem:[%s13376_s7 + $0xae0] sm:$0xff] }
 0x874   : > { %6260 = vmatpush.msra.mxu0 %v5621_v31  ;;  %6280 = vmatpush.msra.mxu1 %v5637_v16  ;;  %v5719_v40 = vld [vmem:[%s13376_s7 + $0xb60] sm:$0xff]  ;;  %v5686_v16 = vld [vmem:[%s13376_s7 + $0xa58] sm:$0xff] }
 0x875   : > { %6300 = vmatpush.msra.mxu2 %v5653_v55  ;;  %6320 = vmatpush.msra.mxu3 %v5669_v10  ;;  %v5735_v31 = vld [vmem:[%s13376_s7 + $0xbe0] sm:$0xff]  ;;  %v5702_v55 = vld [vmem:[%s13376_s7 + $0xad8] sm:$0xff] }
 0x876   : > { %6261 = vmatpush.msra.mxu0 %v5620_v2  ;;  %6281 = vmatpush.msra.mxu1 %v5636_v20  ;;  %v5718_v10 = vld [vmem:[%s13376_s7 + $0xb58] sm:$0xff]  ;;  %v5685_v20 = vld [vmem:[%s13376_s7 + $0xa50] sm:$0xff] }
 0x877   : > { %6301 = vmatpush.msra.mxu2 %v5652_v12  ;;  %6321 = vmatpush.msra.mxu3 %v5668_v11  ;;  %v5734_v2 = vld [vmem:[%s13376_s7 + $0xbd8] sm:$0xff]  ;;  %v5701_v12 = vld [vmem:[%s13376_s7 + $0xad0] sm:$0xff] }
 0x878   : > { %6262 = vmatpush.msra.mxu0 %v5619_v21  ;;  %6282 = vmatpush.msra.mxu1 %v5635_v54  ;;  %v5717_v11 = vld [vmem:[%s13376_s7 + $0xb50] sm:$0xff]  ;;  %v5684_v54 = vld [vmem:[%s13376_s7 + $0xa48] sm:$0xff] }
 0x879   : > { %6302 = vmatpush.msra.mxu2 %v5651_v36  ;;  %6322 = vmatpush.msra.mxu3 %v5667_v8  ;;  %v5733_v21 = vld [vmem:[%s13376_s7 + $0xbd0] sm:$0xff]  ;;  %v5700_v36 = vld [vmem:[%s13376_s7 + $0xac8] sm:$0xff] }
 0x87a   : > { %6263 = vmatpush.msra.mxu0 %v5618_v49  ;;  %6283 = vmatpush.msra.mxu1 %v5634_v14  ;;  %v5716_v8 = vld [vmem:[%s13376_s7 + $0xb48] sm:$0xff]  ;;  %v5683_v14 = vld [vmem:[%s13376_s7 + $0xa40] sm:$0xff] }
 0x87b   : > { %6303 = vmatpush.msra.mxu2 %v5650_v35  ;;  %6323 = vmatpush.msra.mxu3 %v5666_v48  ;;  %v5732_v49 = vld [vmem:[%s13376_s7 + $0xbc8] sm:$0xff]  ;;  %v5699_v35 = vld [vmem:[%s13376_s7 + $0xac0] sm:$0xff] }
 0x87c   : > { %6264 = vmatpush.msra.mxu0 %v5617_v24  ;;  %6284 = vmatpush.msra.mxu1 %v5633_v33  ;;  %v5715_v48 = vld [vmem:[%s13376_s7 + $0xb40] sm:$0xff]  ;;  %v5682_v33 = vld [vmem:[%s13376_s7 + $0xa38] sm:$0xff] }
 0x87d   : > { %6304 = vmatpush.msra.mxu2 %v5649_v59  ;;  %6324 = vmatpush.msra.mxu3 %v5665_v9  ;;  %v5731_v24 = vld [vmem:[%s13376_s7 + $0xbc0] sm:$0xff]  ;;  %v5698_v59 = vld [vmem:[%s13376_s7 + $0xab8] sm:$0xff] }
 0x87e   : > { %6265 = vmatpush.msra.mxu0 %v5616_v41  ;;  %6285 = vmatpush.msra.mxu1 %v5632_v57  ;;  %v5714_v9 = vld [vmem:[%s13376_s7 + $0xb38] sm:$0xff]  ;;  %v5681_v57 = vld [vmem:[%s13376_s7 + $0xa30] sm:$0xff] }
 0x87f   : > { %6305 = vmatpush.msra.mxu2 %v5648_v37  ;;  %6325 = vmatpush.msra.mxu3 %v5664_v52  ;;  %v5730_v41 = vld [vmem:[%s13376_s7 + $0xbb8] sm:$0xff]  ;;  %v5697_v37 = vld [vmem:[%s13376_s7 + $0xab0] sm:$0xff] }
 0x880   : > { %6266 = vmatpush.msra.mxu0 %v5615_v5  ;;  %6286 = vmatpush.msra.mxu1 %v5631_v51  ;;  %v5713_v52 = vld [vmem:[%s13376_s7 + $0xb30] sm:$0xff]  ;;  %v5680_v51 = vld [vmem:[%s13376_s7 + $0xa28] sm:$0xff] }
 0x881   : > { %6306 = vmatpush.msra.mxu2 %v5647_v17  ;;  %6326 = vmatpush.msra.mxu3 %v5663_v34  ;;  %v5729_v5 = vld [vmem:[%s13376_s7 + $0xbb0] sm:$0xff]  ;;  %v5696_v17 = vld [vmem:[%s13376_s7 + $0xaa8] sm:$0xff] }
 0x882   : > { %6267 = vmatpush.msra.mxu0 %v5614_v60  ;;  %6287 = vmatpush.msra.mxu1 %v5630_v25  ;;  %v5712_v34 = vld [vmem:[%s13376_s7 + $0xb28] sm:$0xff]  ;;  %v5679_v25 = vld [vmem:[%s13376_s7 + $0xa20] sm:$0xff] }
 0x883   : > { %6307 = vmatpush.msra.mxu2 %v5646_v58  ;;  %6327 = vmatpush.msra.mxu3 %v5662_v53  ;;  %v5728_v60 = vld [vmem:[%s13376_s7 + $0xba8] sm:$0xff]  ;;  %v5695_v58 = vld [vmem:[%s13376_s7 + $0xaa0] sm:$0xff] }
 0x884   : > { %6268 = vmatpush.msra.mxu0 %v5613_v50  ;;  %6288 = vmatpush.msra.mxu1 %v5629_v3  ;;  %v5711_v53 = vld [vmem:[%s13376_s7 + $0xb20] sm:$0xff]  ;;  %v5678_v3 = vld [vmem:[%s13376_s7 + $0xa18] sm:$0xff] }
 0x885   : > { %6308 = vmatpush.msra.mxu2 %v5645_v38  ;;  %6328 = vmatpush.msra.mxu3 %v5661_v62  ;;  %v5727_v50 = vld [vmem:[%s13376_s7 + $0xba0] sm:$0xff]  ;;  %v5694_v38 = vld [vmem:[%s13376_s7 + $0xa98] sm:$0xff] }
 0x886   : > { %6269 = vmatpush.msra.mxu0 %v5612_v30  ;;  %6289 = vmatpush.msra.mxu1 %v5628_v45  ;;  %v5710_v62 = vld [vmem:[%s13376_s7 + $0xb18] sm:$0xff]  ;;  %v5677_v45 = vld [vmem:[%s13376_s7 + $0xa10] sm:$0xff] }
 0x887   : > { %6309 = vmatpush.msra.mxu2 %v5644_v23  ;;  %6329 = vmatpush.msra.mxu3 %v5660_v43  ;;  %v5726_v30 = vld [vmem:[%s13376_s7 + $0xb98] sm:$0xff]  ;;  %v5693_v23 = vld [vmem:[%s13376_s7 + $0xa90] sm:$0xff] }
 0x888   : > { %6270 = vmatpush.msra.mxu0 %v5611_v4  ;;  %6290 = vmatpush.msra.mxu1 %v5627_v44  ;;  %v5709_v43 = vld [vmem:[%s13376_s7 + $0xb10] sm:$0xff]  ;;  %v5676_v44 = vld [vmem:[%s13376_s7 + $0xa08] sm:$0xff] }
 0x889   : > { %6310 = vmatpush.msra.mxu2 %v5643_v22  ;;  %6330 = vmatpush.msra.mxu3 %v5659_v18  ;;  %v5725_v4 = vld [vmem:[%s13376_s7 + $0xb90] sm:$0xff]  ;;  %v5692_v22 = vld [vmem:[%s13376_s7 + $0xa88] sm:$0xff] }
 0x88a   : > { %6271 = vmatmul.f32.vlgmr.msra.gmra.mxu0 %v5887_v47  ;;  %6311 = vmatmul.f32.vlgmr.msra.gmra.mxu2 %v5889_v15  ;;  %v5708_v18 = vld [vmem:[%s13376_s7 + $0xb08] sm:$0xff]  ;;  %v5675_v15 = vld [vmem:[%s13376_s7 + $0xa00] sm:$0xff] }
 0x88b   : > { %6335 = vmatpush.msrb.mxu0 %v5690_v6  ;;  %6355 = vmatpush.msrb.mxu1 %v5706_v42  ;;  %v5724_v47 = vld [vmem:[%s13376_s7 + $0xb88] sm:$0xff]  ;;  %v5691_v6 = vld [vmem:[%s13376_s7 + $0xa80] sm:$0xff] }
 0x88c   : > { %6375 = vmatpush.msrb.mxu2 %v5722_v32  ;;  %6395 = vmatpush.msrb.mxu3 %v5738_v19  ;;  %v5707_v42 = vld [vmem:[%s13376_s7 + $0xb00] sm:$0xff]  ;;  %v5891_v19 = vperm.slane %v12700_v27, 4 }
 0x88d   : > { %6291 = vmatmul.f32.vlgmr.msra.gmra.mxu1 %v5888_v46  ;;  %6331 = vmatmul.f32.vlgmr.msra.gmra.mxu3 %v5890_v61  ;;  %v5723_v32 = vld [vmem:[%s13376_s7 + $0xb80] sm:$0xff]  ;;  %v5892_v46 = vperm.slane %v12700_v27, 5  ;;  %v5893_v61 = vperm.slane %v12700_v27, 6 }
 0x88e   : > { %6336 = vmatpush.msrb.mxu0 %v5689_v26  ;;  %6356 = vmatpush.msrb.mxu1 %v5705_v28  ;;  %v5894_v26 = vperm.slane %v12700_v27, 7  ;;  %v5754_v28 = vld [vmem:[%s13376_s7 + $0xc78] sm:$0xff] }
 0x88f   : > { %6376 = vmatpush.msrb.mxu2 %v5721_v13  ;;  %6396 = vmatpush.msrb.mxu3 %v5737_v7  ;;  %v5770_v13 = vld [vmem:[%s13376_s7 + $0xcf8] sm:$0xff] }
 0x890   : > { %6337 = vmatpush.msrb.mxu0 %v5688_v1  ;;  %6357 = vmatpush.msrb.mxu1 %v5704_v0  ;;  %v5786_v7 = vld [vmem:[%s13376_s7 + $0xd78] sm:$0xff]  ;;  %v5753_v1 = vld [vmem:[%s13376_s7 + $0xc70] sm:$0xff] }
 0x891   : > { %6377 = vmatpush.msrb.mxu2 %v5720_v29  ;;  %6397 = vmatpush.msrb.mxu3 %v5736_v56  ;;  %v5802_v27 = vld [vmem:[%s13376_s7 + $0xdf8] sm:$0xff]  ;;  %v5769_v0 = vld [vmem:[%s13376_s7 + $0xcf0] sm:$0xff] }
 0x892   : > { %6338 = vmatpush.msrb.mxu0 %v5687_v39  ;;  %6358 = vmatpush.msrb.mxu1 %v5703_v63  ;;  %v5785_v29 = vld [vmem:[%s13376_s7 + $0xd70] sm:$0xff]  ;;  %v5752_v39 = vld [vmem:[%s13376_s7 + $0xc68] sm:$0xff] }
 0x893   : > { %6378 = vmatpush.msrb.mxu2 %v5719_v40  ;;  %6398 = vmatpush.msrb.mxu3 %v5735_v31  ;;  %v5801_v56 = vld [vmem:[%s13376_s7 + $0xdf0] sm:$0xff]  ;;  %v5768_v63 = vld [vmem:[%s13376_s7 + $0xce8] sm:$0xff] }
 0x894   : > { %6339 = vmatpush.msrb.mxu0 %v5686_v16  ;;  %6359 = vmatpush.msrb.mxu1 %v5702_v55  ;;  %v5784_v40 = vld [vmem:[%s13376_s7 + $0xd68] sm:$0xff]  ;;  %v5751_v16 = vld [vmem:[%s13376_s7 + $0xc60] sm:$0xff] }
 0x895   : > { %6379 = vmatpush.msrb.mxu2 %v5718_v10  ;;  %6399 = vmatpush.msrb.mxu3 %v5734_v2  ;;  %v5800_v31 = vld [vmem:[%s13376_s7 + $0xde8] sm:$0xff]  ;;  %v5767_v55 = vld [vmem:[%s13376_s7 + $0xce0] sm:$0xff] }
 0x896   : > { %6340 = vmatpush.msrb.mxu0 %v5685_v20  ;;  %6360 = vmatpush.msrb.mxu1 %v5701_v12  ;;  %v5783_v10 = vld [vmem:[%s13376_s7 + $0xd60] sm:$0xff]  ;;  %v5750_v20 = vld [vmem:[%s13376_s7 + $0xc58] sm:$0xff] }
 0x897   : > { %6380 = vmatpush.msrb.mxu2 %v5717_v11  ;;  %6400 = vmatpush.msrb.mxu3 %v5733_v21  ;;  %v5799_v2 = vld [vmem:[%s13376_s7 + $0xde0] sm:$0xff]  ;;  %v5766_v12 = vld [vmem:[%s13376_s7 + $0xcd8] sm:$0xff] }
 0x898   : > { %6341 = vmatpush.msrb.mxu0 %v5684_v54  ;;  %6361 = vmatpush.msrb.mxu1 %v5700_v36  ;;  %v5782_v11 = vld [vmem:[%s13376_s7 + $0xd58] sm:$0xff]  ;;  %v5749_v54 = vld [vmem:[%s13376_s7 + $0xc50] sm:$0xff] }
 0x899   : > { %6381 = vmatpush.msrb.mxu2 %v5716_v8  ;;  %6401 = vmatpush.msrb.mxu3 %v5732_v49  ;;  %v5798_v21 = vld [vmem:[%s13376_s7 + $0xdd8] sm:$0xff]  ;;  %v5765_v36 = vld [vmem:[%s13376_s7 + $0xcd0] sm:$0xff] }
 0x89a   : > { %6342 = vmatpush.msrb.mxu0 %v5683_v14  ;;  %6362 = vmatpush.msrb.mxu1 %v5699_v35  ;;  %v5781_v8 = vld [vmem:[%s13376_s7 + $0xd50] sm:$0xff]  ;;  %v5748_v14 = vld [vmem:[%s13376_s7 + $0xc48] sm:$0xff] }
 0x89b   : > { %6382 = vmatpush.msrb.mxu2 %v5715_v48  ;;  %6402 = vmatpush.msrb.mxu3 %v5731_v24  ;;  %v5797_v49 = vld [vmem:[%s13376_s7 + $0xdd0] sm:$0xff]  ;;  %v5764_v35 = vld [vmem:[%s13376_s7 + $0xcc8] sm:$0xff] }
 0x89c   : > { %6343 = vmatpush.msrb.mxu0 %v5682_v33  ;;  %6363 = vmatpush.msrb.mxu1 %v5698_v59  ;;  %v5780_v48 = vld [vmem:[%s13376_s7 + $0xd48] sm:$0xff]  ;;  %v5747_v33 = vld [vmem:[%s13376_s7 + $0xc40] sm:$0xff] }
 0x89d   : > { %6383 = vmatpush.msrb.mxu2 %v5714_v9  ;;  %6403 = vmatpush.msrb.mxu3 %v5730_v41  ;;  %v5796_v24 = vld [vmem:[%s13376_s7 + $0xdc8] sm:$0xff]  ;;  %v5763_v59 = vld [vmem:[%s13376_s7 + $0xcc0] sm:$0xff] }
 0x89e   : > { %6344 = vmatpush.msrb.mxu0 %v5681_v57  ;;  %6364 = vmatpush.msrb.mxu1 %v5697_v37  ;;  %v5779_v9 = vld [vmem:[%s13376_s7 + $0xd40] sm:$0xff]  ;;  %v5746_v57 = vld [vmem:[%s13376_s7 + $0xc38] sm:$0xff] }
 0x89f   : > { %6384 = vmatpush.msrb.mxu2 %v5713_v52  ;;  %6404 = vmatpush.msrb.mxu3 %v5729_v5  ;;  %v5795_v41 = vld [vmem:[%s13376_s7 + $0xdc0] sm:$0xff]  ;;  %v5762_v37 = vld [vmem:[%s13376_s7 + $0xcb8] sm:$0xff] }
 0x8a0   : > { %6345 = vmatpush.msrb.mxu0 %v5680_v51  ;;  %6365 = vmatpush.msrb.mxu1 %v5696_v17  ;;  %v5778_v52 = vld [vmem:[%s13376_s7 + $0xd38] sm:$0xff]  ;;  %v5745_v51 = vld [vmem:[%s13376_s7 + $0xc30] sm:$0xff] }
 0x8a1   : > { %6385 = vmatpush.msrb.mxu2 %v5712_v34  ;;  %6405 = vmatpush.msrb.mxu3 %v5728_v60  ;;  %v5794_v5 = vld [vmem:[%s13376_s7 + $0xdb8] sm:$0xff]  ;;  %v5761_v17 = vld [vmem:[%s13376_s7 + $0xcb0] sm:$0xff] }
 0x8a2   : > { %6346 = vmatpush.msrb.mxu0 %v5679_v25  ;;  %6366 = vmatpush.msrb.mxu1 %v5695_v58  ;;  %v5777_v34 = vld [vmem:[%s13376_s7 + $0xd30] sm:$0xff]  ;;  %v5744_v25 = vld [vmem:[%s13376_s7 + $0xc28] sm:$0xff] }
 0x8a3   : > { %6386 = vmatpush.msrb.mxu2 %v5711_v53  ;;  %6406 = vmatpush.msrb.mxu3 %v5727_v50  ;;  %v5793_v60 = vld [vmem:[%s13376_s7 + $0xdb0] sm:$0xff]  ;;  %v5760_v58 = vld [vmem:[%s13376_s7 + $0xca8] sm:$0xff] }
 0x8a4   : > { %6347 = vmatpush.msrb.mxu0 %v5678_v3  ;;  %6367 = vmatpush.msrb.mxu1 %v5694_v38  ;;  %v5776_v53 = vld [vmem:[%s13376_s7 + $0xd28] sm:$0xff]  ;;  %v5743_v3 = vld [vmem:[%s13376_s7 + $0xc20] sm:$0xff] }
 0x8a5   : > { %6387 = vmatpush.msrb.mxu2 %v5710_v62  ;;  %6407 = vmatpush.msrb.mxu3 %v5726_v30  ;;  %v5792_v50 = vld [vmem:[%s13376_s7 + $0xda8] sm:$0xff]  ;;  %v5759_v38 = vld [vmem:[%s13376_s7 + $0xca0] sm:$0xff] }
 0x8a6   : > { %6348 = vmatpush.msrb.mxu0 %v5677_v45  ;;  %6368 = vmatpush.msrb.mxu1 %v5693_v23  ;;  %v5775_v62 = vld [vmem:[%s13376_s7 + $0xd20] sm:$0xff]  ;;  %v5742_v45 = vld [vmem:[%s13376_s7 + $0xc18] sm:$0xff] }
 0x8a7   : > { %6388 = vmatpush.msrb.mxu2 %v5709_v43  ;;  %6408 = vmatpush.msrb.mxu3 %v5725_v4  ;;  %v5791_v30 = vld [vmem:[%s13376_s7 + $0xda0] sm:$0xff]  ;;  %v5758_v23 = vld [vmem:[%s13376_s7 + $0xc98] sm:$0xff] }
 0x8a8   : > { %6349 = vmatpush.msrb.mxu0 %v5676_v44  ;;  %6369 = vmatpush.msrb.mxu1 %v5692_v22  ;;  %v5774_v43 = vld [vmem:[%s13376_s7 + $0xd18] sm:$0xff]  ;;  %v5741_v44 = vld [vmem:[%s13376_s7 + $0xc10] sm:$0xff] }
 0x8a9   : > { %6389 = vmatpush.msrb.mxu2 %v5708_v18  ;;  %6409 = vmatpush.msrb.mxu3 %v5724_v47  ;;  %v5790_v4 = vld [vmem:[%s13376_s7 + $0xd98] sm:$0xff]  ;;  %v5757_v22 = vld [vmem:[%s13376_s7 + $0xc90] sm:$0xff] }
 0x8aa   : > { %6350 = vmatpush.msrb.mxu0 %v5675_v15  ;;  %6370 = vmatpush.msrb.mxu1 %v5691_v6  ;;  %v5773_v18 = vld [vmem:[%s13376_s7 + $0xd10] sm:$0xff]  ;;  %v5740_v15 = vld [vmem:[%s13376_s7 + $0xc08] sm:$0xff] }
 0x8ab   : > { %6390 = vmatpush.msrb.mxu2 %v5707_v42  ;;  %6410 = vmatpush.msrb.mxu3 %v5723_v32  ;;  %v5789_v47 = vld [vmem:[%s13376_s7 + $0xd90] sm:$0xff]  ;;  %v5756_v6 = vld [vmem:[%s13376_s7 + $0xc88] sm:$0xff] }
 0x8ac   : > { %6351 = vmatmul.f32.vlgmr.msrb.gmra.mxu0 %v5891_v19  ;;  %6371 = vmatmul.f32.vlgmr.msrb.gmra.mxu1 %v5892_v46  ;;  %v5772_v42 = vld [vmem:[%s13376_s7 + $0xd08] sm:$0xff]  ;;  %v5739_v19 = vld [vmem:[%s13376_s7 + $0xc00] sm:$0xff] }
 0x8ad   : > { %6391 = vmatmul.f32.vlgmr.msrb.gmra.mxu2 %v5893_v61  ;;  %6411 = vmatmul.f32.vlgmr.msrb.gmra.mxu3 %v5894_v26  ;;  %v5788_v32 = vld [vmem:[%s13376_s7 + $0xd88] sm:$0xff]  ;;  %v5755_v46 = vld [vmem:[%s13376_s7 + $0xc80] sm:$0xff]  ;;  %v13106_v61 = vld [vmem:[#allocation4 + $0x18] sm:$0xff] }
 0x8ae   : > { %6415 = vmatpush.msra.mxu0 %v5754_v28  ;;  %6435 = vmatpush.msra.mxu1 %v5770_v13  ;;  %v5771_v26 = vld [vmem:[%s13376_s7 + $0xd00] sm:$0xff]  ;;  %v5895_v13 = vperm.slane %v13106_v61, 0 }
 0x8af   : > { %6455 = vmatpush.msra.mxu2 %v5786_v7  ;;  %6475 = vmatpush.msra.mxu3 %v5802_v27  ;;  %v5787_v28 = vld [vmem:[%s13376_s7 + $0xd80] sm:$0xff]  ;;  %v5896_v7 = vperm.slane %v13106_v61, 1  ;;  %v5897_v27 = vperm.slane %v13106_v61, 2 }
 0x8b0   : > { %6416 = vmatpush.msra.mxu0 %v5753_v1  ;;  %6436 = vmatpush.msra.mxu1 %v5769_v0  ;;  %v5898_v1 = vperm.slane %v13106_v61, 3  ;;  %v5818_v0 = vld [vmem:[%s13376_s7 + $0xe78] sm:$0xff] }
 0x8b1   : > { %6456 = vmatpush.msra.mxu2 %v5785_v29  ;;  %6476 = vmatpush.msra.mxu3 %v5801_v56  ;;  %v5834_v29 = vld [vmem:[%s13376_s7 + $0xef8] sm:$0xff] }
 0x8b2   : > { %6417 = vmatpush.msra.mxu0 %v5752_v39  ;;  %6437 = vmatpush.msra.mxu1 %v5768_v63  ;;  %v5850_v56 = vld [vmem:[%s13376_s7 + $0xf78] sm:$0xff]  ;;  %v5817_v63 = vld [vmem:[%s13376_s7 + $0xe70] sm:$0xff] }
 0x8b3   : > { %6457 = vmatpush.msra.mxu2 %v5784_v40  ;;  %6477 = vmatpush.msra.mxu3 %v5800_v31  ;;  %v5866_v39 = vld [vmem:[%s13376_s7 + $0xff8] sm:$0xff]  ;;  %v5833_v40 = vld [vmem:[%s13376_s7 + $0xef0] sm:$0xff] }
 0x8b4   : > { %6418 = vmatpush.msra.mxu0 %v5751_v16  ;;  %6438 = vmatpush.msra.mxu1 %v5767_v55  ;;  %v5849_v31 = vld [vmem:[%s13376_s7 + $0xf70] sm:$0xff]  ;;  %v5816_v55 = vld [vmem:[%s13376_s7 + $0xe68] sm:$0xff] }
 0x8b5   : > { %6458 = vmatpush.msra.mxu2 %v5783_v10  ;;  %6478 = vmatpush.msra.mxu3 %v5799_v2  ;;  %v5865_v16 = vld [vmem:[%s13376_s7 + $0xff0] sm:$0xff]  ;;  %v5832_v10 = vld [vmem:[%s13376_s7 + $0xee8] sm:$0xff] }
 0x8b6   : > { %6419 = vmatpush.msra.mxu0 %v5750_v20  ;;  %6439 = vmatpush.msra.mxu1 %v5766_v12  ;;  %v5848_v2 = vld [vmem:[%s13376_s7 + $0xf68] sm:$0xff]  ;;  %v5815_v12 = vld [vmem:[%s13376_s7 + $0xe60] sm:$0xff] }
 0x8b7   : > { %6459 = vmatpush.msra.mxu2 %v5782_v11  ;;  %6479 = vmatpush.msra.mxu3 %v5798_v21  ;;  %v5864_v20 = vld [vmem:[%s13376_s7 + $0xfe8] sm:$0xff]  ;;  %v5831_v11 = vld [vmem:[%s13376_s7 + $0xee0] sm:$0xff] }
 0x8b8   : > { %6420 = vmatpush.msra.mxu0 %v5749_v54  ;;  %6440 = vmatpush.msra.mxu1 %v5765_v36  ;;  %v5847_v21 = vld [vmem:[%s13376_s7 + $0xf60] sm:$0xff]  ;;  %v5814_v36 = vld [vmem:[%s13376_s7 + $0xe58] sm:$0xff] }
 0x8b9   : > { %6460 = vmatpush.msra.mxu2 %v5781_v8  ;;  %6480 = vmatpush.msra.mxu3 %v5797_v49  ;;  %v5863_v54 = vld [vmem:[%s13376_s7 + $0xfe0] sm:$0xff]  ;;  %v5830_v8 = vld [vmem:[%s13376_s7 + $0xed8] sm:$0xff] }
 0x8ba   : > { %6421 = vmatpush.msra.mxu0 %v5748_v14  ;;  %6441 = vmatpush.msra.mxu1 %v5764_v35  ;;  %v5846_v49 = vld [vmem:[%s13376_s7 + $0xf58] sm:$0xff]  ;;  %v5813_v35 = vld [vmem:[%s13376_s7 + $0xe50] sm:$0xff] }
 0x8bb   : > { %6461 = vmatpush.msra.mxu2 %v5780_v48  ;;  %6481 = vmatpush.msra.mxu3 %v5796_v24  ;;  %v5862_v14 = vld [vmem:[%s13376_s7 + $0xfd8] sm:$0xff]  ;;  %v5829_v48 = vld [vmem:[%s13376_s7 + $0xed0] sm:$0xff] }
 0x8bc   : > { %6422 = vmatpush.msra.mxu0 %v5747_v33  ;;  %6442 = vmatpush.msra.mxu1 %v5763_v59  ;;  %v5845_v24 = vld [vmem:[%s13376_s7 + $0xf50] sm:$0xff]  ;;  %v5812_v59 = vld [vmem:[%s13376_s7 + $0xe48] sm:$0xff] }
 0x8bd   : > { %6462 = vmatpush.msra.mxu2 %v5779_v9  ;;  %6482 = vmatpush.msra.mxu3 %v5795_v41  ;;  %v5861_v33 = vld [vmem:[%s13376_s7 + $0xfd0] sm:$0xff]  ;;  %v5828_v9 = vld [vmem:[%s13376_s7 + $0xec8] sm:$0xff] }
 0x8be   : > { %6423 = vmatpush.msra.mxu0 %v5746_v57  ;;  %6443 = vmatpush.msra.mxu1 %v5762_v37  ;;  %v5844_v41 = vld [vmem:[%s13376_s7 + $0xf48] sm:$0xff]  ;;  %v5811_v37 = vld [vmem:[%s13376_s7 + $0xe40] sm:$0xff] }
 0x8bf   : > { %6463 = vmatpush.msra.mxu2 %v5778_v52  ;;  %6483 = vmatpush.msra.mxu3 %v5794_v5  ;;  %v5860_v57 = vld [vmem:[%s13376_s7 + $0xfc8] sm:$0xff]  ;;  %v5827_v52 = vld [vmem:[%s13376_s7 + $0xec0] sm:$0xff] }
 0x8c0   : > { %6424 = vmatpush.msra.mxu0 %v5745_v51  ;;  %6444 = vmatpush.msra.mxu1 %v5761_v17  ;;  %v5843_v5 = vld [vmem:[%s13376_s7 + $0xf40] sm:$0xff]  ;;  %v5810_v17 = vld [vmem:[%s13376_s7 + $0xe38] sm:$0xff] }
 0x8c1   : > { %6464 = vmatpush.msra.mxu2 %v5777_v34  ;;  %6484 = vmatpush.msra.mxu3 %v5793_v60  ;;  %v5859_v51 = vld [vmem:[%s13376_s7 + $0xfc0] sm:$0xff]  ;;  %v5826_v34 = vld [vmem:[%s13376_s7 + $0xeb8] sm:$0xff] }
 0x8c2   : > { %6425 = vmatpush.msra.mxu0 %v5744_v25  ;;  %6445 = vmatpush.msra.mxu1 %v5760_v58  ;;  %v5842_v60 = vld [vmem:[%s13376_s7 + $0xf38] sm:$0xff]  ;;  %v5809_v58 = vld [vmem:[%s13376_s7 + $0xe30] sm:$0xff] }
 0x8c3   : > { %6465 = vmatpush.msra.mxu2 %v5776_v53  ;;  %6485 = vmatpush.msra.mxu3 %v5792_v50  ;;  %v5858_v25 = vld [vmem:[%s13376_s7 + $0xfb8] sm:$0xff]  ;;  %v5825_v53 = vld [vmem:[%s13376_s7 + $0xeb0] sm:$0xff] }
 0x8c4   : > { %6426 = vmatpush.msra.mxu0 %v5743_v3  ;;  %6446 = vmatpush.msra.mxu1 %v5759_v38  ;;  %v5841_v50 = vld [vmem:[%s13376_s7 + $0xf30] sm:$0xff]  ;;  %v5808_v38 = vld [vmem:[%s13376_s7 + $0xe28] sm:$0xff] }
 0x8c5   : > { %6466 = vmatpush.msra.mxu2 %v5775_v62  ;;  %6486 = vmatpush.msra.mxu3 %v5791_v30  ;;  %v5857_v3 = vld [vmem:[%s13376_s7 + $0xfb0] sm:$0xff]  ;;  %v5824_v62 = vld [vmem:[%s13376_s7 + $0xea8] sm:$0xff] }
 0x8c6   : > { %6427 = vmatpush.msra.mxu0 %v5742_v45  ;;  %6447 = vmatpush.msra.mxu1 %v5758_v23  ;;  %v5840_v30 = vld [vmem:[%s13376_s7 + $0xf28] sm:$0xff]  ;;  %v5807_v23 = vld [vmem:[%s13376_s7 + $0xe20] sm:$0xff] }
 0x8c7   : > { %6467 = vmatpush.msra.mxu2 %v5774_v43  ;;  %6487 = vmatpush.msra.mxu3 %v5790_v4  ;;  %v5856_v45 = vld [vmem:[%s13376_s7 + $0xfa8] sm:$0xff]  ;;  %v5823_v43 = vld [vmem:[%s13376_s7 + $0xea0] sm:$0xff] }
 0x8c8   : > { %6428 = vmatpush.msra.mxu0 %v5741_v44  ;;  %6448 = vmatpush.msra.mxu1 %v5757_v22  ;;  %v5839_v4 = vld [vmem:[%s13376_s7 + $0xf20] sm:$0xff]  ;;  %v5806_v22 = vld [vmem:[%s13376_s7 + $0xe18] sm:$0xff] }
 0x8c9   : > { %6468 = vmatpush.msra.mxu2 %v5773_v18  ;;  %6488 = vmatpush.msra.mxu3 %v5789_v47  ;;  %v5855_v44 = vld [vmem:[%s13376_s7 + $0xfa0] sm:$0xff]  ;;  %v5822_v18 = vld [vmem:[%s13376_s7 + $0xe98] sm:$0xff] }
 0x8ca   : > { %6429 = vmatpush.msra.mxu0 %v5740_v15  ;;  %6449 = vmatpush.msra.mxu1 %v5756_v6  ;;  %v5838_v47 = vld [vmem:[%s13376_s7 + $0xf18] sm:$0xff]  ;;  %v5805_v6 = vld [vmem:[%s13376_s7 + $0xe10] sm:$0xff] }
 0x8cb   : > { %6469 = vmatpush.msra.mxu2 %v5772_v42  ;;  %6489 = vmatpush.msra.mxu3 %v5788_v32  ;;  %v5854_v15 = vld [vmem:[%s13376_s7 + $0xf98] sm:$0xff]  ;;  %v5821_v42 = vld [vmem:[%s13376_s7 + $0xe90] sm:$0xff] }
 0x8cc   : > { %6430 = vmatpush.msra.mxu0 %v5739_v19  ;;  %6450 = vmatpush.msra.mxu1 %v5755_v46  ;;  %v5837_v32 = vld [vmem:[%s13376_s7 + $0xf10] sm:$0xff]  ;;  %v5804_v46 = vld [vmem:[%s13376_s7 + $0xe08] sm:$0xff] }
 0x8cd   : > { %6470 = vmatpush.msra.mxu2 %v5771_v26  ;;  %6490 = vmatpush.msra.mxu3 %v5787_v28  ;;  %v5853_v19 = vld [vmem:[%s13376_s7 + $0xf90] sm:$0xff]  ;;  %v5820_v26 = vld [vmem:[%s13376_s7 + $0xe88] sm:$0xff] }
 0x8ce   : > { %6431 = vmatmul.f32.vlgmr.msra.gmra.mxu0 %v5895_v13  ;;  %6451 = vmatmul.f32.vlgmr.msra.gmra.mxu1 %v5896_v7  ;;  %v5836_v28 = vld [vmem:[%s13376_s7 + $0xf08] sm:$0xff]  ;;  %v5803_v7 = vld [vmem:[%s13376_s7 + $0xe00] sm:$0xff] }
 0x8cf   : > { %6471 = vmatmul.f32.vlgmr.msra.gmra.mxu2 %v5897_v27  ;;  %6491 = vmatmul.f32.vlgmr.msra.gmra.mxu3 %v5898_v1  ;;  %v5852_v13 = vld [vmem:[%s13376_s7 + $0xf88] sm:$0xff]  ;;  %v5819_v27 = vld [vmem:[%s13376_s7 + $0xe80] sm:$0xff] }
 0x8d0   : > { %6495 = vmatpush.msrb.mxu0 %v5818_v0  ;;  %6515 = vmatpush.msrb.mxu1 %v5834_v29  ;;  %v5835_v1 = vld [vmem:[%s13376_s7 + $0xf00] sm:$0xff]  ;;  %v5899_v29 = vperm.slane %v13106_v61, 4 }
 0x8d1   : > { %6535 = vmatpush.msrb.mxu2 %v5850_v56  ;;  %6555 = vmatpush.msrb.mxu3 %v5866_v39  ;;  %v5851_v0 = vld [vmem:[%s13376_s7 + $0xf80] sm:$0xff]  ;;  %v5900_v56 = vperm.slane %v13106_v61, 5  ;;  %v5901_v39 = vperm.slane %v13106_v61, 6 }
 0x8d2   : > { %6496 = vmatpush.msrb.mxu0 %v5817_v63  ;;  %6516 = vmatpush.msrb.mxu1 %v5833_v40  ;;  %v5902_v63 = vperm.slane %v13106_v61, 7  ;;  %v5952_v40 = vpop.f32.mrf.mxu0 }
 0x8d3   : > { %6536 = vmatpush.msrb.mxu2 %v5849_v31  ;;  %6556 = vmatpush.msrb.mxu3 %v5865_v16  ;;  %v5972_v31 = vpop.f32.mrf.mxu1  ;;  %v5992_v16 = vpop.f32.mrf.mxu2 }
 0x8d4   : > { %6497 = vmatpush.msrb.mxu0 %v5816_v55  ;;  %6517 = vmatpush.msrb.mxu1 %v5832_v10  ;;  %v5973_v55 = vadd.f32 %v5972_v31, %v5952_v40 }
 0x8d5   : > { %6537 = vmatpush.msrb.mxu2 %v5848_v2  ;;  %6557 = vmatpush.msrb.mxu3 %v5864_v20  ;;  %v6012_v2 = vpop.f32.mrf.mxu3 }
 0x8d6   : > { %6498 = vmatpush.msrb.mxu0 %v5815_v12  ;;  %6518 = vmatpush.msrb.mxu1 %v5831_v11  ;;  %v5993_v10 = vadd.f32 %v5992_v16, %v5973_v55  ;;  %v5252_v11 = vpop.xlane.xlu2 %5251 }
 0x8d7   : > { %6538 = vmatpush.msrb.mxu2 %v5847_v21  ;;  %6558 = vmatpush.msrb.mxu3 %v5863_v54 }
 0x8d8   : > { %6499 = vmatpush.msrb.mxu0 %v5814_v36  ;;  %6519 = vmatpush.msrb.mxu1 %v5830_v8  ;;  %v6013_v20 = vadd.f32 %v6012_v2, %v5993_v10 }
 0x8d9   : > { %6539 = vmatpush.msrb.mxu2 %v5846_v49  ;;  %6559 = vmatpush.msrb.mxu3 %v5862_v14 }
 0x8da   : > { %6500 = vmatpush.msrb.mxu0 %v5813_v35  ;;  %6520 = vmatpush.msrb.mxu1 %v5829_v48  ;;  %v6032_v12 = vpop.f32.mrf.mxu0 }
 0x8db   : > { %6540 = vmatpush.msrb.mxu2 %v5845_v24  ;;  %6560 = vmatpush.msrb.mxu3 %v5861_v33  ;;  %v6033_v21 = vadd.f32 %v6032_v12, %v6013_v20  ;;  %v6052_v54 = vpop.f32.mrf.mxu1  ;;  %v6072_v8 = vpop.f32.mrf.mxu2 }
 0x8dc   : > { %6501 = vmatpush.msrb.mxu0 %v5812_v59  ;;  %6521 = vmatpush.msrb.mxu1 %v5828_v9  ;;  %v5256_v59 = vpop.xlane.xlu0 %5255 }
 0x8dd   : > { %6541 = vmatpush.msrb.mxu2 %v5844_v41  ;;  %6561 = vmatpush.msrb.mxu3 %v5860_v57  ;;  %v6053_v36 = vadd.f32 %v6052_v54, %v6033_v21  ;;  %v6092_v61 = vpop.f32.mrf.mxu3 }
 0x8de   : > { %6502 = vmatpush.msrb.mxu0 %v5811_v37  ;;  %6522 = vmatpush.msrb.mxu1 %v5827_v52  ;;  %v5254_v14 = vpop.xlane.xlu2 %5253  ;;  %v5258_v52 = vpop.xlane.xlu1 %5257 }
 0x8df   : > { %6542 = vmatpush.msrb.mxu2 %v5843_v5  ;;  %6562 = vmatpush.msrb.mxu3 %v5859_v51  ;;  %v6073_v49 = vadd.f32 %v6072_v8, %v6053_v36  ;;  %v5259_v24 = vadd.f32 %v5254_v14, %v5252_v11 }
 0x8e0   : > { %6503 = vmatpush.msrb.mxu0 %v5810_v17  ;;  %6523 = vmatpush.msrb.mxu1 %v5826_v34 }
 0x8e1   : > { %6543 = vmatpush.msrb.mxu2 %v5842_v60  ;;  %6563 = vmatpush.msrb.mxu3 %v5858_v25  ;;  %v6093_v48 = vadd.f32 %v6092_v61, %v6073_v49  ;;  %v5260_v57 = vadd.f32 %v5259_v24, %v5256_v59  ;;  %v6576_v59 = vld [vmem:[%s13377_s8] sm:$0x1] }
 0x8e2   : > { %6504 = vmatpush.msrb.mxu0 %v5809_v58  ;;  %6524 = vmatpush.msrb.mxu1 %v5825_v53  ;;  %v6112_v35 = vpop.f32.mrf.mxu0 }
 0x8e3   : > { %6544 = vmatpush.msrb.mxu2 %v5841_v50  ;;  %6564 = vmatpush.msrb.mxu3 %v5857_v3  ;;  %v6113_v33 = vadd.f32 %v6112_v35, %v6093_v48  ;;  %v6132_v9 = vpop.f32.mrf.mxu1  ;;  %v6152_v41 = vpop.f32.mrf.mxu2  ;;  %v5261_v51 = vadd.f32 %v5260_v57, %v5258_v52 }
 0x8e4   : > { %6505 = vmatpush.msrb.mxu0 %v5808_v38  ;;  %6525 = vmatpush.msrb.mxu1 %v5824_v62 }
 0x8e5   : > { %6545 = vmatpush.msrb.mxu2 %v5840_v30  ;;  %6565 = vmatpush.msrb.mxu3 %v5856_v45  ;;  %v6133_v37 = vadd.f32 %v6132_v9, %v6113_v33  ;;  %v6172_v17 = vpop.f32.mrf.mxu3  ;;  %v5262_v25 = vrot.slane %v5261_v51, 4 }
 0x8e6   : > { %6506 = vmatpush.msrb.mxu0 %v5807_v23  ;;  %6526 = vmatpush.msrb.mxu1 %v5823_v43 }
 0x8e7   : > { %6546 = vmatpush.msrb.mxu2 %v5839_v4  ;;  %6566 = vmatpush.msrb.mxu3 %v5855_v44  ;;  %v6153_v5 = vadd.f32 %v6152_v41, %v6133_v37  ;;  %v5263_v3 = vadd.f32 %v5262_v25, %v5261_v51 }
 0x8e8   : > { %6507 = vmatpush.msrb.mxu0 %v5806_v22  ;;  %6527 = vmatpush.msrb.mxu1 %v5822_v18 }
 0x8e9   : > { %6547 = vmatpush.msrb.mxu2 %v5838_v47  ;;  %6567 = vmatpush.msrb.mxu3 %v5854_v15  ;;  %v6173_v60 = vadd.f32 %v6172_v17, %v6153_v5  ;;  %v5264_v30 = vrot.slane %v5263_v3, 2 }
 0x8ea   : > { %6508 = vmatpush.msrb.mxu0 %v5805_v6  ;;  %6528 = vmatpush.msrb.mxu1 %v5821_v42  ;;  %v6192_v34 = vpop.f32.mrf.mxu0 }
 0x8eb   : > { %6548 = vmatpush.msrb.mxu2 %v5837_v32  ;;  %6568 = vmatpush.msrb.mxu3 %v5853_v19  ;;  %v6193_v58 = vadd.f32 %v6192_v34, %v6173_v60  ;;  %v6212_v53 = vpop.f32.mrf.mxu1  ;;  %v5265_v4 = vadd.f32 %v5264_v30, %v5263_v3 }
 0x8ec   : > { %6509 = vmatpush.msrb.mxu0 %v5804_v46  ;;  %6529 = vmatpush.msrb.mxu1 %v5820_v26  ;;  %v6232_v50 = vpop.f32.mrf.mxu2 }
 0x8ed   : > { %6549 = vmatpush.msrb.mxu2 %v5836_v28  ;;  %6569 = vmatpush.msrb.mxu3 %v5852_v13  ;;  %v6213_v38 = vadd.f32 %v6212_v53, %v6193_v58  ;;  %v6252_v45 = vpop.f32.mrf.mxu3  ;;  %v5266_v47 = vrot.slane %v5265_v4, 1 }
 0x8ee   : > { %6510 = vmatpush.msrb.mxu0 %v5803_v7  ;;  %6530 = vmatpush.msrb.mxu1 %v5819_v27 }
 0x8ef   : > { %6550 = vmatpush.msrb.mxu2 %v5835_v1  ;;  %6570 = vmatpush.msrb.mxu3 %v5851_v0  ;;  %v6233_v62 = vadd.f32 %v6232_v50, %v6213_v38  ;;  %v5267_v32 = vadd.f32 %v5266_v47, %v5265_v4 }
 0x8f0   : > { %6511 = vmatmul.f32.vlgmr.msrb.gmra.mxu0 %v5899_v29  ;;  %6531 = vmatmul.f32.vlgmr.msrb.gmra.mxu1 %v5900_v56 }
 0x8f1   : > { %6551 = vmatmul.f32.vlgmr.msrb.gmra.mxu2 %v5901_v39  ;;  %6571 = vmatmul.f32.vlgmr.msrb.gmra.mxu3 %v5902_v63  ;;  %v6253_v43 = vadd.f32 %v6252_v45, %v6233_v62  ;;  %v5268_v26 = vmax.f32 %v5267_v32, 1e-24 }
 0x8f3   : > { %8416 = vrsqrt.f32 %v5268_v26  ;;  %vm5275_vm4 = vweird.f32 %v5268_v26 }
 0x8f9   : > { %v8417_v56 = vpop.eup %8416 }
 0x8fa   : > { %v5270_v40 = vmul.f32 %v8417_v56, %v5268_v26  ;;  %vm5276_vm3 = vweird.f32 %v8417_v56 }
 0x8fb   : > { %vm5277_vm5 = vmor %vm5275_vm4, %vm5276_vm3 }
 0x8fc   : > { %v5271_v10 = vmul.f32 %v8417_v56, %v5270_v40 }
 0x8fe   : > { %v5272_v12 = vmul.f32 0.5, %v5271_v10 }
 0x900   : > { %v5273_v36 = vsub.f32 1.5, %v5272_v12 }
 0x902   : > { %v5274_v61 = vmul.f32 %v8417_v56, %v5273_v36 }
 0x904   : > { %v5278_v33 = vsel %vm5277_vm5, %v8417_v56, %v5274_v61 }
 0x907   : > { %v6272_v23 = vpop.f32.mrf.mxu0 }
 0x908   : > { %v6273_v44 = vadd.f32 %v6272_v23, %v6253_v43 }
 0x90a   : > { %v6292_v22 = vpop.f32.mrf.mxu1 }
 0x90b   : > { %v6293_v15 = vadd.f32 %v6292_v22, %v6273_v44 }
 0x90d   : > { %v6312_v18 = vpop.f32.mrf.mxu2 }
 0x90e   : > { %v6313_v6 = vadd.f32 %v6312_v18, %v6293_v15 }
 0x910   : > { %v6332_v42 = vpop.f32.mrf.mxu3 }
 0x911   : > { %v6333_v46 = vadd.f32 %v6332_v42, %v6313_v6 }
 0x929   : > { %v6352_v19 = vpop.f32.mrf.mxu0  ;;  %v6372_v13 = vpop.f32.mrf.mxu1 }
 0x92a   : > { %v6353_v28 = vadd.f32 %v6352_v19, %v6333_v46 }
 0x92c   : > { %v6373_v27 = vadd.f32 %v6372_v13, %v6353_v28 }
 0x930   : > { %v6392_v7 = vpop.f32.mrf.mxu2  ;;  %v6412_v0 = vpop.f32.mrf.mxu3 }
 0x931   : > { %v6393_v1 = vadd.f32 %v6392_v7, %v6373_v27 }
 0x933   : > { %v6413_v39 = vadd.f32 %v6412_v0, %v6393_v1 }
 0x94b   : > { %v6432_v29 = vpop.f32.mrf.mxu0  ;;  %v6452_v31 = vpop.f32.mrf.mxu1 }
 0x94c   : > { %v6433_v63 = vadd.f32 %v6432_v29, %v6413_v39 }
 0x94e   : > { %v6453_v55 = vadd.f32 %v6452_v31, %v6433_v63 }
 0x952   : > { %v6472_v16 = vpop.f32.mrf.mxu2  ;;  %v6492_v20 = vpop.f32.mrf.mxu3 }
 0x953   : > { %v6473_v2 = vadd.f32 %v6472_v16, %v6453_v55 }
 0x955   : > { %v6493_v11 = vadd.f32 %v6492_v20, %v6473_v2 }
 0x96d   : > { %v6512_v21 = vpop.f32.mrf.mxu0  ;;  %v6532_v8 = vpop.f32.mrf.mxu1 }
 0x96e   : > { %v6513_v54 = vadd.f32 %v6512_v21, %v6493_v11 }
 0x970   : > { %v6533_v49 = vadd.f32 %v6532_v8, %v6513_v54 }
 0x974   : > { %v6552_v14 = vpop.f32.mrf.mxu2  ;;  %v6572_v48 = vpop.f32.mrf.mxu3 }
 0x975   : > { %v6553_v35 = vadd.f32 %v6552_v14, %v6533_v49 }
 0x977   : > { %v6573_v24 = vadd.f32 %v6572_v48, %v6553_v35 }
 0x979   : > { %v6575_v9 = vmul.f32 %v6573_v24, %v5278_v33 }
 0x97b   : > { %v6577_v41 = vadd.f32 %v6576_v59, %v6575_v9 }
 0x97d   : > { %6578 = vst [vmem:[%s9206_s24] sm:$0x1] %v6577_v41 }
 0x97e PF: > { %s13929_s22 = sld [smem:[#allocation112_spill]]  ;;  %s6590_s21 = sshll.u32 %s9206_s24, 4  ;;  %s6591_s21 = int_to_ptr.vmem [resolvable:$true] %s6590_s21 }
 0x97f   : > { %s13930_s28 = sand.u32 1, %s8496_s10  }
 0x980   : > { %s6580_s20 = scalar_lea.sflag [#allocation7], %s13930_s28 }
 0x984   : > { %s6588_s0 = scalar_lea.hbm %s13929_s22, %s8516_s15  ;;  %s8438_s25 = scalar_lea.hbm %s13929_s22, 2 }
 0x985   : > { %s6592_s12 = sshll.u32 %s6588_s0, 4  ;;  %s6593_s12 = int_to_ptr.hbm [resolvable:$true] %s6592_s12 }
 0x986   : > { %s8432_s14 = sshra.s32 %s6593_s12, 4  ;;  %s8433_s14 = int_to_ptr.hbm [resolvable:$true] %s8432_s14 }
 0x987   : > { %s8434_s29 = scalar_lea.hbm %s8433_s14, 1  ;;  %p8439_p9 = scmp.lt.s32.totalorder %s8433_s14, %s13929_s22 }
 0x988   : > { %p8435_p5 = scmp.ne.s32.totalorder %s8433_s14, %s8434_s29  ;;  %p8440_p10 = scmp.lt.s32.totalorder %s8438_s25, %s8434_s29 }
 0x98a   : > { %p8436_p6 = pnand %p8435_p5, %p8655_p7  ;;  %p8441_p11 = por %p8440_p10, %p8439_p9 }
 0x98c   : > { %p8437_p8 = pneg %p8436_p6 }
 0x98e   : > { %p8442_p13 = pnand %p8441_p11, %p8437_p8 }
 0x990   : > { %8445 = shalt.err (!%p8442_p13)
}
 0x991   : > { %8281 = dma.vmem_to_hbm [thread:$0]  (%p8655_p7), %s6591_s21, 16, %s6593_s12, %s6580_s20  }
 0x992 PF: > { %s13931_s15 = sld [smem:[#allocation9_spill]]  ;;  %p8287_p0 = scmp.ge.s32.totalorder %s8528_s18, 2 }
 0x994   : > { %p8284_p1 = pnand %p8287_p0, %p8663_p12 }
 0x996   : > { %p8285_p2 = pneg %p8284_p1 }
 0x998   : > { %s6604_s30 = sand.u32 1, %s13931_s15  }
 0x999   : > { %s6605_s0 = scalar_lea.sflag [#allocation7], %s6604_s30 }
 0x99a   : > { %8487 = dma.done.wait (%p8285_p2), %s6605_s0, 16  }
 0x99b   : > { %8489 = vsyncadd (%p8285_p2), %s6605_s0, 4294967280  ;;  %s22_s18 = sadd.s32 1, %s8528_s18   ;;  %s13933_s14 = sld [smem:[#allocation10_spill]] }
 0x99c   : > { %p19_p3 = scmp.ge.s32.totalorder %s22_s18, 6   ;;  %s13934_s15 = sld [smem:[#allocation11_spill]] }
 0x99d   : > { %s13935_s16 = sld [smem:[#allocation12_spill]]  ;;  %s13937_s30 = smov %s8496_s10 }
 0x99e   : > { %s13936_s17 = sld [smem:[#allocation13_spill]]  ;;  %s13938_s10 = smov %s8500_s11 }
 0x99f   : > { %s13939_s11 = smov %s8668_s9  ;;  %s13940_s12 = smov %s8508_s13 }
 0x9a0   : > { %s13941_s13 = smov %s8671_s19  ;;  %21 = sbr.rel (!%p19_p3) target bundleno = 9 (0x9), region = 127 }
 0x9a5   :  { %6610 = vsyncpa [#allocation7], 1 }
 0x9a6   :  { %6612 = vsyncpa [#allocation7 + $0x1], 1 }

</bundles_post_ra>
